<compile_context>
chip_gen: v7x
topology: tpu7x:2x2x1
jax: 0.10.0
libtpu: 0.0.40
codegen_flags: <defaults>
</compile_context>

<pallas_src>
import functools

import jax
import jax.numpy as jnp
from jax.experimental import pallas as pl
from jax.experimental.pallas import tpu as pltpu


def _round_up(x, m):
    return (x + m - 1) // m * m


# ----------------------------------------------------------------------------
# Pallas kernel: fused  y = act(x @ W + b), full-K reduction per grid step.
# Grid = (N_tiles,), all parallel.
# ----------------------------------------------------------------------------
def _linear_kernel(x_ref, w_ref, b_ref, o_ref, *, apply_tanh):
    y = jnp.dot(
        x_ref[...].astype(jnp.bfloat16),   # activations -> bf16 for the MXU
        w_ref[...],                        # bf16 weights streamed from HBM
        preferred_element_type=jnp.float32,
    )
    y = y + b_ref[...]
    if apply_tanh:
        y = jnp.tanh(y)
    o_ref[...] = y.astype(o_ref.dtype)


def linear_pallas(x, w, b, *, apply_tanh):
    """y = act(x @ w + b).

    x: (M, K) f32   (M % 8 == 0, K % 128 == 0)
    w: (K, N) bf16  (N % 128 == 0)
    b: (N,)   f32
    """
    M, K = x.shape
    Kw, N = w.shape
    assert K == Kw and M % 8 == 0 and K % 128 == 0 and N % 128 == 0

    # >= 2 blocks along the parallel N axis (cross-TC sharding on v7x).
    # 512-lane tiles for the wide layers: bf16 weight tile = 2 MB (4 MB
    # double-buffered), 4 pipeline stages per layer.
    if N >= 1024:
        tn = 512
    else:
        tn = max(128, N // 2)
    assert N % tn == 0 and tn % 128 == 0

    kernel = functools.partial(_linear_kernel, apply_tanh=apply_tanh)
    b2d = b.reshape(1, N)

    return pl.pallas_call(
        kernel,
        out_shape=jax.ShapeDtypeStruct((M, N), jnp.float32),
        grid_spec=pltpu.PrefetchScalarGridSpec(
            num_scalar_prefetch=0,
            grid=(N // tn,),
            in_specs=[
                pl.BlockSpec((M, K), lambda j: (0, 0)),    # x: fully resident
                pl.BlockSpec((K, tn), lambda j: (0, j)),   # w: streamed
                pl.BlockSpec((1, tn), lambda j: (0, j)),   # bias
            ],
            out_specs=pl.BlockSpec((M, tn), lambda j: (0, j)),
        ),
        compiler_params=pltpu.CompilerParams(
            dimension_semantics=("parallel",),
            vmem_limit_bytes=32 * 1024 * 1024,
        ),
    )(x, w, b2d)


# ----------------------------------------------------------------------------
# Parameter construction (deterministic, mirrors the PyTorch init scheme):
#   weights: xavier normal, std = sqrt(2 / (fan_in + fan_out))
#   biases : nn.Linear default, uniform(-1/sqrt(fan_in), 1/sqrt(fan_in))
# Stored padded to multiples of 128, as (in, out); weights cast to bf16.
# ----------------------------------------------------------------------------
IN_FEATURES = 39 * 39      # 1521
HIDDEN = 2047
OUT_FEATURES = 13 * 13     # 169

LAYER_DIMS = [
    (IN_FEATURES, HIDDEN),
    (HIDDEN, HIDDEN),
    (HIDDEN, HIDDEN),
    (HIDDEN, HIDDEN),
    (HIDDEN, OUT_FEATURES),
]


def init_params(key):
    params = []
    for fan_in, fan_out in LAYER_DIMS:
        key, kw, kb = jax.random.split(key, 3)
        std = (2.0 / (fan_in + fan_out)) ** 0.5
        w = std * jax.random.normal(kw, (fan_in, fan_out), dtype=jnp.float32)
        bound = 1.0 / (fan_in ** 0.5)
        b = jax.random.uniform(
            kb, (fan_out,), dtype=jnp.float32, minval=-bound, maxval=bound
        )
        kp = _round_up(fan_in, 128)
        np_ = _round_up(fan_out, 128)
        w = jnp.pad(w, ((0, kp - fan_in), (0, np_ - fan_out)))
        b = jnp.pad(b, (0, np_ - fan_out))
        params.append((w.astype(jnp.bfloat16), b))
    return params


@jax.jit
def deblur_mlp_forward(x, params):
    """x: (B, 1521) f32  ->  (B, 169) f32"""
    B = x.shape[0]
    Bp = _round_up(max(B, 8), 8)
    Kp = _round_up(IN_FEATURES, 128)
    h = jnp.pad(x.astype(jnp.float32), ((0, Bp - B), (0, Kp - IN_FEATURES)))

    n_layers = len(params)
    for i, (w, b) in enumerate(params):
        apply_tanh = i < n_layers - 1   # last Linear has no activation
        h = linear_pallas(h, w, b, apply_tanh=apply_tanh)

    return h[:B, :OUT_FEATURES]


# ----------------------------------------------------------------------------
# Pure-JAX reference (same bf16-weight math) for a sanity check.
# ----------------------------------------------------------------------------
def reference_forward(x, params):
    Kp = _round_up(IN_FEATURES, 128)
    h = jnp.pad(x.astype(jnp.float32), ((0, 0), (0, Kp - IN_FEATURES)))
    n_layers = len(params)
    for i, (w, b) in enumerate(params):
        y = jnp.dot(h.astype(jnp.bfloat16), w,
                    preferred_element_type=jnp.float32) + b
        h = jnp.tanh(y) if i < n_layers - 1 else y
    return h[:, :OUT_FEATURES]


if __name__ == "__main__":
    key = jax.random.PRNGKey(0)
    key, kx = jax.random.split(key)

    B = 2
    x = jax.random.normal(kx, (B, IN_FEATURES), dtype=jnp.float32)

    params = init_params(key)

    out = deblur_mlp_forward(x, params)
    out = jax.block_until_ready(out)

    ref = reference_forward(x, params)
    assert out.shape == (B, OUT_FEATURES), out.shape
    max_err = float(jnp.max(jnp.abs(out - ref)))
    assert jnp.allclose(out, ref, atol=1e-2, rtol=1e-2), max_err

    print("KERNEL_OK")
</pallas_src>

<mosaic_0001>
module attributes {stable_mosaic.version = 11 : i64} {
  func.func @_linear_kernel(%arg0: i32, %arg1: memref<8x2048xf32, #tpu.memory_space<vmem>>, %arg2: memref<2048x512xbf16, #tpu.memory_space<vmem>>, %arg3: memref<1x512xf32, #tpu.memory_space<vmem>>, %arg4: memref<8x512xf32, #tpu.memory_space<vmem>>) attributes {dimension_semantics = [#tpu.dimension_semantics<parallel>], iteration_bounds = array<i64: 4>, scalar_prefetch = 0 : i64, scratch_operands = 0 : i64, tpu.core_type = #tpu.core_type<tc>, window_params = [{pipeline_mode = #tpu.pipeline_mode<synchronous>, transform_indices = @transform_0, window_bounds = array<i64: 8, 2048>}, {transform_indices = @transform_1, window_bounds = array<i64: 2048, 512>}, {transform_indices = @transform_2, window_bounds = array<i64: 1, 512>}, {transform_indices = @transform_3, window_bounds = array<i64: 8, 512>}]} {
    %c0 = arith.constant 0 : index
    %c0_0 = arith.constant 0 : index
    %0 = vector.load %arg1[%c0, %c0_0] : memref<8x2048xf32, #tpu.memory_space<vmem>>, vector<8x2048xf32>
    %1 = arith.truncf %0 : vector<8x2048xf32> to vector<8x2048xbf16>
    %c0_1 = arith.constant 0 : index
    %c0_2 = arith.constant 0 : index
    %2 = vector.load %arg2[%c0_1, %c0_2] : memref<2048x512xbf16, #tpu.memory_space<vmem>>, vector<2048x512xbf16>
    %cst = arith.constant dense<0.000000e+00> : vector<8x512xf32>
    %3 = tpu.matmul %1, %2, %cst {dimension_numbers = #tpu.dot_dimension_numbers<[1], [0], [0], [1], [0, 0, 1, 1], [], []>} : vector<8x2048xbf16>, vector<2048x512xbf16>, vector<8x512xf32> -> vector<8x512xf32>
    %c0_3 = arith.constant 0 : index
    %c0_4 = arith.constant 0 : index
    %4 = vector.load %arg3[%c0_3, %c0_4] : memref<1x512xf32, #tpu.memory_space<vmem>>, vector<1x512xf32>
    %5 = vector.broadcast %4 : vector<1x512xf32> to vector<8x512xf32>
    %6 = arith.addf %3, %5 : vector<8x512xf32>
    %7 = math.tanh %6 : vector<8x512xf32>
    %c0_5 = arith.constant 0 : index
    %c0_6 = arith.constant 0 : index
    %8 = vector.load %arg4[%c0_5, %c0_6] : memref<8x512xf32, #tpu.memory_space<vmem>>, vector<8x512xf32>
    tpu.vector_store %arg4[%c0_5, %c0_6], %7 {strides = array<i32>} : memref<8x512xf32, #tpu.memory_space<vmem>>, vector<8x512xf32>,
    return
  }
  func.func @transform_0(%arg0: i32) -> (i32, i32) {
    %c0_i32 = arith.constant 0 : i32
    %c0_i32_0 = arith.constant 0 : i32
    %c0_i32_1 = arith.constant 0 : i32
    return %c0_i32, %c0_i32_0 : i32, i32
  }
  func.func @transform_1(%arg0: i32) -> (i32, i32) {
    %c0_i32 = arith.constant 0 : i32
    %c0_i32_0 = arith.constant 0 : i32
    return %c0_i32, %arg0 : i32, i32
  }
  func.func @transform_2(%arg0: i32) -> (i32, i32) {
    %c0_i32 = arith.constant 0 : i32
    %c0_i32_0 = arith.constant 0 : i32
    return %c0_i32, %arg0 : i32, i32
  }
  func.func @transform_3(%arg0: i32) -> (i32, i32) {
    %c0_i32 = arith.constant 0 : i32
    %c0_i32_0 = arith.constant 0 : i32
    return %c0_i32, %arg0 : i32, i32
  }
}

module attributes {stable_mosaic.version = 11 : i64} {
  func.func @_linear_kernel(%arg0: i32, %arg1: memref<8x1536xf32, #tpu.memory_space<vmem>>, %arg2: memref<1536x512xbf16, #tpu.memory_space<vmem>>, %arg3: memref<1x512xf32, #tpu.memory_space<vmem>>, %arg4: memref<8x512xf32, #tpu.memory_space<vmem>>) attributes {dimension_semantics = [#tpu.dimension_semantics<parallel>], iteration_bounds = array<i64: 4>, scalar_prefetch = 0 : i64, scratch_operands = 0 : i64, tpu.core_type = #tpu.core_type<tc>, window_params = [{pipeline_mode = #tpu.pipeline_mode<synchronous>, transform_indices = @transform_0, window_bounds = array<i64: 8, 1536>}, {transform_indices = @transform_1, window_bounds = array<i64: 1536, 512>}, {transform_indices = @transform_2, window_bounds = array<i64: 1, 512>}, {transform_indices = @transform_3, window_bounds = array<i64: 8, 512>}]} {
    %c0 = arith.constant 0 : index
    %c0_0 = arith.constant 0 : index
    %0 = vector.load %arg1[%c0, %c0_0] : memref<8x1536xf32, #tpu.memory_space<vmem>>, vector<8x1536xf32>
    %1 = arith.truncf %0 : vector<8x1536xf32> to vector<8x1536xbf16>
    %c0_1 = arith.constant 0 : index
    %c0_2 = arith.constant 0 : index
    %2 = vector.load %arg2[%c0_1, %c0_2] : memref<1536x512xbf16, #tpu.memory_space<vmem>>, vector<1536x512xbf16>
    %cst = arith.constant dense<0.000000e+00> : vector<8x512xf32>
    %3 = tpu.matmul %1, %2, %cst {dimension_numbers = #tpu.dot_dimension_numbers<[1], [0], [0], [1], [0, 0, 1, 1], [], []>} : vector<8x1536xbf16>, vector<1536x512xbf16>, vector<8x512xf32> -> vector<8x512xf32>
    %c0_3 = arith.constant 0 : index
    %c0_4 = arith.constant 0 : index
    %4 = vector.load %arg3[%c0_3, %c0_4] : memref<1x512xf32, #tpu.memory_space<vmem>>, vector<1x512xf32>
    %5 = vector.broadcast %4 : vector<1x512xf32> to vector<8x512xf32>
    %6 = arith.addf %3, %5 : vector<8x512xf32>
    %7 = math.tanh %6 : vector<8x512xf32>
    %c0_5 = arith.constant 0 : index
    %c0_6 = arith.constant 0 : index
    %8 = vector.load %arg4[%c0_5, %c0_6] : memref<8x512xf32, #tpu.memory_space<vmem>>, vector<8x512xf32>
    tpu.vector_store %arg4[%c0_5, %c0_6], %7 {strides = array<i32>} : memref<8x512xf32, #tpu.memory_space<vmem>>, vector<8x512xf32>,
    return
  }
  func.func @transform_0(%arg0: i32) -> (i32, i32) {
    %c0_i32 = arith.constant 0 : i32
    %c0_i32_0 = arith.constant 0 : i32
    %c0_i32_1 = arith.constant 0 : i32
    return %c0_i32, %c0_i32_0 : i32, i32
  }
  func.func @transform_1(%arg0: i32) -> (i32, i32) {
    %c0_i32 = arith.constant 0 : i32
    %c0_i32_0 = arith.constant 0 : i32
    return %c0_i32, %arg0 : i32, i32
  }
  func.func @transform_2(%arg0: i32) -> (i32, i32) {
    %c0_i32 = arith.constant 0 : i32
    %c0_i32_0 = arith.constant 0 : i32
    return %c0_i32, %arg0 : i32, i32
  }
  func.func @transform_3(%arg0: i32) -> (i32, i32) {
    %c0_i32 = arith.constant 0 : i32
    %c0_i32_0 = arith.constant 0 : i32
    return %c0_i32, %arg0 : i32, i32
  }
}

module attributes {stable_mosaic.version = 11 : i64} {
  func.func @_linear_kernel(%arg0: i32, %arg1: memref<8x2048xf32, #tpu.memory_space<vmem>>, %arg2: memref<2048x512xbf16, #tpu.memory_space<vmem>>, %arg3: memref<1x512xf32, #tpu.memory_space<vmem>>, %arg4: memref<8x512xf32, #tpu.memory_space<vmem>>) attributes {dimension_semantics = [#tpu.dimension_semantics<parallel>], iteration_bounds = array<i64: 4>, scalar_prefetch = 0 : i64, scratch_operands = 0 : i64, tpu.core_type = #tpu.core_type<tc>, window_params = [{pipeline_mode = #tpu.pipeline_mode<synchronous>, transform_indices = @transform_0, window_bounds = array<i64: 8, 2048>}, {transform_indices = @transform_1, window_bounds = array<i64: 2048, 512>}, {transform_indices = @transform_2, window_bounds = array<i64: 1, 512>}, {transform_indices = @transform_3, window_bounds = array<i64: 8, 512>}]} {
    %c0 = arith.constant 0 : index
    %c0_0 = arith.constant 0 : index
    %0 = vector.load %arg1[%c0, %c0_0] : memref<8x2048xf32, #tpu.memory_space<vmem>>, vector<8x2048xf32>
    %1 = arith.truncf %0 : vector<8x2048xf32> to vector<8x2048xbf16>
    %c0_1 = arith.constant 0 : index
    %c0_2 = arith.constant 0 : index
    %2 = vector.load %arg2[%c0_1, %c0_2] : memref<2048x512xbf16, #tpu.memory_space<vmem>>, vector<2048x512xbf16>
    %cst = arith.constant dense<0.000000e+00> : vector<8x512xf32>
    %3 = tpu.matmul %1, %2, %cst {dimension_numbers = #tpu.dot_dimension_numbers<[1], [0], [0], [1], [0, 0, 1, 1], [], []>} : vector<8x2048xbf16>, vector<2048x512xbf16>, vector<8x512xf32> -> vector<8x512xf32>
    %c0_3 = arith.constant 0 : index
    %c0_4 = arith.constant 0 : index
    %4 = vector.load %arg3[%c0_3, %c0_4] : memref<1x512xf32, #tpu.memory_space<vmem>>, vector<1x512xf32>
    %5 = vector.broadcast %4 : vector<1x512xf32> to vector<8x512xf32>
    %6 = arith.addf %3, %5 : vector<8x512xf32>
    %7 = math.tanh %6 : vector<8x512xf32>
    %c0_5 = arith.constant 0 : index
    %c0_6 = arith.constant 0 : index
    %8 = vector.load %arg4[%c0_5, %c0_6] : memref<8x512xf32, #tpu.memory_space<vmem>>, vector<8x512xf32>
    tpu.vector_store %arg4[%c0_5, %c0_6], %7 {strides = array<i32>} : memref<8x512xf32, #tpu.memory_space<vmem>>, vector<8x512xf32>,
    return
  }
  func.func @transform_0(%arg0: i32) -> (i32, i32) {
    %c0_i32 = arith.constant 0 : i32
    %c0_i32_0 = arith.constant 0 : i32
    %c0_i32_1 = arith.constant 0 : i32
    return %c0_i32, %c0_i32_0 : i32, i32
  }
  func.func @transform_1(%arg0: i32) -> (i32, i32) {
    %c0_i32 = arith.constant 0 : i32
    %c0_i32_0 = arith.constant 0 : i32
    return %c0_i32, %arg0 : i32, i32
  }
  func.func @transform_2(%arg0: i32) -> (i32, i32) {
    %c0_i32 = arith.constant 0 : i32
    %c0_i32_0 = arith.constant 0 : i32
    return %c0_i32, %arg0 : i32, i32
  }
  func.func @transform_3(%arg0: i32) -> (i32, i32) {
    %c0_i32 = arith.constant 0 : i32
    %c0_i32_0 = arith.constant 0 : i32
    return %c0_i32, %arg0 : i32, i32
  }
}

module attributes {stable_mosaic.version = 11 : i64} {
  func.func @_linear_kernel(%arg0: i32, %arg1: memref<8x2048xf32, #tpu.memory_space<vmem>>, %arg2: memref<2048x128xbf16, #tpu.memory_space<vmem>>, %arg3: memref<1x128xf32, #tpu.memory_space<vmem>>, %arg4: memref<8x128xf32, #tpu.memory_space<vmem>>) attributes {dimension_semantics = [#tpu.dimension_semantics<parallel>], iteration_bounds = array<i64: 2>, scalar_prefetch = 0 : i64, scratch_operands = 0 : i64, tpu.core_type = #tpu.core_type<tc>, window_params = [{pipeline_mode = #tpu.pipeline_mode<synchronous>, transform_indices = @transform_0, window_bounds = array<i64: 8, 2048>}, {transform_indices = @transform_1, window_bounds = array<i64: 2048, 128>}, {transform_indices = @transform_2, window_bounds = array<i64: 1, 128>}, {transform_indices = @transform_3, window_bounds = array<i64: 8, 128>}]} {
    %c0 = arith.constant 0 : index
    %c0_0 = arith.constant 0 : index
    %0 = vector.load %arg1[%c0, %c0_0] : memref<8x2048xf32, #tpu.memory_space<vmem>>, vector<8x2048xf32>
    %1 = arith.truncf %0 : vector<8x2048xf32> to vector<8x2048xbf16>
    %c0_1 = arith.constant 0 : index
    %c0_2 = arith.constant 0 : index
    %2 = vector.load %arg2[%c0_1, %c0_2] : memref<2048x128xbf16, #tpu.memory_space<vmem>>, vector<2048x128xbf16>
    %cst = arith.constant dense<0.000000e+00> : vector<8x128xf32>
    %3 = tpu.matmul %1, %2, %cst {dimension_numbers = #tpu.dot_dimension_numbers<[1], [0], [0], [1], [0, 0, 1, 1], [], []>} : vector<8x2048xbf16>, vector<2048x128xbf16>, vector<8x128xf32> -> vector<8x128xf32>
    %c0_3 = arith.constant 0 : index
    %c0_4 = arith.constant 0 : index
    %4 = vector.load %arg3[%c0_3, %c0_4] : memref<1x128xf32, #tpu.memory_space<vmem>>, vector<1x128xf32>
    %5 = vector.broadcast %4 : vector<1x128xf32> to vector<8x128xf32>
    %6 = arith.addf %3, %5 : vector<8x128xf32>
    %c0_5 = arith.constant 0 : index
    %c0_6 = arith.constant 0 : index
    %7 = vector.load %arg4[%c0_5, %c0_6] : memref<8x128xf32, #tpu.memory_space<vmem>>, vector<8x128xf32>
    tpu.vector_store %arg4[%c0_5, %c0_6], %6 {strides = array<i32>} : memref<8x128xf32, #tpu.memory_space<vmem>>, vector<8x128xf32>,
    return
  }
  func.func @transform_0(%arg0: i32) -> (i32, i32) {
    %c0_i32 = arith.constant 0 : i32
    %c0_i32_0 = arith.constant 0 : i32
    %c0_i32_1 = arith.constant 0 : i32
    return %c0_i32, %c0_i32_0 : i32, i32
  }
  func.func @transform_1(%arg0: i32) -> (i32, i32) {
    %c0_i32 = arith.constant 0 : i32
    %c0_i32_0 = arith.constant 0 : i32
    return %c0_i32, %arg0 : i32, i32
  }
  func.func @transform_2(%arg0: i32) -> (i32, i32) {
    %c0_i32 = arith.constant 0 : i32
    %c0_i32_0 = arith.constant 0 : i32
    return %c0_i32, %arg0 : i32, i32
  }
  func.func @transform_3(%arg0: i32) -> (i32, i32) {
    %c0_i32 = arith.constant 0 : i32
    %c0_i32_0 = arith.constant 0 : i32
    return %c0_i32, %arg0 : i32, i32
  }
}

</mosaic_0001>

<bundles_post_ra>
// kernel: deblur_mlp_forward.9
= control target key start
LH: loop header
LB: loop body
LE: loop exit
PB: predicated region body
PF: predicated region fallthrough
CT: control target
= control target key end

     0   :  { %s3209_s12 = smov 0   ;;  %s3211_s13 = smov 0   ;;  %s3964_s0 = inlined_call_operand.vmem [shape: f32[8,2048], index: 0, kind: input, shape index: {}]   ;;  %s3965_s1 = inlined_call_operand.vmem [shape: bf16[2048,256], index: 1, kind: input, shape index: {}]   ;;  %s3966_s2 = inlined_call_operand.vmem [shape: f32[1,256], index: 2, kind: input, shape index: {}]   ;;  %s3967_s3 = inlined_call_operand.vmem [shape: f32[8,256], index: 3, kind: output, shape index: {}]  }
   0x1   :  { %s3213_s14 = smov 0  }
   0x2 LB: > { %s2697_s15 = sadd.s32 4294967295, %s3187_s14   ;;  %s3226_s16 = sadd.s32 1, %s3187_s14   ;;  %s3187_s14 = sphi %s3213_s14, %s3970_s14   ;;  %s3183_s13 = sphi %s3211_s13, %s3969_s13   ;;  %s3179_s12 = sphi %s3209_s12, %s3968_s12  }
   0x3   : > { %s38_s17 = ssub.s32 %s3187_s14, %s3226_s16  ;;  %s41_s18 = sadd.s32 1, %s3183_s13 }
   0x4   : > { %p39_p0 = scmp.eq.s32.totalorder %s38_s17, 0  ;;  %p48_p1 = scmp.ne.s32.totalorder %s3183_s13, %s3179_s12 }
   0x5   : > { %p49_p2 = scmp.eq.s32.totalorder %s3187_s14, 0  ;;  %p2700_p4 = scmp.ge.s32.totalorder %s3187_s14, 2 }
   0x6   : > { %s3235_s19 = scalar_select %p39_p0, %s3183_s13, %s41_s18  }
   0x7   : > { %p50_p3 = por %p49_p2, %p48_p1  ;;  %129 = sbr.rel (%p2700_p4) target bundleno = 188 (0xbc), region = 20 }
   0xe   : > { %132 = sbr.rel (!%p50_p3) target bundleno = 188 (0xbc), region = 24  ;;  %s134_s20 = sand.u32 (%p50_p3), 1, %s3183_s13  }
   0xf   : > { %s2702_s21 = sshll.u32 (%p50_p3), %s3187_s14, 2  ;;  %s2701_s22 = sshll.u32 (%p50_p3), %s134_s20, 10 }
  0x10   : > { %s3243_s25 = scalar_lea.vmem (%p50_p3), %s3965_s1, %s2702_s21  ;;  %s3247_s26 = scalar_lea.vmem (%p50_p3), [#allocation2], %s2701_s22 }
  0x11   : > { %v154_v0 = vld [vmem:[%s3243_s25] sm:$0xf] (%p50_p3)  ;;  %v156_v1 = vld [vmem:[%s3243_s25 + $0x8] sm:$0xf] (%p50_p3)  ;;  %v158_v2 = vld [vmem:[%s3243_s25 + $0x10] sm:$0xf] (%p50_p3) }
  0x12   : > { %155 = vst [vmem:[%s3247_s26] sm:$0xf] (%p50_p3), %v154_v0  ;;  %157 = vst [vmem:[%s3247_s26 + $0x4] sm:$0xf] (%p50_p3), %v156_v1  ;;  %v160_v3 = vld [vmem:[%s3243_s25 + $0x18] sm:$0xf] (%p50_p3) }
  0x13   : > { %v162_v4 = vld [vmem:[%s3243_s25 + $0x20] sm:$0xf] (%p50_p3)  ;;  %159 = vst [vmem:[%s3247_s26 + $0x8] sm:$0xf] (%p50_p3), %v158_v2  ;;  %161 = vst [vmem:[%s3247_s26 + $0xc] sm:$0xf] (%p50_p3), %v160_v3 }
  0x14   : > { %163 = vst [vmem:[%s3247_s26 + $0x10] sm:$0xf] (%p50_p3), %v162_v4  ;;  %v164_v5 = vld [vmem:[%s3243_s25 + $0x28] sm:$0xf] (%p50_p3)  ;;  %v166_v6 = vld [vmem:[%s3243_s25 + $0x30] sm:$0xf] (%p50_p3) }
  0x15   : > { %v168_v7 = vld [vmem:[%s3243_s25 + $0x38] sm:$0xf]  ;;  %165 = vst [vmem:[%s3247_s26 + $0x14] sm:$0xf] %v164_v5  ;;  %167 = vst [vmem:[%s3247_s26 + $0x18] sm:$0xf] %v166_v6 }
  0x16   : > { %169 = vst [vmem:[%s3247_s26 + $0x1c] sm:$0xf] %v168_v7  ;;  %v170_v8 = vld [vmem:[%s3243_s25 + $0x40] sm:$0xf]  ;;  %v172_v9 = vld [vmem:[%s3243_s25 + $0x48] sm:$0xf] }
  0x17   : > { %v174_v10 = vld [vmem:[%s3243_s25 + $0x50] sm:$0xf]  ;;  %171 = vst [vmem:[%s3247_s26 + $0x20] sm:$0xf] %v170_v8  ;;  %173 = vst [vmem:[%s3247_s26 + $0x24] sm:$0xf] %v172_v9 }
  0x18   : > { %175 = vst [vmem:[%s3247_s26 + $0x28] sm:$0xf] %v174_v10  ;;  %v176_v11 = vld [vmem:[%s3243_s25 + $0x58] sm:$0xf]  ;;  %v178_v12 = vld [vmem:[%s3243_s25 + $0x60] sm:$0xf] }
  0x19   : > { %v180_v13 = vld [vmem:[%s3243_s25 + $0x68] sm:$0xf]  ;;  %177 = vst [vmem:[%s3247_s26 + $0x2c] sm:$0xf] %v176_v11  ;;  %179 = vst [vmem:[%s3247_s26 + $0x30] sm:$0xf] %v178_v12 }
  0x1a   : > { %181 = vst [vmem:[%s3247_s26 + $0x34] sm:$0xf] %v180_v13  ;;  %v182_v14 = vld [vmem:[%s3243_s25 + $0x70] sm:$0xf]  ;;  %v184_v15 = vld [vmem:[%s3243_s25 + $0x78] sm:$0xf] }
  0x1b   : > { %v186_v16 = vld [vmem:[%s3243_s25 + $0x80] sm:$0xf]  ;;  %183 = vst [vmem:[%s3247_s26 + $0x38] sm:$0xf] %v182_v14  ;;  %185 = vst [vmem:[%s3247_s26 + $0x3c] sm:$0xf] %v184_v15 }
  0x1c   : > { %187 = vst [vmem:[%s3247_s26 + $0x40] sm:$0xf] %v186_v16  ;;  %v188_v17 = vld [vmem:[%s3243_s25 + $0x88] sm:$0xf]  ;;  %v190_v18 = vld [vmem:[%s3243_s25 + $0x90] sm:$0xf] }
  0x1d   : > { %v192_v19 = vld [vmem:[%s3243_s25 + $0x98] sm:$0xf]  ;;  %189 = vst [vmem:[%s3247_s26 + $0x44] sm:$0xf] %v188_v17  ;;  %191 = vst [vmem:[%s3247_s26 + $0x48] sm:$0xf] %v190_v18 }
  0x1e   : > { %193 = vst [vmem:[%s3247_s26 + $0x4c] sm:$0xf] %v192_v19  ;;  %v194_v20 = vld [vmem:[%s3243_s25 + $0xa0] sm:$0xf]  ;;  %v196_v21 = vld [vmem:[%s3243_s25 + $0xa8] sm:$0xf] }
  0x1f   : > { %v198_v22 = vld [vmem:[%s3243_s25 + $0xb0] sm:$0xf]  ;;  %195 = vst [vmem:[%s3247_s26 + $0x50] sm:$0xf] %v194_v20  ;;  %197 = vst [vmem:[%s3247_s26 + $0x54] sm:$0xf] %v196_v21 }
  0x20   : > { %199 = vst [vmem:[%s3247_s26 + $0x58] sm:$0xf] %v198_v22  ;;  %v200_v23 = vld [vmem:[%s3243_s25 + $0xb8] sm:$0xf]  ;;  %v202_v24 = vld [vmem:[%s3243_s25 + $0xc0] sm:$0xf] }
  0x21   : > { %v204_v25 = vld [vmem:[%s3243_s25 + $0xc8] sm:$0xf]  ;;  %201 = vst [vmem:[%s3247_s26 + $0x5c] sm:$0xf] %v200_v23  ;;  %203 = vst [vmem:[%s3247_s26 + $0x60] sm:$0xf] %v202_v24 }
  0x22   : > { %205 = vst [vmem:[%s3247_s26 + $0x64] sm:$0xf] %v204_v25  ;;  %v206_v26 = vld [vmem:[%s3243_s25 + $0xd0] sm:$0xf]  ;;  %v208_v27 = vld [vmem:[%s3243_s25 + $0xd8] sm:$0xf] }
  0x23   : > { %v210_v28 = vld [vmem:[%s3243_s25 + $0xe0] sm:$0xf]  ;;  %207 = vst [vmem:[%s3247_s26 + $0x68] sm:$0xf] %v206_v26  ;;  %209 = vst [vmem:[%s3247_s26 + $0x6c] sm:$0xf] %v208_v27 }
  0x24   : > { %211 = vst [vmem:[%s3247_s26 + $0x70] sm:$0xf] %v210_v28  ;;  %v212_v29 = vld [vmem:[%s3243_s25 + $0xe8] sm:$0xf]  ;;  %v214_v30 = vld [vmem:[%s3243_s25 + $0xf0] sm:$0xf] }
  0x25   : > { %v216_v31 = vld [vmem:[%s3243_s25 + $0xf8] sm:$0xf]  ;;  %213 = vst [vmem:[%s3247_s26 + $0x74] sm:$0xf] %v212_v29  ;;  %215 = vst [vmem:[%s3247_s26 + $0x78] sm:$0xf] %v214_v30 }
  0x26   : > { %217 = vst [vmem:[%s3247_s26 + $0x7c] sm:$0xf] %v216_v31  ;;  %v218_v32 = vld [vmem:[%s3243_s25 + $0x100] sm:$0xf]  ;;  %v220_v33 = vld [vmem:[%s3243_s25 + $0x108] sm:$0xf] }
  0x27   : > { %v222_v34 = vld [vmem:[%s3243_s25 + $0x110] sm:$0xf]  ;;  %219 = vst [vmem:[%s3247_s26 + $0x80] sm:$0xf] %v218_v32  ;;  %221 = vst [vmem:[%s3247_s26 + $0x84] sm:$0xf] %v220_v33 }
  0x28   : > { %223 = vst [vmem:[%s3247_s26 + $0x88] sm:$0xf] %v222_v34  ;;  %v224_v35 = vld [vmem:[%s3243_s25 + $0x118] sm:$0xf]  ;;  %v226_v36 = vld [vmem:[%s3243_s25 + $0x120] sm:$0xf] }
  0x29   : > { %v228_v37 = vld [vmem:[%s3243_s25 + $0x128] sm:$0xf]  ;;  %225 = vst [vmem:[%s3247_s26 + $0x8c] sm:$0xf] %v224_v35  ;;  %227 = vst [vmem:[%s3247_s26 + $0x90] sm:$0xf] %v226_v36 }
  0x2a   : > { %229 = vst [vmem:[%s3247_s26 + $0x94] sm:$0xf] %v228_v37  ;;  %v230_v38 = vld [vmem:[%s3243_s25 + $0x130] sm:$0xf]  ;;  %v232_v39 = vld [vmem:[%s3243_s25 + $0x138] sm:$0xf] }
  0x2b   : > { %v234_v40 = vld [vmem:[%s3243_s25 + $0x140] sm:$0xf]  ;;  %231 = vst [vmem:[%s3247_s26 + $0x98] sm:$0xf] %v230_v38  ;;  %233 = vst [vmem:[%s3247_s26 + $0x9c] sm:$0xf] %v232_v39 }
  0x2c   : > { %235 = vst [vmem:[%s3247_s26 + $0xa0] sm:$0xf] %v234_v40  ;;  %v236_v41 = vld [vmem:[%s3243_s25 + $0x148] sm:$0xf]  ;;  %v238_v42 = vld [vmem:[%s3243_s25 + $0x150] sm:$0xf] }
  0x2d   : > { %v240_v43 = vld [vmem:[%s3243_s25 + $0x158] sm:$0xf]  ;;  %237 = vst [vmem:[%s3247_s26 + $0xa4] sm:$0xf] %v236_v41  ;;  %239 = vst [vmem:[%s3247_s26 + $0xa8] sm:$0xf] %v238_v42 }
  0x2e   : > { %241 = vst [vmem:[%s3247_s26 + $0xac] sm:$0xf] %v240_v43  ;;  %v242_v44 = vld [vmem:[%s3243_s25 + $0x160] sm:$0xf]  ;;  %v244_v45 = vld [vmem:[%s3243_s25 + $0x168] sm:$0xf] }
  0x2f   : > { %v246_v46 = vld [vmem:[%s3243_s25 + $0x170] sm:$0xf]  ;;  %243 = vst [vmem:[%s3247_s26 + $0xb0] sm:$0xf] %v242_v44  ;;  %245 = vst [vmem:[%s3247_s26 + $0xb4] sm:$0xf] %v244_v45 }
  0x30   : > { %247 = vst [vmem:[%s3247_s26 + $0xb8] sm:$0xf] %v246_v46  ;;  %v248_v47 = vld [vmem:[%s3243_s25 + $0x178] sm:$0xf]  ;;  %v250_v48 = vld [vmem:[%s3243_s25 + $0x180] sm:$0xf] }
  0x31   : > { %v252_v49 = vld [vmem:[%s3243_s25 + $0x188] sm:$0xf]  ;;  %249 = vst [vmem:[%s3247_s26 + $0xbc] sm:$0xf] %v248_v47  ;;  %251 = vst [vmem:[%s3247_s26 + $0xc0] sm:$0xf] %v250_v48 }
  0x32   : > { %253 = vst [vmem:[%s3247_s26 + $0xc4] sm:$0xf] %v252_v49  ;;  %v254_v50 = vld [vmem:[%s3243_s25 + $0x190] sm:$0xf]  ;;  %v256_v51 = vld [vmem:[%s3243_s25 + $0x198] sm:$0xf] }
  0x33   : > { %v258_v52 = vld [vmem:[%s3243_s25 + $0x1a0] sm:$0xf]  ;;  %255 = vst [vmem:[%s3247_s26 + $0xc8] sm:$0xf] %v254_v50  ;;  %257 = vst [vmem:[%s3247_s26 + $0xcc] sm:$0xf] %v256_v51 }
  0x34   : > { %259 = vst [vmem:[%s3247_s26 + $0xd0] sm:$0xf] %v258_v52  ;;  %v260_v53 = vld [vmem:[%s3243_s25 + $0x1a8] sm:$0xf]  ;;  %v262_v54 = vld [vmem:[%s3243_s25 + $0x1b0] sm:$0xf] }
  0x35   : > { %v264_v55 = vld [vmem:[%s3243_s25 + $0x1b8] sm:$0xf]  ;;  %261 = vst [vmem:[%s3247_s26 + $0xd4] sm:$0xf] %v260_v53  ;;  %263 = vst [vmem:[%s3247_s26 + $0xd8] sm:$0xf] %v262_v54 }
  0x36   : > { %265 = vst [vmem:[%s3247_s26 + $0xdc] sm:$0xf] %v264_v55  ;;  %v266_v56 = vld [vmem:[%s3243_s25 + $0x1c0] sm:$0xf]  ;;  %v268_v57 = vld [vmem:[%s3243_s25 + $0x1c8] sm:$0xf] }
  0x37   : > { %v270_v58 = vld [vmem:[%s3243_s25 + $0x1d0] sm:$0xf]  ;;  %267 = vst [vmem:[%s3247_s26 + $0xe0] sm:$0xf] %v266_v56  ;;  %269 = vst [vmem:[%s3247_s26 + $0xe4] sm:$0xf] %v268_v57 }
  0x38   : > { %271 = vst [vmem:[%s3247_s26 + $0xe8] sm:$0xf] %v270_v58  ;;  %v272_v59 = vld [vmem:[%s3243_s25 + $0x1d8] sm:$0xf]  ;;  %v274_v60 = vld [vmem:[%s3243_s25 + $0x1e0] sm:$0xf] }
  0x39   : > { %v276_v61 = vld [vmem:[%s3243_s25 + $0x1e8] sm:$0xf]  ;;  %273 = vst [vmem:[%s3247_s26 + $0xec] sm:$0xf] %v272_v59  ;;  %275 = vst [vmem:[%s3247_s26 + $0xf0] sm:$0xf] %v274_v60 }
  0x3a   : > { %277 = vst [vmem:[%s3247_s26 + $0xf4] sm:$0xf] %v276_v61  ;;  %v278_v62 = vld [vmem:[%s3243_s25 + $0x1f0] sm:$0xf]  ;;  %v280_v63 = vld [vmem:[%s3243_s25 + $0x1f8] sm:$0xf] }
  0x3b   : > { %v282_v0 = vld [vmem:[%s3243_s25 + $0x200] sm:$0xf]  ;;  %279 = vst [vmem:[%s3247_s26 + $0xf8] sm:$0xf] %v278_v62  ;;  %281 = vst [vmem:[%s3247_s26 + $0xfc] sm:$0xf] %v280_v63 }
  0x3c   : > { %283 = vst [vmem:[%s3247_s26 + $0x100] sm:$0xf] %v282_v0  ;;  %v284_v1 = vld [vmem:[%s3243_s25 + $0x208] sm:$0xf]  ;;  %v286_v2 = vld [vmem:[%s3243_s25 + $0x210] sm:$0xf] }
  0x3d   : > { %v288_v3 = vld [vmem:[%s3243_s25 + $0x218] sm:$0xf]  ;;  %285 = vst [vmem:[%s3247_s26 + $0x104] sm:$0xf] %v284_v1  ;;  %287 = vst [vmem:[%s3247_s26 + $0x108] sm:$0xf] %v286_v2 }
  0x3e   : > { %289 = vst [vmem:[%s3247_s26 + $0x10c] sm:$0xf] %v288_v3  ;;  %v290_v4 = vld [vmem:[%s3243_s25 + $0x220] sm:$0xf]  ;;  %v292_v5 = vld [vmem:[%s3243_s25 + $0x228] sm:$0xf] }
  0x3f   : > { %v294_v6 = vld [vmem:[%s3243_s25 + $0x230] sm:$0xf]  ;;  %291 = vst [vmem:[%s3247_s26 + $0x110] sm:$0xf] %v290_v4  ;;  %293 = vst [vmem:[%s3247_s26 + $0x114] sm:$0xf] %v292_v5 }
  0x40   : > { %295 = vst [vmem:[%s3247_s26 + $0x118] sm:$0xf] %v294_v6  ;;  %v296_v7 = vld [vmem:[%s3243_s25 + $0x238] sm:$0xf]  ;;  %v298_v8 = vld [vmem:[%s3243_s25 + $0x240] sm:$0xf] }
  0x41   : > { %v300_v9 = vld [vmem:[%s3243_s25 + $0x248] sm:$0xf]  ;;  %297 = vst [vmem:[%s3247_s26 + $0x11c] sm:$0xf] %v296_v7  ;;  %299 = vst [vmem:[%s3247_s26 + $0x120] sm:$0xf] %v298_v8 }
  0x42   : > { %301 = vst [vmem:[%s3247_s26 + $0x124] sm:$0xf] %v300_v9  ;;  %v302_v10 = vld [vmem:[%s3243_s25 + $0x250] sm:$0xf]  ;;  %v304_v11 = vld [vmem:[%s3243_s25 + $0x258] sm:$0xf] }
  0x43   : > { %v306_v12 = vld [vmem:[%s3243_s25 + $0x260] sm:$0xf]  ;;  %303 = vst [vmem:[%s3247_s26 + $0x128] sm:$0xf] %v302_v10  ;;  %305 = vst [vmem:[%s3247_s26 + $0x12c] sm:$0xf] %v304_v11 }
  0x44   : > { %307 = vst [vmem:[%s3247_s26 + $0x130] sm:$0xf] %v306_v12  ;;  %v308_v13 = vld [vmem:[%s3243_s25 + $0x268] sm:$0xf]  ;;  %v310_v14 = vld [vmem:[%s3243_s25 + $0x270] sm:$0xf] }
  0x45   : > { %v312_v15 = vld [vmem:[%s3243_s25 + $0x278] sm:$0xf]  ;;  %309 = vst [vmem:[%s3247_s26 + $0x134] sm:$0xf] %v308_v13  ;;  %311 = vst [vmem:[%s3247_s26 + $0x138] sm:$0xf] %v310_v14 }
  0x46   : > { %313 = vst [vmem:[%s3247_s26 + $0x13c] sm:$0xf] %v312_v15  ;;  %v314_v16 = vld [vmem:[%s3243_s25 + $0x280] sm:$0xf]  ;;  %v316_v17 = vld [vmem:[%s3243_s25 + $0x288] sm:$0xf] }
  0x47   : > { %v318_v18 = vld [vmem:[%s3243_s25 + $0x290] sm:$0xf]  ;;  %315 = vst [vmem:[%s3247_s26 + $0x140] sm:$0xf] %v314_v16  ;;  %317 = vst [vmem:[%s3247_s26 + $0x144] sm:$0xf] %v316_v17 }
  0x48   : > { %319 = vst [vmem:[%s3247_s26 + $0x148] sm:$0xf] %v318_v18  ;;  %v320_v19 = vld [vmem:[%s3243_s25 + $0x298] sm:$0xf]  ;;  %v322_v20 = vld [vmem:[%s3243_s25 + $0x2a0] sm:$0xf] }
  0x49   : > { %v324_v21 = vld [vmem:[%s3243_s25 + $0x2a8] sm:$0xf]  ;;  %321 = vst [vmem:[%s3247_s26 + $0x14c] sm:$0xf] %v320_v19  ;;  %323 = vst [vmem:[%s3247_s26 + $0x150] sm:$0xf] %v322_v20 }
  0x4a   : > { %325 = vst [vmem:[%s3247_s26 + $0x154] sm:$0xf] %v324_v21  ;;  %v326_v22 = vld [vmem:[%s3243_s25 + $0x2b0] sm:$0xf]  ;;  %v328_v23 = vld [vmem:[%s3243_s25 + $0x2b8] sm:$0xf] }
  0x4b   : > { %v330_v24 = vld [vmem:[%s3243_s25 + $0x2c0] sm:$0xf]  ;;  %327 = vst [vmem:[%s3247_s26 + $0x158] sm:$0xf] %v326_v22  ;;  %329 = vst [vmem:[%s3247_s26 + $0x15c] sm:$0xf] %v328_v23 }
  0x4c   : > { %331 = vst [vmem:[%s3247_s26 + $0x160] sm:$0xf] %v330_v24  ;;  %v332_v25 = vld [vmem:[%s3243_s25 + $0x2c8] sm:$0xf]  ;;  %v334_v26 = vld [vmem:[%s3243_s25 + $0x2d0] sm:$0xf] }
  0x4d   : > { %v336_v27 = vld [vmem:[%s3243_s25 + $0x2d8] sm:$0xf]  ;;  %333 = vst [vmem:[%s3247_s26 + $0x164] sm:$0xf] %v332_v25  ;;  %335 = vst [vmem:[%s3247_s26 + $0x168] sm:$0xf] %v334_v26 }
  0x4e   : > { %337 = vst [vmem:[%s3247_s26 + $0x16c] sm:$0xf] %v336_v27  ;;  %v338_v28 = vld [vmem:[%s3243_s25 + $0x2e0] sm:$0xf]  ;;  %v340_v29 = vld [vmem:[%s3243_s25 + $0x2e8] sm:$0xf] }
  0x4f   : > { %v342_v30 = vld [vmem:[%s3243_s25 + $0x2f0] sm:$0xf]  ;;  %339 = vst [vmem:[%s3247_s26 + $0x170] sm:$0xf] %v338_v28  ;;  %341 = vst [vmem:[%s3247_s26 + $0x174] sm:$0xf] %v340_v29 }
  0x50   : > { %343 = vst [vmem:[%s3247_s26 + $0x178] sm:$0xf] %v342_v30  ;;  %v344_v31 = vld [vmem:[%s3243_s25 + $0x2f8] sm:$0xf]  ;;  %v346_v32 = vld [vmem:[%s3243_s25 + $0x300] sm:$0xf] }
  0x51   : > { %v348_v33 = vld [vmem:[%s3243_s25 + $0x308] sm:$0xf]  ;;  %345 = vst [vmem:[%s3247_s26 + $0x17c] sm:$0xf] %v344_v31  ;;  %347 = vst [vmem:[%s3247_s26 + $0x180] sm:$0xf] %v346_v32 }
  0x52   : > { %349 = vst [vmem:[%s3247_s26 + $0x184] sm:$0xf] %v348_v33  ;;  %v350_v34 = vld [vmem:[%s3243_s25 + $0x310] sm:$0xf]  ;;  %v352_v35 = vld [vmem:[%s3243_s25 + $0x318] sm:$0xf] }
  0x53   : > { %v354_v36 = vld [vmem:[%s3243_s25 + $0x320] sm:$0xf]  ;;  %351 = vst [vmem:[%s3247_s26 + $0x188] sm:$0xf] %v350_v34  ;;  %353 = vst [vmem:[%s3247_s26 + $0x18c] sm:$0xf] %v352_v35 }
  0x54   : > { %355 = vst [vmem:[%s3247_s26 + $0x190] sm:$0xf] %v354_v36  ;;  %v356_v37 = vld [vmem:[%s3243_s25 + $0x328] sm:$0xf]  ;;  %v358_v38 = vld [vmem:[%s3243_s25 + $0x330] sm:$0xf] }
  0x55   : > { %v360_v39 = vld [vmem:[%s3243_s25 + $0x338] sm:$0xf]  ;;  %357 = vst [vmem:[%s3247_s26 + $0x194] sm:$0xf] %v356_v37  ;;  %359 = vst [vmem:[%s3247_s26 + $0x198] sm:$0xf] %v358_v38 }
  0x56   : > { %361 = vst [vmem:[%s3247_s26 + $0x19c] sm:$0xf] %v360_v39  ;;  %v362_v40 = vld [vmem:[%s3243_s25 + $0x340] sm:$0xf]  ;;  %v364_v41 = vld [vmem:[%s3243_s25 + $0x348] sm:$0xf] }
  0x57   : > { %v366_v42 = vld [vmem:[%s3243_s25 + $0x350] sm:$0xf]  ;;  %363 = vst [vmem:[%s3247_s26 + $0x1a0] sm:$0xf] %v362_v40  ;;  %365 = vst [vmem:[%s3247_s26 + $0x1a4] sm:$0xf] %v364_v41 }
  0x58   : > { %367 = vst [vmem:[%s3247_s26 + $0x1a8] sm:$0xf] %v366_v42  ;;  %v368_v43 = vld [vmem:[%s3243_s25 + $0x358] sm:$0xf]  ;;  %v370_v44 = vld [vmem:[%s3243_s25 + $0x360] sm:$0xf] }
  0x59   : > { %v372_v45 = vld [vmem:[%s3243_s25 + $0x368] sm:$0xf]  ;;  %369 = vst [vmem:[%s3247_s26 + $0x1ac] sm:$0xf] %v368_v43  ;;  %371 = vst [vmem:[%s3247_s26 + $0x1b0] sm:$0xf] %v370_v44 }
  0x5a   : > { %373 = vst [vmem:[%s3247_s26 + $0x1b4] sm:$0xf] %v372_v45  ;;  %v374_v46 = vld [vmem:[%s3243_s25 + $0x370] sm:$0xf]  ;;  %v376_v47 = vld [vmem:[%s3243_s25 + $0x378] sm:$0xf] }
  0x5b   : > { %v378_v48 = vld [vmem:[%s3243_s25 + $0x380] sm:$0xf]  ;;  %375 = vst [vmem:[%s3247_s26 + $0x1b8] sm:$0xf] %v374_v46  ;;  %377 = vst [vmem:[%s3247_s26 + $0x1bc] sm:$0xf] %v376_v47 }
  0x5c   : > { %379 = vst [vmem:[%s3247_s26 + $0x1c0] sm:$0xf] %v378_v48  ;;  %v380_v49 = vld [vmem:[%s3243_s25 + $0x388] sm:$0xf]  ;;  %v382_v50 = vld [vmem:[%s3243_s25 + $0x390] sm:$0xf] }
  0x5d   : > { %v384_v51 = vld [vmem:[%s3243_s25 + $0x398] sm:$0xf]  ;;  %381 = vst [vmem:[%s3247_s26 + $0x1c4] sm:$0xf] %v380_v49  ;;  %383 = vst [vmem:[%s3247_s26 + $0x1c8] sm:$0xf] %v382_v50 }
  0x5e   : > { %385 = vst [vmem:[%s3247_s26 + $0x1cc] sm:$0xf] %v384_v51  ;;  %v386_v52 = vld [vmem:[%s3243_s25 + $0x3a0] sm:$0xf]  ;;  %v388_v53 = vld [vmem:[%s3243_s25 + $0x3a8] sm:$0xf] }
  0x5f   : > { %v390_v54 = vld [vmem:[%s3243_s25 + $0x3b0] sm:$0xf]  ;;  %387 = vst [vmem:[%s3247_s26 + $0x1d0] sm:$0xf] %v386_v52  ;;  %389 = vst [vmem:[%s3247_s26 + $0x1d4] sm:$0xf] %v388_v53 }
  0x60   : > { %391 = vst [vmem:[%s3247_s26 + $0x1d8] sm:$0xf] %v390_v54  ;;  %v392_v55 = vld [vmem:[%s3243_s25 + $0x3b8] sm:$0xf]  ;;  %v394_v56 = vld [vmem:[%s3243_s25 + $0x3c0] sm:$0xf] }
  0x61   : > { %v396_v57 = vld [vmem:[%s3243_s25 + $0x3c8] sm:$0xf]  ;;  %393 = vst [vmem:[%s3247_s26 + $0x1dc] sm:$0xf] %v392_v55  ;;  %395 = vst [vmem:[%s3247_s26 + $0x1e0] sm:$0xf] %v394_v56 }
  0x62   : > { %397 = vst [vmem:[%s3247_s26 + $0x1e4] sm:$0xf] %v396_v57  ;;  %v398_v58 = vld [vmem:[%s3243_s25 + $0x3d0] sm:$0xf]  ;;  %v400_v59 = vld [vmem:[%s3243_s25 + $0x3d8] sm:$0xf] }
  0x63   : > { %v402_v60 = vld [vmem:[%s3243_s25 + $0x3e0] sm:$0xf]  ;;  %399 = vst [vmem:[%s3247_s26 + $0x1e8] sm:$0xf] %v398_v58  ;;  %401 = vst [vmem:[%s3247_s26 + $0x1ec] sm:$0xf] %v400_v59 }
  0x64   : > { %403 = vst [vmem:[%s3247_s26 + $0x1f0] sm:$0xf] %v402_v60  ;;  %v404_v61 = vld [vmem:[%s3243_s25 + $0x3e8] sm:$0xf]  ;;  %v406_v62 = vld [vmem:[%s3243_s25 + $0x3f0] sm:$0xf] }
  0x65   : > { %v408_v63 = vld [vmem:[%s3243_s25 + $0x3f8] sm:$0xf]  ;;  %405 = vst [vmem:[%s3247_s26 + $0x1f4] sm:$0xf] %v404_v61  ;;  %407 = vst [vmem:[%s3247_s26 + $0x1f8] sm:$0xf] %v406_v62 }
  0x66   : > { %409 = vst [vmem:[%s3247_s26 + $0x1fc] sm:$0xf] %v408_v63  ;;  %v410_v0 = vld [vmem:[%s3243_s25 + $0x400] sm:$0xf]  ;;  %v412_v1 = vld [vmem:[%s3243_s25 + $0x408] sm:$0xf] }
  0x67   : > { %v414_v2 = vld [vmem:[%s3243_s25 + $0x410] sm:$0xf]  ;;  %411 = vst [vmem:[%s3247_s26 + $0x200] sm:$0xf] %v410_v0  ;;  %413 = vst [vmem:[%s3247_s26 + $0x204] sm:$0xf] %v412_v1 }
  0x68   : > { %415 = vst [vmem:[%s3247_s26 + $0x208] sm:$0xf] %v414_v2  ;;  %v416_v3 = vld [vmem:[%s3243_s25 + $0x418] sm:$0xf]  ;;  %v418_v4 = vld [vmem:[%s3243_s25 + $0x420] sm:$0xf] }
  0x69   : > { %v420_v5 = vld [vmem:[%s3243_s25 + $0x428] sm:$0xf]  ;;  %417 = vst [vmem:[%s3247_s26 + $0x20c] sm:$0xf] %v416_v3  ;;  %419 = vst [vmem:[%s3247_s26 + $0x210] sm:$0xf] %v418_v4 }
  0x6a   : > { %421 = vst [vmem:[%s3247_s26 + $0x214] sm:$0xf] %v420_v5  ;;  %v422_v6 = vld [vmem:[%s3243_s25 + $0x430] sm:$0xf]  ;;  %v424_v7 = vld [vmem:[%s3243_s25 + $0x438] sm:$0xf] }
  0x6b   : > { %v426_v8 = vld [vmem:[%s3243_s25 + $0x440] sm:$0xf]  ;;  %423 = vst [vmem:[%s3247_s26 + $0x218] sm:$0xf] %v422_v6  ;;  %425 = vst [vmem:[%s3247_s26 + $0x21c] sm:$0xf] %v424_v7 }
  0x6c   : > { %427 = vst [vmem:[%s3247_s26 + $0x220] sm:$0xf] %v426_v8  ;;  %v428_v9 = vld [vmem:[%s3243_s25 + $0x448] sm:$0xf]  ;;  %v430_v10 = vld [vmem:[%s3243_s25 + $0x450] sm:$0xf] }
  0x6d   : > { %v432_v11 = vld [vmem:[%s3243_s25 + $0x458] sm:$0xf]  ;;  %429 = vst [vmem:[%s3247_s26 + $0x224] sm:$0xf] %v428_v9  ;;  %431 = vst [vmem:[%s3247_s26 + $0x228] sm:$0xf] %v430_v10 }
  0x6e   : > { %433 = vst [vmem:[%s3247_s26 + $0x22c] sm:$0xf] %v432_v11  ;;  %v434_v12 = vld [vmem:[%s3243_s25 + $0x460] sm:$0xf]  ;;  %v436_v13 = vld [vmem:[%s3243_s25 + $0x468] sm:$0xf] }
  0x6f   : > { %v438_v14 = vld [vmem:[%s3243_s25 + $0x470] sm:$0xf]  ;;  %435 = vst [vmem:[%s3247_s26 + $0x230] sm:$0xf] %v434_v12  ;;  %437 = vst [vmem:[%s3247_s26 + $0x234] sm:$0xf] %v436_v13 }
  0x70   : > { %439 = vst [vmem:[%s3247_s26 + $0x238] sm:$0xf] %v438_v14  ;;  %v440_v15 = vld [vmem:[%s3243_s25 + $0x478] sm:$0xf]  ;;  %v442_v16 = vld [vmem:[%s3243_s25 + $0x480] sm:$0xf] }
  0x71   : > { %v444_v17 = vld [vmem:[%s3243_s25 + $0x488] sm:$0xf]  ;;  %441 = vst [vmem:[%s3247_s26 + $0x23c] sm:$0xf] %v440_v15  ;;  %443 = vst [vmem:[%s3247_s26 + $0x240] sm:$0xf] %v442_v16 }
  0x72   : > { %445 = vst [vmem:[%s3247_s26 + $0x244] sm:$0xf] %v444_v17  ;;  %v446_v18 = vld [vmem:[%s3243_s25 + $0x490] sm:$0xf]  ;;  %v448_v19 = vld [vmem:[%s3243_s25 + $0x498] sm:$0xf] }
  0x73   : > { %v450_v20 = vld [vmem:[%s3243_s25 + $0x4a0] sm:$0xf]  ;;  %447 = vst [vmem:[%s3247_s26 + $0x248] sm:$0xf] %v446_v18  ;;  %449 = vst [vmem:[%s3247_s26 + $0x24c] sm:$0xf] %v448_v19 }
  0x74   : > { %451 = vst [vmem:[%s3247_s26 + $0x250] sm:$0xf] %v450_v20  ;;  %v452_v21 = vld [vmem:[%s3243_s25 + $0x4a8] sm:$0xf]  ;;  %v454_v22 = vld [vmem:[%s3243_s25 + $0x4b0] sm:$0xf] }
  0x75   : > { %v456_v23 = vld [vmem:[%s3243_s25 + $0x4b8] sm:$0xf]  ;;  %453 = vst [vmem:[%s3247_s26 + $0x254] sm:$0xf] %v452_v21  ;;  %455 = vst [vmem:[%s3247_s26 + $0x258] sm:$0xf] %v454_v22 }
  0x76   : > { %457 = vst [vmem:[%s3247_s26 + $0x25c] sm:$0xf] %v456_v23  ;;  %v458_v24 = vld [vmem:[%s3243_s25 + $0x4c0] sm:$0xf]  ;;  %v460_v25 = vld [vmem:[%s3243_s25 + $0x4c8] sm:$0xf] }
  0x77   : > { %v462_v26 = vld [vmem:[%s3243_s25 + $0x4d0] sm:$0xf]  ;;  %459 = vst [vmem:[%s3247_s26 + $0x260] sm:$0xf] %v458_v24  ;;  %461 = vst [vmem:[%s3247_s26 + $0x264] sm:$0xf] %v460_v25 }
  0x78   : > { %463 = vst [vmem:[%s3247_s26 + $0x268] sm:$0xf] %v462_v26  ;;  %v464_v27 = vld [vmem:[%s3243_s25 + $0x4d8] sm:$0xf]  ;;  %v466_v28 = vld [vmem:[%s3243_s25 + $0x4e0] sm:$0xf] }
  0x79   : > { %v468_v29 = vld [vmem:[%s3243_s25 + $0x4e8] sm:$0xf]  ;;  %465 = vst [vmem:[%s3247_s26 + $0x26c] sm:$0xf] %v464_v27  ;;  %467 = vst [vmem:[%s3247_s26 + $0x270] sm:$0xf] %v466_v28 }
  0x7a   : > { %469 = vst [vmem:[%s3247_s26 + $0x274] sm:$0xf] %v468_v29  ;;  %v470_v30 = vld [vmem:[%s3243_s25 + $0x4f0] sm:$0xf]  ;;  %v472_v31 = vld [vmem:[%s3243_s25 + $0x4f8] sm:$0xf] }
  0x7b   : > { %v474_v32 = vld [vmem:[%s3243_s25 + $0x500] sm:$0xf]  ;;  %471 = vst [vmem:[%s3247_s26 + $0x278] sm:$0xf] %v470_v30  ;;  %473 = vst [vmem:[%s3247_s26 + $0x27c] sm:$0xf] %v472_v31 }
  0x7c   : > { %475 = vst [vmem:[%s3247_s26 + $0x280] sm:$0xf] %v474_v32  ;;  %v476_v33 = vld [vmem:[%s3243_s25 + $0x508] sm:$0xf]  ;;  %v478_v34 = vld [vmem:[%s3243_s25 + $0x510] sm:$0xf] }
  0x7d   : > { %v480_v35 = vld [vmem:[%s3243_s25 + $0x518] sm:$0xf]  ;;  %477 = vst [vmem:[%s3247_s26 + $0x284] sm:$0xf] %v476_v33  ;;  %479 = vst [vmem:[%s3247_s26 + $0x288] sm:$0xf] %v478_v34 }
  0x7e   : > { %481 = vst [vmem:[%s3247_s26 + $0x28c] sm:$0xf] %v480_v35  ;;  %v482_v36 = vld [vmem:[%s3243_s25 + $0x520] sm:$0xf]  ;;  %v484_v37 = vld [vmem:[%s3243_s25 + $0x528] sm:$0xf] }
  0x7f   : > { %v486_v38 = vld [vmem:[%s3243_s25 + $0x530] sm:$0xf]  ;;  %483 = vst [vmem:[%s3247_s26 + $0x290] sm:$0xf] %v482_v36  ;;  %485 = vst [vmem:[%s3247_s26 + $0x294] sm:$0xf] %v484_v37 }
  0x80   : > { %487 = vst [vmem:[%s3247_s26 + $0x298] sm:$0xf] %v486_v38  ;;  %v488_v39 = vld [vmem:[%s3243_s25 + $0x538] sm:$0xf]  ;;  %v490_v40 = vld [vmem:[%s3243_s25 + $0x540] sm:$0xf] }
  0x81   : > { %v492_v41 = vld [vmem:[%s3243_s25 + $0x548] sm:$0xf]  ;;  %489 = vst [vmem:[%s3247_s26 + $0x29c] sm:$0xf] %v488_v39  ;;  %491 = vst [vmem:[%s3247_s26 + $0x2a0] sm:$0xf] %v490_v40 }
  0x82   : > { %493 = vst [vmem:[%s3247_s26 + $0x2a4] sm:$0xf] %v492_v41  ;;  %v494_v42 = vld [vmem:[%s3243_s25 + $0x550] sm:$0xf]  ;;  %v496_v43 = vld [vmem:[%s3243_s25 + $0x558] sm:$0xf] }
  0x83   : > { %v498_v44 = vld [vmem:[%s3243_s25 + $0x560] sm:$0xf]  ;;  %495 = vst [vmem:[%s3247_s26 + $0x2a8] sm:$0xf] %v494_v42  ;;  %497 = vst [vmem:[%s3247_s26 + $0x2ac] sm:$0xf] %v496_v43 }
  0x84   : > { %499 = vst [vmem:[%s3247_s26 + $0x2b0] sm:$0xf] %v498_v44  ;;  %v500_v45 = vld [vmem:[%s3243_s25 + $0x568] sm:$0xf]  ;;  %v502_v46 = vld [vmem:[%s3243_s25 + $0x570] sm:$0xf] }
  0x85   : > { %v504_v47 = vld [vmem:[%s3243_s25 + $0x578] sm:$0xf]  ;;  %501 = vst [vmem:[%s3247_s26 + $0x2b4] sm:$0xf] %v500_v45  ;;  %503 = vst [vmem:[%s3247_s26 + $0x2b8] sm:$0xf] %v502_v46 }
  0x86   : > { %505 = vst [vmem:[%s3247_s26 + $0x2bc] sm:$0xf] %v504_v47  ;;  %v506_v48 = vld [vmem:[%s3243_s25 + $0x580] sm:$0xf]  ;;  %v508_v49 = vld [vmem:[%s3243_s25 + $0x588] sm:$0xf] }
  0x87   : > { %v510_v50 = vld [vmem:[%s3243_s25 + $0x590] sm:$0xf]  ;;  %507 = vst [vmem:[%s3247_s26 + $0x2c0] sm:$0xf] %v506_v48  ;;  %509 = vst [vmem:[%s3247_s26 + $0x2c4] sm:$0xf] %v508_v49 }
  0x88   : > { %511 = vst [vmem:[%s3247_s26 + $0x2c8] sm:$0xf] %v510_v50  ;;  %v512_v51 = vld [vmem:[%s3243_s25 + $0x598] sm:$0xf]  ;;  %v514_v52 = vld [vmem:[%s3243_s25 + $0x5a0] sm:$0xf] }
  0x89   : > { %v516_v53 = vld [vmem:[%s3243_s25 + $0x5a8] sm:$0xf]  ;;  %513 = vst [vmem:[%s3247_s26 + $0x2cc] sm:$0xf] %v512_v51  ;;  %515 = vst [vmem:[%s3247_s26 + $0x2d0] sm:$0xf] %v514_v52 }
  0x8a   : > { %517 = vst [vmem:[%s3247_s26 + $0x2d4] sm:$0xf] %v516_v53  ;;  %v518_v54 = vld [vmem:[%s3243_s25 + $0x5b0] sm:$0xf]  ;;  %v520_v55 = vld [vmem:[%s3243_s25 + $0x5b8] sm:$0xf] }
  0x8b   : > { %v522_v56 = vld [vmem:[%s3243_s25 + $0x5c0] sm:$0xf]  ;;  %519 = vst [vmem:[%s3247_s26 + $0x2d8] sm:$0xf] %v518_v54  ;;  %521 = vst [vmem:[%s3247_s26 + $0x2dc] sm:$0xf] %v520_v55 }
  0x8c   : > { %523 = vst [vmem:[%s3247_s26 + $0x2e0] sm:$0xf] %v522_v56  ;;  %v524_v57 = vld [vmem:[%s3243_s25 + $0x5c8] sm:$0xf]  ;;  %v526_v58 = vld [vmem:[%s3243_s25 + $0x5d0] sm:$0xf] }
  0x8d   : > { %v528_v59 = vld [vmem:[%s3243_s25 + $0x5d8] sm:$0xf]  ;;  %525 = vst [vmem:[%s3247_s26 + $0x2e4] sm:$0xf] %v524_v57  ;;  %527 = vst [vmem:[%s3247_s26 + $0x2e8] sm:$0xf] %v526_v58 }
  0x8e   : > { %529 = vst [vmem:[%s3247_s26 + $0x2ec] sm:$0xf] %v528_v59  ;;  %v530_v60 = vld [vmem:[%s3243_s25 + $0x5e0] sm:$0xf]  ;;  %v532_v61 = vld [vmem:[%s3243_s25 + $0x5e8] sm:$0xf] }
  0x8f   : > { %v534_v62 = vld [vmem:[%s3243_s25 + $0x5f0] sm:$0xf]  ;;  %531 = vst [vmem:[%s3247_s26 + $0x2f0] sm:$0xf] %v530_v60  ;;  %533 = vst [vmem:[%s3247_s26 + $0x2f4] sm:$0xf] %v532_v61 }
  0x90   : > { %535 = vst [vmem:[%s3247_s26 + $0x2f8] sm:$0xf] %v534_v62  ;;  %v536_v63 = vld [vmem:[%s3243_s25 + $0x5f8] sm:$0xf]  ;;  %v538_v0 = vld [vmem:[%s3243_s25 + $0x600] sm:$0xf] }
  0x91   : > { %v540_v1 = vld [vmem:[%s3243_s25 + $0x608] sm:$0xf]  ;;  %537 = vst [vmem:[%s3247_s26 + $0x2fc] sm:$0xf] %v536_v63  ;;  %539 = vst [vmem:[%s3247_s26 + $0x300] sm:$0xf] %v538_v0 }
  0x92   : > { %541 = vst [vmem:[%s3247_s26 + $0x304] sm:$0xf] %v540_v1  ;;  %v542_v2 = vld [vmem:[%s3243_s25 + $0x610] sm:$0xf]  ;;  %v544_v3 = vld [vmem:[%s3243_s25 + $0x618] sm:$0xf] }
  0x93   : > { %v546_v4 = vld [vmem:[%s3243_s25 + $0x620] sm:$0xf]  ;;  %543 = vst [vmem:[%s3247_s26 + $0x308] sm:$0xf] %v542_v2  ;;  %545 = vst [vmem:[%s3247_s26 + $0x30c] sm:$0xf] %v544_v3 }
  0x94   : > { %547 = vst [vmem:[%s3247_s26 + $0x310] sm:$0xf] %v546_v4  ;;  %v548_v5 = vld [vmem:[%s3243_s25 + $0x628] sm:$0xf]  ;;  %v550_v6 = vld [vmem:[%s3243_s25 + $0x630] sm:$0xf] }
  0x95   : > { %v552_v7 = vld [vmem:[%s3243_s25 + $0x638] sm:$0xf]  ;;  %549 = vst [vmem:[%s3247_s26 + $0x314] sm:$0xf] %v548_v5  ;;  %551 = vst [vmem:[%s3247_s26 + $0x318] sm:$0xf] %v550_v6 }
  0x96   : > { %553 = vst [vmem:[%s3247_s26 + $0x31c] sm:$0xf] %v552_v7  ;;  %v554_v8 = vld [vmem:[%s3243_s25 + $0x640] sm:$0xf]  ;;  %v556_v9 = vld [vmem:[%s3243_s25 + $0x648] sm:$0xf] }
  0x97   : > { %v558_v10 = vld [vmem:[%s3243_s25 + $0x650] sm:$0xf]  ;;  %555 = vst [vmem:[%s3247_s26 + $0x320] sm:$0xf] %v554_v8  ;;  %557 = vst [vmem:[%s3247_s26 + $0x324] sm:$0xf] %v556_v9 }
  0x98   : > { %559 = vst [vmem:[%s3247_s26 + $0x328] sm:$0xf] %v558_v10  ;;  %v560_v11 = vld [vmem:[%s3243_s25 + $0x658] sm:$0xf]  ;;  %v562_v12 = vld [vmem:[%s3243_s25 + $0x660] sm:$0xf] }
  0x99   : > { %v564_v13 = vld [vmem:[%s3243_s25 + $0x668] sm:$0xf]  ;;  %561 = vst [vmem:[%s3247_s26 + $0x32c] sm:$0xf] %v560_v11  ;;  %563 = vst [vmem:[%s3247_s26 + $0x330] sm:$0xf] %v562_v12 }
  0x9a   : > { %565 = vst [vmem:[%s3247_s26 + $0x334] sm:$0xf] %v564_v13  ;;  %v566_v14 = vld [vmem:[%s3243_s25 + $0x670] sm:$0xf]  ;;  %v568_v15 = vld [vmem:[%s3243_s25 + $0x678] sm:$0xf] }
  0x9b   : > { %v570_v16 = vld [vmem:[%s3243_s25 + $0x680] sm:$0xf]  ;;  %567 = vst [vmem:[%s3247_s26 + $0x338] sm:$0xf] %v566_v14  ;;  %569 = vst [vmem:[%s3247_s26 + $0x33c] sm:$0xf] %v568_v15 }
  0x9c   : > { %571 = vst [vmem:[%s3247_s26 + $0x340] sm:$0xf] %v570_v16  ;;  %v572_v17 = vld [vmem:[%s3243_s25 + $0x688] sm:$0xf]  ;;  %v574_v18 = vld [vmem:[%s3243_s25 + $0x690] sm:$0xf] }
  0x9d   : > { %v576_v19 = vld [vmem:[%s3243_s25 + $0x698] sm:$0xf]  ;;  %573 = vst [vmem:[%s3247_s26 + $0x344] sm:$0xf] %v572_v17  ;;  %575 = vst [vmem:[%s3247_s26 + $0x348] sm:$0xf] %v574_v18 }
  0x9e   : > { %577 = vst [vmem:[%s3247_s26 + $0x34c] sm:$0xf] %v576_v19  ;;  %v578_v20 = vld [vmem:[%s3243_s25 + $0x6a0] sm:$0xf]  ;;  %v580_v21 = vld [vmem:[%s3243_s25 + $0x6a8] sm:$0xf] }
  0x9f   : > { %v582_v22 = vld [vmem:[%s3243_s25 + $0x6b0] sm:$0xf]  ;;  %579 = vst [vmem:[%s3247_s26 + $0x350] sm:$0xf] %v578_v20  ;;  %581 = vst [vmem:[%s3247_s26 + $0x354] sm:$0xf] %v580_v21 }
  0xa0   : > { %583 = vst [vmem:[%s3247_s26 + $0x358] sm:$0xf] %v582_v22  ;;  %v584_v23 = vld [vmem:[%s3243_s25 + $0x6b8] sm:$0xf]  ;;  %v586_v24 = vld [vmem:[%s3243_s25 + $0x6c0] sm:$0xf] }
  0xa1   : > { %v588_v25 = vld [vmem:[%s3243_s25 + $0x6c8] sm:$0xf]  ;;  %585 = vst [vmem:[%s3247_s26 + $0x35c] sm:$0xf] %v584_v23  ;;  %587 = vst [vmem:[%s3247_s26 + $0x360] sm:$0xf] %v586_v24 }
  0xa2   : > { %589 = vst [vmem:[%s3247_s26 + $0x364] sm:$0xf] %v588_v25  ;;  %v590_v26 = vld [vmem:[%s3243_s25 + $0x6d0] sm:$0xf]  ;;  %v592_v27 = vld [vmem:[%s3243_s25 + $0x6d8] sm:$0xf] }
  0xa3   : > { %v594_v28 = vld [vmem:[%s3243_s25 + $0x6e0] sm:$0xf]  ;;  %591 = vst [vmem:[%s3247_s26 + $0x368] sm:$0xf] %v590_v26  ;;  %593 = vst [vmem:[%s3247_s26 + $0x36c] sm:$0xf] %v592_v27 }
  0xa4   : > { %595 = vst [vmem:[%s3247_s26 + $0x370] sm:$0xf] %v594_v28  ;;  %v596_v29 = vld [vmem:[%s3243_s25 + $0x6e8] sm:$0xf]  ;;  %v598_v30 = vld [vmem:[%s3243_s25 + $0x6f0] sm:$0xf] }
  0xa5   : > { %v600_v31 = vld [vmem:[%s3243_s25 + $0x6f8] sm:$0xf]  ;;  %597 = vst [vmem:[%s3247_s26 + $0x374] sm:$0xf] %v596_v29  ;;  %599 = vst [vmem:[%s3247_s26 + $0x378] sm:$0xf] %v598_v30 }
  0xa6   : > { %601 = vst [vmem:[%s3247_s26 + $0x37c] sm:$0xf] %v600_v31  ;;  %v602_v32 = vld [vmem:[%s3243_s25 + $0x700] sm:$0xf]  ;;  %v604_v33 = vld [vmem:[%s3243_s25 + $0x708] sm:$0xf] }
  0xa7   : > { %v606_v34 = vld [vmem:[%s3243_s25 + $0x710] sm:$0xf]  ;;  %603 = vst [vmem:[%s3247_s26 + $0x380] sm:$0xf] %v602_v32  ;;  %605 = vst [vmem:[%s3247_s26 + $0x384] sm:$0xf] %v604_v33 }
  0xa8   : > { %607 = vst [vmem:[%s3247_s26 + $0x388] sm:$0xf] %v606_v34  ;;  %v608_v35 = vld [vmem:[%s3243_s25 + $0x718] sm:$0xf]  ;;  %v610_v36 = vld [vmem:[%s3243_s25 + $0x720] sm:$0xf] }
  0xa9   : > { %v612_v37 = vld [vmem:[%s3243_s25 + $0x728] sm:$0xf]  ;;  %609 = vst [vmem:[%s3247_s26 + $0x38c] sm:$0xf] %v608_v35  ;;  %611 = vst [vmem:[%s3247_s26 + $0x390] sm:$0xf] %v610_v36 }
  0xaa   : > { %613 = vst [vmem:[%s3247_s26 + $0x394] sm:$0xf] %v612_v37  ;;  %v614_v38 = vld [vmem:[%s3243_s25 + $0x730] sm:$0xf]  ;;  %v616_v39 = vld [vmem:[%s3243_s25 + $0x738] sm:$0xf] }
  0xab   : > { %v618_v40 = vld [vmem:[%s3243_s25 + $0x740] sm:$0xf]  ;;  %615 = vst [vmem:[%s3247_s26 + $0x398] sm:$0xf] %v614_v38  ;;  %617 = vst [vmem:[%s3247_s26 + $0x39c] sm:$0xf] %v616_v39 }
  0xac   : > { %619 = vst [vmem:[%s3247_s26 + $0x3a0] sm:$0xf] %v618_v40  ;;  %v620_v41 = vld [vmem:[%s3243_s25 + $0x748] sm:$0xf]  ;;  %v622_v42 = vld [vmem:[%s3243_s25 + $0x750] sm:$0xf] }
  0xad   : > { %v624_v43 = vld [vmem:[%s3243_s25 + $0x758] sm:$0xf]  ;;  %621 = vst [vmem:[%s3247_s26 + $0x3a4] sm:$0xf] %v620_v41  ;;  %623 = vst [vmem:[%s3247_s26 + $0x3a8] sm:$0xf] %v622_v42 }
  0xae   : > { %625 = vst [vmem:[%s3247_s26 + $0x3ac] sm:$0xf] %v624_v43  ;;  %v626_v44 = vld [vmem:[%s3243_s25 + $0x760] sm:$0xf]  ;;  %v628_v45 = vld [vmem:[%s3243_s25 + $0x768] sm:$0xf] }
  0xaf   : > { %v630_v46 = vld [vmem:[%s3243_s25 + $0x770] sm:$0xf]  ;;  %627 = vst [vmem:[%s3247_s26 + $0x3b0] sm:$0xf] %v626_v44  ;;  %629 = vst [vmem:[%s3247_s26 + $0x3b4] sm:$0xf] %v628_v45 }
  0xb0   : > { %631 = vst [vmem:[%s3247_s26 + $0x3b8] sm:$0xf] %v630_v46  ;;  %v632_v47 = vld [vmem:[%s3243_s25 + $0x778] sm:$0xf]  ;;  %v634_v48 = vld [vmem:[%s3243_s25 + $0x780] sm:$0xf] }
  0xb1   : > { %v636_v49 = vld [vmem:[%s3243_s25 + $0x788] sm:$0xf]  ;;  %633 = vst [vmem:[%s3247_s26 + $0x3bc] sm:$0xf] %v632_v47  ;;  %635 = vst [vmem:[%s3247_s26 + $0x3c0] sm:$0xf] %v634_v48 }
  0xb2   : > { %637 = vst [vmem:[%s3247_s26 + $0x3c4] sm:$0xf] %v636_v49  ;;  %v638_v50 = vld [vmem:[%s3243_s25 + $0x790] sm:$0xf]  ;;  %v640_v51 = vld [vmem:[%s3243_s25 + $0x798] sm:$0xf] }
  0xb3   : > { %v642_v52 = vld [vmem:[%s3243_s25 + $0x7a0] sm:$0xf]  ;;  %639 = vst [vmem:[%s3247_s26 + $0x3c8] sm:$0xf] %v638_v50  ;;  %641 = vst [vmem:[%s3247_s26 + $0x3cc] sm:$0xf] %v640_v51 }
  0xb4   : > { %643 = vst [vmem:[%s3247_s26 + $0x3d0] sm:$0xf] %v642_v52  ;;  %v644_v53 = vld [vmem:[%s3243_s25 + $0x7a8] sm:$0xf]  ;;  %v646_v54 = vld [vmem:[%s3243_s25 + $0x7b0] sm:$0xf] }
  0xb5   : > { %v648_v55 = vld [vmem:[%s3243_s25 + $0x7b8] sm:$0xf]  ;;  %645 = vst [vmem:[%s3247_s26 + $0x3d4] sm:$0xf] %v644_v53  ;;  %647 = vst [vmem:[%s3247_s26 + $0x3d8] sm:$0xf] %v646_v54 }
  0xb6   : > { %649 = vst [vmem:[%s3247_s26 + $0x3dc] sm:$0xf] %v648_v55  ;;  %v650_v56 = vld [vmem:[%s3243_s25 + $0x7c0] sm:$0xf]  ;;  %v652_v57 = vld [vmem:[%s3243_s25 + $0x7c8] sm:$0xf] }
  0xb7   : > { %v654_v58 = vld [vmem:[%s3243_s25 + $0x7d0] sm:$0xf]  ;;  %651 = vst [vmem:[%s3247_s26 + $0x3e0] sm:$0xf] %v650_v56  ;;  %653 = vst [vmem:[%s3247_s26 + $0x3e4] sm:$0xf] %v652_v57 }
  0xb8   : > { %655 = vst [vmem:[%s3247_s26 + $0x3e8] sm:$0xf] %v654_v58  ;;  %v656_v59 = vld [vmem:[%s3243_s25 + $0x7d8] sm:$0xf]  ;;  %v658_v60 = vld [vmem:[%s3243_s25 + $0x7e0] sm:$0xf] }
  0xb9   : > { %v660_v61 = vld [vmem:[%s3243_s25 + $0x7e8] sm:$0xf]  ;;  %657 = vst [vmem:[%s3247_s26 + $0x3ec] sm:$0xf] %v656_v59  ;;  %659 = vst [vmem:[%s3247_s26 + $0x3f0] sm:$0xf] %v658_v60 }
  0xba   : > { %661 = vst [vmem:[%s3247_s26 + $0x3f4] sm:$0xf] %v660_v61  ;;  %v662_v62 = vld [vmem:[%s3243_s25 + $0x7f0] sm:$0xf]  ;;  %v664_v63 = vld [vmem:[%s3243_s25 + $0x7f8] sm:$0xf] }
  0xbb   : > { %663 = vst [vmem:[%s3247_s26 + $0x3f8] sm:$0xf] %v662_v62  ;;  %665 = vst [vmem:[%s3247_s26 + $0x3fc] sm:$0xf] %v664_v63 }
  0xbc PF: > { %p2703_p5 = scmp.ge.s32.totalorder %s3187_s14, 1  ;;  %p1205_p6 = scmp.lt.s32.totalorder %s3187_s14, 3 }
  0xbe   : > { %p1206_p7 = pnand %p2703_p5, %p1205_p6 }
  0xbf   : > { %s1212_s27 = sand.u32 (!%p1206_p7), 1, %s3179_s12   ;;  %v1246_v0 = vld [vmem:[%s3964_s0 + $0x8] sm:$0xff] (!%p1206_p7)  ;;  %v1248_v1 = vld [vmem:[%s3964_s0 + $0x18] sm:$0xff] (!%p1206_p7)  ;;  %v1245_v31 = vld [vmem:[%s3964_s0] sm:$0xff] (!%p1206_p7)  ;;  %p1237_p8 = scmp.lt.s32.totalorder (!%p1206_p7), %s2697_s15, 1 }
  0xc0   : > { %1209 = sbr.rel (%p1206_p7) target bundleno = 544 (0x220), region = 69  ;;  %s2704_s5 = sshll.u32 (!%p1206_p7), %s1212_s27, 10  ;;  %v1262_v2 = vpack.c.bf16 (!%p1206_p7), %v1246_v0, %v1246_v0  ;;  %v1264_v3 = vpack.c.bf16 (!%p1206_p7), %v1248_v1, %v1248_v1  ;;  %v1247_v33 = vld [vmem:[%s3964_s0 + $0x10] sm:$0xff] (!%p1206_p7)  ;;  %v1250_v35 = vld [vmem:[%s3964_s0 + $0x28] sm:$0xff] (!%p1206_p7)  ;;  %v1252_v37 = vld [vmem:[%s3964_s0 + $0x38] sm:$0xff] (!%p1206_p7)  ;;  %v1261_v40 = vpack.c.bf16 (!%p1206_p7), %v1245_v31, %v1245_v31 }
  0xc1   : > { %s3768_s6 = scalar_lea.vmem (!%p1206_p7), [#allocation2], %s2704_s5  ;;  %v1263_v41 = vpack.c.bf16 (!%p1206_p7), %v1247_v33, %v1247_v33  ;;  %v1266_v44 = vpack.c.bf16 (!%p1206_p7), %v1250_v35, %v1250_v35  ;;  %v1268_v46 = vpack.c.bf16 (!%p1206_p7), %v1252_v37, %v1252_v37 }
  0xc2   : > { %v3037_v4 = vld [vmem:[%s3768_s6 + $0x40] sm:$0xff] (!%p1206_p7)   ;;  %2340 = vmatprep.mubr.bf16.mxu0 (!%p1206_p7), %v1262_v2  ;;  %2380 = vmatprep.mubr.bf16.mxu1 (!%p1206_p7), %v1264_v3  ;;  %v3041_v8 = vld [vmem:[%s3768_s6 + $0x48] sm:$0xff] (!%p1206_p7)   ;;  %v3045_v12 = vld [vmem:[%s3768_s6 + $0x50] sm:$0xff] (!%p1206_p7)  }
  0xc3   : > { %v3038_v5 = vld [vmem:[%s3768_s6 + $0xc0] sm:$0xff] (!%p1206_p7)   ;;  %2837 = vmatprep.subr.bf16.mxu0 (!%p1206_p7), %v3037_v4  ;;  %v3042_v9 = vld [vmem:[%s3768_s6 + $0xc8] sm:$0xff] (!%p1206_p7)   ;;  %v3046_v13 = vld [vmem:[%s3768_s6 + $0xd0] sm:$0xff] (!%p1206_p7)  }
  0xc4   : > { %v3039_v6 = vld [vmem:[%s3768_s6] sm:$0xff] (!%p1206_p7)   ;;  %2859 = vmatprep.subr.bf16.mxu1 (!%p1206_p7), %v3038_v5  ;;  %v3043_v10 = vld [vmem:[%s3768_s6 + $0x8] sm:$0xff] (!%p1206_p7)   ;;  %v3047_v14 = vld [vmem:[%s3768_s6 + $0x10] sm:$0xff] (!%p1206_p7)  }
  0xc5   : > { %v3040_v7 = vld [vmem:[%s3768_s6 + $0x80] sm:$0xff] (!%p1206_p7)   ;;  %2838 = vmatpush3.bf16.msra.mxu0 (!%p1206_p7), %v3039_v6  ;;  %v3044_v11 = vld [vmem:[%s3768_s6 + $0x88] sm:$0xff] (!%p1206_p7)   ;;  %v3048_v15 = vld [vmem:[%s3768_s6 + $0x90] sm:$0xff] (!%p1206_p7)  }
  0xc6   : > { %2860 = vmatpush3.bf16.msra.mxu1 (!%p1206_p7), %v3040_v7  ;;  %2839 = vmatprep.subr.bf16.mxu0 (!%p1206_p7), %v3041_v8  ;;  %v3049_v16 = vld [vmem:[%s3768_s6 + $0x58] sm:$0xff] (!%p1206_p7)   ;;  %v3053_v20 = vld [vmem:[%s3768_s6 + $0x60] sm:$0xff] (!%p1206_p7)   ;;  %v3057_v24 = vld [vmem:[%s3768_s6 + $0x68] sm:$0xff] (!%p1206_p7)  }
  0xc7   : > { %2861 = vmatprep.subr.bf16.mxu1 %v3042_v9  ;;  %v3050_v17 = vld [vmem:[%s3768_s6 + $0xd8] sm:$0xff]   ;;  %v3054_v21 = vld [vmem:[%s3768_s6 + $0xe0] sm:$0xff]   ;;  %v3058_v25 = vld [vmem:[%s3768_s6 + $0xe8] sm:$0xff]   ;;  %s3972_s15 = smov (!%p1237_p8, %s2697_s15), 1 }
  0xc8   : > { %v3051_v18 = vld [vmem:[%s3768_s6 + $0x18] sm:$0xff]   ;;  %v3055_v22 = vld [vmem:[%s3768_s6 + $0x20] sm:$0xff]   ;;  %v3059_v26 = vld [vmem:[%s3768_s6 + $0x28] sm:$0xff]   ;;  %s1239_s20 = scalar_lea.vmem %s3966_s2, %s3972_s15  ;;  %s2705_s14 = sshll.u32 %s3972_s15, 3 }
  0xc9   : > { %2840 = vmatpush3.bf16.msra.mxu0 %v3043_v10  ;;  %v3052_v19 = vld [vmem:[%s3768_s6 + $0x98] sm:$0xff]   ;;  %v3056_v23 = vld [vmem:[%s3768_s6 + $0xa0] sm:$0xff]   ;;  %v3060_v27 = vld [vmem:[%s3768_s6 + $0xa8] sm:$0xff]   ;;  %s1243_s23 = scalar_lea.vmem %s3967_s3, %s2705_s14 }
  0xca   : > { %2862 = vmatpush3.bf16.msra.mxu1 %v3044_v11  ;;  %2841 = vmatprep.subr.bf16.mxu0 %v3045_v12  ;;  %v3061_v28 = vld [vmem:[%s3768_s6 + $0x70] sm:$0xff]   ;;  %v3065_v34 = vld [vmem:[%s3768_s6 + $0x78] sm:$0xff]   ;;  %v3069_v42 = vld [vmem:[%s3768_s6 + $0x140] sm:$0xff]  }
  0xcb   : > { %2863 = vmatprep.subr.bf16.mxu1 %v3046_v13  ;;  %v3062_v29 = vld [vmem:[%s3768_s6 + $0xf0] sm:$0xff]   ;;  %v3066_v36 = vld [vmem:[%s3768_s6 + $0xf8] sm:$0xff]   ;;  %v3070_v43 = vld [vmem:[%s3768_s6 + $0x1c0] sm:$0xff]  }
  0xcc   : > { %v3063_v30 = vld [vmem:[%s3768_s6 + $0x30] sm:$0xff]   ;;  %v3067_v38 = vld [vmem:[%s3768_s6 + $0x38] sm:$0xff]   ;;  %v3071_v45 = vld [vmem:[%s3768_s6 + $0x100] sm:$0xff]  }
  0xcd   : > { %2842 = vmatpush3.bf16.msra.mxu0 %v3047_v14  ;;  %v3064_v32 = vld [vmem:[%s3768_s6 + $0xb0] sm:$0xff]   ;;  %v3068_v39 = vld [vmem:[%s3768_s6 + $0xb8] sm:$0xff]   ;;  %v3072_v47 = vld [vmem:[%s3768_s6 + $0x180] sm:$0xff]  }
  0xce   : > { %2864 = vmatpush3.bf16.msra.mxu1 %v3048_v15  ;;  %2843 = vmatprep.subr.bf16.mxu0 %v3049_v16  ;;  %v3073_v48 = vld [vmem:[%s3768_s6 + $0x148] sm:$0xff]   ;;  %v3077_v52 = vld [vmem:[%s3768_s6 + $0x150] sm:$0xff]   ;;  %v3081_v56 = vld [vmem:[%s3768_s6 + $0x158] sm:$0xff]  }
  0xcf   : > { %2865 = vmatprep.subr.bf16.mxu1 %v3050_v17  ;;  %v3074_v49 = vld [vmem:[%s3768_s6 + $0x1c8] sm:$0xff]   ;;  %v3078_v53 = vld [vmem:[%s3768_s6 + $0x1d0] sm:$0xff]   ;;  %v3082_v57 = vld [vmem:[%s3768_s6 + $0x1d8] sm:$0xff]  }
  0xd0   : > { %v3075_v50 = vld [vmem:[%s3768_s6 + $0x108] sm:$0xff]   ;;  %v3079_v54 = vld [vmem:[%s3768_s6 + $0x110] sm:$0xff]   ;;  %v3083_v58 = vld [vmem:[%s3768_s6 + $0x118] sm:$0xff]  }
  0xd1   : > { %2844 = vmatpush3.bf16.msra.mxu0 %v3051_v18  ;;  %v3076_v51 = vld [vmem:[%s3768_s6 + $0x188] sm:$0xff]   ;;  %v3080_v55 = vld [vmem:[%s3768_s6 + $0x190] sm:$0xff]   ;;  %v3084_v59 = vld [vmem:[%s3768_s6 + $0x198] sm:$0xff]  }
  0xd2   : > { %2866 = vmatpush3.bf16.msra.mxu1 %v3052_v19  ;;  %2845 = vmatprep.subr.bf16.mxu0 %v3053_v20  ;;  %v3085_v60 = vld [vmem:[%s3768_s6 + $0x160] sm:$0xff]   ;;  %v3089_v0 = vld [vmem:[%s3768_s6 + $0x168] sm:$0xff]   ;;  %v3093_v4 = vld [vmem:[%s3768_s6 + $0x170] sm:$0xff]  }
  0xd3   : > { %2867 = vmatprep.subr.bf16.mxu1 %v3054_v21  ;;  %v3086_v61 = vld [vmem:[%s3768_s6 + $0x1e0] sm:$0xff]   ;;  %v3090_v1 = vld [vmem:[%s3768_s6 + $0x1e8] sm:$0xff]   ;;  %v3094_v5 = vld [vmem:[%s3768_s6 + $0x1f0] sm:$0xff]  }
  0xd4   : > { %v3087_v62 = vld [vmem:[%s3768_s6 + $0x120] sm:$0xff]   ;;  %v3091_v2 = vld [vmem:[%s3768_s6 + $0x128] sm:$0xff]   ;;  %v3095_v6 = vld [vmem:[%s3768_s6 + $0x130] sm:$0xff]  }
  0xd5   : > { %2846 = vmatpush3.bf16.msra.mxu0 %v3055_v22  ;;  %v3088_v63 = vld [vmem:[%s3768_s6 + $0x1a0] sm:$0xff]   ;;  %v3092_v3 = vld [vmem:[%s3768_s6 + $0x1a8] sm:$0xff]   ;;  %v3096_v8 = vld [vmem:[%s3768_s6 + $0x1b0] sm:$0xff]  }
  0xd6   : > { %2868 = vmatpush3.bf16.msra.mxu1 %v3056_v23  ;;  %2847 = vmatprep.subr.bf16.mxu0 %v3057_v24  ;;  %v1249_v7 = vld [vmem:[%s3964_s0 + $0x20] sm:$0xff]  ;;  %v1251_v9 = vld [vmem:[%s3964_s0 + $0x30] sm:$0xff]  ;;  %v3097_v10 = vld [vmem:[%s3768_s6 + $0x178] sm:$0xff]  }
  0xd7   : > { %2869 = vmatprep.subr.bf16.mxu1 %v3058_v25  ;;  %v1254_v11 = vld [vmem:[%s3964_s0 + $0x48] sm:$0xff]  ;;  %v3098_v12 = vld [vmem:[%s3768_s6 + $0x1f8] sm:$0xff]   ;;  %v1265_v15 = vpack.c.bf16 %v1249_v7, %v1249_v7  ;;  %v1267_v16 = vpack.c.bf16 %v1251_v9, %v1251_v9  ;;  %v3101_v17 = vld [vmem:[%s3768_s6 + $0x240] sm:$0xff]  }
  0xd8   : > { %v3099_v13 = vld [vmem:[%s3768_s6 + $0x138] sm:$0xff]   ;;  %v3102_v18 = vld [vmem:[%s3768_s6 + $0x2c0] sm:$0xff]   ;;  %v1270_v19 = vpack.c.bf16 %v1254_v11, %v1254_v11  ;;  %v3105_v22 = vld [vmem:[%s3768_s6 + $0x248] sm:$0xff]  }
  0xd9   : > { %2848 = vmatpush3.bf16.msra.mxu0 %v3059_v26  ;;  %v3100_v14 = vld [vmem:[%s3768_s6 + $0x1b8] sm:$0xff]   ;;  %v3103_v20 = vld [vmem:[%s3768_s6 + $0x200] sm:$0xff]   ;;  %v3106_v23 = vld [vmem:[%s3768_s6 + $0x2c8] sm:$0xff]  }
  0xda   : > { %2870 = vmatpush3.bf16.msra.mxu1 %v3060_v27  ;;  %2849 = vmatprep.subr.bf16.mxu0 %v3061_v28  ;;  %v3104_v21 = vld [vmem:[%s3768_s6 + $0x280] sm:$0xff]   ;;  %v3107_v24 = vld [vmem:[%s3768_s6 + $0x208] sm:$0xff]   ;;  %v3109_v26 = vld [vmem:[%s3768_s6 + $0x250] sm:$0xff]  }
  0xdb   : > { %2871 = vmatprep.subr.bf16.mxu1 %v3062_v29  ;;  %v3108_v25 = vld [vmem:[%s3768_s6 + $0x288] sm:$0xff]   ;;  %v3110_v27 = vld [vmem:[%s3768_s6 + $0x2d0] sm:$0xff]   ;;  %v3114_v31 = vld [vmem:[%s3768_s6 + $0x2d8] sm:$0xff]  }
  0xdc   : > { %v3111_v28 = vld [vmem:[%s3768_s6 + $0x210] sm:$0xff]   ;;  %v3116_v33 = vld [vmem:[%s3768_s6 + $0x298] sm:$0xff]   ;;  %v3118_v35 = vld [vmem:[%s3768_s6 + $0x2e0] sm:$0xff]  }
  0xdd   : > { %2850 = vmatpush3.bf16.msra.mxu0 %v3063_v30  ;;  %v3112_v29 = vld [vmem:[%s3768_s6 + $0x290] sm:$0xff]   ;;  %v3113_v30 = vld [vmem:[%s3768_s6 + $0x258] sm:$0xff]   ;;  %v3120_v37 = vld [vmem:[%s3768_s6 + $0x2a0] sm:$0xff]  }
  0xde   : > { %2872 = vmatpush3.bf16.msra.mxu1 %v3064_v32  ;;  %2851 = vmatprep.subr.bf16.mxu0 %v3065_v34  ;;  %v3115_v32 = vld [vmem:[%s3768_s6 + $0x218] sm:$0xff]   ;;  %v3117_v34 = vld [vmem:[%s3768_s6 + $0x260] sm:$0xff]  }
  0xdf   : > { %2873 = vmatprep.subr.bf16.mxu1 %v3066_v36  ;;  %v3119_v36 = vld [vmem:[%s3768_s6 + $0x220] sm:$0xff]   ;;  %v3148_v7 = vld [vmem:[%s3768_s6 + $0x398] sm:$0xff]  }
  0xe0   : > { %v3150_v9 = vld [vmem:[%s3768_s6 + $0x3e0] sm:$0xff]  }
  0xe1   : > { %2852 = vmatpush3.bf16.msra.mxu0 %v3067_v38  ;;  %v3121_v38 = vld [vmem:[%s3768_s6 + $0x268] sm:$0xff]   ;;  %v3152_v11 = vld [vmem:[%s3768_s6 + $0x3a0] sm:$0xff]  }
  0xe2   : > { %2874 = vmatpush3.bf16.msra.mxu1 %v3068_v39  ;;  %2881 = vmatprep.subr.bf16.mxu0 %v3069_v42  ;;  %v3122_v39 = vld [vmem:[%s3768_s6 + $0x2e8] sm:$0xff]   ;;  %v3125_v42 = vld [vmem:[%s3768_s6 + $0x270] sm:$0xff]  }
  0xe3   : > { %2903 = vmatprep.subr.bf16.mxu1 %v3070_v43  ;;  %v3126_v43 = vld [vmem:[%s3768_s6 + $0x2f0] sm:$0xff]  }
  0xe4   : > { %2341 = vmatmul.mubr.bf16.vlgmr.msra.gmra.mrb[0].mxu0 %v1261_v40  ;;  %v3123_v40 = vld [vmem:[%s3768_s6 + $0x228] sm:$0xff]  }
  0xe5   : > { %2381 = vmatmul.mubr.bf16.vlgmr.msra.gmra.mrb[0].mxu1 %v1263_v41  ;;  %2882 = vmatpush3.bf16.msra.mxu0 %v3071_v45  ;;  %v3124_v41 = vld [vmem:[%s3768_s6 + $0x2a8] sm:$0xff]   ;;  %v3128_v45 = vld [vmem:[%s3768_s6 + $0x2b0] sm:$0xff]  }
  0xe6   : > { %2904 = vmatpush3.bf16.msra.mxu1 %v3072_v47  ;;  %2420 = vmatprep.mubr.bf16.mxu0 %v1266_v44  ;;  %v3127_v44 = vld [vmem:[%s3768_s6 + $0x230] sm:$0xff]   ;;  %v3130_v47 = vld [vmem:[%s3768_s6 + $0x2f8] sm:$0xff]  }
  0xe7   : > { %2883 = vmatprep.subr.bf16.mxu0 %v3073_v48  ;;  %2460 = vmatprep.mubr.bf16.mxu1 %v1268_v46  ;;  %v3129_v46 = vld [vmem:[%s3768_s6 + $0x278] sm:$0xff]  }
  0xe8   : > { %2905 = vmatprep.subr.bf16.mxu1 %v3074_v49  ;;  %v3131_v48 = vld [vmem:[%s3768_s6 + $0x238] sm:$0xff]  }
  0xe9   : > { %2884 = vmatpush3.bf16.msra.mxu0 %v3075_v50  ;;  %v3132_v49 = vld [vmem:[%s3768_s6 + $0x2b8] sm:$0xff]  }
  0xea   : > { %2906 = vmatpush3.bf16.msra.mxu1 %v3076_v51  ;;  %2885 = vmatprep.subr.bf16.mxu0 %v3077_v52  ;;  %v1256_v50 = vld [vmem:[%s3964_s0 + $0x58] sm:$0xff]  ;;  %v1253_v51 = vld [vmem:[%s3964_s0 + $0x40] sm:$0xff]  ;;  %v1255_v52 = vld [vmem:[%s3964_s0 + $0x50] sm:$0xff] }
  0xeb   : > { %2907 = vmatprep.subr.bf16.mxu1 %v3078_v53  ;;  %v1272_v53 = vpack.c.bf16 %v1256_v50, %v1256_v50 }
  0xed   : > { %2886 = vmatpush3.bf16.msra.mxu0 %v3079_v54  ;;  %v1269_v54 = vpack.c.bf16 %v1253_v51, %v1253_v51 }
  0xee   : > { %2908 = vmatpush3.bf16.msra.mxu1 %v3080_v55  ;;  %2887 = vmatprep.subr.bf16.mxu0 %v3081_v56  ;;  %v1271_v55 = vpack.c.bf16 %v1255_v52, %v1255_v52  ;;  %v3133_v56 = vld [vmem:[%s3768_s6 + $0x340] sm:$0xff]  }
  0xef   : > { %2909 = vmatprep.subr.bf16.mxu1 %v3082_v57  ;;  %v3134_v57 = vld [vmem:[%s3768_s6 + $0x3c0] sm:$0xff]  }
  0xf1   : > { %2888 = vmatpush3.bf16.msra.mxu0 %v3083_v58  ;;  %v3135_v58 = vld [vmem:[%s3768_s6 + $0x300] sm:$0xff]  }
  0xf2   : > { %2910 = vmatpush3.bf16.msra.mxu1 %v3084_v59  ;;  %2889 = vmatprep.subr.bf16.mxu0 %v3085_v60  ;;  %v3136_v59 = vld [vmem:[%s3768_s6 + $0x380] sm:$0xff]   ;;  %v3137_v60 = vld [vmem:[%s3768_s6 + $0x348] sm:$0xff]  }
  0xf3   : > { %2911 = vmatprep.subr.bf16.mxu1 %v3086_v61  ;;  %v3138_v61 = vld [vmem:[%s3768_s6 + $0x3c8] sm:$0xff]  }
  0xf5   : > { %2890 = vmatpush3.bf16.msra.mxu0 %v3087_v62  ;;  %v3139_v62 = vld [vmem:[%s3768_s6 + $0x308] sm:$0xff]  }
  0xf6   : > { %2912 = vmatpush3.bf16.msra.mxu1 %v3088_v63  ;;  %2891 = vmatprep.subr.bf16.mxu0 %v3089_v0  ;;  %v3140_v63 = vld [vmem:[%s3768_s6 + $0x388] sm:$0xff]   ;;  %v3141_v0 = vld [vmem:[%s3768_s6 + $0x350] sm:$0xff]  }
  0xf7   : > { %2913 = vmatprep.subr.bf16.mxu1 %v3090_v1  ;;  %v3142_v1 = vld [vmem:[%s3768_s6 + $0x3d0] sm:$0xff]  }
  0xf9   : > { %2892 = vmatpush3.bf16.msra.mxu0 %v3091_v2  ;;  %v3143_v2 = vld [vmem:[%s3768_s6 + $0x310] sm:$0xff]  }
  0xfa   : > { %2914 = vmatpush3.bf16.msra.mxu1 %v3092_v3  ;;  %2893 = vmatprep.subr.bf16.mxu0 %v3093_v4  ;;  %v3144_v3 = vld [vmem:[%s3768_s6 + $0x390] sm:$0xff]   ;;  %v3145_v4 = vld [vmem:[%s3768_s6 + $0x358] sm:$0xff]  }
  0xfb   : > { %2915 = vmatprep.subr.bf16.mxu1 %v3094_v5  ;;  %v3146_v5 = vld [vmem:[%s3768_s6 + $0x3d8] sm:$0xff]  }
  0xfd   : > { %2894 = vmatpush3.bf16.msra.mxu0 %v3095_v6  ;;  %v3147_v6 = vld [vmem:[%s3768_s6 + $0x318] sm:$0xff]  }
  0xfe   : > { %2916 = vmatpush3.bf16.msra.mxu1 %v3096_v8  ;;  %2895 = vmatprep.subr.bf16.mxu0 %v3097_v10  ;;  %v3149_v8 = vld [vmem:[%s3768_s6 + $0x360] sm:$0xff]  }
  0xff   : > { %2917 = vmatprep.subr.bf16.mxu1 %v3098_v12  ;;  %v3151_v10 = vld [vmem:[%s3768_s6 + $0x320] sm:$0xff]   ;;  %v3153_v12 = vld [vmem:[%s3768_s6 + $0x368] sm:$0xff]  }
 0x101   : > { %2896 = vmatpush3.bf16.msra.mxu0 %v3099_v13  ;;  %v3154_v13 = vld [vmem:[%s3768_s6 + $0x3e8] sm:$0xff]  }
 0x102   : > { %2918 = vmatpush3.bf16.msra.mxu1 %v3100_v14  ;;  %2925 = vmatprep.subr.bf16.mxu0 %v3101_v17  ;;  %v3155_v14 = vld [vmem:[%s3768_s6 + $0x328] sm:$0xff]   ;;  %v3158_v17 = vld [vmem:[%s3768_s6 + $0x3f0] sm:$0xff]  }
 0x103   : > { %2947 = vmatprep.subr.bf16.mxu1 %v3102_v18  ;;  %v3159_v18 = vld [vmem:[%s3768_s6 + $0x330] sm:$0xff]  }
 0x104   : > { %2421 = vmatmul.mubr.bf16.vlgmr.msra.gmra.mrb[4].mxu0 %v1265_v15  ;;  %v3156_v15 = vld [vmem:[%s3768_s6 + $0x3a8] sm:$0xff]  }
 0x105   : > { %2461 = vmatmul.mubr.bf16.vlgmr.msra.gmra.mrb[4].mxu1 %v1267_v16  ;;  %2926 = vmatpush3.bf16.msra.mxu0 %v3103_v20  ;;  %v3157_v16 = vld [vmem:[%s3768_s6 + $0x370] sm:$0xff]   ;;  %v3161_v20 = vld [vmem:[%s3768_s6 + $0x378] sm:$0xff]  }
 0x106   : > { %2948 = vmatpush3.bf16.msra.mxu1 %v3104_v21  ;;  %2500 = vmatprep.mubr.bf16.mxu0 %v1270_v19  ;;  %v3160_v19 = vld [vmem:[%s3768_s6 + $0x3b0] sm:$0xff]   ;;  %v3162_v21 = vld [vmem:[%s3768_s6 + $0x3f8] sm:$0xff]  }
 0x107   : > { %2927 = vmatprep.subr.bf16.mxu0 %v3105_v22  ;;  %2949 = vmatprep.subr.bf16.mxu1 %v3106_v23  ;;  %v3163_v22 = vld [vmem:[%s3768_s6 + $0x338] sm:$0xff]  }
 0x108   : > { %2540 = vmatprep.mubr.bf16.mxu1 %v1272_v53  ;;  %v3164_v23 = vld [vmem:[%s3768_s6 + $0x3b8] sm:$0xff]  }
 0x109   : > { %2928 = vmatpush3.bf16.msra.mxu0 %v3107_v24  ;;  %v1258_v24 = vld [vmem:[%s3964_s0 + $0x68] sm:$0xff] }
 0x10a   : > { %2950 = vmatpush3.bf16.msra.mxu1 %v3108_v25  ;;  %2929 = vmatprep.subr.bf16.mxu0 %v3109_v26  ;;  %v1260_v25 = vld [vmem:[%s3964_s0 + $0x78] sm:$0xff]  ;;  %v1257_v26 = vld [vmem:[%s3964_s0 + $0x60] sm:$0xff] }
 0x10b   : > { %2951 = vmatprep.subr.bf16.mxu1 %v3110_v27  ;;  %v1274_v27 = vpack.c.bf16 %v1258_v24, %v1258_v24 }
 0x10d   : > { %2930 = vmatpush3.bf16.msra.mxu0 %v3111_v28  ;;  %v1276_v28 = vpack.c.bf16 %v1260_v25, %v1260_v25 }
 0x10e   : > { %2952 = vmatpush3.bf16.msra.mxu1 %v3112_v29  ;;  %2931 = vmatprep.subr.bf16.mxu0 %v3113_v30  ;;  %v1273_v29 = vpack.c.bf16 %v1257_v26, %v1257_v26  ;;  %v1259_v30 = vld [vmem:[%s3964_s0 + $0x70] sm:$0xff] }
 0x10f   : > { %2953 = vmatprep.subr.bf16.mxu1 %v3114_v31  ;;  %v1275_v31 = vpack.c.bf16 %v1259_v30, %v1259_v30 }
 0x111   : > { %2932 = vmatpush3.bf16.msra.mxu0 %v3115_v32 }
 0x112   : > { %2954 = vmatpush3.bf16.msra.mxu1 %v3116_v33  ;;  %2933 = vmatprep.subr.bf16.mxu0 %v3117_v34  ;;  %v2706_v34 = vld [vmem:[%s1239_s20] ss:$0 sm:$0xff] }
 0x113   : > { %2955 = vmatprep.subr.bf16.mxu1 %v3118_v35 }
 0x115   : > { %2934 = vmatpush3.bf16.msra.mxu0 %v3119_v36 }
 0x116   : > { %2956 = vmatpush3.bf16.msra.mxu1 %v3120_v37  ;;  %2935 = vmatprep.subr.bf16.mxu0 %v3121_v38 }
 0x117   : > { %2957 = vmatprep.subr.bf16.mxu1 %v3122_v39 }
 0x119   : > { %2936 = vmatpush3.bf16.msra.mxu0 %v3123_v40 }
 0x11a   : > { %2958 = vmatpush3.bf16.msra.mxu1 %v3124_v41  ;;  %2937 = vmatprep.subr.bf16.mxu0 %v3125_v42 }
 0x11b   : > { %2959 = vmatprep.subr.bf16.mxu1 %v3126_v43 }
 0x11d   : > { %2938 = vmatpush3.bf16.msra.mxu0 %v3127_v44 }
 0x11e   : > { %2960 = vmatpush3.bf16.msra.mxu1 %v3128_v45  ;;  %2939 = vmatprep.subr.bf16.mxu0 %v3129_v46 }
 0x11f   : > { %2961 = vmatprep.subr.bf16.mxu1 %v3130_v47 }
 0x121   : > { %2940 = vmatpush3.bf16.msra.mxu0 %v3131_v48 }
 0x122   : > { %2962 = vmatpush3.bf16.msra.mxu1 %v3132_v49  ;;  %2969 = vmatprep.subr.bf16.mxu0 %v3133_v56 }
 0x123   : > { %2991 = vmatprep.subr.bf16.mxu1 %v3134_v57 }
 0x124   : > { %2501 = vmatmul.mubr.bf16.vlgmr.msra.gmra.mrb[8].mxu0 %v1269_v54 }
 0x125   : > { %2541 = vmatmul.mubr.bf16.vlgmr.msra.gmra.mrb[8].mxu1 %v1271_v55  ;;  %2970 = vmatpush3.bf16.msra.mxu0 %v3135_v58 }
 0x126   : > { %2992 = vmatpush3.bf16.msra.mxu1 %v3136_v59  ;;  %2971 = vmatprep.subr.bf16.mxu0 %v3137_v60 }
 0x127   : > { %2993 = vmatprep.subr.bf16.mxu1 %v3138_v61  ;;  %2580 = vmatprep.mubr.bf16.mxu0 %v1274_v27 }
 0x128   : > { %2620 = vmatprep.mubr.bf16.mxu1 %v1276_v28 }
 0x129   : > { %2972 = vmatpush3.bf16.msra.mxu0 %v3139_v62 }
 0x12a   : > { %2994 = vmatpush3.bf16.msra.mxu1 %v3140_v63  ;;  %2973 = vmatprep.subr.bf16.mxu0 %v3141_v0 }
 0x12b   : > { %2995 = vmatprep.subr.bf16.mxu1 %v3142_v1 }
 0x12d   : > { %2974 = vmatpush3.bf16.msra.mxu0 %v3143_v2 }
 0x12e   : > { %2996 = vmatpush3.bf16.msra.mxu1 %v3144_v3  ;;  %2975 = vmatprep.subr.bf16.mxu0 %v3145_v4 }
 0x12f   : > { %2997 = vmatprep.subr.bf16.mxu1 %v3146_v5 }
 0x131   : > { %2976 = vmatpush3.bf16.msra.mxu0 %v3147_v6 }
 0x132   : > { %2998 = vmatpush3.bf16.msra.mxu1 %v3148_v7  ;;  %2977 = vmatprep.subr.bf16.mxu0 %v3149_v8 }
 0x133   : > { %2999 = vmatprep.subr.bf16.mxu1 %v3150_v9 }
 0x135   : > { %2978 = vmatpush3.bf16.msra.mxu0 %v3151_v10 }
 0x136   : > { %3000 = vmatpush3.bf16.msra.mxu1 %v3152_v11  ;;  %2979 = vmatprep.subr.bf16.mxu0 %v3153_v12 }
 0x137   : > { %3001 = vmatprep.subr.bf16.mxu1 %v3154_v13 }
 0x139   : > { %2980 = vmatpush3.bf16.msra.mxu0 %v3155_v14 }
 0x13a   : > { %3002 = vmatpush3.bf16.msra.mxu1 %v3156_v15  ;;  %2981 = vmatprep.subr.bf16.mxu0 %v3157_v16 }
 0x13b   : > { %3003 = vmatprep.subr.bf16.mxu1 %v3158_v17 }
 0x13d   : > { %2982 = vmatpush3.bf16.msra.mxu0 %v3159_v18 }
 0x13e   : > { %3004 = vmatpush3.bf16.msra.mxu1 %v3160_v19  ;;  %2983 = vmatprep.subr.bf16.mxu0 %v3161_v20 }
 0x13f   : > { %3005 = vmatprep.subr.bf16.mxu1 %v3162_v21 }
 0x141   : > { %2984 = vmatpush3.bf16.msra.mxu0 %v3163_v22 }
 0x142   : > { %3006 = vmatpush3.bf16.msra.mxu1 %v3164_v23 }
 0x144   : > { %2581 = vmatmul.mubr.bf16.vlgmr.msra.gmra.mrb[12].mxu0 %v1273_v29 }
 0x145   : > { %2621 = vmatmul.mubr.bf16.vlgmr.msra.gmra.mrb[12].mxu1 %v1275_v31 }
 0x1b7   : > { %v2853_v32 = vpop.f32.mrb[0].mxu0 }
 0x1b8   : > { %v2875_v33 = vpop.f32.mrb[0].mxu1  ;;  %v2854_v35 = vpop.f32.mrb[1].mxu0 }
 0x1b9   : > { %v2855_v36 = vadd.f32 %v2854_v35, %v2853_v32  ;;  %v2876_v37 = vpop.f32.mrb[1].mxu1  ;;  %v2856_v38 = vpop.f32.mrb[2].mxu0 }
 0x1ba   : > { %v2877_v39 = vadd.f32 %v2876_v37, %v2875_v33  ;;  %v2878_v40 = vpop.f32.mrb[2].mxu1  ;;  %v2857_v41 = vpop.f32.mrb[3].mxu0 }
 0x1bb   : > { %v2343_v42 = vadd.f32 %v2855_v36, %v2706_v34  ;;  %v2879_v43 = vpop.f32.mrb[3].mxu1 }
 0x1bd   : > { %v2383_v44 = vadd.f32 %v2877_v39, %v2343_v42 }
 0x1d7   : > { %v2897_v45 = vpop.f32.mrb[4].mxu0 }
 0x1d8   : > { %v2919_v46 = vpop.f32.mrb[4].mxu1  ;;  %v2898_v47 = vpop.f32.mrb[5].mxu0 }
 0x1d9   : > { %v2899_v48 = vadd.f32 %v2898_v47, %v2897_v45  ;;  %v2920_v49 = vpop.f32.mrb[5].mxu1  ;;  %v2900_v50 = vpop.f32.mrb[6].mxu0 }
 0x1da   : > { %v2921_v51 = vadd.f32 %v2920_v49, %v2919_v46  ;;  %v2922_v52 = vpop.f32.mrb[6].mxu1  ;;  %v2901_v53 = vpop.f32.mrb[7].mxu0 }
 0x1db   : > { %v2423_v54 = vadd.f32 %v2899_v48, %v2383_v44  ;;  %v2923_v55 = vpop.f32.mrb[7].mxu1 }
 0x1dd   : > { %v2463_v56 = vadd.f32 %v2921_v51, %v2423_v54 }
 0x1f7   : > { %v2941_v57 = vpop.f32.mrb[8].mxu0 }
 0x1f8   : > { %v2963_v58 = vpop.f32.mrb[8].mxu1  ;;  %v2942_v59 = vpop.f32.mrb[9].mxu0 }
 0x1f9   : > { %v2943_v60 = vadd.f32 %v2942_v59, %v2941_v57  ;;  %v2964_v61 = vpop.f32.mrb[9].mxu1  ;;  %v2944_v62 = vpop.f32.mrb[10].mxu0 }
 0x1fa   : > { %v2965_v63 = vadd.f32 %v2964_v61, %v2963_v58  ;;  %v2966_v0 = vpop.f32.mrb[10].mxu1  ;;  %v2945_v1 = vpop.f32.mrb[11].mxu0 }
 0x1fb   : > { %v2503_v2 = vadd.f32 %v2943_v60, %v2463_v56  ;;  %v2967_v3 = vpop.f32.mrb[11].mxu1 }
 0x1fd   : > { %v2543_v4 = vadd.f32 %v2965_v63, %v2503_v2 }
 0x217   : > { %v2985_v5 = vpop.f32.mrb[12].mxu0 }
 0x218   : > { %v3007_v6 = vpop.f32.mrb[12].mxu1  ;;  %v2986_v7 = vpop.f32.mrb[13].mxu0 }
 0x219   : > { %v3008_v8 = vpop.f32.mrb[13].mxu1  ;;  %v2987_v9 = vadd.f32 %v2986_v7, %v2985_v5  ;;  %v2988_v11 = vpop.f32.mrb[14].mxu0 }
 0x21a   : > { %v3009_v10 = vadd.f32 %v3008_v8, %v3007_v6  ;;  %v3010_v12 = vpop.f32.mrb[14].mxu1  ;;  %v2989_v13 = vpop.f32.mrb[15].mxu0 }
 0x21b   : > { %v3011_v14 = vpop.f32.mrb[15].mxu1  ;;  %v2583_v15 = vadd.f32 %v2987_v9, %v2543_v4 }
 0x21d   : > { %v2623_v16 = vadd.f32 %v3009_v10, %v2583_v15 }
 0x21f   : > { %2628 = vst [vmem:[%s1243_s23] sm:$0xff] %v2623_v16 }
 0x220 PF: > { %p10_p9 = scmp.ge.s32.totalorder %s3226_s16, 4   ;;  %s3968_s12 = smov %s3183_s13 }
 0x221   : > { %s3969_s13 = smov %s3235_s19  ;;  %s3970_s14 = smov %s3226_s16 }
 0x222   :  { %12 = sbr.rel (!%p10_p9) target bundleno = 2 (0x2), region = 111 }

// kernel: deblur_mlp_forward.5
= control target key start
LH: loop header
LB: loop body
LE: loop exit
PB: predicated region body
PF: predicated region fallthrough
CT: control target
= control target key end

     0   :  { %8 = vsyncpa [#allocation3], 0  ;;  %s4946_s0 = inlined_call_operand.vmem [shape: f32[8,1536], index: 0, kind: input, shape index: {}]   ;;  %s4947_s1 = inlined_call_operand.hbm [shape: bf16[1536,2048], index: 1, kind: input, shape index: {}]   ;;  %s4948_s2 = inlined_call_operand.hbm [shape: f32[1,2048], index: 2, kind: input, shape index: {}]   ;;  %s4949_s3 = inlined_call_operand.vmem [shape: f32[8,2048], index: 3, kind: output, shape index: {}]  }
   0x1   :  { %10 = vsyncpa [#allocation3 + $0x1], 0 }
   0x2   :  { %11 = vsyncpa [#allocation5], 0 }
   0x3   :  { %13 = vsyncpa [#allocation5 + $0x1], 0  ;;  %s4375_s12 = smov 0   ;;  %s4377_s13 = smov 0  }
   0x4   :  { %s4379_s14 = smov 0   ;;  %s4381_s15 = smov 0  }
   0x5 LB: > { %s3172_s16 = sadd.s32 4294967295, %s4348_s15   ;;  %s4395_s17 = sadd.s32 1, %s4348_s15   ;;  %s4348_s15 = sphi %s4381_s15, %s4959_s15   ;;  %s4344_s14 = sphi %s4379_s14, %s4958_s14   ;;  %s4340_s13 = sphi %s4377_s13, %s4957_s13   ;;  %s4336_s12 = sphi %s4375_s12, %s4956_s12  }
   0x6   : > { %s44_s18 = ssub.s32 %s4348_s15, %s4395_s17  ;;  %s47_s19 = sadd.s32 1, %s4344_s14 }
   0x7   : > { %p45_p0 = scmp.eq.s32.totalorder %s44_s18, 0  ;;  %p54_p1 = scmp.ne.s32.totalorder %s4344_s14, %s4340_s13 }
   0x8   : > { %p55_p2 = scmp.eq.s32.totalorder %s4348_s15, 0  ;;  %p60_p3 = scmp.ne.s32.totalorder %s4340_s13, %s4336_s12 }
   0x9   : > { %s4405_s20 = scalar_select %p45_p0, %s4344_s14, %s47_s19  }
   0xa   : > { %p56_p4 = por %p55_p2, %p54_p1  ;;  %p61_p5 = scmp.eq.s32.totalorder %s3172_s16, 0 }
   0xb   : > { %p3630_p6 = scmp.lt.s32.totalorder %s4348_s15, 4  ;;  %s4415_s22 = sand.u32 1, %s4344_s14  }
   0xc   : > { %p4410_p7 = por %p61_p5, %p60_p3  ;;  %s3617_s23 = smul.u32 3072, %s4415_s22 }
   0xd   : > { %s3571_s24 = sshll.u32 %s4348_s15, 8  ;;  %p4419_p8 = pnand %p3630_p6, %p56_p4 }
   0xe   : > { %s4951_s21 = scalar_select %p4410_p7, 1, 0 }
   0xf   : > { %s4426_s28 = scalar_lea.hbm %s4947_s1, %s3571_s24  ;;  %s143_s29 = scalar_lea.vmem [#allocation2], %s3617_s23 }
  0x10   : > { %s150_s30 = sshll.u32 %s143_s29, 4  ;;  %s140_s4 = scalar_lea.sflag [#allocation3], %s4415_s22  ;;  %s4428_s30 = int_to_ptr.vmem [resolvable:$true] %s150_s30 }
  0x11   : > { %s4250_s5 = scalar_lea.hbm %s4426_s28, 49152  ;;  %p4252_p10 = pneg %p4419_p8 }
  0x12   : > { %p4251_p9 = scmp.ne.s32.totalorder %s4426_s28, %s4250_s5  ;;  %s4255_s8 = scalar_lea.hbm %s4947_s1, 196608 }
  0x13   : > { %p4256_p13 = scmp.lt.u32.totalorder %s4426_s28, %s4947_s1  ;;  %p4257_p0 = scmp.lt.u32.totalorder %s4255_s8, %s4250_s5 }
  0x14   : > { %p4253_p11 = pnand %p4252_p10, %p4251_p9  ;;  %p4259_p2 = scmp.lt.u32.totalorder %s4250_s5, %s4426_s28 }
  0x15   : > { %p4258_p1 = por %p4257_p0, %p4256_p13 }
  0x16   : > { %p4254_p12 = pneg %p4253_p11 }
  0x17   : > { %p4260_p3 = por %p4259_p2, %p4258_p1 }
  0x19   : > { %p4261_p4 = pnand %p4260_p3, %p4254_p12 }
  0x1b   : > { %4264 = shalt.err (!%p4261_p4)
}
  0x1c   : > { %s4265_s11 = scalar_lea.vmem %s4428_s30, 49152  ;;  %s4350_s12 = smov [#allocation2]  }
  0x1d   : > { %p4266_p5 = scmp.ne.s32.totalorder %s4428_s30, %s4265_s11  ;;  %s4270_s18 = sshll.u32 %s4350_s12, 4  ;;  %s4271_s18 = int_to_ptr.vmem [resolvable:$false] %s4270_s18 }
  0x1e   : > { %s4272_s19 = scalar_lea.vmem %s4271_s18, 98304  ;;  %p4273_p11 = scmp.lt.s32.totalorder %s4428_s30, %s4271_s18 }
  0x1f   : > { %p4268_p6 = pnand %p4266_p5, %p4252_p10  ;;  %p4274_p13 = scmp.lt.s32.totalorder %s4272_s19, %s4265_s11 }
  0x21   : > { %p4269_p9 = pneg %p4268_p6  ;;  %p4275_p0 = por %p4274_p13, %p4273_p11 }
  0x23   : > { %p4276_p1 = pnand %p4275_p0, %p4269_p9 }
  0x25   : > { %4279 = shalt.err (!%p4276_p1)
}
  0x26   : > { %s4351_s23 = smov 1024   ;;  %s4352_s24 = smov 256  }
  0x27   : > { %s4353_s26 = smov 16   ;;  %p3181_p12 = scmp.ge.s32.totalorder %s4348_s15, 1 }
  0x28   : > { %3626 = dma.hbm_to_vmem [thread:$0]  (!%p4419_p8), %s4426_s28, 49152, %s4428_s30, %s140_s4, %s4351_s23, %s4352_s24, %s4353_s26  }
  0x29   : > { %p177_p2 = scmp.lt.s32.totalorder %s4348_s15, 5  ;;  %s3178_s27 = sshll.u32 %s4415_s22, 2 }
  0x2a   : > { %s3572_s5 = sshll.u32 %s4348_s15, 6  ;;  %s164_s6 = scalar_lea.vmem [#allocation4], %s3178_s27 }
  0x2b   : > { %p4461_p3 = pnand %p3181_p12, %p177_p2  ;;  %s172_s7 = sshll.u32 %s164_s6, 4  ;;  %s173_s7 = int_to_ptr.vmem [resolvable:$true] %s172_s7 }
  0x2c   : > { %s4469_s10 = scalar_lea.hbm %s4948_s2, %s3572_s5  ;;  %s161_s28 = scalar_lea.sflag [#allocation5], %s4415_s22 }
  0x2d   : > { %s4953_s29 = scalar_select %p4461_p3, 1, 0 }
  0x2e   : > { %s4280_s30 = scalar_lea.hbm %s4469_s10, 64  ;;  %s4285_s12 = scalar_lea.hbm %s4948_s2, 256 }
  0x2f   : > { %p4281_p4 = scmp.ne.s32.totalorder %s4469_s10, %s4280_s30  ;;  %p4286_p9 = scmp.lt.u32.totalorder %s4469_s10, %s4948_s2 }
  0x30   : > { %p4287_p11 = scmp.lt.u32.totalorder %s4285_s12, %s4280_s30  ;;  %p4289_p0 = scmp.lt.u32.totalorder %s4280_s30, %s4469_s10 }
  0x31   : > { %p4283_p5 = pnand %p4281_p4, %p4252_p10 }
  0x32   : > { %p4288_p13 = por %p4287_p11, %p4286_p9 }
  0x33   : > { %p4284_p6 = pneg %p4283_p5 }
  0x34   : > { %p4290_p1 = por %p4289_p0, %p4288_p13 }
  0x36   : > { %p4291_p12 = pnand %p4290_p1, %p4284_p6 }
  0x38   : > { %4294 = shalt.err (!%p4291_p12)
}
  0x39   : > { %s4295_s22 = scalar_lea.vmem %s173_s7, 64  ;;  %s4354_s23 = smov [#allocation4]  }
  0x3a   : > { %p4296_p2 = scmp.ne.s32.totalorder %s173_s7, %s4295_s22  ;;  %s4300_s24 = sshll.u32 %s4354_s23, 4  ;;  %s4301_s24 = int_to_ptr.vmem [resolvable:$false] %s4300_s24 }
  0x3b   : > { %s4302_s26 = scalar_lea.vmem %s4301_s24, 128  ;;  %p4303_p7 = scmp.lt.s32.totalorder %s173_s7, %s4301_s24 }
  0x3c   : > { %p4298_p4 = pnand %p4296_p2, %p4252_p10  ;;  %p4304_p3 = scmp.lt.s32.totalorder %s4302_s26, %s4295_s22 }
  0x3e   : > { %p4299_p5 = pneg %p4298_p4  ;;  %p4305_p9 = por %p4304_p3, %p4303_p7 }
  0x40   : > { %p4306_p11 = pnand %p4305_p9, %p4299_p5 }
  0x42   : > { %4309 = shalt.err (!%p4306_p11)
}
  0x43   : > { %3629 = dma.hbm_to_vmem [thread:$0]  (!%p4419_p8), %s4469_s10, 64, %s173_s7, %s161_s28  }
  0x44   : > { %p4954_p6 = scmp.ne.s32.totalorder %s4953_s29, 0 }
  0x45   : > { %s183_s27 = sand.u32 (!%p4954_p6), 1, %s4340_s13   ;;  %p4955_p10 = scmp.ne.s32.totalorder (!%p4954_p6), %s4951_s21, 0 }
  0x46   : > { %181 = sbr.rel (%p4954_p6) target bundleno = 695 (0x2b7), region = 32  ;;  %s184_s6 = scalar_lea.sflag (!%p4954_p6), [#allocation3], %s183_s27 }
  0x47   : > { %s3618_s5 = smul.u32 (!%p4954_p6), 3072, %s183_s27 }
  0x49   : > { %s4494_s8 = scalar_lea.vmem (!%p4954_p6), [#allocation2], %s3618_s5 }
  0x4d   : > { %4327 = dma.done.wait (%p4955_p10), %s184_s6, 49152  }
  0x4e   : > { %4329 = vsyncadd (%p4955_p10), %s184_s6, 4294918144  ;;  %s3182_s9 = sshll.u32 %s183_s27, 2  ;;  %s193_s25 = scalar_lea.sflag [#allocation5], %s183_s27 }
  0x4f   : > { %s4500_s30 = scalar_lea.vmem [#allocation4], %s3182_s9 }
  0x50   : > { %4331 = dma.done.wait (%p4955_p10), %s193_s25, 64  }
  0x51   : > { %4333 = vsyncadd (%p4955_p10), %s193_s25, 4294967232  ;;  %v3666_v0 = vld [vmem:[%s4494_s8 + $0x4] ss:$16 sps:$4 sm:$0xff]   ;;  %v3668_v1 = vld [vmem:[%s4494_s8 + $0xc] ss:$16 sps:$4 sm:$0xff]  }
  0x52   : > { %2582 = vmatprep.subr.bf16.mxu0 %v3666_v0  ;;  %v3670_v2 = vld [vmem:[%s4494_s8] ss:$16 sps:$4 sm:$0xff]   ;;  %v3671_v3 = vld [vmem:[%s4494_s8 + $0x8] ss:$16 sps:$4 sm:$0xff]   ;;  %2828 = vmatprep.subr.bf16.mxu1 %v3668_v1  ;;  %v3672_v4 = vld [vmem:[%s4494_s8 + $0x24] ss:$16 sps:$4 sm:$0xff]  }
  0x53   : > { %2583 = vmatpush1.bf16.msra.mxu0 %v3670_v2  ;;  %2829 = vmatpush1.bf16.msra.mxu1 %v3671_v3  ;;  %v3674_v5 = vld [vmem:[%s4494_s8 + $0x2c] ss:$16 sps:$4 sm:$0xff]   ;;  %v3676_v6 = vld [vmem:[%s4494_s8 + $0x20] ss:$16 sps:$4 sm:$0xff]   ;;  %v3677_v7 = vld [vmem:[%s4494_s8 + $0x28] ss:$16 sps:$4 sm:$0xff]  }
  0x54   : > { %2584 = vmatprep.subr.bf16.mxu0 %v3672_v4  ;;  %2830 = vmatprep.subr.bf16.mxu1 %v3674_v5  ;;  %v3678_v8 = vld [vmem:[%s4494_s8 + $0x44] ss:$16 sps:$4 sm:$0xff]   ;;  %v3680_v9 = vld [vmem:[%s4494_s8 + $0x4c] ss:$16 sps:$4 sm:$0xff]   ;;  %v3682_v10 = vld [vmem:[%s4494_s8 + $0x40] ss:$16 sps:$4 sm:$0xff]  }
  0x55   : > { %v3683_v11 = vld [vmem:[%s4494_s8 + $0x48] ss:$16 sps:$4 sm:$0xff]   ;;  %v3684_v12 = vld [vmem:[%s4494_s8 + $0x64] ss:$16 sps:$4 sm:$0xff]   ;;  %v3686_v13 = vld [vmem:[%s4494_s8 + $0x6c] ss:$16 sps:$4 sm:$0xff]  }
  0x56   : > { %v3688_v14 = vld [vmem:[%s4494_s8 + $0x60] ss:$16 sps:$4 sm:$0xff]   ;;  %v3689_v15 = vld [vmem:[%s4494_s8 + $0x68] ss:$16 sps:$4 sm:$0xff]   ;;  %v3690_v16 = vld [vmem:[%s4494_s8 + $0x84] ss:$16 sps:$4 sm:$0xff]  }
  0x57   : > { %2585 = vmatpush1.bf16.msra.mxu0 %v3676_v6  ;;  %2831 = vmatpush1.bf16.msra.mxu1 %v3677_v7  ;;  %v3692_v17 = vld [vmem:[%s4494_s8 + $0x8c] ss:$16 sps:$4 sm:$0xff]   ;;  %v3694_v18 = vld [vmem:[%s4494_s8 + $0x80] ss:$16 sps:$4 sm:$0xff]   ;;  %v3695_v19 = vld [vmem:[%s4494_s8 + $0x88] ss:$16 sps:$4 sm:$0xff]  }
  0x58   : > { %2586 = vmatprep.subr.bf16.mxu0 %v3678_v8  ;;  %2832 = vmatprep.subr.bf16.mxu1 %v3680_v9  ;;  %v3696_v20 = vld [vmem:[%s4494_s8 + $0xa4] ss:$16 sps:$4 sm:$0xff]   ;;  %v3698_v21 = vld [vmem:[%s4494_s8 + $0xac] ss:$16 sps:$4 sm:$0xff]   ;;  %v3700_v22 = vld [vmem:[%s4494_s8 + $0xa0] ss:$16 sps:$4 sm:$0xff]  }
  0x59   : > { %v3701_v23 = vld [vmem:[%s4494_s8 + $0xa8] ss:$16 sps:$4 sm:$0xff]   ;;  %v3702_v24 = vld [vmem:[%s4494_s8 + $0xc4] ss:$16 sps:$4 sm:$0xff]   ;;  %v3704_v25 = vld [vmem:[%s4494_s8 + $0xcc] ss:$16 sps:$4 sm:$0xff]  }
  0x5a   : > { %v3706_v26 = vld [vmem:[%s4494_s8 + $0xc0] ss:$16 sps:$4 sm:$0xff]   ;;  %v3707_v27 = vld [vmem:[%s4494_s8 + $0xc8] ss:$16 sps:$4 sm:$0xff]   ;;  %v3708_v28 = vld [vmem:[%s4494_s8 + $0xe4] ss:$16 sps:$4 sm:$0xff]  }
  0x5b   : > { %2587 = vmatpush1.bf16.msra.mxu0 %v3682_v10  ;;  %2833 = vmatpush1.bf16.msra.mxu1 %v3683_v11  ;;  %v3710_v29 = vld [vmem:[%s4494_s8 + $0xec] ss:$16 sps:$4 sm:$0xff]   ;;  %v3712_v30 = vld [vmem:[%s4494_s8 + $0xe0] ss:$16 sps:$4 sm:$0xff]   ;;  %v3713_v31 = vld [vmem:[%s4494_s8 + $0xe8] ss:$16 sps:$4 sm:$0xff]  }
  0x5c   : > { %2588 = vmatprep.subr.bf16.mxu0 %v3684_v12  ;;  %2834 = vmatprep.subr.bf16.mxu1 %v3686_v13  ;;  %v3714_v32 = vld [vmem:[%s4494_s8 + $0x104] ss:$16 sps:$4 sm:$0xff]   ;;  %v3716_v33 = vld [vmem:[%s4494_s8 + $0x10c] ss:$16 sps:$4 sm:$0xff]   ;;  %v3718_v34 = vld [vmem:[%s4494_s8 + $0x100] ss:$16 sps:$4 sm:$0xff]  }
  0x5d   : > { %v3719_v35 = vld [vmem:[%s4494_s8 + $0x108] ss:$16 sps:$4 sm:$0xff]   ;;  %v3720_v36 = vld [vmem:[%s4494_s8 + $0x124] ss:$16 sps:$4 sm:$0xff]   ;;  %v3722_v37 = vld [vmem:[%s4494_s8 + $0x12c] ss:$16 sps:$4 sm:$0xff]  }
  0x5e   : > { %v3724_v38 = vld [vmem:[%s4494_s8 + $0x120] ss:$16 sps:$4 sm:$0xff]   ;;  %v3725_v39 = vld [vmem:[%s4494_s8 + $0x128] ss:$16 sps:$4 sm:$0xff]   ;;  %v3726_v40 = vld [vmem:[%s4494_s8 + $0x144] ss:$16 sps:$4 sm:$0xff]  }
  0x5f   : > { %2589 = vmatpush1.bf16.msra.mxu0 %v3688_v14  ;;  %2835 = vmatpush1.bf16.msra.mxu1 %v3689_v15  ;;  %v3728_v41 = vld [vmem:[%s4494_s8 + $0x14c] ss:$16 sps:$4 sm:$0xff]   ;;  %v3730_v42 = vld [vmem:[%s4494_s8 + $0x140] ss:$16 sps:$4 sm:$0xff]   ;;  %v3731_v43 = vld [vmem:[%s4494_s8 + $0x148] ss:$16 sps:$4 sm:$0xff]  }
  0x60   : > { %2590 = vmatprep.subr.bf16.mxu0 %v3690_v16  ;;  %2836 = vmatprep.subr.bf16.mxu1 %v3692_v17  ;;  %v3732_v44 = vld [vmem:[%s4494_s8 + $0x164] ss:$16 sps:$4 sm:$0xff]   ;;  %v3734_v45 = vld [vmem:[%s4494_s8 + $0x16c] ss:$16 sps:$4 sm:$0xff]   ;;  %v3736_v47 = vld [vmem:[%s4494_s8 + $0x160] ss:$16 sps:$4 sm:$0xff]  }
  0x61   : > { %v233_v46 = vld [vmem:[%s4946_s0 + $0x8] sm:$0xff]  ;;  %v3738_v50 = vld [vmem:[%s4494_s8 + $0x184] ss:$16 sps:$4 sm:$0xff]   ;;  %v3742_v52 = vld [vmem:[%s4494_s8 + $0x180] ss:$16 sps:$4 sm:$0xff]  }
  0x62   : > { %v245_v48 = vpack.c.bf16 %v233_v46, %v233_v46  ;;  %v3737_v49 = vld [vmem:[%s4494_s8 + $0x168] ss:$16 sps:$4 sm:$0xff]   ;;  %v3740_v51 = vld [vmem:[%s4494_s8 + $0x18c] ss:$16 sps:$4 sm:$0xff]   ;;  %v3744_v54 = vld [vmem:[%s4494_s8 + $0x1a4] ss:$16 sps:$4 sm:$0xff]  }
  0x63   : > { %2591 = vmatpush1.bf16.msra.mxu0 %v3694_v18  ;;  %2837 = vmatpush1.bf16.msra.mxu1 %v3695_v19  ;;  %v3743_v53 = vld [vmem:[%s4494_s8 + $0x188] ss:$16 sps:$4 sm:$0xff]   ;;  %v3746_v55 = vld [vmem:[%s4494_s8 + $0x1ac] ss:$16 sps:$4 sm:$0xff]   ;;  %v3748_v56 = vld [vmem:[%s4494_s8 + $0x1a0] ss:$16 sps:$4 sm:$0xff]  }
  0x64   : > { %2592 = vmatprep.subr.bf16.mxu0 %v3696_v20  ;;  %2838 = vmatprep.subr.bf16.mxu1 %v3698_v21  ;;  %v3749_v57 = vld [vmem:[%s4494_s8 + $0x1a8] ss:$16 sps:$4 sm:$0xff]   ;;  %v3750_v58 = vld [vmem:[%s4494_s8 + $0x1c4] ss:$16 sps:$4 sm:$0xff]   ;;  %v3752_v59 = vld [vmem:[%s4494_s8 + $0x1cc] ss:$16 sps:$4 sm:$0xff]  }
  0x65   : > { %2614 = vmatprep.mubr.bf16.mxu0 %v245_v48  ;;  %2860 = vmatprep.mubr.bf16.mxu1 %v245_v48  ;;  %v3754_v60 = vld [vmem:[%s4494_s8 + $0x1c0] ss:$16 sps:$4 sm:$0xff]   ;;  %v3755_v61 = vld [vmem:[%s4494_s8 + $0x1c8] ss:$16 sps:$4 sm:$0xff]   ;;  %v3756_v62 = vld [vmem:[%s4494_s8 + $0x1e4] ss:$16 sps:$4 sm:$0xff]  }
  0x66   : > { %v3758_v63 = vld [vmem:[%s4494_s8 + $0x1ec] ss:$16 sps:$4 sm:$0xff]   ;;  %v3760_v0 = vld [vmem:[%s4494_s8 + $0x1e0] ss:$16 sps:$4 sm:$0xff]   ;;  %v3761_v1 = vld [vmem:[%s4494_s8 + $0x1e8] ss:$16 sps:$4 sm:$0xff]  }
  0x67   : > { %2593 = vmatpush1.bf16.msra.mxu0 %v3700_v22  ;;  %2839 = vmatpush1.bf16.msra.mxu1 %v3701_v23  ;;  %v232_v2 = vld [vmem:[%s4946_s0] sm:$0xff]  ;;  %v3767_v4 = vld [vmem:[%s4494_s8 + $0x20c] ss:$16 sps:$4 sm:$0xff]   ;;  %v3765_v7 = vld [vmem:[%s4494_s8 + $0x208] ss:$16 sps:$4 sm:$0xff]  }
  0x68   : > { %2594 = vmatprep.subr.bf16.mxu0 %v3702_v24  ;;  %2840 = vmatprep.subr.bf16.mxu1 %v3704_v25  ;;  %v3764_v3 = vld [vmem:[%s4494_s8 + $0x204] ss:$16 sps:$4 sm:$0xff]   ;;  %v244_v5 = vpack.c.bf16 %v232_v2, %v232_v2  ;;  %v3762_v6 = vld [vmem:[%s4494_s8 + $0x200] ss:$16 sps:$4 sm:$0xff]   ;;  %v3773_v9 = vld [vmem:[%s4494_s8 + $0x22c] ss:$16 sps:$4 sm:$0xff]  }
  0x69   : > { %v3770_v8 = vld [vmem:[%s4494_s8 + $0x224] ss:$16 sps:$4 sm:$0xff]   ;;  %v3768_v10 = vld [vmem:[%s4494_s8 + $0x220] ss:$16 sps:$4 sm:$0xff]   ;;  %v3771_v11 = vld [vmem:[%s4494_s8 + $0x228] ss:$16 sps:$4 sm:$0xff]  }
  0x6a   : > { %v3776_v12 = vld [vmem:[%s4494_s8 + $0x244] ss:$16 sps:$4 sm:$0xff]   ;;  %v3779_v13 = vld [vmem:[%s4494_s8 + $0x24c] ss:$16 sps:$4 sm:$0xff]   ;;  %v3774_v14 = vld [vmem:[%s4494_s8 + $0x240] ss:$16 sps:$4 sm:$0xff]  }
  0x6b   : > { %2595 = vmatpush1.bf16.msra.mxu0 %v3706_v26  ;;  %2841 = vmatpush1.bf16.msra.mxu1 %v3707_v27  ;;  %v3777_v15 = vld [vmem:[%s4494_s8 + $0x248] ss:$16 sps:$4 sm:$0xff]   ;;  %v3782_v16 = vld [vmem:[%s4494_s8 + $0x264] ss:$16 sps:$4 sm:$0xff]   ;;  %v3785_v17 = vld [vmem:[%s4494_s8 + $0x26c] ss:$16 sps:$4 sm:$0xff]  }
  0x6c   : > { %2596 = vmatprep.subr.bf16.mxu0 %v3708_v28  ;;  %2842 = vmatprep.subr.bf16.mxu1 %v3710_v29  ;;  %v3780_v18 = vld [vmem:[%s4494_s8 + $0x260] ss:$16 sps:$4 sm:$0xff]   ;;  %v3783_v19 = vld [vmem:[%s4494_s8 + $0x268] ss:$16 sps:$4 sm:$0xff]   ;;  %v3788_v20 = vld [vmem:[%s4494_s8 + $0x284] ss:$16 sps:$4 sm:$0xff]  }
  0x6d   : > { %v3791_v21 = vld [vmem:[%s4494_s8 + $0x28c] ss:$16 sps:$4 sm:$0xff]   ;;  %v3786_v22 = vld [vmem:[%s4494_s8 + $0x280] ss:$16 sps:$4 sm:$0xff]   ;;  %v3789_v23 = vld [vmem:[%s4494_s8 + $0x288] ss:$16 sps:$4 sm:$0xff]  }
  0x6e   : > { %v3794_v24 = vld [vmem:[%s4494_s8 + $0x2a4] ss:$16 sps:$4 sm:$0xff]   ;;  %v3797_v25 = vld [vmem:[%s4494_s8 + $0x2ac] ss:$16 sps:$4 sm:$0xff]   ;;  %v3792_v26 = vld [vmem:[%s4494_s8 + $0x2a0] ss:$16 sps:$4 sm:$0xff]  }
  0x6f   : > { %2597 = vmatpush1.bf16.msra.mxu0 %v3712_v30  ;;  %2843 = vmatpush1.bf16.msra.mxu1 %v3713_v31  ;;  %v3795_v27 = vld [vmem:[%s4494_s8 + $0x2a8] ss:$16 sps:$4 sm:$0xff]   ;;  %v3800_v28 = vld [vmem:[%s4494_s8 + $0x2c4] ss:$16 sps:$4 sm:$0xff]   ;;  %v3803_v29 = vld [vmem:[%s4494_s8 + $0x2cc] ss:$16 sps:$4 sm:$0xff]  }
  0x70   : > { %2598 = vmatprep.subr.bf16.mxu0 %v3714_v32  ;;  %2844 = vmatprep.subr.bf16.mxu1 %v3716_v33  ;;  %v235_v30 = vld [vmem:[%s4946_s0 + $0x18] sm:$0xff]  ;;  %v3798_v31 = vld [vmem:[%s4494_s8 + $0x2c0] ss:$16 sps:$4 sm:$0xff]   ;;  %v3824_v46 = vld [vmem:[%s4494_s8 + $0x344] ss:$16 sps:$4 sm:$0xff]  }
  0x71   : > { %v247_v32 = vpack.c.bf16 %v235_v30, %v235_v30  ;;  %v3801_v33 = vld [vmem:[%s4494_s8 + $0x2c8] ss:$16 sps:$4 sm:$0xff]   ;;  %v3822_v48 = vld [vmem:[%s4494_s8 + $0x340] ss:$16 sps:$4 sm:$0xff]   ;;  %v3854_v2 = vld [vmem:[%s4494_s8 + $0x3e4] ss:$16 sps:$4 sm:$0xff]  }
  0x72   : > { %v3890_v30 = vld [vmem:[%s4494_s8 + $0x4a4] ss:$16 sps:$4 sm:$0xff]  }
  0x73   : > { %2599 = vmatpush1.bf16.msra.mxu0 %v3718_v34  ;;  %2845 = vmatpush1.bf16.msra.mxu1 %v3719_v35  ;;  %v3806_v34 = vld [vmem:[%s4494_s8 + $0x2e4] ss:$16 sps:$4 sm:$0xff]   ;;  %v3809_v35 = vld [vmem:[%s4494_s8 + $0x2ec] ss:$16 sps:$4 sm:$0xff]  }
  0x74   : > { %2600 = vmatprep.subr.bf16.mxu0 %v3720_v36  ;;  %2846 = vmatprep.subr.bf16.mxu1 %v3722_v37  ;;  %v3804_v36 = vld [vmem:[%s4494_s8 + $0x2e0] ss:$16 sps:$4 sm:$0xff]   ;;  %v3807_v37 = vld [vmem:[%s4494_s8 + $0x2e8] ss:$16 sps:$4 sm:$0xff]  }
  0x77   : > { %2601 = vmatpush1.bf16.msra.mxu0 %v3724_v38  ;;  %2847 = vmatpush1.bf16.msra.mxu1 %v3725_v39  ;;  %v3812_v38 = vld [vmem:[%s4494_s8 + $0x304] ss:$16 sps:$4 sm:$0xff]   ;;  %v3815_v39 = vld [vmem:[%s4494_s8 + $0x30c] ss:$16 sps:$4 sm:$0xff]  }
  0x78   : > { %2602 = vmatprep.subr.bf16.mxu0 %v3726_v40  ;;  %2848 = vmatprep.subr.bf16.mxu1 %v3728_v41  ;;  %v3810_v40 = vld [vmem:[%s4494_s8 + $0x300] ss:$16 sps:$4 sm:$0xff]   ;;  %v3813_v41 = vld [vmem:[%s4494_s8 + $0x308] ss:$16 sps:$4 sm:$0xff]  }
  0x7b   : > { %2603 = vmatpush1.bf16.msra.mxu0 %v3730_v42  ;;  %2849 = vmatpush1.bf16.msra.mxu1 %v3731_v43  ;;  %v3818_v42 = vld [vmem:[%s4494_s8 + $0x324] ss:$16 sps:$4 sm:$0xff]   ;;  %v3821_v43 = vld [vmem:[%s4494_s8 + $0x32c] ss:$16 sps:$4 sm:$0xff]  }
  0x7c   : > { %2604 = vmatprep.subr.bf16.mxu0 %v3732_v44  ;;  %2850 = vmatprep.subr.bf16.mxu1 %v3734_v45  ;;  %v3816_v44 = vld [vmem:[%s4494_s8 + $0x320] ss:$16 sps:$4 sm:$0xff]   ;;  %v3819_v45 = vld [vmem:[%s4494_s8 + $0x328] ss:$16 sps:$4 sm:$0xff]  }
  0x7f   : > { %2605 = vmatpush1.bf16.msra.mxu0 %v3736_v47  ;;  %2851 = vmatpush1.bf16.msra.mxu1 %v3737_v49  ;;  %v3827_v47 = vld [vmem:[%s4494_s8 + $0x34c] ss:$16 sps:$4 sm:$0xff]   ;;  %v3825_v49 = vld [vmem:[%s4494_s8 + $0x348] ss:$16 sps:$4 sm:$0xff]  }
  0x80   : > { %2606 = vmatprep.subr.bf16.mxu0 %v3738_v50  ;;  %2852 = vmatprep.subr.bf16.mxu1 %v3740_v51  ;;  %v3830_v50 = vld [vmem:[%s4494_s8 + $0x364] ss:$16 sps:$4 sm:$0xff]   ;;  %v3833_v51 = vld [vmem:[%s4494_s8 + $0x36c] ss:$16 sps:$4 sm:$0xff]  }
  0x83   : > { %2607 = vmatpush1.bf16.msra.mxu0 %v3742_v52  ;;  %2853 = vmatpush1.bf16.msra.mxu1 %v3743_v53  ;;  %v3828_v52 = vld [vmem:[%s4494_s8 + $0x360] ss:$16 sps:$4 sm:$0xff]   ;;  %v3831_v53 = vld [vmem:[%s4494_s8 + $0x368] ss:$16 sps:$4 sm:$0xff]  }
  0x84   : > { %2608 = vmatprep.subr.bf16.mxu0 %v3744_v54  ;;  %2854 = vmatprep.subr.bf16.mxu1 %v3746_v55  ;;  %v3836_v54 = vld [vmem:[%s4494_s8 + $0x384] ss:$16 sps:$4 sm:$0xff]   ;;  %v3839_v55 = vld [vmem:[%s4494_s8 + $0x38c] ss:$16 sps:$4 sm:$0xff]  }
  0x87   : > { %2609 = vmatpush1.bf16.msra.mxu0 %v3748_v56  ;;  %2855 = vmatpush1.bf16.msra.mxu1 %v3749_v57  ;;  %v3834_v56 = vld [vmem:[%s4494_s8 + $0x380] ss:$16 sps:$4 sm:$0xff]   ;;  %v3837_v57 = vld [vmem:[%s4494_s8 + $0x388] ss:$16 sps:$4 sm:$0xff]  }
  0x88   : > { %2610 = vmatprep.subr.bf16.mxu0 %v3750_v58  ;;  %2856 = vmatprep.subr.bf16.mxu1 %v3752_v59  ;;  %v3842_v58 = vld [vmem:[%s4494_s8 + $0x3a4] ss:$16 sps:$4 sm:$0xff]   ;;  %v3845_v59 = vld [vmem:[%s4494_s8 + $0x3ac] ss:$16 sps:$4 sm:$0xff]  }
  0x8b   : > { %2611 = vmatpush1.bf16.msra.mxu0 %v3754_v60  ;;  %2857 = vmatpush1.bf16.msra.mxu1 %v3755_v61  ;;  %v3840_v60 = vld [vmem:[%s4494_s8 + $0x3a0] ss:$16 sps:$4 sm:$0xff]   ;;  %v3843_v61 = vld [vmem:[%s4494_s8 + $0x3a8] ss:$16 sps:$4 sm:$0xff]  }
  0x8c   : > { %2612 = vmatprep.subr.bf16.mxu0 %v3756_v62  ;;  %2858 = vmatprep.subr.bf16.mxu1 %v3758_v63  ;;  %v3848_v62 = vld [vmem:[%s4494_s8 + $0x3c4] ss:$16 sps:$4 sm:$0xff]   ;;  %v3851_v63 = vld [vmem:[%s4494_s8 + $0x3cc] ss:$16 sps:$4 sm:$0xff]  }
  0x8f   : > { %2613 = vmatpush1.bf16.msra.mxu0 %v3760_v0  ;;  %2859 = vmatpush1.bf16.msra.mxu1 %v3761_v1  ;;  %v3846_v0 = vld [vmem:[%s4494_s8 + $0x3c0] ss:$16 sps:$4 sm:$0xff]   ;;  %v3849_v1 = vld [vmem:[%s4494_s8 + $0x3c8] ss:$16 sps:$4 sm:$0xff]  }
  0x90   : > { %2623 = vmatprep.subr.bf16.mxu0 %v3764_v3  ;;  %2869 = vmatprep.subr.bf16.mxu1 %v3767_v4  ;;  %v3857_v3 = vld [vmem:[%s4494_s8 + $0x3ec] ss:$16 sps:$4 sm:$0xff]   ;;  %v3852_v4 = vld [vmem:[%s4494_s8 + $0x3e0] ss:$16 sps:$4 sm:$0xff]  }
  0x92   : > { %2615 = vmatmul.mubr.bf16.vlgmr.msra.gmra.mrb[0].mxu0 %v244_v5  ;;  %2861 = vmatmul.mubr.bf16.vlgmr.msra.gmra.mrb[0].mxu1 %v244_v5  ;;  %v3855_v5 = vld [vmem:[%s4494_s8 + $0x3e8] ss:$16 sps:$4 sm:$0xff]  }
  0x93   : > { %2624 = vmatpush1.bf16.msra.mxu0 %v3762_v6  ;;  %2870 = vmatpush1.bf16.msra.mxu1 %v3765_v7  ;;  %v3860_v6 = vld [vmem:[%s4494_s8 + $0x404] ss:$16 sps:$4 sm:$0xff]  }
  0x94   : > { %2625 = vmatprep.subr.bf16.mxu0 %v3770_v8  ;;  %2871 = vmatprep.subr.bf16.mxu1 %v3773_v9  ;;  %v234_v7 = vld [vmem:[%s4946_s0 + $0x10] sm:$0xff]  ;;  %v3863_v8 = vld [vmem:[%s4494_s8 + $0x40c] ss:$16 sps:$4 sm:$0xff]  }
  0x95   : > { %2655 = vmatprep.mubr.bf16.mxu0 %v247_v32  ;;  %2901 = vmatprep.mubr.bf16.mxu1 %v247_v32  ;;  %v3858_v9 = vld [vmem:[%s4494_s8 + $0x400] ss:$16 sps:$4 sm:$0xff]  }
  0x96   : > { %v3888_v32 = vld [vmem:[%s4494_s8 + $0x4a0] ss:$16 sps:$4 sm:$0xff]  }
  0x97   : > { %2626 = vmatpush1.bf16.msra.mxu0 %v3768_v10  ;;  %2872 = vmatpush1.bf16.msra.mxu1 %v3771_v11  ;;  %v3861_v10 = vld [vmem:[%s4494_s8 + $0x408] ss:$16 sps:$4 sm:$0xff]   ;;  %v246_v11 = vpack.c.bf16 %v234_v7, %v234_v7  ;;  %v3953_v7 = vld [vmem:[%s4494_s8 + $0x5ec] ss:$16 sps:$4 sm:$0xff]  }
  0x98   : > { %2627 = vmatprep.subr.bf16.mxu0 %v3776_v12  ;;  %2873 = vmatprep.subr.bf16.mxu1 %v3779_v13  ;;  %v3866_v12 = vld [vmem:[%s4494_s8 + $0x424] ss:$16 sps:$4 sm:$0xff]   ;;  %v3869_v13 = vld [vmem:[%s4494_s8 + $0x42c] ss:$16 sps:$4 sm:$0xff]  }
  0x9b   : > { %2628 = vmatpush1.bf16.msra.mxu0 %v3774_v14  ;;  %2874 = vmatpush1.bf16.msra.mxu1 %v3777_v15  ;;  %v237_v14 = vld [vmem:[%s4946_s0 + $0x28] sm:$0xff] }
  0x9c   : > { %2629 = vmatprep.subr.bf16.mxu0 %v3782_v16  ;;  %2875 = vmatprep.subr.bf16.mxu1 %v3785_v17  ;;  %v249_v15 = vpack.c.bf16 %v237_v14, %v237_v14  ;;  %v3864_v16 = vld [vmem:[%s4494_s8 + $0x420] ss:$16 sps:$4 sm:$0xff]   ;;  %v3867_v17 = vld [vmem:[%s4494_s8 + $0x428] ss:$16 sps:$4 sm:$0xff]  }
  0x9d   : > { %v3957_v14 = vld [vmem:[%s4494_s8 + $0x608] ss:$16 sps:$4 sm:$0xff]  }
  0x9f   : > { %2630 = vmatpush1.bf16.msra.mxu0 %v3780_v18  ;;  %2876 = vmatpush1.bf16.msra.mxu1 %v3783_v19  ;;  %v3872_v18 = vld [vmem:[%s4494_s8 + $0x444] ss:$16 sps:$4 sm:$0xff]   ;;  %v3875_v19 = vld [vmem:[%s4494_s8 + $0x44c] ss:$16 sps:$4 sm:$0xff]  }
  0xa0   : > { %2631 = vmatprep.subr.bf16.mxu0 %v3788_v20  ;;  %2877 = vmatprep.subr.bf16.mxu1 %v3791_v21  ;;  %v3870_v20 = vld [vmem:[%s4494_s8 + $0x440] ss:$16 sps:$4 sm:$0xff]   ;;  %v3873_v21 = vld [vmem:[%s4494_s8 + $0x448] ss:$16 sps:$4 sm:$0xff]  }
  0xa3   : > { %2632 = vmatpush1.bf16.msra.mxu0 %v3786_v22  ;;  %2878 = vmatpush1.bf16.msra.mxu1 %v3789_v23  ;;  %v3878_v22 = vld [vmem:[%s4494_s8 + $0x464] ss:$16 sps:$4 sm:$0xff]   ;;  %v3881_v23 = vld [vmem:[%s4494_s8 + $0x46c] ss:$16 sps:$4 sm:$0xff]  }
  0xa4   : > { %2633 = vmatprep.subr.bf16.mxu0 %v3794_v24  ;;  %2879 = vmatprep.subr.bf16.mxu1 %v3797_v25  ;;  %v3876_v24 = vld [vmem:[%s4494_s8 + $0x460] ss:$16 sps:$4 sm:$0xff]   ;;  %v3879_v25 = vld [vmem:[%s4494_s8 + $0x468] ss:$16 sps:$4 sm:$0xff]  }
  0xa7   : > { %2634 = vmatpush1.bf16.msra.mxu0 %v3792_v26  ;;  %2880 = vmatpush1.bf16.msra.mxu1 %v3795_v27  ;;  %v3884_v26 = vld [vmem:[%s4494_s8 + $0x484] ss:$16 sps:$4 sm:$0xff]   ;;  %v3887_v27 = vld [vmem:[%s4494_s8 + $0x48c] ss:$16 sps:$4 sm:$0xff]  }
  0xa8   : > { %2635 = vmatprep.subr.bf16.mxu0 %v3800_v28  ;;  %2881 = vmatprep.subr.bf16.mxu1 %v3803_v29  ;;  %v3882_v28 = vld [vmem:[%s4494_s8 + $0x480] ss:$16 sps:$4 sm:$0xff]   ;;  %v3885_v29 = vld [vmem:[%s4494_s8 + $0x488] ss:$16 sps:$4 sm:$0xff]  }
  0xab   : > { %2636 = vmatpush1.bf16.msra.mxu0 %v3798_v31  ;;  %2882 = vmatpush1.bf16.msra.mxu1 %v3801_v33  ;;  %v3893_v31 = vld [vmem:[%s4494_s8 + $0x4ac] ss:$16 sps:$4 sm:$0xff]   ;;  %v3891_v33 = vld [vmem:[%s4494_s8 + $0x4a8] ss:$16 sps:$4 sm:$0xff]  }
  0xac   : > { %2637 = vmatprep.subr.bf16.mxu0 %v3806_v34  ;;  %2883 = vmatprep.subr.bf16.mxu1 %v3809_v35  ;;  %v3896_v34 = vld [vmem:[%s4494_s8 + $0x4c4] ss:$16 sps:$4 sm:$0xff]   ;;  %v3899_v35 = vld [vmem:[%s4494_s8 + $0x4cc] ss:$16 sps:$4 sm:$0xff]  }
  0xaf   : > { %2638 = vmatpush1.bf16.msra.mxu0 %v3804_v36  ;;  %2884 = vmatpush1.bf16.msra.mxu1 %v3807_v37  ;;  %v3894_v36 = vld [vmem:[%s4494_s8 + $0x4c0] ss:$16 sps:$4 sm:$0xff]   ;;  %v3897_v37 = vld [vmem:[%s4494_s8 + $0x4c8] ss:$16 sps:$4 sm:$0xff]  }
  0xb0   : > { %2639 = vmatprep.subr.bf16.mxu0 %v3812_v38  ;;  %2885 = vmatprep.subr.bf16.mxu1 %v3815_v39  ;;  %v3902_v38 = vld [vmem:[%s4494_s8 + $0x4e4] ss:$16 sps:$4 sm:$0xff]   ;;  %v3905_v39 = vld [vmem:[%s4494_s8 + $0x4ec] ss:$16 sps:$4 sm:$0xff]  }
  0xb3   : > { %2640 = vmatpush1.bf16.msra.mxu0 %v3810_v40  ;;  %2886 = vmatpush1.bf16.msra.mxu1 %v3813_v41  ;;  %v3900_v40 = vld [vmem:[%s4494_s8 + $0x4e0] ss:$16 sps:$4 sm:$0xff]   ;;  %v3903_v41 = vld [vmem:[%s4494_s8 + $0x4e8] ss:$16 sps:$4 sm:$0xff]  }
  0xb4   : > { %2641 = vmatprep.subr.bf16.mxu0 %v3818_v42  ;;  %2887 = vmatprep.subr.bf16.mxu1 %v3821_v43  ;;  %v3908_v42 = vld [vmem:[%s4494_s8 + $0x504] ss:$16 sps:$4 sm:$0xff]   ;;  %v3911_v43 = vld [vmem:[%s4494_s8 + $0x50c] ss:$16 sps:$4 sm:$0xff]  }
  0xb7   : > { %2642 = vmatpush1.bf16.msra.mxu0 %v3816_v44  ;;  %2888 = vmatpush1.bf16.msra.mxu1 %v3819_v45  ;;  %v3906_v44 = vld [vmem:[%s4494_s8 + $0x500] ss:$16 sps:$4 sm:$0xff]   ;;  %v3909_v45 = vld [vmem:[%s4494_s8 + $0x508] ss:$16 sps:$4 sm:$0xff]  }
  0xb8   : > { %2643 = vmatprep.subr.bf16.mxu0 %v3824_v46  ;;  %2889 = vmatprep.subr.bf16.mxu1 %v3827_v47  ;;  %v3914_v46 = vld [vmem:[%s4494_s8 + $0x524] ss:$16 sps:$4 sm:$0xff]   ;;  %v3917_v47 = vld [vmem:[%s4494_s8 + $0x52c] ss:$16 sps:$4 sm:$0xff]  }
  0xbb   : > { %2644 = vmatpush1.bf16.msra.mxu0 %v3822_v48  ;;  %2890 = vmatpush1.bf16.msra.mxu1 %v3825_v49  ;;  %v3912_v48 = vld [vmem:[%s4494_s8 + $0x520] ss:$16 sps:$4 sm:$0xff]   ;;  %v3915_v49 = vld [vmem:[%s4494_s8 + $0x528] ss:$16 sps:$4 sm:$0xff]  }
  0xbc   : > { %2645 = vmatprep.subr.bf16.mxu0 %v3830_v50  ;;  %2891 = vmatprep.subr.bf16.mxu1 %v3833_v51  ;;  %v3920_v50 = vld [vmem:[%s4494_s8 + $0x544] ss:$16 sps:$4 sm:$0xff]   ;;  %v3923_v51 = vld [vmem:[%s4494_s8 + $0x54c] ss:$16 sps:$4 sm:$0xff]  }
  0xbf   : > { %2646 = vmatpush1.bf16.msra.mxu0 %v3828_v52  ;;  %2892 = vmatpush1.bf16.msra.mxu1 %v3831_v53  ;;  %v3918_v52 = vld [vmem:[%s4494_s8 + $0x540] ss:$16 sps:$4 sm:$0xff]   ;;  %v3921_v53 = vld [vmem:[%s4494_s8 + $0x548] ss:$16 sps:$4 sm:$0xff]  }
  0xc0   : > { %2647 = vmatprep.subr.bf16.mxu0 %v3836_v54  ;;  %2893 = vmatprep.subr.bf16.mxu1 %v3839_v55  ;;  %v3926_v54 = vld [vmem:[%s4494_s8 + $0x564] ss:$16 sps:$4 sm:$0xff]   ;;  %v3929_v55 = vld [vmem:[%s4494_s8 + $0x56c] ss:$16 sps:$4 sm:$0xff]  }
  0xc3   : > { %2648 = vmatpush1.bf16.msra.mxu0 %v3834_v56  ;;  %2894 = vmatpush1.bf16.msra.mxu1 %v3837_v57  ;;  %v3924_v56 = vld [vmem:[%s4494_s8 + $0x560] ss:$16 sps:$4 sm:$0xff]   ;;  %v3927_v57 = vld [vmem:[%s4494_s8 + $0x568] ss:$16 sps:$4 sm:$0xff]  }
  0xc4   : > { %2649 = vmatprep.subr.bf16.mxu0 %v3842_v58  ;;  %2895 = vmatprep.subr.bf16.mxu1 %v3845_v59  ;;  %v3932_v58 = vld [vmem:[%s4494_s8 + $0x584] ss:$16 sps:$4 sm:$0xff]   ;;  %v3935_v59 = vld [vmem:[%s4494_s8 + $0x58c] ss:$16 sps:$4 sm:$0xff]  }
  0xc7   : > { %2650 = vmatpush1.bf16.msra.mxu0 %v3840_v60  ;;  %2896 = vmatpush1.bf16.msra.mxu1 %v3843_v61  ;;  %v3930_v60 = vld [vmem:[%s4494_s8 + $0x580] ss:$16 sps:$4 sm:$0xff]   ;;  %v3933_v61 = vld [vmem:[%s4494_s8 + $0x588] ss:$16 sps:$4 sm:$0xff]  }
  0xc8   : > { %2651 = vmatprep.subr.bf16.mxu0 %v3848_v62  ;;  %2897 = vmatprep.subr.bf16.mxu1 %v3851_v63  ;;  %v3938_v62 = vld [vmem:[%s4494_s8 + $0x5a4] ss:$16 sps:$4 sm:$0xff]   ;;  %v3941_v63 = vld [vmem:[%s4494_s8 + $0x5ac] ss:$16 sps:$4 sm:$0xff]  }
  0xcb   : > { %2652 = vmatpush1.bf16.msra.mxu0 %v3846_v0  ;;  %2898 = vmatpush1.bf16.msra.mxu1 %v3849_v1  ;;  %v3936_v0 = vld [vmem:[%s4494_s8 + $0x5a0] ss:$16 sps:$4 sm:$0xff]   ;;  %v3939_v1 = vld [vmem:[%s4494_s8 + $0x5a8] ss:$16 sps:$4 sm:$0xff]  }
  0xcc   : > { %2653 = vmatprep.subr.bf16.mxu0 %v3854_v2  ;;  %2899 = vmatprep.subr.bf16.mxu1 %v3857_v3  ;;  %v3944_v2 = vld [vmem:[%s4494_s8 + $0x5c4] ss:$16 sps:$4 sm:$0xff]   ;;  %v3947_v3 = vld [vmem:[%s4494_s8 + $0x5cc] ss:$16 sps:$4 sm:$0xff]  }
  0xcf   : > { %2654 = vmatpush1.bf16.msra.mxu0 %v3852_v4  ;;  %2900 = vmatpush1.bf16.msra.mxu1 %v3855_v5  ;;  %v3942_v4 = vld [vmem:[%s4494_s8 + $0x5c0] ss:$16 sps:$4 sm:$0xff]   ;;  %v3945_v5 = vld [vmem:[%s4494_s8 + $0x5c8] ss:$16 sps:$4 sm:$0xff]  }
  0xd0   : > { %2664 = vmatprep.subr.bf16.mxu0 %v3860_v6  ;;  %2910 = vmatprep.subr.bf16.mxu1 %v3863_v8  ;;  %v3950_v6 = vld [vmem:[%s4494_s8 + $0x5e4] ss:$16 sps:$4 sm:$0xff]   ;;  %v3948_v8 = vld [vmem:[%s4494_s8 + $0x5e0] ss:$16 sps:$4 sm:$0xff]  }
  0xd2   : > { %2656 = vmatmul.mubr.bf16.vlgmr.msra.gmra.mrb[0].mxu0 %v246_v11  ;;  %2902 = vmatmul.mubr.bf16.vlgmr.msra.gmra.mrb[0].mxu1 %v246_v11  ;;  %v236_v11 = vld [vmem:[%s4946_s0 + $0x20] sm:$0xff] }
  0xd3   : > { %2665 = vmatpush1.bf16.msra.mxu0 %v3858_v9  ;;  %2911 = vmatpush1.bf16.msra.mxu1 %v3861_v10  ;;  %v3951_v9 = vld [vmem:[%s4494_s8 + $0x5e8] ss:$16 sps:$4 sm:$0xff]   ;;  %v3956_v10 = vld [vmem:[%s4494_s8 + $0x604] ss:$16 sps:$4 sm:$0xff]  }
  0xd4   : > { %2666 = vmatprep.subr.bf16.mxu0 %v3866_v12  ;;  %2912 = vmatprep.subr.bf16.mxu1 %v3869_v13  ;;  %v3959_v12 = vld [vmem:[%s4494_s8 + $0x60c] ss:$16 sps:$4 sm:$0xff]   ;;  %v3954_v13 = vld [vmem:[%s4494_s8 + $0x600] ss:$16 sps:$4 sm:$0xff]  }
  0xd5   : > { %2696 = vmatprep.mubr.bf16.mxu0 %v249_v15  ;;  %2942 = vmatprep.mubr.bf16.mxu1 %v249_v15  ;;  %v248_v15 = vpack.c.bf16 %v236_v11, %v236_v11  ;;  %v4049_v11 = vld [vmem:[%s4494_s8 + $0x7ec] ss:$16 sps:$4 sm:$0xff]  }
  0xd7   : > { %2667 = vmatpush1.bf16.msra.mxu0 %v3864_v16  ;;  %2913 = vmatpush1.bf16.msra.mxu1 %v3867_v17  ;;  %v239_v16 = vld [vmem:[%s4946_s0 + $0x38] sm:$0xff]  ;;  %v3962_v17 = vld [vmem:[%s4494_s8 + $0x624] ss:$16 sps:$4 sm:$0xff]  }
  0xd8   : > { %2668 = vmatprep.subr.bf16.mxu0 %v3872_v18  ;;  %2914 = vmatprep.subr.bf16.mxu1 %v3875_v19  ;;  %v3965_v18 = vld [vmem:[%s4494_s8 + $0x62c] ss:$16 sps:$4 sm:$0xff]   ;;  %v251_v19 = vpack.c.bf16 %v239_v16, %v239_v16 }
  0xd9   : > { %v4055_v16 = vld [vmem:[%s4494_s8 + $0x80c] ss:$16 sps:$4 sm:$0xff]  }
  0xdb   : > { %2669 = vmatpush1.bf16.msra.mxu0 %v3870_v20  ;;  %2915 = vmatpush1.bf16.msra.mxu1 %v3873_v21  ;;  %v3960_v20 = vld [vmem:[%s4494_s8 + $0x620] ss:$16 sps:$4 sm:$0xff]   ;;  %v3963_v21 = vld [vmem:[%s4494_s8 + $0x628] ss:$16 sps:$4 sm:$0xff]  }
  0xdc   : > { %2670 = vmatprep.subr.bf16.mxu0 %v3878_v22  ;;  %2916 = vmatprep.subr.bf16.mxu1 %v3881_v23  ;;  %v3968_v22 = vld [vmem:[%s4494_s8 + $0x644] ss:$16 sps:$4 sm:$0xff]   ;;  %v3971_v23 = vld [vmem:[%s4494_s8 + $0x64c] ss:$16 sps:$4 sm:$0xff]  }
  0xdf   : > { %2671 = vmatpush1.bf16.msra.mxu0 %v3876_v24  ;;  %2917 = vmatpush1.bf16.msra.mxu1 %v3879_v25  ;;  %v3966_v24 = vld [vmem:[%s4494_s8 + $0x640] ss:$16 sps:$4 sm:$0xff]   ;;  %v3969_v25 = vld [vmem:[%s4494_s8 + $0x648] ss:$16 sps:$4 sm:$0xff]  }
  0xe0   : > { %2672 = vmatprep.subr.bf16.mxu0 %v3884_v26  ;;  %2918 = vmatprep.subr.bf16.mxu1 %v3887_v27  ;;  %v3974_v26 = vld [vmem:[%s4494_s8 + $0x664] ss:$16 sps:$4 sm:$0xff]   ;;  %v3977_v27 = vld [vmem:[%s4494_s8 + $0x66c] ss:$16 sps:$4 sm:$0xff]  }
  0xe3   : > { %2673 = vmatpush1.bf16.msra.mxu0 %v3882_v28  ;;  %2919 = vmatpush1.bf16.msra.mxu1 %v3885_v29  ;;  %v3972_v28 = vld [vmem:[%s4494_s8 + $0x660] ss:$16 sps:$4 sm:$0xff]   ;;  %v3975_v29 = vld [vmem:[%s4494_s8 + $0x668] ss:$16 sps:$4 sm:$0xff]  }
  0xe4   : > { %2674 = vmatprep.subr.bf16.mxu0 %v3890_v30  ;;  %2920 = vmatprep.subr.bf16.mxu1 %v3893_v31  ;;  %v3980_v30 = vld [vmem:[%s4494_s8 + $0x684] ss:$16 sps:$4 sm:$0xff]   ;;  %v3983_v31 = vld [vmem:[%s4494_s8 + $0x68c] ss:$16 sps:$4 sm:$0xff]  }
  0xe7   : > { %2675 = vmatpush1.bf16.msra.mxu0 %v3888_v32  ;;  %2921 = vmatpush1.bf16.msra.mxu1 %v3891_v33  ;;  %v3978_v32 = vld [vmem:[%s4494_s8 + $0x680] ss:$16 sps:$4 sm:$0xff]   ;;  %v3981_v33 = vld [vmem:[%s4494_s8 + $0x688] ss:$16 sps:$4 sm:$0xff]  }
  0xe8   : > { %2676 = vmatprep.subr.bf16.mxu0 %v3896_v34  ;;  %2922 = vmatprep.subr.bf16.mxu1 %v3899_v35  ;;  %v3986_v34 = vld [vmem:[%s4494_s8 + $0x6a4] ss:$16 sps:$4 sm:$0xff]   ;;  %v3989_v35 = vld [vmem:[%s4494_s8 + $0x6ac] ss:$16 sps:$4 sm:$0xff]  }
  0xeb   : > { %2677 = vmatpush1.bf16.msra.mxu0 %v3894_v36  ;;  %2923 = vmatpush1.bf16.msra.mxu1 %v3897_v37  ;;  %v3984_v36 = vld [vmem:[%s4494_s8 + $0x6a0] ss:$16 sps:$4 sm:$0xff]   ;;  %v3987_v37 = vld [vmem:[%s4494_s8 + $0x6a8] ss:$16 sps:$4 sm:$0xff]  }
  0xec   : > { %2678 = vmatprep.subr.bf16.mxu0 %v3902_v38  ;;  %2924 = vmatprep.subr.bf16.mxu1 %v3905_v39  ;;  %v3992_v38 = vld [vmem:[%s4494_s8 + $0x6c4] ss:$16 sps:$4 sm:$0xff]   ;;  %v3995_v39 = vld [vmem:[%s4494_s8 + $0x6cc] ss:$16 sps:$4 sm:$0xff]  }
  0xef   : > { %2679 = vmatpush1.bf16.msra.mxu0 %v3900_v40  ;;  %2925 = vmatpush1.bf16.msra.mxu1 %v3903_v41  ;;  %v3990_v40 = vld [vmem:[%s4494_s8 + $0x6c0] ss:$16 sps:$4 sm:$0xff]   ;;  %v3993_v41 = vld [vmem:[%s4494_s8 + $0x6c8] ss:$16 sps:$4 sm:$0xff]  }
  0xf0   : > { %2680 = vmatprep.subr.bf16.mxu0 %v3908_v42  ;;  %2926 = vmatprep.subr.bf16.mxu1 %v3911_v43  ;;  %v3998_v42 = vld [vmem:[%s4494_s8 + $0x6e4] ss:$16 sps:$4 sm:$0xff]   ;;  %v4001_v43 = vld [vmem:[%s4494_s8 + $0x6ec] ss:$16 sps:$4 sm:$0xff]  }
  0xf3   : > { %2681 = vmatpush1.bf16.msra.mxu0 %v3906_v44  ;;  %2927 = vmatpush1.bf16.msra.mxu1 %v3909_v45  ;;  %v3996_v44 = vld [vmem:[%s4494_s8 + $0x6e0] ss:$16 sps:$4 sm:$0xff]   ;;  %v3999_v45 = vld [vmem:[%s4494_s8 + $0x6e8] ss:$16 sps:$4 sm:$0xff]  }
  0xf4   : > { %2682 = vmatprep.subr.bf16.mxu0 %v3914_v46  ;;  %2928 = vmatprep.subr.bf16.mxu1 %v3917_v47  ;;  %v4004_v46 = vld [vmem:[%s4494_s8 + $0x704] ss:$16 sps:$4 sm:$0xff]   ;;  %v4007_v47 = vld [vmem:[%s4494_s8 + $0x70c] ss:$16 sps:$4 sm:$0xff]  }
  0xf7   : > { %2683 = vmatpush1.bf16.msra.mxu0 %v3912_v48  ;;  %2929 = vmatpush1.bf16.msra.mxu1 %v3915_v49  ;;  %v4002_v48 = vld [vmem:[%s4494_s8 + $0x700] ss:$16 sps:$4 sm:$0xff]   ;;  %v4005_v49 = vld [vmem:[%s4494_s8 + $0x708] ss:$16 sps:$4 sm:$0xff]  }
  0xf8   : > { %2684 = vmatprep.subr.bf16.mxu0 %v3920_v50  ;;  %2930 = vmatprep.subr.bf16.mxu1 %v3923_v51  ;;  %v4010_v50 = vld [vmem:[%s4494_s8 + $0x724] ss:$16 sps:$4 sm:$0xff]   ;;  %v4013_v51 = vld [vmem:[%s4494_s8 + $0x72c] ss:$16 sps:$4 sm:$0xff]  }
  0xfb   : > { %2685 = vmatpush1.bf16.msra.mxu0 %v3918_v52  ;;  %2931 = vmatpush1.bf16.msra.mxu1 %v3921_v53  ;;  %v4008_v52 = vld [vmem:[%s4494_s8 + $0x720] ss:$16 sps:$4 sm:$0xff]   ;;  %v4011_v53 = vld [vmem:[%s4494_s8 + $0x728] ss:$16 sps:$4 sm:$0xff]  }
  0xfc   : > { %2686 = vmatprep.subr.bf16.mxu0 %v3926_v54  ;;  %2932 = vmatprep.subr.bf16.mxu1 %v3929_v55  ;;  %v4016_v54 = vld [vmem:[%s4494_s8 + $0x744] ss:$16 sps:$4 sm:$0xff]   ;;  %v4019_v55 = vld [vmem:[%s4494_s8 + $0x74c] ss:$16 sps:$4 sm:$0xff]  }
  0xff   : > { %2687 = vmatpush1.bf16.msra.mxu0 %v3924_v56  ;;  %2933 = vmatpush1.bf16.msra.mxu1 %v3927_v57  ;;  %v4014_v56 = vld [vmem:[%s4494_s8 + $0x740] ss:$16 sps:$4 sm:$0xff]   ;;  %v4017_v57 = vld [vmem:[%s4494_s8 + $0x748] ss:$16 sps:$4 sm:$0xff]  }
 0x100   : > { %2688 = vmatprep.subr.bf16.mxu0 %v3932_v58  ;;  %2934 = vmatprep.subr.bf16.mxu1 %v3935_v59  ;;  %v4022_v58 = vld [vmem:[%s4494_s8 + $0x764] ss:$16 sps:$4 sm:$0xff]   ;;  %v4025_v59 = vld [vmem:[%s4494_s8 + $0x76c] ss:$16 sps:$4 sm:$0xff]  }
 0x103   : > { %2689 = vmatpush1.bf16.msra.mxu0 %v3930_v60  ;;  %2935 = vmatpush1.bf16.msra.mxu1 %v3933_v61  ;;  %v4020_v60 = vld [vmem:[%s4494_s8 + $0x760] ss:$16 sps:$4 sm:$0xff]   ;;  %v4023_v61 = vld [vmem:[%s4494_s8 + $0x768] ss:$16 sps:$4 sm:$0xff]  }
 0x104   : > { %2690 = vmatprep.subr.bf16.mxu0 %v3938_v62  ;;  %2936 = vmatprep.subr.bf16.mxu1 %v3941_v63  ;;  %v4028_v62 = vld [vmem:[%s4494_s8 + $0x784] ss:$16 sps:$4 sm:$0xff]   ;;  %v4031_v63 = vld [vmem:[%s4494_s8 + $0x78c] ss:$16 sps:$4 sm:$0xff]  }
 0x107   : > { %2691 = vmatpush1.bf16.msra.mxu0 %v3936_v0  ;;  %2937 = vmatpush1.bf16.msra.mxu1 %v3939_v1  ;;  %v4026_v0 = vld [vmem:[%s4494_s8 + $0x780] ss:$16 sps:$4 sm:$0xff]   ;;  %v4029_v1 = vld [vmem:[%s4494_s8 + $0x788] ss:$16 sps:$4 sm:$0xff]  }
 0x108   : > { %2692 = vmatprep.subr.bf16.mxu0 %v3944_v2  ;;  %2938 = vmatprep.subr.bf16.mxu1 %v3947_v3  ;;  %v4034_v2 = vld [vmem:[%s4494_s8 + $0x7a4] ss:$16 sps:$4 sm:$0xff]   ;;  %v4037_v3 = vld [vmem:[%s4494_s8 + $0x7ac] ss:$16 sps:$4 sm:$0xff]  }
 0x10b   : > { %2693 = vmatpush1.bf16.msra.mxu0 %v3942_v4  ;;  %2939 = vmatpush1.bf16.msra.mxu1 %v3945_v5  ;;  %v4032_v4 = vld [vmem:[%s4494_s8 + $0x7a0] ss:$16 sps:$4 sm:$0xff]   ;;  %v4035_v5 = vld [vmem:[%s4494_s8 + $0x7a8] ss:$16 sps:$4 sm:$0xff]  }
 0x10c   : > { %2694 = vmatprep.subr.bf16.mxu0 %v3950_v6  ;;  %2940 = vmatprep.subr.bf16.mxu1 %v3953_v7  ;;  %v4040_v6 = vld [vmem:[%s4494_s8 + $0x7c4] ss:$16 sps:$4 sm:$0xff]   ;;  %v4043_v7 = vld [vmem:[%s4494_s8 + $0x7cc] ss:$16 sps:$4 sm:$0xff]  }
 0x10f   : > { %2695 = vmatpush1.bf16.msra.mxu0 %v3948_v8  ;;  %2941 = vmatpush1.bf16.msra.mxu1 %v3951_v9  ;;  %v4038_v8 = vld [vmem:[%s4494_s8 + $0x7c0] ss:$16 sps:$4 sm:$0xff]   ;;  %v4041_v9 = vld [vmem:[%s4494_s8 + $0x7c8] ss:$16 sps:$4 sm:$0xff]  }
 0x110   : > { %2705 = vmatprep.subr.bf16.mxu0 %v3956_v10  ;;  %2951 = vmatprep.subr.bf16.mxu1 %v3959_v12  ;;  %v4046_v10 = vld [vmem:[%s4494_s8 + $0x7e4] ss:$16 sps:$4 sm:$0xff]   ;;  %v4044_v12 = vld [vmem:[%s4494_s8 + $0x7e0] ss:$16 sps:$4 sm:$0xff]  }
 0x112   : > { %2697 = vmatmul.mubr.bf16.vlgmr.msra.gmra.mrb[0].mxu0 %v248_v15  ;;  %2943 = vmatmul.mubr.bf16.vlgmr.msra.gmra.mrb[0].mxu1 %v248_v15  ;;  %v4052_v15 = vld [vmem:[%s4494_s8 + $0x804] ss:$16 sps:$4 sm:$0xff]  }
 0x113   : > { %2706 = vmatpush1.bf16.msra.mxu0 %v3954_v13  ;;  %2952 = vmatpush1.bf16.msra.mxu1 %v3957_v14  ;;  %v4047_v13 = vld [vmem:[%s4494_s8 + $0x7e8] ss:$16 sps:$4 sm:$0xff]   ;;  %v238_v14 = vld [vmem:[%s4946_s0 + $0x30] sm:$0xff] }
 0x114   : > { %2707 = vmatprep.subr.bf16.mxu0 %v3962_v17  ;;  %2953 = vmatprep.subr.bf16.mxu1 %v3965_v18  ;;  %v250_v17 = vpack.c.bf16 %v238_v14, %v238_v14  ;;  %v241_v18 = vld [vmem:[%s4946_s0 + $0x48] sm:$0xff]  ;;  %v4142_v14 = vld [vmem:[%s4494_s8 + $0x9e4] ss:$16 sps:$4 sm:$0xff]  }
 0x115   : > { %2737 = vmatprep.mubr.bf16.mxu0 %v251_v19  ;;  %2983 = vmatprep.mubr.bf16.mxu1 %v251_v19  ;;  %v4050_v19 = vld [vmem:[%s4494_s8 + $0x800] ss:$16 sps:$4 sm:$0xff]  }
 0x117   : > { %2708 = vmatpush1.bf16.msra.mxu0 %v3960_v20  ;;  %2954 = vmatpush1.bf16.msra.mxu1 %v3963_v21  ;;  %v4053_v20 = vld [vmem:[%s4494_s8 + $0x808] ss:$16 sps:$4 sm:$0xff]   ;;  %v4058_v21 = vld [vmem:[%s4494_s8 + $0x824] ss:$16 sps:$4 sm:$0xff]  }
 0x118   : > { %2709 = vmatprep.subr.bf16.mxu0 %v3968_v22  ;;  %2955 = vmatprep.subr.bf16.mxu1 %v3971_v23  ;;  %v4061_v22 = vld [vmem:[%s4494_s8 + $0x82c] ss:$16 sps:$4 sm:$0xff]   ;;  %v253_v23 = vpack.c.bf16 %v241_v18, %v241_v18  ;;  %v240_v18 = vld [vmem:[%s4946_s0 + $0x40] sm:$0xff] }
 0x11b   : > { %2710 = vmatpush1.bf16.msra.mxu0 %v3966_v24  ;;  %2956 = vmatpush1.bf16.msra.mxu1 %v3969_v25  ;;  %v4056_v24 = vld [vmem:[%s4494_s8 + $0x820] ss:$16 sps:$4 sm:$0xff]   ;;  %v4059_v25 = vld [vmem:[%s4494_s8 + $0x828] ss:$16 sps:$4 sm:$0xff]  }
 0x11c   : > { %2711 = vmatprep.subr.bf16.mxu0 %v3974_v26  ;;  %2957 = vmatprep.subr.bf16.mxu1 %v3977_v27  ;;  %v4064_v26 = vld [vmem:[%s4494_s8 + $0x844] ss:$16 sps:$4 sm:$0xff]   ;;  %v4067_v27 = vld [vmem:[%s4494_s8 + $0x84c] ss:$16 sps:$4 sm:$0xff]  }
 0x11f   : > { %2712 = vmatpush1.bf16.msra.mxu0 %v3972_v28  ;;  %2958 = vmatpush1.bf16.msra.mxu1 %v3975_v29  ;;  %v4062_v28 = vld [vmem:[%s4494_s8 + $0x840] ss:$16 sps:$4 sm:$0xff]   ;;  %v4065_v29 = vld [vmem:[%s4494_s8 + $0x848] ss:$16 sps:$4 sm:$0xff]  }
 0x120   : > { %2713 = vmatprep.subr.bf16.mxu0 %v3980_v30  ;;  %2959 = vmatprep.subr.bf16.mxu1 %v3983_v31  ;;  %v4070_v30 = vld [vmem:[%s4494_s8 + $0x864] ss:$16 sps:$4 sm:$0xff]   ;;  %v4073_v31 = vld [vmem:[%s4494_s8 + $0x86c] ss:$16 sps:$4 sm:$0xff]  }
 0x123   : > { %2714 = vmatpush1.bf16.msra.mxu0 %v3978_v32  ;;  %2960 = vmatpush1.bf16.msra.mxu1 %v3981_v33  ;;  %v4068_v32 = vld [vmem:[%s4494_s8 + $0x860] ss:$16 sps:$4 sm:$0xff]   ;;  %v4071_v33 = vld [vmem:[%s4494_s8 + $0x868] ss:$16 sps:$4 sm:$0xff]  }
 0x124   : > { %2715 = vmatprep.subr.bf16.mxu0 %v3986_v34  ;;  %2961 = vmatprep.subr.bf16.mxu1 %v3989_v35  ;;  %v4076_v34 = vld [vmem:[%s4494_s8 + $0x884] ss:$16 sps:$4 sm:$0xff]   ;;  %v4079_v35 = vld [vmem:[%s4494_s8 + $0x88c] ss:$16 sps:$4 sm:$0xff]  }
 0x127   : > { %2716 = vmatpush1.bf16.msra.mxu0 %v3984_v36  ;;  %2962 = vmatpush1.bf16.msra.mxu1 %v3987_v37  ;;  %v4074_v36 = vld [vmem:[%s4494_s8 + $0x880] ss:$16 sps:$4 sm:$0xff]   ;;  %v4077_v37 = vld [vmem:[%s4494_s8 + $0x888] ss:$16 sps:$4 sm:$0xff]  }
 0x128   : > { %2717 = vmatprep.subr.bf16.mxu0 %v3992_v38  ;;  %2963 = vmatprep.subr.bf16.mxu1 %v3995_v39  ;;  %v4082_v38 = vld [vmem:[%s4494_s8 + $0x8a4] ss:$16 sps:$4 sm:$0xff]   ;;  %v4085_v39 = vld [vmem:[%s4494_s8 + $0x8ac] ss:$16 sps:$4 sm:$0xff]  }
 0x12b   : > { %2718 = vmatpush1.bf16.msra.mxu0 %v3990_v40  ;;  %2964 = vmatpush1.bf16.msra.mxu1 %v3993_v41  ;;  %v4080_v40 = vld [vmem:[%s4494_s8 + $0x8a0] ss:$16 sps:$4 sm:$0xff]   ;;  %v4083_v41 = vld [vmem:[%s4494_s8 + $0x8a8] ss:$16 sps:$4 sm:$0xff]  }
 0x12c   : > { %2719 = vmatprep.subr.bf16.mxu0 %v3998_v42  ;;  %2965 = vmatprep.subr.bf16.mxu1 %v4001_v43  ;;  %v4088_v42 = vld [vmem:[%s4494_s8 + $0x8c4] ss:$16 sps:$4 sm:$0xff]   ;;  %v4091_v43 = vld [vmem:[%s4494_s8 + $0x8cc] ss:$16 sps:$4 sm:$0xff]  }
 0x12f   : > { %2720 = vmatpush1.bf16.msra.mxu0 %v3996_v44  ;;  %2966 = vmatpush1.bf16.msra.mxu1 %v3999_v45  ;;  %v4086_v44 = vld [vmem:[%s4494_s8 + $0x8c0] ss:$16 sps:$4 sm:$0xff]   ;;  %v4089_v45 = vld [vmem:[%s4494_s8 + $0x8c8] ss:$16 sps:$4 sm:$0xff]  }
 0x130   : > { %2721 = vmatprep.subr.bf16.mxu0 %v4004_v46  ;;  %2967 = vmatprep.subr.bf16.mxu1 %v4007_v47  ;;  %v4094_v46 = vld [vmem:[%s4494_s8 + $0x8e4] ss:$16 sps:$4 sm:$0xff]   ;;  %v4097_v47 = vld [vmem:[%s4494_s8 + $0x8ec] ss:$16 sps:$4 sm:$0xff]  }
 0x133   : > { %2722 = vmatpush1.bf16.msra.mxu0 %v4002_v48  ;;  %2968 = vmatpush1.bf16.msra.mxu1 %v4005_v49  ;;  %v4092_v48 = vld [vmem:[%s4494_s8 + $0x8e0] ss:$16 sps:$4 sm:$0xff]   ;;  %v4095_v49 = vld [vmem:[%s4494_s8 + $0x8e8] ss:$16 sps:$4 sm:$0xff]  }
 0x134   : > { %2723 = vmatprep.subr.bf16.mxu0 %v4010_v50  ;;  %2969 = vmatprep.subr.bf16.mxu1 %v4013_v51  ;;  %v4100_v50 = vld [vmem:[%s4494_s8 + $0x904] ss:$16 sps:$4 sm:$0xff]   ;;  %v4103_v51 = vld [vmem:[%s4494_s8 + $0x90c] ss:$16 sps:$4 sm:$0xff]  }
 0x137   : > { %2724 = vmatpush1.bf16.msra.mxu0 %v4008_v52  ;;  %2970 = vmatpush1.bf16.msra.mxu1 %v4011_v53  ;;  %v4098_v52 = vld [vmem:[%s4494_s8 + $0x900] ss:$16 sps:$4 sm:$0xff]   ;;  %v4101_v53 = vld [vmem:[%s4494_s8 + $0x908] ss:$16 sps:$4 sm:$0xff]  }
 0x138   : > { %2725 = vmatprep.subr.bf16.mxu0 %v4016_v54  ;;  %2971 = vmatprep.subr.bf16.mxu1 %v4019_v55  ;;  %v4106_v54 = vld [vmem:[%s4494_s8 + $0x924] ss:$16 sps:$4 sm:$0xff]   ;;  %v4109_v55 = vld [vmem:[%s4494_s8 + $0x92c] ss:$16 sps:$4 sm:$0xff]  }
 0x13b   : > { %2726 = vmatpush1.bf16.msra.mxu0 %v4014_v56  ;;  %2972 = vmatpush1.bf16.msra.mxu1 %v4017_v57  ;;  %v4104_v56 = vld [vmem:[%s4494_s8 + $0x920] ss:$16 sps:$4 sm:$0xff]   ;;  %v4107_v57 = vld [vmem:[%s4494_s8 + $0x928] ss:$16 sps:$4 sm:$0xff]  }
 0x13c   : > { %2727 = vmatprep.subr.bf16.mxu0 %v4022_v58  ;;  %2973 = vmatprep.subr.bf16.mxu1 %v4025_v59  ;;  %v4112_v58 = vld [vmem:[%s4494_s8 + $0x944] ss:$16 sps:$4 sm:$0xff]   ;;  %v4115_v59 = vld [vmem:[%s4494_s8 + $0x94c] ss:$16 sps:$4 sm:$0xff]  }
 0x13f   : > { %2728 = vmatpush1.bf16.msra.mxu0 %v4020_v60  ;;  %2974 = vmatpush1.bf16.msra.mxu1 %v4023_v61  ;;  %v4110_v60 = vld [vmem:[%s4494_s8 + $0x940] ss:$16 sps:$4 sm:$0xff]   ;;  %v4113_v61 = vld [vmem:[%s4494_s8 + $0x948] ss:$16 sps:$4 sm:$0xff]  }
 0x140   : > { %2729 = vmatprep.subr.bf16.mxu0 %v4028_v62  ;;  %2975 = vmatprep.subr.bf16.mxu1 %v4031_v63  ;;  %v4118_v62 = vld [vmem:[%s4494_s8 + $0x964] ss:$16 sps:$4 sm:$0xff]   ;;  %v4121_v63 = vld [vmem:[%s4494_s8 + $0x96c] ss:$16 sps:$4 sm:$0xff]  }
 0x143   : > { %2730 = vmatpush1.bf16.msra.mxu0 %v4026_v0  ;;  %2976 = vmatpush1.bf16.msra.mxu1 %v4029_v1  ;;  %v4116_v0 = vld [vmem:[%s4494_s8 + $0x960] ss:$16 sps:$4 sm:$0xff]   ;;  %v4119_v1 = vld [vmem:[%s4494_s8 + $0x968] ss:$16 sps:$4 sm:$0xff]  }
 0x144   : > { %2731 = vmatprep.subr.bf16.mxu0 %v4034_v2  ;;  %2977 = vmatprep.subr.bf16.mxu1 %v4037_v3  ;;  %v4124_v2 = vld [vmem:[%s4494_s8 + $0x984] ss:$16 sps:$4 sm:$0xff]   ;;  %v4127_v3 = vld [vmem:[%s4494_s8 + $0x98c] ss:$16 sps:$4 sm:$0xff]  }
 0x147   : > { %2732 = vmatpush1.bf16.msra.mxu0 %v4032_v4  ;;  %2978 = vmatpush1.bf16.msra.mxu1 %v4035_v5  ;;  %v4122_v4 = vld [vmem:[%s4494_s8 + $0x980] ss:$16 sps:$4 sm:$0xff]   ;;  %v4125_v5 = vld [vmem:[%s4494_s8 + $0x988] ss:$16 sps:$4 sm:$0xff]  }
 0x148   : > { %2733 = vmatprep.subr.bf16.mxu0 %v4040_v6  ;;  %2979 = vmatprep.subr.bf16.mxu1 %v4043_v7  ;;  %v4130_v6 = vld [vmem:[%s4494_s8 + $0x9a4] ss:$16 sps:$4 sm:$0xff]   ;;  %v4133_v7 = vld [vmem:[%s4494_s8 + $0x9ac] ss:$16 sps:$4 sm:$0xff]  }
 0x14b   : > { %2734 = vmatpush1.bf16.msra.mxu0 %v4038_v8  ;;  %2980 = vmatpush1.bf16.msra.mxu1 %v4041_v9  ;;  %v4128_v8 = vld [vmem:[%s4494_s8 + $0x9a0] ss:$16 sps:$4 sm:$0xff]   ;;  %v4131_v9 = vld [vmem:[%s4494_s8 + $0x9a8] ss:$16 sps:$4 sm:$0xff]  }
 0x14c   : > { %2735 = vmatprep.subr.bf16.mxu0 %v4046_v10  ;;  %2981 = vmatprep.subr.bf16.mxu1 %v4049_v11  ;;  %v4136_v10 = vld [vmem:[%s4494_s8 + $0x9c4] ss:$16 sps:$4 sm:$0xff]   ;;  %v4139_v11 = vld [vmem:[%s4494_s8 + $0x9cc] ss:$16 sps:$4 sm:$0xff]  }
 0x14f   : > { %2736 = vmatpush1.bf16.msra.mxu0 %v4044_v12  ;;  %2982 = vmatpush1.bf16.msra.mxu1 %v4047_v13  ;;  %v4134_v12 = vld [vmem:[%s4494_s8 + $0x9c0] ss:$16 sps:$4 sm:$0xff]   ;;  %v4137_v13 = vld [vmem:[%s4494_s8 + $0x9c8] ss:$16 sps:$4 sm:$0xff]  }
 0x150   : > { %2746 = vmatprep.subr.bf16.mxu0 %v4052_v15  ;;  %2992 = vmatprep.subr.bf16.mxu1 %v4055_v16  ;;  %v4145_v15 = vld [vmem:[%s4494_s8 + $0x9ec] ss:$16 sps:$4 sm:$0xff]   ;;  %v4140_v16 = vld [vmem:[%s4494_s8 + $0x9e0] ss:$16 sps:$4 sm:$0xff]  }
 0x152   : > { %2738 = vmatmul.mubr.bf16.vlgmr.msra.gmra.mrb[0].mxu0 %v250_v17  ;;  %2984 = vmatmul.mubr.bf16.vlgmr.msra.gmra.mrb[0].mxu1 %v250_v17  ;;  %v4143_v17 = vld [vmem:[%s4494_s8 + $0x9e8] ss:$16 sps:$4 sm:$0xff]  }
 0x153   : > { %2747 = vmatpush1.bf16.msra.mxu0 %v4050_v19  ;;  %2993 = vmatpush1.bf16.msra.mxu1 %v4053_v20  ;;  %v4148_v19 = vld [vmem:[%s4494_s8 + $0xa04] ss:$16 sps:$4 sm:$0xff]   ;;  %v4151_v20 = vld [vmem:[%s4494_s8 + $0xa0c] ss:$16 sps:$4 sm:$0xff]  }
 0x154   : > { %2748 = vmatprep.subr.bf16.mxu0 %v4058_v21  ;;  %2994 = vmatprep.subr.bf16.mxu1 %v4061_v22  ;;  %v252_v21 = vpack.c.bf16 %v240_v18, %v240_v18  ;;  %v243_v22 = vld [vmem:[%s4946_s0 + $0x58] sm:$0xff]  ;;  %v4238_v18 = vld [vmem:[%s4494_s8 + $0xbe4] ss:$16 sps:$4 sm:$0xff]  }
 0x155   : > { %2778 = vmatprep.mubr.bf16.mxu0 %v253_v23  ;;  %3024 = vmatprep.mubr.bf16.mxu1 %v253_v23  ;;  %v4146_v23 = vld [vmem:[%s4494_s8 + $0xa00] ss:$16 sps:$4 sm:$0xff]  }
 0x157   : > { %2749 = vmatpush1.bf16.msra.mxu0 %v4056_v24  ;;  %2995 = vmatpush1.bf16.msra.mxu1 %v4059_v25  ;;  %v4149_v24 = vld [vmem:[%s4494_s8 + $0xa08] ss:$16 sps:$4 sm:$0xff]   ;;  %v4154_v25 = vld [vmem:[%s4494_s8 + $0xa24] ss:$16 sps:$4 sm:$0xff]  }
 0x158   : > { %2750 = vmatprep.subr.bf16.mxu0 %v4064_v26  ;;  %2996 = vmatprep.subr.bf16.mxu1 %v4067_v27  ;;  %v4157_v26 = vld [vmem:[%s4494_s8 + $0xa2c] ss:$16 sps:$4 sm:$0xff]   ;;  %v255_v27 = vpack.c.bf16 %v243_v22, %v243_v22  ;;  %v242_v22 = vld [vmem:[%s4946_s0 + $0x50] sm:$0xff] }
 0x15b   : > { %2751 = vmatpush1.bf16.msra.mxu0 %v4062_v28  ;;  %2997 = vmatpush1.bf16.msra.mxu1 %v4065_v29  ;;  %v4152_v28 = vld [vmem:[%s4494_s8 + $0xa20] ss:$16 sps:$4 sm:$0xff]   ;;  %v4155_v29 = vld [vmem:[%s4494_s8 + $0xa28] ss:$16 sps:$4 sm:$0xff]  }
 0x15c   : > { %2752 = vmatprep.subr.bf16.mxu0 %v4070_v30  ;;  %2998 = vmatprep.subr.bf16.mxu1 %v4073_v31  ;;  %v4160_v30 = vld [vmem:[%s4494_s8 + $0xa44] ss:$16 sps:$4 sm:$0xff]   ;;  %v4163_v31 = vld [vmem:[%s4494_s8 + $0xa4c] ss:$16 sps:$4 sm:$0xff]  }
 0x15f   : > { %2753 = vmatpush1.bf16.msra.mxu0 %v4068_v32  ;;  %2999 = vmatpush1.bf16.msra.mxu1 %v4071_v33  ;;  %v4158_v32 = vld [vmem:[%s4494_s8 + $0xa40] ss:$16 sps:$4 sm:$0xff]   ;;  %v4161_v33 = vld [vmem:[%s4494_s8 + $0xa48] ss:$16 sps:$4 sm:$0xff]  }
 0x160   : > { %2754 = vmatprep.subr.bf16.mxu0 %v4076_v34  ;;  %3000 = vmatprep.subr.bf16.mxu1 %v4079_v35  ;;  %v4166_v34 = vld [vmem:[%s4494_s8 + $0xa64] ss:$16 sps:$4 sm:$0xff]   ;;  %v4169_v35 = vld [vmem:[%s4494_s8 + $0xa6c] ss:$16 sps:$4 sm:$0xff]  }
 0x163   : > { %2755 = vmatpush1.bf16.msra.mxu0 %v4074_v36  ;;  %3001 = vmatpush1.bf16.msra.mxu1 %v4077_v37  ;;  %v4164_v36 = vld [vmem:[%s4494_s8 + $0xa60] ss:$16 sps:$4 sm:$0xff]   ;;  %v4167_v37 = vld [vmem:[%s4494_s8 + $0xa68] ss:$16 sps:$4 sm:$0xff]  }
 0x164   : > { %2756 = vmatprep.subr.bf16.mxu0 %v4082_v38  ;;  %3002 = vmatprep.subr.bf16.mxu1 %v4085_v39  ;;  %v4172_v38 = vld [vmem:[%s4494_s8 + $0xa84] ss:$16 sps:$4 sm:$0xff]   ;;  %v4175_v39 = vld [vmem:[%s4494_s8 + $0xa8c] ss:$16 sps:$4 sm:$0xff]  }
 0x167   : > { %2757 = vmatpush1.bf16.msra.mxu0 %v4080_v40  ;;  %3003 = vmatpush1.bf16.msra.mxu1 %v4083_v41  ;;  %v4170_v40 = vld [vmem:[%s4494_s8 + $0xa80] ss:$16 sps:$4 sm:$0xff]   ;;  %v4173_v41 = vld [vmem:[%s4494_s8 + $0xa88] ss:$16 sps:$4 sm:$0xff]  }
 0x168   : > { %2758 = vmatprep.subr.bf16.mxu0 %v4088_v42  ;;  %3004 = vmatprep.subr.bf16.mxu1 %v4091_v43  ;;  %v4178_v42 = vld [vmem:[%s4494_s8 + $0xaa4] ss:$16 sps:$4 sm:$0xff]   ;;  %v4181_v43 = vld [vmem:[%s4494_s8 + $0xaac] ss:$16 sps:$4 sm:$0xff]  }
 0x16b   : > { %2759 = vmatpush1.bf16.msra.mxu0 %v4086_v44  ;;  %3005 = vmatpush1.bf16.msra.mxu1 %v4089_v45  ;;  %v4176_v44 = vld [vmem:[%s4494_s8 + $0xaa0] ss:$16 sps:$4 sm:$0xff]   ;;  %v4179_v45 = vld [vmem:[%s4494_s8 + $0xaa8] ss:$16 sps:$4 sm:$0xff]  }
 0x16c   : > { %2760 = vmatprep.subr.bf16.mxu0 %v4094_v46  ;;  %3006 = vmatprep.subr.bf16.mxu1 %v4097_v47  ;;  %v4184_v46 = vld [vmem:[%s4494_s8 + $0xac4] ss:$16 sps:$4 sm:$0xff]   ;;  %v4187_v47 = vld [vmem:[%s4494_s8 + $0xacc] ss:$16 sps:$4 sm:$0xff]  }
 0x16f   : > { %2761 = vmatpush1.bf16.msra.mxu0 %v4092_v48  ;;  %3007 = vmatpush1.bf16.msra.mxu1 %v4095_v49  ;;  %v4182_v48 = vld [vmem:[%s4494_s8 + $0xac0] ss:$16 sps:$4 sm:$0xff]   ;;  %v4185_v49 = vld [vmem:[%s4494_s8 + $0xac8] ss:$16 sps:$4 sm:$0xff]  }
 0x170   : > { %2762 = vmatprep.subr.bf16.mxu0 %v4100_v50  ;;  %3008 = vmatprep.subr.bf16.mxu1 %v4103_v51  ;;  %v4190_v50 = vld [vmem:[%s4494_s8 + $0xae4] ss:$16 sps:$4 sm:$0xff]   ;;  %v4193_v51 = vld [vmem:[%s4494_s8 + $0xaec] ss:$16 sps:$4 sm:$0xff]  }
 0x173   : > { %2763 = vmatpush1.bf16.msra.mxu0 %v4098_v52  ;;  %3009 = vmatpush1.bf16.msra.mxu1 %v4101_v53  ;;  %v4188_v52 = vld [vmem:[%s4494_s8 + $0xae0] ss:$16 sps:$4 sm:$0xff]   ;;  %v4191_v53 = vld [vmem:[%s4494_s8 + $0xae8] ss:$16 sps:$4 sm:$0xff]  }
 0x174   : > { %2764 = vmatprep.subr.bf16.mxu0 %v4106_v54  ;;  %3010 = vmatprep.subr.bf16.mxu1 %v4109_v55  ;;  %v4196_v54 = vld [vmem:[%s4494_s8 + $0xb04] ss:$16 sps:$4 sm:$0xff]   ;;  %v4199_v55 = vld [vmem:[%s4494_s8 + $0xb0c] ss:$16 sps:$4 sm:$0xff]  }
 0x177   : > { %2765 = vmatpush1.bf16.msra.mxu0 %v4104_v56  ;;  %3011 = vmatpush1.bf16.msra.mxu1 %v4107_v57  ;;  %v4194_v56 = vld [vmem:[%s4494_s8 + $0xb00] ss:$16 sps:$4 sm:$0xff]   ;;  %v4197_v57 = vld [vmem:[%s4494_s8 + $0xb08] ss:$16 sps:$4 sm:$0xff]  }
 0x178   : > { %2766 = vmatprep.subr.bf16.mxu0 %v4112_v58  ;;  %3012 = vmatprep.subr.bf16.mxu1 %v4115_v59  ;;  %v4202_v58 = vld [vmem:[%s4494_s8 + $0xb24] ss:$16 sps:$4 sm:$0xff]   ;;  %v4205_v59 = vld [vmem:[%s4494_s8 + $0xb2c] ss:$16 sps:$4 sm:$0xff]  }
 0x17b   : > { %2767 = vmatpush1.bf16.msra.mxu0 %v4110_v60  ;;  %3013 = vmatpush1.bf16.msra.mxu1 %v4113_v61  ;;  %v4200_v60 = vld [vmem:[%s4494_s8 + $0xb20] ss:$16 sps:$4 sm:$0xff]   ;;  %v4203_v61 = vld [vmem:[%s4494_s8 + $0xb28] ss:$16 sps:$4 sm:$0xff]  }
 0x17c   : > { %2768 = vmatprep.subr.bf16.mxu0 %v4118_v62  ;;  %3014 = vmatprep.subr.bf16.mxu1 %v4121_v63  ;;  %v4208_v62 = vld [vmem:[%s4494_s8 + $0xb44] ss:$16 sps:$4 sm:$0xff]   ;;  %v4211_v63 = vld [vmem:[%s4494_s8 + $0xb4c] ss:$16 sps:$4 sm:$0xff]  }
 0x17f   : > { %2769 = vmatpush1.bf16.msra.mxu0 %v4116_v0  ;;  %3015 = vmatpush1.bf16.msra.mxu1 %v4119_v1  ;;  %v4206_v0 = vld [vmem:[%s4494_s8 + $0xb40] ss:$16 sps:$4 sm:$0xff]   ;;  %v4209_v1 = vld [vmem:[%s4494_s8 + $0xb48] ss:$16 sps:$4 sm:$0xff]  }
 0x180   : > { %2770 = vmatprep.subr.bf16.mxu0 %v4124_v2  ;;  %3016 = vmatprep.subr.bf16.mxu1 %v4127_v3  ;;  %v4214_v2 = vld [vmem:[%s4494_s8 + $0xb64] ss:$16 sps:$4 sm:$0xff]   ;;  %v4217_v3 = vld [vmem:[%s4494_s8 + $0xb6c] ss:$16 sps:$4 sm:$0xff]  }
 0x183   : > { %2771 = vmatpush1.bf16.msra.mxu0 %v4122_v4  ;;  %3017 = vmatpush1.bf16.msra.mxu1 %v4125_v5  ;;  %v4212_v4 = vld [vmem:[%s4494_s8 + $0xb60] ss:$16 sps:$4 sm:$0xff]   ;;  %v4215_v5 = vld [vmem:[%s4494_s8 + $0xb68] ss:$16 sps:$4 sm:$0xff]  }
 0x184   : > { %2772 = vmatprep.subr.bf16.mxu0 %v4130_v6  ;;  %3018 = vmatprep.subr.bf16.mxu1 %v4133_v7  ;;  %v4220_v6 = vld [vmem:[%s4494_s8 + $0xb84] ss:$16 sps:$4 sm:$0xff]   ;;  %v4223_v7 = vld [vmem:[%s4494_s8 + $0xb8c] ss:$16 sps:$4 sm:$0xff]  }
 0x187   : > { %2773 = vmatpush1.bf16.msra.mxu0 %v4128_v8  ;;  %3019 = vmatpush1.bf16.msra.mxu1 %v4131_v9  ;;  %v4218_v8 = vld [vmem:[%s4494_s8 + $0xb80] ss:$16 sps:$4 sm:$0xff]   ;;  %v4221_v9 = vld [vmem:[%s4494_s8 + $0xb88] ss:$16 sps:$4 sm:$0xff]  }
 0x188   : > { %2774 = vmatprep.subr.bf16.mxu0 %v4136_v10  ;;  %3020 = vmatprep.subr.bf16.mxu1 %v4139_v11  ;;  %v4226_v10 = vld [vmem:[%s4494_s8 + $0xba4] ss:$16 sps:$4 sm:$0xff]   ;;  %v4229_v11 = vld [vmem:[%s4494_s8 + $0xbac] ss:$16 sps:$4 sm:$0xff]  }
 0x18b   : > { %2775 = vmatpush1.bf16.msra.mxu0 %v4134_v12  ;;  %3021 = vmatpush1.bf16.msra.mxu1 %v4137_v13  ;;  %v4224_v12 = vld [vmem:[%s4494_s8 + $0xba0] ss:$16 sps:$4 sm:$0xff]   ;;  %v4227_v13 = vld [vmem:[%s4494_s8 + $0xba8] ss:$16 sps:$4 sm:$0xff]  }
 0x18c   : > { %2776 = vmatprep.subr.bf16.mxu0 %v4142_v14  ;;  %3022 = vmatprep.subr.bf16.mxu1 %v4145_v15  ;;  %v4232_v14 = vld [vmem:[%s4494_s8 + $0xbc4] ss:$16 sps:$4 sm:$0xff]   ;;  %v4235_v15 = vld [vmem:[%s4494_s8 + $0xbcc] ss:$16 sps:$4 sm:$0xff]  }
 0x18f   : > { %2777 = vmatpush1.bf16.msra.mxu0 %v4140_v16  ;;  %3023 = vmatpush1.bf16.msra.mxu1 %v4143_v17  ;;  %v4230_v16 = vld [vmem:[%s4494_s8 + $0xbc0] ss:$16 sps:$4 sm:$0xff]   ;;  %v4233_v17 = vld [vmem:[%s4494_s8 + $0xbc8] ss:$16 sps:$4 sm:$0xff]  }
 0x190   : > { %2787 = vmatprep.subr.bf16.mxu0 %v4148_v19  ;;  %3033 = vmatprep.subr.bf16.mxu1 %v4151_v20  ;;  %v4241_v19 = vld [vmem:[%s4494_s8 + $0xbec] ss:$16 sps:$4 sm:$0xff]   ;;  %v4236_v20 = vld [vmem:[%s4494_s8 + $0xbe0] ss:$16 sps:$4 sm:$0xff]  }
 0x192   : > { %2779 = vmatmul.mubr.bf16.vlgmr.msra.gmra.mrb[0].mxu0 %v252_v21  ;;  %3025 = vmatmul.mubr.bf16.vlgmr.msra.gmra.mrb[0].mxu1 %v252_v21  ;;  %v4239_v21 = vld [vmem:[%s4494_s8 + $0xbe8] ss:$16 sps:$4 sm:$0xff]   ;;  %s3183_s8 = sshll.u32 %s3172_s16, 2 }
 0x193   : > { %2788 = vmatpush1.bf16.msra.mxu0 %v4146_v23  ;;  %3034 = vmatpush1.bf16.msra.mxu1 %v4149_v24  ;;  %v254_v23 = vpack.c.bf16 %v242_v22, %v242_v22  ;;  %v642_v24 = vlaneseq  ;;  %p227_p7 = scmp.lt.s32.totalorder %s3183_s8, 15 }
 0x194   : > { %2789 = vmatprep.subr.bf16.mxu0 %v4154_v25  ;;  %3035 = vmatprep.subr.bf16.mxu1 %v4157_v26 }
 0x195   : > { %2819 = vmatprep.mubr.bf16.mxu0 %v255_v27  ;;  %3065 = vmatprep.mubr.bf16.mxu1 %v255_v27  ;;  %v643_v25 = vshrl.u32 %v642_v24, 7  ;;  %s4961_s8 = smov (!%p227_p7, %s3183_s8), 15 }
 0x196   : > { %s3184_s15 = sshll.u32 %s4961_s8, 3 }
 0x197   : > { %2790 = vmatpush1.bf16.msra.mxu0 %v4152_v28  ;;  %3036 = vmatpush1.bf16.msra.mxu1 %v4155_v29  ;;  %v644_v26 = vsub.s32 0, %v643_v25  ;;  %v652_v27 = vsub.s32 2, %v643_v25  ;;  %v640_v28 = vld [vmem:[%s4500_s30] sm:$0xf]  ;;  %v648_v29 = vsub.s32 1, %v643_v25  ;;  %s230_s4 = scalar_lea.vmem %s4949_s3, %s3184_s15 }
 0x198   : > { %2791 = vmatprep.subr.bf16.mxu0 %v4160_v30  ;;  %3037 = vmatprep.subr.bf16.mxu1 %v4163_v31  ;;  %v656_v30 = vsub.s32 3, %v643_v25 }
 0x199   : > { %v645_v31 = vrot.slane %v640_v28, %v644_v26 }
 0x19b   : > { %2792 = vmatpush1.bf16.msra.mxu0 %v4158_v32  ;;  %3038 = vmatpush1.bf16.msra.mxu1 %v4161_v33  ;;  %v653_v32 = vrot.slane %v640_v28, %v652_v27  ;;  %v649_v33 = vrot.slane %v640_v28, %v648_v29 }
 0x19c   : > { %2793 = vmatprep.subr.bf16.mxu0 %v4166_v34  ;;  %3039 = vmatprep.subr.bf16.mxu1 %v4169_v35  ;;  %v657_v34 = vrot.slane %v640_v28, %v656_v30 }
 0x19f   : > { %2794 = vmatpush1.bf16.msra.mxu0 %v4164_v36  ;;  %3040 = vmatpush1.bf16.msra.mxu1 %v4167_v37 }
 0x1a0   : > { %2795 = vmatprep.subr.bf16.mxu0 %v4172_v38  ;;  %3041 = vmatprep.subr.bf16.mxu1 %v4175_v39 }
 0x1a3   : > { %2796 = vmatpush1.bf16.msra.mxu0 %v4170_v40  ;;  %3042 = vmatpush1.bf16.msra.mxu1 %v4173_v41 }
 0x1a4   : > { %2797 = vmatprep.subr.bf16.mxu0 %v4178_v42  ;;  %3043 = vmatprep.subr.bf16.mxu1 %v4181_v43 }
 0x1a7   : > { %2798 = vmatpush1.bf16.msra.mxu0 %v4176_v44  ;;  %3044 = vmatpush1.bf16.msra.mxu1 %v4179_v45 }
 0x1a8   : > { %2799 = vmatprep.subr.bf16.mxu0 %v4184_v46  ;;  %3045 = vmatprep.subr.bf16.mxu1 %v4187_v47 }
 0x1ab   : > { %2800 = vmatpush1.bf16.msra.mxu0 %v4182_v48  ;;  %3046 = vmatpush1.bf16.msra.mxu1 %v4185_v49 }
 0x1ac   : > { %2801 = vmatprep.subr.bf16.mxu0 %v4190_v50  ;;  %3047 = vmatprep.subr.bf16.mxu1 %v4193_v51 }
 0x1af   : > { %2802 = vmatpush1.bf16.msra.mxu0 %v4188_v52  ;;  %3048 = vmatpush1.bf16.msra.mxu1 %v4191_v53 }
 0x1b0   : > { %2803 = vmatprep.subr.bf16.mxu0 %v4196_v54  ;;  %3049 = vmatprep.subr.bf16.mxu1 %v4199_v55 }
 0x1b3   : > { %2804 = vmatpush1.bf16.msra.mxu0 %v4194_v56  ;;  %3050 = vmatpush1.bf16.msra.mxu1 %v4197_v57 }
 0x1b4   : > { %2805 = vmatprep.subr.bf16.mxu0 %v4202_v58  ;;  %3051 = vmatprep.subr.bf16.mxu1 %v4205_v59 }
 0x1b7   : > { %2806 = vmatpush1.bf16.msra.mxu0 %v4200_v60  ;;  %3052 = vmatpush1.bf16.msra.mxu1 %v4203_v61 }
 0x1b8   : > { %2807 = vmatprep.subr.bf16.mxu0 %v4208_v62  ;;  %3053 = vmatprep.subr.bf16.mxu1 %v4211_v63 }
 0x1bb   : > { %2808 = vmatpush1.bf16.msra.mxu0 %v4206_v0  ;;  %3054 = vmatpush1.bf16.msra.mxu1 %v4209_v1 }
 0x1bc   : > { %2809 = vmatprep.subr.bf16.mxu0 %v4214_v2  ;;  %3055 = vmatprep.subr.bf16.mxu1 %v4217_v3 }
 0x1bf   : > { %2810 = vmatpush1.bf16.msra.mxu0 %v4212_v4  ;;  %3056 = vmatpush1.bf16.msra.mxu1 %v4215_v5 }
 0x1c0   : > { %2811 = vmatprep.subr.bf16.mxu0 %v4220_v6  ;;  %3057 = vmatprep.subr.bf16.mxu1 %v4223_v7 }
 0x1c3   : > { %2812 = vmatpush1.bf16.msra.mxu0 %v4218_v8  ;;  %3058 = vmatpush1.bf16.msra.mxu1 %v4221_v9 }
 0x1c4   : > { %2813 = vmatprep.subr.bf16.mxu0 %v4226_v10  ;;  %3059 = vmatprep.subr.bf16.mxu1 %v4229_v11 }
 0x1c7   : > { %2814 = vmatpush1.bf16.msra.mxu0 %v4224_v12  ;;  %3060 = vmatpush1.bf16.msra.mxu1 %v4227_v13 }
 0x1c8   : > { %2815 = vmatprep.subr.bf16.mxu0 %v4232_v14  ;;  %3061 = vmatprep.subr.bf16.mxu1 %v4235_v15 }
 0x1cb   : > { %2816 = vmatpush1.bf16.msra.mxu0 %v4230_v16  ;;  %3062 = vmatpush1.bf16.msra.mxu1 %v4233_v17 }
 0x1cc   : > { %2817 = vmatprep.subr.bf16.mxu0 %v4238_v18  ;;  %3063 = vmatprep.subr.bf16.mxu1 %v4241_v19 }
 0x1cf   : > { %2818 = vmatpush1.bf16.msra.mxu0 %v4236_v20  ;;  %3064 = vmatpush1.bf16.msra.mxu1 %v4239_v21 }
 0x1d2   : > { %2820 = vmatmul.mubr.bf16.vlgmr.msra.gmra.mrb[0].mxu0 %v254_v23  ;;  %3066 = vmatmul.mubr.bf16.vlgmr.msra.gmra.mrb[0].mxu1 %v254_v23 }
 0x2a5   : > { %v2821_v35 = vpop.f32.mrb[0].mxu0  ;;  %v3067_v36 = vpop.f32.mrb[0].mxu1 }
 0x2a6   : > { %v3573_v37 = vadd.f32 %v2821_v35, %v645_v31  ;;  %v3575_v38 = vadd.f32 %v3067_v36, %v653_v32  ;;  %v2823_v39 = vpop.f32.mrb[1].mxu0  ;;  %v3069_v40 = vpop.f32.mrb[1].mxu1 }
 0x2a7   : > { %v3574_v41 = vadd.f32 %v2823_v39, %v649_v33  ;;  %v3576_v42 = vadd.f32 %v3069_v40, %v657_v34  ;;  %v2825_v43 = vpop.f32.mrb[2].mxu0  ;;  %v3071_v44 = vpop.f32.mrb[2].mxu1 }
 0x2a8   : > { %4242 = vtanh.f32 %v3573_v37  ;;  %v2826_v45 = vpop.f32.mrb[3].mxu0  ;;  %v3072_v46 = vpop.f32.mrb[3].mxu1 }
 0x2a9   : > { %4244 = vtanh.f32 %v3575_v38 }
 0x2aa   : > { %4246 = vtanh.f32 %v3574_v41 }
 0x2ab   : > { %4248 = vtanh.f32 %v3576_v42 }
 0x2b2   : > { %v4243_v47 = vpop.eup %4242 }
 0x2b3   : > { %v4245_v48 = vpop.eup %4244  ;;  %3078 = vst [vmem:[%s230_s4] sm:$0xff] %v4243_v47 }
 0x2b4   : > { %v4247_v49 = vpop.eup %4246  ;;  %3080 = vst [vmem:[%s230_s4 + $0x10] sm:$0xff] %v4245_v48 }
 0x2b5   : > { %v4249_v50 = vpop.eup %4248  ;;  %3079 = vst [vmem:[%s230_s4 + $0x8] sm:$0xff] %v4247_v49 }
 0x2b6   : > { %3081 = vst [vmem:[%s230_s4 + $0x18] sm:$0xff] %v4249_v50 }
 0x2b7 PF: > { %p16_p8 = scmp.ge.s32.totalorder %s4395_s17, 6   ;;  %s4956_s12 = smov %s4340_s13 }
 0x2b8   : > { %s4957_s13 = smov %s4344_s14  ;;  %s4958_s14 = smov %s4405_s20 }
 0x2b9   : > { %s4959_s15 = smov %s4395_s17  ;;  %18 = sbr.rel (!%p16_p8) target bundleno = 5 (0x5), region = 85 }
 0x2c0   :  { %3104 = vsyncpa [#allocation3], 1 }
 0x2c1   :  { %3106 = vsyncpa [#allocation3 + $0x1], 1 }
 0x2c2   :  { %3107 = vsyncpa [#allocation5], 1 }
 0x2c3   :  { %3109 = vsyncpa [#allocation5 + $0x1], 1 }

// kernel: deblur_mlp_forward.7
= control target key start
LH: loop header
LB: loop body
LE: loop exit
PB: predicated region body
PF: predicated region fallthrough
CT: control target
= control target key end

     0   :  { %s6526_s12 = smov 0   ;;  %s6528_s13 = smov 0   ;;  %s8175_s0 = inlined_call_operand.vmem [shape: f32[8,2048], index: 0, kind: input, shape index: {}]   ;;  %s8176_s1 = inlined_call_operand.vmem [shape: bf16[2048,2048], index: 1, kind: input, shape index: {}]   ;;  %s8177_s2 = inlined_call_operand.vmem [shape: f32[1,2048], index: 2, kind: input, shape index: {}]   ;;  %s8178_s3 = inlined_call_operand.vmem [shape: f32[8,2048], index: 3, kind: output, shape index: {}]  }
   0x1   :  { %s6530_s14 = smov 0  }
   0x2 LB: > { %s5095_s15 = sadd.s32 4294967295, %s6504_s14   ;;  %s6543_s16 = sadd.s32 1, %s6504_s14   ;;  %s6504_s14 = sphi %s6530_s14, %s8181_s14   ;;  %s6500_s13 = sphi %s6528_s13, %s8180_s13   ;;  %s6496_s12 = sphi %s6526_s12, %s8179_s12  }
   0x3   : > { %s38_s17 = ssub.s32 %s6504_s14, %s6543_s16  ;;  %s41_s18 = sadd.s32 1, %s6500_s13 }
   0x4   : > { %p39_p0 = scmp.eq.s32.totalorder %s38_s17, 0  ;;  %p48_p1 = scmp.ne.s32.totalorder %s6500_s13, %s6496_s12 }
   0x5   : > { %p49_p2 = scmp.eq.s32.totalorder %s6504_s14, 0  ;;  %p5098_p4 = scmp.ge.s32.totalorder %s6504_s14, 4 }
   0x6   : > { %s6552_s19 = scalar_select %p39_p0, %s6500_s13, %s41_s18  }
   0x7   : > { %p50_p3 = por %p49_p2, %p48_p1  ;;  %129 = sbr.rel (%p5098_p4) target bundleno = 274 (0x112), region = 20 }
   0xe   : > { %132 = sbr.rel (!%p50_p3) target bundleno = 274 (0x112), region = 24  ;;  %s134_s20 = sand.u32 (%p50_p3), 1, %s6500_s13  }
   0xf   : > { %s5621_s21 = sshll.u32 (%p50_p3), %s6504_s14, 4  ;;  %s5099_s22 = sshll.u32 (%p50_p3), %s134_s20, 12 }
  0x10   : > { %s6560_s25 = scalar_lea.vmem (%p50_p3), %s8176_s1, %s5621_s21  ;;  %s6565_s26 = scalar_lea.vmem (%p50_p3), [#allocation2], %s5099_s22 }
  0x11   : > { %v152_v0 = vld [vmem:[%s6560_s25] sm:$0xff] (%p50_p3)  ;;  %v154_v1 = vld [vmem:[%s6560_s25 + $0x8] sm:$0xff] (%p50_p3) }
  0x12   : > { %v156_v2 = vld [vmem:[%s6560_s25 + $0x40] sm:$0xff] (%p50_p3)  ;;  %153 = vst [vmem:[%s6565_s26] sm:$0xff] (%p50_p3), %v152_v0  ;;  %155 = vst [vmem:[%s6565_s26 + $0x8] sm:$0xff] (%p50_p3), %v154_v1  ;;  %v158_v3 = vld [vmem:[%s6560_s25 + $0x48] sm:$0xff] (%p50_p3) }
  0x13   : > { %157 = vst [vmem:[%s6565_s26 + $0x10] sm:$0xff] (%p50_p3), %v156_v2  ;;  %v160_v4 = vld [vmem:[%s6560_s25 + $0x80] sm:$0xff] (%p50_p3)  ;;  %v162_v5 = vld [vmem:[%s6560_s25 + $0x88] sm:$0xff] (%p50_p3)  ;;  %159 = vst [vmem:[%s6565_s26 + $0x18] sm:$0xff] (%p50_p3), %v158_v3 }
  0x14   : > { %161 = vst [vmem:[%s6565_s26 + $0x20] sm:$0xff] (%p50_p3), %v160_v4  ;;  %163 = vst [vmem:[%s6565_s26 + $0x28] sm:$0xff] (%p50_p3), %v162_v5  ;;  %v164_v6 = vld [vmem:[%s6560_s25 + $0xc0] sm:$0xff] (%p50_p3)  ;;  %v166_v7 = vld [vmem:[%s6560_s25 + $0xc8] sm:$0xff] (%p50_p3) }
  0x15   : > { %v168_v8 = vld [vmem:[%s6560_s25 + $0x100] sm:$0xff]  ;;  %165 = vst [vmem:[%s6565_s26 + $0x30] sm:$0xff] %v164_v6  ;;  %167 = vst [vmem:[%s6565_s26 + $0x38] sm:$0xff] %v166_v7  ;;  %v170_v9 = vld [vmem:[%s6560_s25 + $0x108] sm:$0xff] }
  0x16   : > { %169 = vst [vmem:[%s6565_s26 + $0x40] sm:$0xff] %v168_v8  ;;  %v172_v10 = vld [vmem:[%s6560_s25 + $0x140] sm:$0xff]  ;;  %v174_v11 = vld [vmem:[%s6560_s25 + $0x148] sm:$0xff]  ;;  %171 = vst [vmem:[%s6565_s26 + $0x48] sm:$0xff] %v170_v9 }
  0x17   : > { %173 = vst [vmem:[%s6565_s26 + $0x50] sm:$0xff] %v172_v10  ;;  %175 = vst [vmem:[%s6565_s26 + $0x58] sm:$0xff] %v174_v11  ;;  %v176_v12 = vld [vmem:[%s6560_s25 + $0x180] sm:$0xff]  ;;  %v178_v13 = vld [vmem:[%s6560_s25 + $0x188] sm:$0xff] }
  0x18   : > { %v180_v14 = vld [vmem:[%s6560_s25 + $0x1c0] sm:$0xff]  ;;  %177 = vst [vmem:[%s6565_s26 + $0x60] sm:$0xff] %v176_v12  ;;  %179 = vst [vmem:[%s6565_s26 + $0x68] sm:$0xff] %v178_v13  ;;  %v182_v15 = vld [vmem:[%s6560_s25 + $0x1c8] sm:$0xff] }
  0x19   : > { %181 = vst [vmem:[%s6565_s26 + $0x70] sm:$0xff] %v180_v14  ;;  %v184_v16 = vld [vmem:[%s6560_s25 + $0x200] sm:$0xff]  ;;  %v186_v17 = vld [vmem:[%s6560_s25 + $0x208] sm:$0xff]  ;;  %183 = vst [vmem:[%s6565_s26 + $0x78] sm:$0xff] %v182_v15 }
  0x1a   : > { %185 = vst [vmem:[%s6565_s26 + $0x80] sm:$0xff] %v184_v16  ;;  %187 = vst [vmem:[%s6565_s26 + $0x88] sm:$0xff] %v186_v17  ;;  %v188_v18 = vld [vmem:[%s6560_s25 + $0x240] sm:$0xff]  ;;  %v190_v19 = vld [vmem:[%s6560_s25 + $0x248] sm:$0xff] }
  0x1b   : > { %v192_v20 = vld [vmem:[%s6560_s25 + $0x280] sm:$0xff]  ;;  %189 = vst [vmem:[%s6565_s26 + $0x90] sm:$0xff] %v188_v18  ;;  %191 = vst [vmem:[%s6565_s26 + $0x98] sm:$0xff] %v190_v19  ;;  %v194_v21 = vld [vmem:[%s6560_s25 + $0x288] sm:$0xff] }
  0x1c   : > { %193 = vst [vmem:[%s6565_s26 + $0xa0] sm:$0xff] %v192_v20  ;;  %v196_v22 = vld [vmem:[%s6560_s25 + $0x2c0] sm:$0xff]  ;;  %v198_v23 = vld [vmem:[%s6560_s25 + $0x2c8] sm:$0xff]  ;;  %195 = vst [vmem:[%s6565_s26 + $0xa8] sm:$0xff] %v194_v21 }
  0x1d   : > { %197 = vst [vmem:[%s6565_s26 + $0xb0] sm:$0xff] %v196_v22  ;;  %199 = vst [vmem:[%s6565_s26 + $0xb8] sm:$0xff] %v198_v23  ;;  %v200_v24 = vld [vmem:[%s6560_s25 + $0x300] sm:$0xff]  ;;  %v202_v25 = vld [vmem:[%s6560_s25 + $0x308] sm:$0xff] }
  0x1e   : > { %v204_v26 = vld [vmem:[%s6560_s25 + $0x340] sm:$0xff]  ;;  %201 = vst [vmem:[%s6565_s26 + $0xc0] sm:$0xff] %v200_v24  ;;  %203 = vst [vmem:[%s6565_s26 + $0xc8] sm:$0xff] %v202_v25  ;;  %v206_v27 = vld [vmem:[%s6560_s25 + $0x348] sm:$0xff] }
  0x1f   : > { %205 = vst [vmem:[%s6565_s26 + $0xd0] sm:$0xff] %v204_v26  ;;  %v208_v28 = vld [vmem:[%s6560_s25 + $0x380] sm:$0xff]  ;;  %v210_v29 = vld [vmem:[%s6560_s25 + $0x388] sm:$0xff]  ;;  %207 = vst [vmem:[%s6565_s26 + $0xd8] sm:$0xff] %v206_v27 }
  0x20   : > { %209 = vst [vmem:[%s6565_s26 + $0xe0] sm:$0xff] %v208_v28  ;;  %211 = vst [vmem:[%s6565_s26 + $0xe8] sm:$0xff] %v210_v29  ;;  %v212_v30 = vld [vmem:[%s6560_s25 + $0x3c0] sm:$0xff]  ;;  %v214_v31 = vld [vmem:[%s6560_s25 + $0x3c8] sm:$0xff] }
  0x21   : > { %v216_v32 = vld [vmem:[%s6560_s25 + $0x400] sm:$0xff]  ;;  %213 = vst [vmem:[%s6565_s26 + $0xf0] sm:$0xff] %v212_v30  ;;  %215 = vst [vmem:[%s6565_s26 + $0xf8] sm:$0xff] %v214_v31  ;;  %v218_v33 = vld [vmem:[%s6560_s25 + $0x408] sm:$0xff] }
  0x22   : > { %217 = vst [vmem:[%s6565_s26 + $0x100] sm:$0xff] %v216_v32  ;;  %v220_v34 = vld [vmem:[%s6560_s25 + $0x440] sm:$0xff]  ;;  %v222_v35 = vld [vmem:[%s6560_s25 + $0x448] sm:$0xff]  ;;  %219 = vst [vmem:[%s6565_s26 + $0x108] sm:$0xff] %v218_v33 }
  0x23   : > { %221 = vst [vmem:[%s6565_s26 + $0x110] sm:$0xff] %v220_v34  ;;  %223 = vst [vmem:[%s6565_s26 + $0x118] sm:$0xff] %v222_v35  ;;  %v224_v36 = vld [vmem:[%s6560_s25 + $0x480] sm:$0xff]  ;;  %v226_v37 = vld [vmem:[%s6560_s25 + $0x488] sm:$0xff] }
  0x24   : > { %v228_v38 = vld [vmem:[%s6560_s25 + $0x4c0] sm:$0xff]  ;;  %225 = vst [vmem:[%s6565_s26 + $0x120] sm:$0xff] %v224_v36  ;;  %227 = vst [vmem:[%s6565_s26 + $0x128] sm:$0xff] %v226_v37  ;;  %v230_v39 = vld [vmem:[%s6560_s25 + $0x4c8] sm:$0xff] }
  0x25   : > { %229 = vst [vmem:[%s6565_s26 + $0x130] sm:$0xff] %v228_v38  ;;  %v232_v40 = vld [vmem:[%s6560_s25 + $0x500] sm:$0xff]  ;;  %v234_v41 = vld [vmem:[%s6560_s25 + $0x508] sm:$0xff]  ;;  %231 = vst [vmem:[%s6565_s26 + $0x138] sm:$0xff] %v230_v39 }
  0x26   : > { %233 = vst [vmem:[%s6565_s26 + $0x140] sm:$0xff] %v232_v40  ;;  %235 = vst [vmem:[%s6565_s26 + $0x148] sm:$0xff] %v234_v41  ;;  %v236_v42 = vld [vmem:[%s6560_s25 + $0x540] sm:$0xff]  ;;  %v238_v43 = vld [vmem:[%s6560_s25 + $0x548] sm:$0xff] }
  0x27   : > { %v240_v44 = vld [vmem:[%s6560_s25 + $0x580] sm:$0xff]  ;;  %237 = vst [vmem:[%s6565_s26 + $0x150] sm:$0xff] %v236_v42  ;;  %239 = vst [vmem:[%s6565_s26 + $0x158] sm:$0xff] %v238_v43  ;;  %v242_v45 = vld [vmem:[%s6560_s25 + $0x588] sm:$0xff] }
  0x28   : > { %241 = vst [vmem:[%s6565_s26 + $0x160] sm:$0xff] %v240_v44  ;;  %v244_v46 = vld [vmem:[%s6560_s25 + $0x5c0] sm:$0xff]  ;;  %v246_v47 = vld [vmem:[%s6560_s25 + $0x5c8] sm:$0xff]  ;;  %243 = vst [vmem:[%s6565_s26 + $0x168] sm:$0xff] %v242_v45 }
  0x29   : > { %245 = vst [vmem:[%s6565_s26 + $0x170] sm:$0xff] %v244_v46  ;;  %247 = vst [vmem:[%s6565_s26 + $0x178] sm:$0xff] %v246_v47  ;;  %v248_v48 = vld [vmem:[%s6560_s25 + $0x600] sm:$0xff]  ;;  %v250_v49 = vld [vmem:[%s6560_s25 + $0x608] sm:$0xff] }
  0x2a   : > { %v252_v50 = vld [vmem:[%s6560_s25 + $0x640] sm:$0xff]  ;;  %249 = vst [vmem:[%s6565_s26 + $0x180] sm:$0xff] %v248_v48  ;;  %251 = vst [vmem:[%s6565_s26 + $0x188] sm:$0xff] %v250_v49  ;;  %v254_v51 = vld [vmem:[%s6560_s25 + $0x648] sm:$0xff] }
  0x2b   : > { %253 = vst [vmem:[%s6565_s26 + $0x190] sm:$0xff] %v252_v50  ;;  %v256_v52 = vld [vmem:[%s6560_s25 + $0x680] sm:$0xff]  ;;  %v258_v53 = vld [vmem:[%s6560_s25 + $0x688] sm:$0xff]  ;;  %255 = vst [vmem:[%s6565_s26 + $0x198] sm:$0xff] %v254_v51 }
  0x2c   : > { %257 = vst [vmem:[%s6565_s26 + $0x1a0] sm:$0xff] %v256_v52  ;;  %259 = vst [vmem:[%s6565_s26 + $0x1a8] sm:$0xff] %v258_v53  ;;  %v260_v54 = vld [vmem:[%s6560_s25 + $0x6c0] sm:$0xff]  ;;  %v262_v55 = vld [vmem:[%s6560_s25 + $0x6c8] sm:$0xff] }
  0x2d   : > { %v264_v56 = vld [vmem:[%s6560_s25 + $0x700] sm:$0xff]  ;;  %261 = vst [vmem:[%s6565_s26 + $0x1b0] sm:$0xff] %v260_v54  ;;  %263 = vst [vmem:[%s6565_s26 + $0x1b8] sm:$0xff] %v262_v55  ;;  %v266_v57 = vld [vmem:[%s6560_s25 + $0x708] sm:$0xff] }
  0x2e   : > { %265 = vst [vmem:[%s6565_s26 + $0x1c0] sm:$0xff] %v264_v56  ;;  %v268_v58 = vld [vmem:[%s6560_s25 + $0x740] sm:$0xff]  ;;  %v270_v59 = vld [vmem:[%s6560_s25 + $0x748] sm:$0xff]  ;;  %267 = vst [vmem:[%s6565_s26 + $0x1c8] sm:$0xff] %v266_v57 }
  0x2f   : > { %269 = vst [vmem:[%s6565_s26 + $0x1d0] sm:$0xff] %v268_v58  ;;  %271 = vst [vmem:[%s6565_s26 + $0x1d8] sm:$0xff] %v270_v59  ;;  %v272_v60 = vld [vmem:[%s6560_s25 + $0x780] sm:$0xff]  ;;  %v274_v61 = vld [vmem:[%s6560_s25 + $0x788] sm:$0xff] }
  0x30   : > { %v276_v62 = vld [vmem:[%s6560_s25 + $0x7c0] sm:$0xff]  ;;  %273 = vst [vmem:[%s6565_s26 + $0x1e0] sm:$0xff] %v272_v60  ;;  %275 = vst [vmem:[%s6565_s26 + $0x1e8] sm:$0xff] %v274_v61  ;;  %v278_v63 = vld [vmem:[%s6560_s25 + $0x7c8] sm:$0xff] }
  0x31   : > { %277 = vst [vmem:[%s6565_s26 + $0x1f0] sm:$0xff] %v276_v62  ;;  %v280_v0 = vld [vmem:[%s6560_s25 + $0x800] sm:$0xff]  ;;  %v282_v1 = vld [vmem:[%s6560_s25 + $0x808] sm:$0xff]  ;;  %279 = vst [vmem:[%s6565_s26 + $0x1f8] sm:$0xff] %v278_v63 }
  0x32   : > { %281 = vst [vmem:[%s6565_s26 + $0x200] sm:$0xff] %v280_v0  ;;  %283 = vst [vmem:[%s6565_s26 + $0x208] sm:$0xff] %v282_v1  ;;  %v284_v2 = vld [vmem:[%s6560_s25 + $0x840] sm:$0xff]  ;;  %v286_v3 = vld [vmem:[%s6560_s25 + $0x848] sm:$0xff] }
  0x33   : > { %v288_v4 = vld [vmem:[%s6560_s25 + $0x880] sm:$0xff]  ;;  %285 = vst [vmem:[%s6565_s26 + $0x210] sm:$0xff] %v284_v2  ;;  %287 = vst [vmem:[%s6565_s26 + $0x218] sm:$0xff] %v286_v3  ;;  %v290_v5 = vld [vmem:[%s6560_s25 + $0x888] sm:$0xff] }
  0x34   : > { %289 = vst [vmem:[%s6565_s26 + $0x220] sm:$0xff] %v288_v4  ;;  %v292_v6 = vld [vmem:[%s6560_s25 + $0x8c0] sm:$0xff]  ;;  %v294_v7 = vld [vmem:[%s6560_s25 + $0x8c8] sm:$0xff]  ;;  %291 = vst [vmem:[%s6565_s26 + $0x228] sm:$0xff] %v290_v5 }
  0x35   : > { %293 = vst [vmem:[%s6565_s26 + $0x230] sm:$0xff] %v292_v6  ;;  %295 = vst [vmem:[%s6565_s26 + $0x238] sm:$0xff] %v294_v7  ;;  %v296_v8 = vld [vmem:[%s6560_s25 + $0x900] sm:$0xff]  ;;  %v298_v9 = vld [vmem:[%s6560_s25 + $0x908] sm:$0xff] }
  0x36   : > { %v300_v10 = vld [vmem:[%s6560_s25 + $0x940] sm:$0xff]  ;;  %297 = vst [vmem:[%s6565_s26 + $0x240] sm:$0xff] %v296_v8  ;;  %299 = vst [vmem:[%s6565_s26 + $0x248] sm:$0xff] %v298_v9  ;;  %v302_v11 = vld [vmem:[%s6560_s25 + $0x948] sm:$0xff] }
  0x37   : > { %301 = vst [vmem:[%s6565_s26 + $0x250] sm:$0xff] %v300_v10  ;;  %v304_v12 = vld [vmem:[%s6560_s25 + $0x980] sm:$0xff]  ;;  %v306_v13 = vld [vmem:[%s6560_s25 + $0x988] sm:$0xff]  ;;  %303 = vst [vmem:[%s6565_s26 + $0x258] sm:$0xff] %v302_v11 }
  0x38   : > { %305 = vst [vmem:[%s6565_s26 + $0x260] sm:$0xff] %v304_v12  ;;  %307 = vst [vmem:[%s6565_s26 + $0x268] sm:$0xff] %v306_v13  ;;  %v308_v14 = vld [vmem:[%s6560_s25 + $0x9c0] sm:$0xff]  ;;  %v310_v15 = vld [vmem:[%s6560_s25 + $0x9c8] sm:$0xff] }
  0x39   : > { %v312_v16 = vld [vmem:[%s6560_s25 + $0xa00] sm:$0xff]  ;;  %309 = vst [vmem:[%s6565_s26 + $0x270] sm:$0xff] %v308_v14  ;;  %311 = vst [vmem:[%s6565_s26 + $0x278] sm:$0xff] %v310_v15  ;;  %v314_v17 = vld [vmem:[%s6560_s25 + $0xa08] sm:$0xff] }
  0x3a   : > { %313 = vst [vmem:[%s6565_s26 + $0x280] sm:$0xff] %v312_v16  ;;  %v316_v18 = vld [vmem:[%s6560_s25 + $0xa40] sm:$0xff]  ;;  %v318_v19 = vld [vmem:[%s6560_s25 + $0xa48] sm:$0xff]  ;;  %315 = vst [vmem:[%s6565_s26 + $0x288] sm:$0xff] %v314_v17 }
  0x3b   : > { %317 = vst [vmem:[%s6565_s26 + $0x290] sm:$0xff] %v316_v18  ;;  %319 = vst [vmem:[%s6565_s26 + $0x298] sm:$0xff] %v318_v19  ;;  %v320_v20 = vld [vmem:[%s6560_s25 + $0xa80] sm:$0xff]  ;;  %v322_v21 = vld [vmem:[%s6560_s25 + $0xa88] sm:$0xff] }
  0x3c   : > { %v324_v22 = vld [vmem:[%s6560_s25 + $0xac0] sm:$0xff]  ;;  %321 = vst [vmem:[%s6565_s26 + $0x2a0] sm:$0xff] %v320_v20  ;;  %323 = vst [vmem:[%s6565_s26 + $0x2a8] sm:$0xff] %v322_v21  ;;  %v326_v23 = vld [vmem:[%s6560_s25 + $0xac8] sm:$0xff] }
  0x3d   : > { %325 = vst [vmem:[%s6565_s26 + $0x2b0] sm:$0xff] %v324_v22  ;;  %v328_v24 = vld [vmem:[%s6560_s25 + $0xb00] sm:$0xff]  ;;  %v330_v25 = vld [vmem:[%s6560_s25 + $0xb08] sm:$0xff]  ;;  %327 = vst [vmem:[%s6565_s26 + $0x2b8] sm:$0xff] %v326_v23 }
  0x3e   : > { %329 = vst [vmem:[%s6565_s26 + $0x2c0] sm:$0xff] %v328_v24  ;;  %331 = vst [vmem:[%s6565_s26 + $0x2c8] sm:$0xff] %v330_v25  ;;  %v332_v26 = vld [vmem:[%s6560_s25 + $0xb40] sm:$0xff]  ;;  %v334_v27 = vld [vmem:[%s6560_s25 + $0xb48] sm:$0xff] }
  0x3f   : > { %v336_v28 = vld [vmem:[%s6560_s25 + $0xb80] sm:$0xff]  ;;  %333 = vst [vmem:[%s6565_s26 + $0x2d0] sm:$0xff] %v332_v26  ;;  %335 = vst [vmem:[%s6565_s26 + $0x2d8] sm:$0xff] %v334_v27  ;;  %v338_v29 = vld [vmem:[%s6560_s25 + $0xb88] sm:$0xff] }
  0x40   : > { %337 = vst [vmem:[%s6565_s26 + $0x2e0] sm:$0xff] %v336_v28  ;;  %v340_v30 = vld [vmem:[%s6560_s25 + $0xbc0] sm:$0xff]  ;;  %v342_v31 = vld [vmem:[%s6560_s25 + $0xbc8] sm:$0xff]  ;;  %339 = vst [vmem:[%s6565_s26 + $0x2e8] sm:$0xff] %v338_v29 }
  0x41   : > { %341 = vst [vmem:[%s6565_s26 + $0x2f0] sm:$0xff] %v340_v30  ;;  %343 = vst [vmem:[%s6565_s26 + $0x2f8] sm:$0xff] %v342_v31  ;;  %v344_v32 = vld [vmem:[%s6560_s25 + $0xc00] sm:$0xff]  ;;  %v346_v33 = vld [vmem:[%s6560_s25 + $0xc08] sm:$0xff] }
  0x42   : > { %v348_v34 = vld [vmem:[%s6560_s25 + $0xc40] sm:$0xff]  ;;  %345 = vst [vmem:[%s6565_s26 + $0x300] sm:$0xff] %v344_v32  ;;  %347 = vst [vmem:[%s6565_s26 + $0x308] sm:$0xff] %v346_v33  ;;  %v350_v35 = vld [vmem:[%s6560_s25 + $0xc48] sm:$0xff] }
  0x43   : > { %349 = vst [vmem:[%s6565_s26 + $0x310] sm:$0xff] %v348_v34  ;;  %v352_v36 = vld [vmem:[%s6560_s25 + $0xc80] sm:$0xff]  ;;  %v354_v37 = vld [vmem:[%s6560_s25 + $0xc88] sm:$0xff]  ;;  %351 = vst [vmem:[%s6565_s26 + $0x318] sm:$0xff] %v350_v35 }
  0x44   : > { %353 = vst [vmem:[%s6565_s26 + $0x320] sm:$0xff] %v352_v36  ;;  %355 = vst [vmem:[%s6565_s26 + $0x328] sm:$0xff] %v354_v37  ;;  %v356_v38 = vld [vmem:[%s6560_s25 + $0xcc0] sm:$0xff]  ;;  %v358_v39 = vld [vmem:[%s6560_s25 + $0xcc8] sm:$0xff] }
  0x45   : > { %v360_v40 = vld [vmem:[%s6560_s25 + $0xd00] sm:$0xff]  ;;  %357 = vst [vmem:[%s6565_s26 + $0x330] sm:$0xff] %v356_v38  ;;  %359 = vst [vmem:[%s6565_s26 + $0x338] sm:$0xff] %v358_v39  ;;  %v362_v41 = vld [vmem:[%s6560_s25 + $0xd08] sm:$0xff] }
  0x46   : > { %361 = vst [vmem:[%s6565_s26 + $0x340] sm:$0xff] %v360_v40  ;;  %v364_v42 = vld [vmem:[%s6560_s25 + $0xd40] sm:$0xff]  ;;  %v366_v43 = vld [vmem:[%s6560_s25 + $0xd48] sm:$0xff]  ;;  %363 = vst [vmem:[%s6565_s26 + $0x348] sm:$0xff] %v362_v41 }
  0x47   : > { %365 = vst [vmem:[%s6565_s26 + $0x350] sm:$0xff] %v364_v42  ;;  %367 = vst [vmem:[%s6565_s26 + $0x358] sm:$0xff] %v366_v43  ;;  %v368_v44 = vld [vmem:[%s6560_s25 + $0xd80] sm:$0xff]  ;;  %v370_v45 = vld [vmem:[%s6560_s25 + $0xd88] sm:$0xff] }
  0x48   : > { %v372_v46 = vld [vmem:[%s6560_s25 + $0xdc0] sm:$0xff]  ;;  %369 = vst [vmem:[%s6565_s26 + $0x360] sm:$0xff] %v368_v44  ;;  %371 = vst [vmem:[%s6565_s26 + $0x368] sm:$0xff] %v370_v45  ;;  %v374_v47 = vld [vmem:[%s6560_s25 + $0xdc8] sm:$0xff] }
  0x49   : > { %373 = vst [vmem:[%s6565_s26 + $0x370] sm:$0xff] %v372_v46  ;;  %v376_v48 = vld [vmem:[%s6560_s25 + $0xe00] sm:$0xff]  ;;  %v378_v49 = vld [vmem:[%s6560_s25 + $0xe08] sm:$0xff]  ;;  %375 = vst [vmem:[%s6565_s26 + $0x378] sm:$0xff] %v374_v47 }
  0x4a   : > { %377 = vst [vmem:[%s6565_s26 + $0x380] sm:$0xff] %v376_v48  ;;  %379 = vst [vmem:[%s6565_s26 + $0x388] sm:$0xff] %v378_v49  ;;  %v380_v50 = vld [vmem:[%s6560_s25 + $0xe40] sm:$0xff]  ;;  %v382_v51 = vld [vmem:[%s6560_s25 + $0xe48] sm:$0xff] }
  0x4b   : > { %v384_v52 = vld [vmem:[%s6560_s25 + $0xe80] sm:$0xff]  ;;  %381 = vst [vmem:[%s6565_s26 + $0x390] sm:$0xff] %v380_v50  ;;  %383 = vst [vmem:[%s6565_s26 + $0x398] sm:$0xff] %v382_v51  ;;  %v386_v53 = vld [vmem:[%s6560_s25 + $0xe88] sm:$0xff] }
  0x4c   : > { %385 = vst [vmem:[%s6565_s26 + $0x3a0] sm:$0xff] %v384_v52  ;;  %v388_v54 = vld [vmem:[%s6560_s25 + $0xec0] sm:$0xff]  ;;  %v390_v55 = vld [vmem:[%s6560_s25 + $0xec8] sm:$0xff]  ;;  %387 = vst [vmem:[%s6565_s26 + $0x3a8] sm:$0xff] %v386_v53 }
  0x4d   : > { %389 = vst [vmem:[%s6565_s26 + $0x3b0] sm:$0xff] %v388_v54  ;;  %391 = vst [vmem:[%s6565_s26 + $0x3b8] sm:$0xff] %v390_v55  ;;  %v392_v56 = vld [vmem:[%s6560_s25 + $0xf00] sm:$0xff]  ;;  %v394_v57 = vld [vmem:[%s6560_s25 + $0xf08] sm:$0xff] }
  0x4e   : > { %v396_v58 = vld [vmem:[%s6560_s25 + $0xf40] sm:$0xff]  ;;  %393 = vst [vmem:[%s6565_s26 + $0x3c0] sm:$0xff] %v392_v56  ;;  %395 = vst [vmem:[%s6565_s26 + $0x3c8] sm:$0xff] %v394_v57  ;;  %v398_v59 = vld [vmem:[%s6560_s25 + $0xf48] sm:$0xff] }
  0x4f   : > { %397 = vst [vmem:[%s6565_s26 + $0x3d0] sm:$0xff] %v396_v58  ;;  %v400_v60 = vld [vmem:[%s6560_s25 + $0xf80] sm:$0xff]  ;;  %v402_v61 = vld [vmem:[%s6560_s25 + $0xf88] sm:$0xff]  ;;  %399 = vst [vmem:[%s6565_s26 + $0x3d8] sm:$0xff] %v398_v59 }
  0x50   : > { %401 = vst [vmem:[%s6565_s26 + $0x3e0] sm:$0xff] %v400_v60  ;;  %403 = vst [vmem:[%s6565_s26 + $0x3e8] sm:$0xff] %v402_v61  ;;  %v404_v62 = vld [vmem:[%s6560_s25 + $0xfc0] sm:$0xff]  ;;  %v406_v63 = vld [vmem:[%s6560_s25 + $0xfc8] sm:$0xff] }
  0x51   : > { %v408_v0 = vld [vmem:[%s6560_s25 + $0x1000] sm:$0xff]  ;;  %405 = vst [vmem:[%s6565_s26 + $0x3f0] sm:$0xff] %v404_v62  ;;  %407 = vst [vmem:[%s6565_s26 + $0x3f8] sm:$0xff] %v406_v63  ;;  %v410_v1 = vld [vmem:[%s6560_s25 + $0x1008] sm:$0xff] }
  0x52   : > { %409 = vst [vmem:[%s6565_s26 + $0x400] sm:$0xff] %v408_v0  ;;  %v412_v2 = vld [vmem:[%s6560_s25 + $0x1040] sm:$0xff]  ;;  %v414_v3 = vld [vmem:[%s6560_s25 + $0x1048] sm:$0xff]  ;;  %411 = vst [vmem:[%s6565_s26 + $0x408] sm:$0xff] %v410_v1 }
  0x53   : > { %413 = vst [vmem:[%s6565_s26 + $0x410] sm:$0xff] %v412_v2  ;;  %415 = vst [vmem:[%s6565_s26 + $0x418] sm:$0xff] %v414_v3  ;;  %v416_v4 = vld [vmem:[%s6560_s25 + $0x1080] sm:$0xff]  ;;  %v418_v5 = vld [vmem:[%s6560_s25 + $0x1088] sm:$0xff] }
  0x54   : > { %v420_v6 = vld [vmem:[%s6560_s25 + $0x10c0] sm:$0xff]  ;;  %417 = vst [vmem:[%s6565_s26 + $0x420] sm:$0xff] %v416_v4  ;;  %419 = vst [vmem:[%s6565_s26 + $0x428] sm:$0xff] %v418_v5  ;;  %v422_v7 = vld [vmem:[%s6560_s25 + $0x10c8] sm:$0xff] }
  0x55   : > { %421 = vst [vmem:[%s6565_s26 + $0x430] sm:$0xff] %v420_v6  ;;  %v424_v8 = vld [vmem:[%s6560_s25 + $0x1100] sm:$0xff]  ;;  %v426_v9 = vld [vmem:[%s6560_s25 + $0x1108] sm:$0xff]  ;;  %423 = vst [vmem:[%s6565_s26 + $0x438] sm:$0xff] %v422_v7 }
  0x56   : > { %425 = vst [vmem:[%s6565_s26 + $0x440] sm:$0xff] %v424_v8  ;;  %427 = vst [vmem:[%s6565_s26 + $0x448] sm:$0xff] %v426_v9  ;;  %v428_v10 = vld [vmem:[%s6560_s25 + $0x1140] sm:$0xff]  ;;  %v430_v11 = vld [vmem:[%s6560_s25 + $0x1148] sm:$0xff] }
  0x57   : > { %v432_v12 = vld [vmem:[%s6560_s25 + $0x1180] sm:$0xff]  ;;  %429 = vst [vmem:[%s6565_s26 + $0x450] sm:$0xff] %v428_v10  ;;  %431 = vst [vmem:[%s6565_s26 + $0x458] sm:$0xff] %v430_v11  ;;  %v434_v13 = vld [vmem:[%s6560_s25 + $0x1188] sm:$0xff] }
  0x58   : > { %433 = vst [vmem:[%s6565_s26 + $0x460] sm:$0xff] %v432_v12  ;;  %v436_v14 = vld [vmem:[%s6560_s25 + $0x11c0] sm:$0xff]  ;;  %v438_v15 = vld [vmem:[%s6560_s25 + $0x11c8] sm:$0xff]  ;;  %435 = vst [vmem:[%s6565_s26 + $0x468] sm:$0xff] %v434_v13 }
  0x59   : > { %437 = vst [vmem:[%s6565_s26 + $0x470] sm:$0xff] %v436_v14  ;;  %439 = vst [vmem:[%s6565_s26 + $0x478] sm:$0xff] %v438_v15  ;;  %v440_v16 = vld [vmem:[%s6560_s25 + $0x1200] sm:$0xff]  ;;  %v442_v17 = vld [vmem:[%s6560_s25 + $0x1208] sm:$0xff] }
  0x5a   : > { %v444_v18 = vld [vmem:[%s6560_s25 + $0x1240] sm:$0xff]  ;;  %441 = vst [vmem:[%s6565_s26 + $0x480] sm:$0xff] %v440_v16  ;;  %443 = vst [vmem:[%s6565_s26 + $0x488] sm:$0xff] %v442_v17  ;;  %v446_v19 = vld [vmem:[%s6560_s25 + $0x1248] sm:$0xff] }
  0x5b   : > { %445 = vst [vmem:[%s6565_s26 + $0x490] sm:$0xff] %v444_v18  ;;  %v448_v20 = vld [vmem:[%s6560_s25 + $0x1280] sm:$0xff]  ;;  %v450_v21 = vld [vmem:[%s6560_s25 + $0x1288] sm:$0xff]  ;;  %447 = vst [vmem:[%s6565_s26 + $0x498] sm:$0xff] %v446_v19 }
  0x5c   : > { %449 = vst [vmem:[%s6565_s26 + $0x4a0] sm:$0xff] %v448_v20  ;;  %451 = vst [vmem:[%s6565_s26 + $0x4a8] sm:$0xff] %v450_v21  ;;  %v452_v22 = vld [vmem:[%s6560_s25 + $0x12c0] sm:$0xff]  ;;  %v454_v23 = vld [vmem:[%s6560_s25 + $0x12c8] sm:$0xff] }
  0x5d   : > { %v456_v24 = vld [vmem:[%s6560_s25 + $0x1300] sm:$0xff]  ;;  %453 = vst [vmem:[%s6565_s26 + $0x4b0] sm:$0xff] %v452_v22  ;;  %455 = vst [vmem:[%s6565_s26 + $0x4b8] sm:$0xff] %v454_v23  ;;  %v458_v25 = vld [vmem:[%s6560_s25 + $0x1308] sm:$0xff] }
  0x5e   : > { %457 = vst [vmem:[%s6565_s26 + $0x4c0] sm:$0xff] %v456_v24  ;;  %v460_v26 = vld [vmem:[%s6560_s25 + $0x1340] sm:$0xff]  ;;  %v462_v27 = vld [vmem:[%s6560_s25 + $0x1348] sm:$0xff]  ;;  %459 = vst [vmem:[%s6565_s26 + $0x4c8] sm:$0xff] %v458_v25 }
  0x5f   : > { %461 = vst [vmem:[%s6565_s26 + $0x4d0] sm:$0xff] %v460_v26  ;;  %463 = vst [vmem:[%s6565_s26 + $0x4d8] sm:$0xff] %v462_v27  ;;  %v464_v28 = vld [vmem:[%s6560_s25 + $0x1380] sm:$0xff]  ;;  %v466_v29 = vld [vmem:[%s6560_s25 + $0x1388] sm:$0xff] }
  0x60   : > { %v468_v30 = vld [vmem:[%s6560_s25 + $0x13c0] sm:$0xff]  ;;  %465 = vst [vmem:[%s6565_s26 + $0x4e0] sm:$0xff] %v464_v28  ;;  %467 = vst [vmem:[%s6565_s26 + $0x4e8] sm:$0xff] %v466_v29  ;;  %v470_v31 = vld [vmem:[%s6560_s25 + $0x13c8] sm:$0xff] }
  0x61   : > { %469 = vst [vmem:[%s6565_s26 + $0x4f0] sm:$0xff] %v468_v30  ;;  %v472_v32 = vld [vmem:[%s6560_s25 + $0x1400] sm:$0xff]  ;;  %v474_v33 = vld [vmem:[%s6560_s25 + $0x1408] sm:$0xff]  ;;  %471 = vst [vmem:[%s6565_s26 + $0x4f8] sm:$0xff] %v470_v31 }
  0x62   : > { %473 = vst [vmem:[%s6565_s26 + $0x500] sm:$0xff] %v472_v32  ;;  %475 = vst [vmem:[%s6565_s26 + $0x508] sm:$0xff] %v474_v33  ;;  %v476_v34 = vld [vmem:[%s6560_s25 + $0x1440] sm:$0xff]  ;;  %v478_v35 = vld [vmem:[%s6560_s25 + $0x1448] sm:$0xff] }
  0x63   : > { %v480_v36 = vld [vmem:[%s6560_s25 + $0x1480] sm:$0xff]  ;;  %477 = vst [vmem:[%s6565_s26 + $0x510] sm:$0xff] %v476_v34  ;;  %479 = vst [vmem:[%s6565_s26 + $0x518] sm:$0xff] %v478_v35  ;;  %v482_v37 = vld [vmem:[%s6560_s25 + $0x1488] sm:$0xff] }
  0x64   : > { %481 = vst [vmem:[%s6565_s26 + $0x520] sm:$0xff] %v480_v36  ;;  %v484_v38 = vld [vmem:[%s6560_s25 + $0x14c0] sm:$0xff]  ;;  %v486_v39 = vld [vmem:[%s6560_s25 + $0x14c8] sm:$0xff]  ;;  %483 = vst [vmem:[%s6565_s26 + $0x528] sm:$0xff] %v482_v37 }
  0x65   : > { %485 = vst [vmem:[%s6565_s26 + $0x530] sm:$0xff] %v484_v38  ;;  %487 = vst [vmem:[%s6565_s26 + $0x538] sm:$0xff] %v486_v39  ;;  %v488_v40 = vld [vmem:[%s6560_s25 + $0x1500] sm:$0xff]  ;;  %v490_v41 = vld [vmem:[%s6560_s25 + $0x1508] sm:$0xff] }
  0x66   : > { %v492_v42 = vld [vmem:[%s6560_s25 + $0x1540] sm:$0xff]  ;;  %489 = vst [vmem:[%s6565_s26 + $0x540] sm:$0xff] %v488_v40  ;;  %491 = vst [vmem:[%s6565_s26 + $0x548] sm:$0xff] %v490_v41  ;;  %v494_v43 = vld [vmem:[%s6560_s25 + $0x1548] sm:$0xff] }
  0x67   : > { %493 = vst [vmem:[%s6565_s26 + $0x550] sm:$0xff] %v492_v42  ;;  %v496_v44 = vld [vmem:[%s6560_s25 + $0x1580] sm:$0xff]  ;;  %v498_v45 = vld [vmem:[%s6560_s25 + $0x1588] sm:$0xff]  ;;  %495 = vst [vmem:[%s6565_s26 + $0x558] sm:$0xff] %v494_v43 }
  0x68   : > { %497 = vst [vmem:[%s6565_s26 + $0x560] sm:$0xff] %v496_v44  ;;  %499 = vst [vmem:[%s6565_s26 + $0x568] sm:$0xff] %v498_v45  ;;  %v500_v46 = vld [vmem:[%s6560_s25 + $0x15c0] sm:$0xff]  ;;  %v502_v47 = vld [vmem:[%s6560_s25 + $0x15c8] sm:$0xff] }
  0x69   : > { %v504_v48 = vld [vmem:[%s6560_s25 + $0x1600] sm:$0xff]  ;;  %501 = vst [vmem:[%s6565_s26 + $0x570] sm:$0xff] %v500_v46  ;;  %503 = vst [vmem:[%s6565_s26 + $0x578] sm:$0xff] %v502_v47  ;;  %v506_v49 = vld [vmem:[%s6560_s25 + $0x1608] sm:$0xff] }
  0x6a   : > { %505 = vst [vmem:[%s6565_s26 + $0x580] sm:$0xff] %v504_v48  ;;  %v508_v50 = vld [vmem:[%s6560_s25 + $0x1640] sm:$0xff]  ;;  %v510_v51 = vld [vmem:[%s6560_s25 + $0x1648] sm:$0xff]  ;;  %507 = vst [vmem:[%s6565_s26 + $0x588] sm:$0xff] %v506_v49 }
  0x6b   : > { %509 = vst [vmem:[%s6565_s26 + $0x590] sm:$0xff] %v508_v50  ;;  %511 = vst [vmem:[%s6565_s26 + $0x598] sm:$0xff] %v510_v51  ;;  %v512_v52 = vld [vmem:[%s6560_s25 + $0x1680] sm:$0xff]  ;;  %v514_v53 = vld [vmem:[%s6560_s25 + $0x1688] sm:$0xff] }
  0x6c   : > { %v516_v54 = vld [vmem:[%s6560_s25 + $0x16c0] sm:$0xff]  ;;  %513 = vst [vmem:[%s6565_s26 + $0x5a0] sm:$0xff] %v512_v52  ;;  %515 = vst [vmem:[%s6565_s26 + $0x5a8] sm:$0xff] %v514_v53  ;;  %v518_v55 = vld [vmem:[%s6560_s25 + $0x16c8] sm:$0xff] }
  0x6d   : > { %517 = vst [vmem:[%s6565_s26 + $0x5b0] sm:$0xff] %v516_v54  ;;  %v520_v56 = vld [vmem:[%s6560_s25 + $0x1700] sm:$0xff]  ;;  %v522_v57 = vld [vmem:[%s6560_s25 + $0x1708] sm:$0xff]  ;;  %519 = vst [vmem:[%s6565_s26 + $0x5b8] sm:$0xff] %v518_v55 }
  0x6e   : > { %521 = vst [vmem:[%s6565_s26 + $0x5c0] sm:$0xff] %v520_v56  ;;  %523 = vst [vmem:[%s6565_s26 + $0x5c8] sm:$0xff] %v522_v57  ;;  %v524_v58 = vld [vmem:[%s6560_s25 + $0x1740] sm:$0xff]  ;;  %v526_v59 = vld [vmem:[%s6560_s25 + $0x1748] sm:$0xff] }
  0x6f   : > { %v528_v60 = vld [vmem:[%s6560_s25 + $0x1780] sm:$0xff]  ;;  %525 = vst [vmem:[%s6565_s26 + $0x5d0] sm:$0xff] %v524_v58  ;;  %527 = vst [vmem:[%s6565_s26 + $0x5d8] sm:$0xff] %v526_v59  ;;  %v530_v61 = vld [vmem:[%s6560_s25 + $0x1788] sm:$0xff] }
  0x70   : > { %529 = vst [vmem:[%s6565_s26 + $0x5e0] sm:$0xff] %v528_v60  ;;  %v532_v62 = vld [vmem:[%s6560_s25 + $0x17c0] sm:$0xff]  ;;  %v534_v63 = vld [vmem:[%s6560_s25 + $0x17c8] sm:$0xff]  ;;  %531 = vst [vmem:[%s6565_s26 + $0x5e8] sm:$0xff] %v530_v61 }
  0x71   : > { %533 = vst [vmem:[%s6565_s26 + $0x5f0] sm:$0xff] %v532_v62  ;;  %535 = vst [vmem:[%s6565_s26 + $0x5f8] sm:$0xff] %v534_v63  ;;  %v536_v0 = vld [vmem:[%s6560_s25 + $0x1800] sm:$0xff]  ;;  %v538_v1 = vld [vmem:[%s6560_s25 + $0x1808] sm:$0xff] }
  0x72   : > { %v540_v2 = vld [vmem:[%s6560_s25 + $0x1840] sm:$0xff]  ;;  %537 = vst [vmem:[%s6565_s26 + $0x600] sm:$0xff] %v536_v0  ;;  %539 = vst [vmem:[%s6565_s26 + $0x608] sm:$0xff] %v538_v1  ;;  %v542_v3 = vld [vmem:[%s6560_s25 + $0x1848] sm:$0xff] }
  0x73   : > { %541 = vst [vmem:[%s6565_s26 + $0x610] sm:$0xff] %v540_v2  ;;  %v544_v4 = vld [vmem:[%s6560_s25 + $0x1880] sm:$0xff]  ;;  %v546_v5 = vld [vmem:[%s6560_s25 + $0x1888] sm:$0xff]  ;;  %543 = vst [vmem:[%s6565_s26 + $0x618] sm:$0xff] %v542_v3 }
  0x74   : > { %545 = vst [vmem:[%s6565_s26 + $0x620] sm:$0xff] %v544_v4  ;;  %547 = vst [vmem:[%s6565_s26 + $0x628] sm:$0xff] %v546_v5  ;;  %v548_v6 = vld [vmem:[%s6560_s25 + $0x18c0] sm:$0xff]  ;;  %v550_v7 = vld [vmem:[%s6560_s25 + $0x18c8] sm:$0xff] }
  0x75   : > { %v552_v8 = vld [vmem:[%s6560_s25 + $0x1900] sm:$0xff]  ;;  %549 = vst [vmem:[%s6565_s26 + $0x630] sm:$0xff] %v548_v6  ;;  %551 = vst [vmem:[%s6565_s26 + $0x638] sm:$0xff] %v550_v7  ;;  %v554_v9 = vld [vmem:[%s6560_s25 + $0x1908] sm:$0xff] }
  0x76   : > { %553 = vst [vmem:[%s6565_s26 + $0x640] sm:$0xff] %v552_v8  ;;  %v556_v10 = vld [vmem:[%s6560_s25 + $0x1940] sm:$0xff]  ;;  %v558_v11 = vld [vmem:[%s6560_s25 + $0x1948] sm:$0xff]  ;;  %555 = vst [vmem:[%s6565_s26 + $0x648] sm:$0xff] %v554_v9 }
  0x77   : > { %557 = vst [vmem:[%s6565_s26 + $0x650] sm:$0xff] %v556_v10  ;;  %559 = vst [vmem:[%s6565_s26 + $0x658] sm:$0xff] %v558_v11  ;;  %v560_v12 = vld [vmem:[%s6560_s25 + $0x1980] sm:$0xff]  ;;  %v562_v13 = vld [vmem:[%s6560_s25 + $0x1988] sm:$0xff] }
  0x78   : > { %v564_v14 = vld [vmem:[%s6560_s25 + $0x19c0] sm:$0xff]  ;;  %561 = vst [vmem:[%s6565_s26 + $0x660] sm:$0xff] %v560_v12  ;;  %563 = vst [vmem:[%s6565_s26 + $0x668] sm:$0xff] %v562_v13  ;;  %v566_v15 = vld [vmem:[%s6560_s25 + $0x19c8] sm:$0xff] }
  0x79   : > { %565 = vst [vmem:[%s6565_s26 + $0x670] sm:$0xff] %v564_v14  ;;  %v568_v16 = vld [vmem:[%s6560_s25 + $0x1a00] sm:$0xff]  ;;  %v570_v17 = vld [vmem:[%s6560_s25 + $0x1a08] sm:$0xff]  ;;  %567 = vst [vmem:[%s6565_s26 + $0x678] sm:$0xff] %v566_v15 }
  0x7a   : > { %569 = vst [vmem:[%s6565_s26 + $0x680] sm:$0xff] %v568_v16  ;;  %571 = vst [vmem:[%s6565_s26 + $0x688] sm:$0xff] %v570_v17  ;;  %v572_v18 = vld [vmem:[%s6560_s25 + $0x1a40] sm:$0xff]  ;;  %v574_v19 = vld [vmem:[%s6560_s25 + $0x1a48] sm:$0xff] }
  0x7b   : > { %v576_v20 = vld [vmem:[%s6560_s25 + $0x1a80] sm:$0xff]  ;;  %573 = vst [vmem:[%s6565_s26 + $0x690] sm:$0xff] %v572_v18  ;;  %575 = vst [vmem:[%s6565_s26 + $0x698] sm:$0xff] %v574_v19  ;;  %v578_v21 = vld [vmem:[%s6560_s25 + $0x1a88] sm:$0xff] }
  0x7c   : > { %577 = vst [vmem:[%s6565_s26 + $0x6a0] sm:$0xff] %v576_v20  ;;  %v580_v22 = vld [vmem:[%s6560_s25 + $0x1ac0] sm:$0xff]  ;;  %v582_v23 = vld [vmem:[%s6560_s25 + $0x1ac8] sm:$0xff]  ;;  %579 = vst [vmem:[%s6565_s26 + $0x6a8] sm:$0xff] %v578_v21 }
  0x7d   : > { %581 = vst [vmem:[%s6565_s26 + $0x6b0] sm:$0xff] %v580_v22  ;;  %583 = vst [vmem:[%s6565_s26 + $0x6b8] sm:$0xff] %v582_v23  ;;  %v584_v24 = vld [vmem:[%s6560_s25 + $0x1b00] sm:$0xff]  ;;  %v586_v25 = vld [vmem:[%s6560_s25 + $0x1b08] sm:$0xff] }
  0x7e   : > { %v588_v26 = vld [vmem:[%s6560_s25 + $0x1b40] sm:$0xff]  ;;  %585 = vst [vmem:[%s6565_s26 + $0x6c0] sm:$0xff] %v584_v24  ;;  %587 = vst [vmem:[%s6565_s26 + $0x6c8] sm:$0xff] %v586_v25  ;;  %v590_v27 = vld [vmem:[%s6560_s25 + $0x1b48] sm:$0xff] }
  0x7f   : > { %589 = vst [vmem:[%s6565_s26 + $0x6d0] sm:$0xff] %v588_v26  ;;  %v592_v28 = vld [vmem:[%s6560_s25 + $0x1b80] sm:$0xff]  ;;  %v594_v29 = vld [vmem:[%s6560_s25 + $0x1b88] sm:$0xff]  ;;  %591 = vst [vmem:[%s6565_s26 + $0x6d8] sm:$0xff] %v590_v27 }
  0x80   : > { %593 = vst [vmem:[%s6565_s26 + $0x6e0] sm:$0xff] %v592_v28  ;;  %595 = vst [vmem:[%s6565_s26 + $0x6e8] sm:$0xff] %v594_v29  ;;  %v596_v30 = vld [vmem:[%s6560_s25 + $0x1bc0] sm:$0xff]  ;;  %v598_v31 = vld [vmem:[%s6560_s25 + $0x1bc8] sm:$0xff] }
  0x81   : > { %v600_v32 = vld [vmem:[%s6560_s25 + $0x1c00] sm:$0xff]  ;;  %597 = vst [vmem:[%s6565_s26 + $0x6f0] sm:$0xff] %v596_v30  ;;  %599 = vst [vmem:[%s6565_s26 + $0x6f8] sm:$0xff] %v598_v31  ;;  %v602_v33 = vld [vmem:[%s6560_s25 + $0x1c08] sm:$0xff] }
  0x82   : > { %601 = vst [vmem:[%s6565_s26 + $0x700] sm:$0xff] %v600_v32  ;;  %v604_v34 = vld [vmem:[%s6560_s25 + $0x1c40] sm:$0xff]  ;;  %v606_v35 = vld [vmem:[%s6560_s25 + $0x1c48] sm:$0xff]  ;;  %603 = vst [vmem:[%s6565_s26 + $0x708] sm:$0xff] %v602_v33 }
  0x83   : > { %605 = vst [vmem:[%s6565_s26 + $0x710] sm:$0xff] %v604_v34  ;;  %607 = vst [vmem:[%s6565_s26 + $0x718] sm:$0xff] %v606_v35  ;;  %v608_v36 = vld [vmem:[%s6560_s25 + $0x1c80] sm:$0xff]  ;;  %v610_v37 = vld [vmem:[%s6560_s25 + $0x1c88] sm:$0xff] }
  0x84   : > { %v612_v38 = vld [vmem:[%s6560_s25 + $0x1cc0] sm:$0xff]  ;;  %609 = vst [vmem:[%s6565_s26 + $0x720] sm:$0xff] %v608_v36  ;;  %611 = vst [vmem:[%s6565_s26 + $0x728] sm:$0xff] %v610_v37  ;;  %v614_v39 = vld [vmem:[%s6560_s25 + $0x1cc8] sm:$0xff] }
  0x85   : > { %613 = vst [vmem:[%s6565_s26 + $0x730] sm:$0xff] %v612_v38  ;;  %v616_v40 = vld [vmem:[%s6560_s25 + $0x1d00] sm:$0xff]  ;;  %v618_v41 = vld [vmem:[%s6560_s25 + $0x1d08] sm:$0xff]  ;;  %615 = vst [vmem:[%s6565_s26 + $0x738] sm:$0xff] %v614_v39 }
  0x86   : > { %617 = vst [vmem:[%s6565_s26 + $0x740] sm:$0xff] %v616_v40  ;;  %619 = vst [vmem:[%s6565_s26 + $0x748] sm:$0xff] %v618_v41  ;;  %v620_v42 = vld [vmem:[%s6560_s25 + $0x1d40] sm:$0xff]  ;;  %v622_v43 = vld [vmem:[%s6560_s25 + $0x1d48] sm:$0xff] }
  0x87   : > { %v624_v44 = vld [vmem:[%s6560_s25 + $0x1d80] sm:$0xff]  ;;  %621 = vst [vmem:[%s6565_s26 + $0x750] sm:$0xff] %v620_v42  ;;  %623 = vst [vmem:[%s6565_s26 + $0x758] sm:$0xff] %v622_v43  ;;  %v626_v45 = vld [vmem:[%s6560_s25 + $0x1d88] sm:$0xff] }
  0x88   : > { %625 = vst [vmem:[%s6565_s26 + $0x760] sm:$0xff] %v624_v44  ;;  %v628_v46 = vld [vmem:[%s6560_s25 + $0x1dc0] sm:$0xff]  ;;  %v630_v47 = vld [vmem:[%s6560_s25 + $0x1dc8] sm:$0xff]  ;;  %627 = vst [vmem:[%s6565_s26 + $0x768] sm:$0xff] %v626_v45 }
  0x89   : > { %629 = vst [vmem:[%s6565_s26 + $0x770] sm:$0xff] %v628_v46  ;;  %631 = vst [vmem:[%s6565_s26 + $0x778] sm:$0xff] %v630_v47  ;;  %v632_v48 = vld [vmem:[%s6560_s25 + $0x1e00] sm:$0xff]  ;;  %v634_v49 = vld [vmem:[%s6560_s25 + $0x1e08] sm:$0xff] }
  0x8a   : > { %v636_v50 = vld [vmem:[%s6560_s25 + $0x1e40] sm:$0xff]  ;;  %633 = vst [vmem:[%s6565_s26 + $0x780] sm:$0xff] %v632_v48  ;;  %635 = vst [vmem:[%s6565_s26 + $0x788] sm:$0xff] %v634_v49  ;;  %v638_v51 = vld [vmem:[%s6560_s25 + $0x1e48] sm:$0xff] }
  0x8b   : > { %637 = vst [vmem:[%s6565_s26 + $0x790] sm:$0xff] %v636_v50  ;;  %v640_v52 = vld [vmem:[%s6560_s25 + $0x1e80] sm:$0xff]  ;;  %v642_v53 = vld [vmem:[%s6560_s25 + $0x1e88] sm:$0xff]  ;;  %639 = vst [vmem:[%s6565_s26 + $0x798] sm:$0xff] %v638_v51 }
  0x8c   : > { %641 = vst [vmem:[%s6565_s26 + $0x7a0] sm:$0xff] %v640_v52  ;;  %643 = vst [vmem:[%s6565_s26 + $0x7a8] sm:$0xff] %v642_v53  ;;  %v644_v54 = vld [vmem:[%s6560_s25 + $0x1ec0] sm:$0xff]  ;;  %v646_v55 = vld [vmem:[%s6560_s25 + $0x1ec8] sm:$0xff] }
  0x8d   : > { %v648_v56 = vld [vmem:[%s6560_s25 + $0x1f00] sm:$0xff]  ;;  %645 = vst [vmem:[%s6565_s26 + $0x7b0] sm:$0xff] %v644_v54  ;;  %647 = vst [vmem:[%s6565_s26 + $0x7b8] sm:$0xff] %v646_v55  ;;  %v650_v57 = vld [vmem:[%s6560_s25 + $0x1f08] sm:$0xff] }
  0x8e   : > { %649 = vst [vmem:[%s6565_s26 + $0x7c0] sm:$0xff] %v648_v56  ;;  %v652_v58 = vld [vmem:[%s6560_s25 + $0x1f40] sm:$0xff]  ;;  %v654_v59 = vld [vmem:[%s6560_s25 + $0x1f48] sm:$0xff]  ;;  %651 = vst [vmem:[%s6565_s26 + $0x7c8] sm:$0xff] %v650_v57 }
  0x8f   : > { %653 = vst [vmem:[%s6565_s26 + $0x7d0] sm:$0xff] %v652_v58  ;;  %655 = vst [vmem:[%s6565_s26 + $0x7d8] sm:$0xff] %v654_v59  ;;  %v656_v60 = vld [vmem:[%s6560_s25 + $0x1f80] sm:$0xff]  ;;  %v658_v61 = vld [vmem:[%s6560_s25 + $0x1f88] sm:$0xff] }
  0x90   : > { %v660_v62 = vld [vmem:[%s6560_s25 + $0x1fc0] sm:$0xff]  ;;  %657 = vst [vmem:[%s6565_s26 + $0x7e0] sm:$0xff] %v656_v60  ;;  %659 = vst [vmem:[%s6565_s26 + $0x7e8] sm:$0xff] %v658_v61  ;;  %v662_v63 = vld [vmem:[%s6560_s25 + $0x1fc8] sm:$0xff] }
  0x91   : > { %661 = vst [vmem:[%s6565_s26 + $0x7f0] sm:$0xff] %v660_v62  ;;  %v664_v0 = vld [vmem:[%s6560_s25 + $0x2000] sm:$0xff]  ;;  %v666_v1 = vld [vmem:[%s6560_s25 + $0x2008] sm:$0xff]  ;;  %663 = vst [vmem:[%s6565_s26 + $0x7f8] sm:$0xff] %v662_v63 }
  0x92   : > { %665 = vst [vmem:[%s6565_s26 + $0x800] sm:$0xff] %v664_v0  ;;  %667 = vst [vmem:[%s6565_s26 + $0x808] sm:$0xff] %v666_v1  ;;  %v668_v2 = vld [vmem:[%s6560_s25 + $0x2040] sm:$0xff]  ;;  %v670_v3 = vld [vmem:[%s6560_s25 + $0x2048] sm:$0xff] }
  0x93   : > { %v672_v4 = vld [vmem:[%s6560_s25 + $0x2080] sm:$0xff]  ;;  %669 = vst [vmem:[%s6565_s26 + $0x810] sm:$0xff] %v668_v2  ;;  %671 = vst [vmem:[%s6565_s26 + $0x818] sm:$0xff] %v670_v3  ;;  %v674_v5 = vld [vmem:[%s6560_s25 + $0x2088] sm:$0xff] }
  0x94   : > { %673 = vst [vmem:[%s6565_s26 + $0x820] sm:$0xff] %v672_v4  ;;  %v676_v6 = vld [vmem:[%s6560_s25 + $0x20c0] sm:$0xff]  ;;  %v678_v7 = vld [vmem:[%s6560_s25 + $0x20c8] sm:$0xff]  ;;  %675 = vst [vmem:[%s6565_s26 + $0x828] sm:$0xff] %v674_v5 }
  0x95   : > { %677 = vst [vmem:[%s6565_s26 + $0x830] sm:$0xff] %v676_v6  ;;  %679 = vst [vmem:[%s6565_s26 + $0x838] sm:$0xff] %v678_v7  ;;  %v680_v8 = vld [vmem:[%s6560_s25 + $0x2100] sm:$0xff]  ;;  %v682_v9 = vld [vmem:[%s6560_s25 + $0x2108] sm:$0xff] }
  0x96   : > { %v684_v10 = vld [vmem:[%s6560_s25 + $0x2140] sm:$0xff]  ;;  %681 = vst [vmem:[%s6565_s26 + $0x840] sm:$0xff] %v680_v8  ;;  %683 = vst [vmem:[%s6565_s26 + $0x848] sm:$0xff] %v682_v9  ;;  %v686_v11 = vld [vmem:[%s6560_s25 + $0x2148] sm:$0xff] }
  0x97   : > { %685 = vst [vmem:[%s6565_s26 + $0x850] sm:$0xff] %v684_v10  ;;  %v688_v12 = vld [vmem:[%s6560_s25 + $0x2180] sm:$0xff]  ;;  %v690_v13 = vld [vmem:[%s6560_s25 + $0x2188] sm:$0xff]  ;;  %687 = vst [vmem:[%s6565_s26 + $0x858] sm:$0xff] %v686_v11 }
  0x98   : > { %689 = vst [vmem:[%s6565_s26 + $0x860] sm:$0xff] %v688_v12  ;;  %691 = vst [vmem:[%s6565_s26 + $0x868] sm:$0xff] %v690_v13  ;;  %v692_v14 = vld [vmem:[%s6560_s25 + $0x21c0] sm:$0xff]  ;;  %v694_v15 = vld [vmem:[%s6560_s25 + $0x21c8] sm:$0xff] }
  0x99   : > { %v696_v16 = vld [vmem:[%s6560_s25 + $0x2200] sm:$0xff]  ;;  %693 = vst [vmem:[%s6565_s26 + $0x870] sm:$0xff] %v692_v14  ;;  %695 = vst [vmem:[%s6565_s26 + $0x878] sm:$0xff] %v694_v15  ;;  %v698_v17 = vld [vmem:[%s6560_s25 + $0x2208] sm:$0xff] }
  0x9a   : > { %697 = vst [vmem:[%s6565_s26 + $0x880] sm:$0xff] %v696_v16  ;;  %v700_v18 = vld [vmem:[%s6560_s25 + $0x2240] sm:$0xff]  ;;  %v702_v19 = vld [vmem:[%s6560_s25 + $0x2248] sm:$0xff]  ;;  %699 = vst [vmem:[%s6565_s26 + $0x888] sm:$0xff] %v698_v17 }
  0x9b   : > { %701 = vst [vmem:[%s6565_s26 + $0x890] sm:$0xff] %v700_v18  ;;  %703 = vst [vmem:[%s6565_s26 + $0x898] sm:$0xff] %v702_v19  ;;  %v704_v20 = vld [vmem:[%s6560_s25 + $0x2280] sm:$0xff]  ;;  %v706_v21 = vld [vmem:[%s6560_s25 + $0x2288] sm:$0xff] }
  0x9c   : > { %v708_v22 = vld [vmem:[%s6560_s25 + $0x22c0] sm:$0xff]  ;;  %705 = vst [vmem:[%s6565_s26 + $0x8a0] sm:$0xff] %v704_v20  ;;  %707 = vst [vmem:[%s6565_s26 + $0x8a8] sm:$0xff] %v706_v21  ;;  %v710_v23 = vld [vmem:[%s6560_s25 + $0x22c8] sm:$0xff] }
  0x9d   : > { %709 = vst [vmem:[%s6565_s26 + $0x8b0] sm:$0xff] %v708_v22  ;;  %v712_v24 = vld [vmem:[%s6560_s25 + $0x2300] sm:$0xff]  ;;  %v714_v25 = vld [vmem:[%s6560_s25 + $0x2308] sm:$0xff]  ;;  %711 = vst [vmem:[%s6565_s26 + $0x8b8] sm:$0xff] %v710_v23 }
  0x9e   : > { %713 = vst [vmem:[%s6565_s26 + $0x8c0] sm:$0xff] %v712_v24  ;;  %715 = vst [vmem:[%s6565_s26 + $0x8c8] sm:$0xff] %v714_v25  ;;  %v716_v26 = vld [vmem:[%s6560_s25 + $0x2340] sm:$0xff]  ;;  %v718_v27 = vld [vmem:[%s6560_s25 + $0x2348] sm:$0xff] }
  0x9f   : > { %v720_v28 = vld [vmem:[%s6560_s25 + $0x2380] sm:$0xff]  ;;  %717 = vst [vmem:[%s6565_s26 + $0x8d0] sm:$0xff] %v716_v26  ;;  %719 = vst [vmem:[%s6565_s26 + $0x8d8] sm:$0xff] %v718_v27  ;;  %v722_v29 = vld [vmem:[%s6560_s25 + $0x2388] sm:$0xff] }
  0xa0   : > { %721 = vst [vmem:[%s6565_s26 + $0x8e0] sm:$0xff] %v720_v28  ;;  %v724_v30 = vld [vmem:[%s6560_s25 + $0x23c0] sm:$0xff]  ;;  %v726_v31 = vld [vmem:[%s6560_s25 + $0x23c8] sm:$0xff]  ;;  %723 = vst [vmem:[%s6565_s26 + $0x8e8] sm:$0xff] %v722_v29 }
  0xa1   : > { %725 = vst [vmem:[%s6565_s26 + $0x8f0] sm:$0xff] %v724_v30  ;;  %727 = vst [vmem:[%s6565_s26 + $0x8f8] sm:$0xff] %v726_v31  ;;  %v728_v32 = vld [vmem:[%s6560_s25 + $0x2400] sm:$0xff]  ;;  %v730_v33 = vld [vmem:[%s6560_s25 + $0x2408] sm:$0xff] }
  0xa2   : > { %v732_v34 = vld [vmem:[%s6560_s25 + $0x2440] sm:$0xff]  ;;  %729 = vst [vmem:[%s6565_s26 + $0x900] sm:$0xff] %v728_v32  ;;  %731 = vst [vmem:[%s6565_s26 + $0x908] sm:$0xff] %v730_v33  ;;  %v734_v35 = vld [vmem:[%s6560_s25 + $0x2448] sm:$0xff] }
  0xa3   : > { %733 = vst [vmem:[%s6565_s26 + $0x910] sm:$0xff] %v732_v34  ;;  %v736_v36 = vld [vmem:[%s6560_s25 + $0x2480] sm:$0xff]  ;;  %v738_v37 = vld [vmem:[%s6560_s25 + $0x2488] sm:$0xff]  ;;  %735 = vst [vmem:[%s6565_s26 + $0x918] sm:$0xff] %v734_v35 }
  0xa4   : > { %737 = vst [vmem:[%s6565_s26 + $0x920] sm:$0xff] %v736_v36  ;;  %739 = vst [vmem:[%s6565_s26 + $0x928] sm:$0xff] %v738_v37  ;;  %v740_v38 = vld [vmem:[%s6560_s25 + $0x24c0] sm:$0xff]  ;;  %v742_v39 = vld [vmem:[%s6560_s25 + $0x24c8] sm:$0xff] }
  0xa5   : > { %v744_v40 = vld [vmem:[%s6560_s25 + $0x2500] sm:$0xff]  ;;  %741 = vst [vmem:[%s6565_s26 + $0x930] sm:$0xff] %v740_v38  ;;  %743 = vst [vmem:[%s6565_s26 + $0x938] sm:$0xff] %v742_v39  ;;  %v746_v41 = vld [vmem:[%s6560_s25 + $0x2508] sm:$0xff] }
  0xa6   : > { %745 = vst [vmem:[%s6565_s26 + $0x940] sm:$0xff] %v744_v40  ;;  %v748_v42 = vld [vmem:[%s6560_s25 + $0x2540] sm:$0xff]  ;;  %v750_v43 = vld [vmem:[%s6560_s25 + $0x2548] sm:$0xff]  ;;  %747 = vst [vmem:[%s6565_s26 + $0x948] sm:$0xff] %v746_v41 }
  0xa7   : > { %749 = vst [vmem:[%s6565_s26 + $0x950] sm:$0xff] %v748_v42  ;;  %751 = vst [vmem:[%s6565_s26 + $0x958] sm:$0xff] %v750_v43  ;;  %v752_v44 = vld [vmem:[%s6560_s25 + $0x2580] sm:$0xff]  ;;  %v754_v45 = vld [vmem:[%s6560_s25 + $0x2588] sm:$0xff] }
  0xa8   : > { %v756_v46 = vld [vmem:[%s6560_s25 + $0x25c0] sm:$0xff]  ;;  %753 = vst [vmem:[%s6565_s26 + $0x960] sm:$0xff] %v752_v44  ;;  %755 = vst [vmem:[%s6565_s26 + $0x968] sm:$0xff] %v754_v45  ;;  %v758_v47 = vld [vmem:[%s6560_s25 + $0x25c8] sm:$0xff] }
  0xa9   : > { %757 = vst [vmem:[%s6565_s26 + $0x970] sm:$0xff] %v756_v46  ;;  %v760_v48 = vld [vmem:[%s6560_s25 + $0x2600] sm:$0xff]  ;;  %v762_v49 = vld [vmem:[%s6560_s25 + $0x2608] sm:$0xff]  ;;  %759 = vst [vmem:[%s6565_s26 + $0x978] sm:$0xff] %v758_v47 }
  0xaa   : > { %761 = vst [vmem:[%s6565_s26 + $0x980] sm:$0xff] %v760_v48  ;;  %763 = vst [vmem:[%s6565_s26 + $0x988] sm:$0xff] %v762_v49  ;;  %v764_v50 = vld [vmem:[%s6560_s25 + $0x2640] sm:$0xff]  ;;  %v766_v51 = vld [vmem:[%s6560_s25 + $0x2648] sm:$0xff] }
  0xab   : > { %v768_v52 = vld [vmem:[%s6560_s25 + $0x2680] sm:$0xff]  ;;  %765 = vst [vmem:[%s6565_s26 + $0x990] sm:$0xff] %v764_v50  ;;  %767 = vst [vmem:[%s6565_s26 + $0x998] sm:$0xff] %v766_v51  ;;  %v770_v53 = vld [vmem:[%s6560_s25 + $0x2688] sm:$0xff] }
  0xac   : > { %769 = vst [vmem:[%s6565_s26 + $0x9a0] sm:$0xff] %v768_v52  ;;  %v772_v54 = vld [vmem:[%s6560_s25 + $0x26c0] sm:$0xff]  ;;  %v774_v55 = vld [vmem:[%s6560_s25 + $0x26c8] sm:$0xff]  ;;  %771 = vst [vmem:[%s6565_s26 + $0x9a8] sm:$0xff] %v770_v53 }
  0xad   : > { %773 = vst [vmem:[%s6565_s26 + $0x9b0] sm:$0xff] %v772_v54  ;;  %775 = vst [vmem:[%s6565_s26 + $0x9b8] sm:$0xff] %v774_v55  ;;  %v776_v56 = vld [vmem:[%s6560_s25 + $0x2700] sm:$0xff]  ;;  %v778_v57 = vld [vmem:[%s6560_s25 + $0x2708] sm:$0xff] }
  0xae   : > { %v780_v58 = vld [vmem:[%s6560_s25 + $0x2740] sm:$0xff]  ;;  %777 = vst [vmem:[%s6565_s26 + $0x9c0] sm:$0xff] %v776_v56  ;;  %779 = vst [vmem:[%s6565_s26 + $0x9c8] sm:$0xff] %v778_v57  ;;  %v782_v59 = vld [vmem:[%s6560_s25 + $0x2748] sm:$0xff] }
  0xaf   : > { %781 = vst [vmem:[%s6565_s26 + $0x9d0] sm:$0xff] %v780_v58  ;;  %v784_v60 = vld [vmem:[%s6560_s25 + $0x2780] sm:$0xff]  ;;  %v786_v61 = vld [vmem:[%s6560_s25 + $0x2788] sm:$0xff]  ;;  %783 = vst [vmem:[%s6565_s26 + $0x9d8] sm:$0xff] %v782_v59 }
  0xb0   : > { %785 = vst [vmem:[%s6565_s26 + $0x9e0] sm:$0xff] %v784_v60  ;;  %787 = vst [vmem:[%s6565_s26 + $0x9e8] sm:$0xff] %v786_v61  ;;  %v788_v62 = vld [vmem:[%s6560_s25 + $0x27c0] sm:$0xff]  ;;  %v790_v63 = vld [vmem:[%s6560_s25 + $0x27c8] sm:$0xff] }
  0xb1   : > { %v792_v0 = vld [vmem:[%s6560_s25 + $0x2800] sm:$0xff]  ;;  %789 = vst [vmem:[%s6565_s26 + $0x9f0] sm:$0xff] %v788_v62  ;;  %791 = vst [vmem:[%s6565_s26 + $0x9f8] sm:$0xff] %v790_v63  ;;  %v794_v1 = vld [vmem:[%s6560_s25 + $0x2808] sm:$0xff] }
  0xb2   : > { %793 = vst [vmem:[%s6565_s26 + $0xa00] sm:$0xff] %v792_v0  ;;  %v796_v2 = vld [vmem:[%s6560_s25 + $0x2840] sm:$0xff]  ;;  %v798_v3 = vld [vmem:[%s6560_s25 + $0x2848] sm:$0xff]  ;;  %795 = vst [vmem:[%s6565_s26 + $0xa08] sm:$0xff] %v794_v1 }
  0xb3   : > { %797 = vst [vmem:[%s6565_s26 + $0xa10] sm:$0xff] %v796_v2  ;;  %799 = vst [vmem:[%s6565_s26 + $0xa18] sm:$0xff] %v798_v3  ;;  %v800_v4 = vld [vmem:[%s6560_s25 + $0x2880] sm:$0xff]  ;;  %v802_v5 = vld [vmem:[%s6560_s25 + $0x2888] sm:$0xff] }
  0xb4   : > { %v804_v6 = vld [vmem:[%s6560_s25 + $0x28c0] sm:$0xff]  ;;  %801 = vst [vmem:[%s6565_s26 + $0xa20] sm:$0xff] %v800_v4  ;;  %803 = vst [vmem:[%s6565_s26 + $0xa28] sm:$0xff] %v802_v5  ;;  %v806_v7 = vld [vmem:[%s6560_s25 + $0x28c8] sm:$0xff] }
  0xb5   : > { %805 = vst [vmem:[%s6565_s26 + $0xa30] sm:$0xff] %v804_v6  ;;  %v808_v8 = vld [vmem:[%s6560_s25 + $0x2900] sm:$0xff]  ;;  %v810_v9 = vld [vmem:[%s6560_s25 + $0x2908] sm:$0xff]  ;;  %807 = vst [vmem:[%s6565_s26 + $0xa38] sm:$0xff] %v806_v7 }
  0xb6   : > { %809 = vst [vmem:[%s6565_s26 + $0xa40] sm:$0xff] %v808_v8  ;;  %811 = vst [vmem:[%s6565_s26 + $0xa48] sm:$0xff] %v810_v9  ;;  %v812_v10 = vld [vmem:[%s6560_s25 + $0x2940] sm:$0xff]  ;;  %v814_v11 = vld [vmem:[%s6560_s25 + $0x2948] sm:$0xff] }
  0xb7   : > { %v816_v12 = vld [vmem:[%s6560_s25 + $0x2980] sm:$0xff]  ;;  %813 = vst [vmem:[%s6565_s26 + $0xa50] sm:$0xff] %v812_v10  ;;  %815 = vst [vmem:[%s6565_s26 + $0xa58] sm:$0xff] %v814_v11  ;;  %v818_v13 = vld [vmem:[%s6560_s25 + $0x2988] sm:$0xff] }
  0xb8   : > { %817 = vst [vmem:[%s6565_s26 + $0xa60] sm:$0xff] %v816_v12  ;;  %v820_v14 = vld [vmem:[%s6560_s25 + $0x29c0] sm:$0xff]  ;;  %v822_v15 = vld [vmem:[%s6560_s25 + $0x29c8] sm:$0xff]  ;;  %819 = vst [vmem:[%s6565_s26 + $0xa68] sm:$0xff] %v818_v13 }
  0xb9   : > { %821 = vst [vmem:[%s6565_s26 + $0xa70] sm:$0xff] %v820_v14  ;;  %823 = vst [vmem:[%s6565_s26 + $0xa78] sm:$0xff] %v822_v15  ;;  %v824_v16 = vld [vmem:[%s6560_s25 + $0x2a00] sm:$0xff]  ;;  %v826_v17 = vld [vmem:[%s6560_s25 + $0x2a08] sm:$0xff] }
  0xba   : > { %v828_v18 = vld [vmem:[%s6560_s25 + $0x2a40] sm:$0xff]  ;;  %825 = vst [vmem:[%s6565_s26 + $0xa80] sm:$0xff] %v824_v16  ;;  %827 = vst [vmem:[%s6565_s26 + $0xa88] sm:$0xff] %v826_v17  ;;  %v830_v19 = vld [vmem:[%s6560_s25 + $0x2a48] sm:$0xff] }
  0xbb   : > { %829 = vst [vmem:[%s6565_s26 + $0xa90] sm:$0xff] %v828_v18  ;;  %v832_v20 = vld [vmem:[%s6560_s25 + $0x2a80] sm:$0xff]  ;;  %v834_v21 = vld [vmem:[%s6560_s25 + $0x2a88] sm:$0xff]  ;;  %831 = vst [vmem:[%s6565_s26 + $0xa98] sm:$0xff] %v830_v19 }
  0xbc   : > { %833 = vst [vmem:[%s6565_s26 + $0xaa0] sm:$0xff] %v832_v20  ;;  %835 = vst [vmem:[%s6565_s26 + $0xaa8] sm:$0xff] %v834_v21  ;;  %v836_v22 = vld [vmem:[%s6560_s25 + $0x2ac0] sm:$0xff]  ;;  %v838_v23 = vld [vmem:[%s6560_s25 + $0x2ac8] sm:$0xff] }
  0xbd   : > { %v840_v24 = vld [vmem:[%s6560_s25 + $0x2b00] sm:$0xff]  ;;  %837 = vst [vmem:[%s6565_s26 + $0xab0] sm:$0xff] %v836_v22  ;;  %839 = vst [vmem:[%s6565_s26 + $0xab8] sm:$0xff] %v838_v23  ;;  %v842_v25 = vld [vmem:[%s6560_s25 + $0x2b08] sm:$0xff] }
  0xbe   : > { %841 = vst [vmem:[%s6565_s26 + $0xac0] sm:$0xff] %v840_v24  ;;  %v844_v26 = vld [vmem:[%s6560_s25 + $0x2b40] sm:$0xff]  ;;  %v846_v27 = vld [vmem:[%s6560_s25 + $0x2b48] sm:$0xff]  ;;  %843 = vst [vmem:[%s6565_s26 + $0xac8] sm:$0xff] %v842_v25 }
  0xbf   : > { %845 = vst [vmem:[%s6565_s26 + $0xad0] sm:$0xff] %v844_v26  ;;  %847 = vst [vmem:[%s6565_s26 + $0xad8] sm:$0xff] %v846_v27  ;;  %v848_v28 = vld [vmem:[%s6560_s25 + $0x2b80] sm:$0xff]  ;;  %v850_v29 = vld [vmem:[%s6560_s25 + $0x2b88] sm:$0xff] }
  0xc0   : > { %v852_v30 = vld [vmem:[%s6560_s25 + $0x2bc0] sm:$0xff]  ;;  %849 = vst [vmem:[%s6565_s26 + $0xae0] sm:$0xff] %v848_v28  ;;  %851 = vst [vmem:[%s6565_s26 + $0xae8] sm:$0xff] %v850_v29  ;;  %v854_v31 = vld [vmem:[%s6560_s25 + $0x2bc8] sm:$0xff] }
  0xc1   : > { %853 = vst [vmem:[%s6565_s26 + $0xaf0] sm:$0xff] %v852_v30  ;;  %v856_v32 = vld [vmem:[%s6560_s25 + $0x2c00] sm:$0xff]  ;;  %v858_v33 = vld [vmem:[%s6560_s25 + $0x2c08] sm:$0xff]  ;;  %855 = vst [vmem:[%s6565_s26 + $0xaf8] sm:$0xff] %v854_v31 }
  0xc2   : > { %857 = vst [vmem:[%s6565_s26 + $0xb00] sm:$0xff] %v856_v32  ;;  %859 = vst [vmem:[%s6565_s26 + $0xb08] sm:$0xff] %v858_v33  ;;  %v860_v34 = vld [vmem:[%s6560_s25 + $0x2c40] sm:$0xff]  ;;  %v862_v35 = vld [vmem:[%s6560_s25 + $0x2c48] sm:$0xff] }
  0xc3   : > { %v864_v36 = vld [vmem:[%s6560_s25 + $0x2c80] sm:$0xff]  ;;  %861 = vst [vmem:[%s6565_s26 + $0xb10] sm:$0xff] %v860_v34  ;;  %863 = vst [vmem:[%s6565_s26 + $0xb18] sm:$0xff] %v862_v35  ;;  %v866_v37 = vld [vmem:[%s6560_s25 + $0x2c88] sm:$0xff] }
  0xc4   : > { %865 = vst [vmem:[%s6565_s26 + $0xb20] sm:$0xff] %v864_v36  ;;  %v868_v38 = vld [vmem:[%s6560_s25 + $0x2cc0] sm:$0xff]  ;;  %v870_v39 = vld [vmem:[%s6560_s25 + $0x2cc8] sm:$0xff]  ;;  %867 = vst [vmem:[%s6565_s26 + $0xb28] sm:$0xff] %v866_v37 }
  0xc5   : > { %869 = vst [vmem:[%s6565_s26 + $0xb30] sm:$0xff] %v868_v38  ;;  %871 = vst [vmem:[%s6565_s26 + $0xb38] sm:$0xff] %v870_v39  ;;  %v872_v40 = vld [vmem:[%s6560_s25 + $0x2d00] sm:$0xff]  ;;  %v874_v41 = vld [vmem:[%s6560_s25 + $0x2d08] sm:$0xff] }
  0xc6   : > { %v876_v42 = vld [vmem:[%s6560_s25 + $0x2d40] sm:$0xff]  ;;  %873 = vst [vmem:[%s6565_s26 + $0xb40] sm:$0xff] %v872_v40  ;;  %875 = vst [vmem:[%s6565_s26 + $0xb48] sm:$0xff] %v874_v41  ;;  %v878_v43 = vld [vmem:[%s6560_s25 + $0x2d48] sm:$0xff] }
  0xc7   : > { %877 = vst [vmem:[%s6565_s26 + $0xb50] sm:$0xff] %v876_v42  ;;  %v880_v44 = vld [vmem:[%s6560_s25 + $0x2d80] sm:$0xff]  ;;  %v882_v45 = vld [vmem:[%s6560_s25 + $0x2d88] sm:$0xff]  ;;  %879 = vst [vmem:[%s6565_s26 + $0xb58] sm:$0xff] %v878_v43 }
  0xc8   : > { %881 = vst [vmem:[%s6565_s26 + $0xb60] sm:$0xff] %v880_v44  ;;  %883 = vst [vmem:[%s6565_s26 + $0xb68] sm:$0xff] %v882_v45  ;;  %v884_v46 = vld [vmem:[%s6560_s25 + $0x2dc0] sm:$0xff]  ;;  %v886_v47 = vld [vmem:[%s6560_s25 + $0x2dc8] sm:$0xff] }
  0xc9   : > { %v888_v48 = vld [vmem:[%s6560_s25 + $0x2e00] sm:$0xff]  ;;  %885 = vst [vmem:[%s6565_s26 + $0xb70] sm:$0xff] %v884_v46  ;;  %887 = vst [vmem:[%s6565_s26 + $0xb78] sm:$0xff] %v886_v47  ;;  %v890_v49 = vld [vmem:[%s6560_s25 + $0x2e08] sm:$0xff] }
  0xca   : > { %889 = vst [vmem:[%s6565_s26 + $0xb80] sm:$0xff] %v888_v48  ;;  %v892_v50 = vld [vmem:[%s6560_s25 + $0x2e40] sm:$0xff]  ;;  %v894_v51 = vld [vmem:[%s6560_s25 + $0x2e48] sm:$0xff]  ;;  %891 = vst [vmem:[%s6565_s26 + $0xb88] sm:$0xff] %v890_v49 }
  0xcb   : > { %893 = vst [vmem:[%s6565_s26 + $0xb90] sm:$0xff] %v892_v50  ;;  %895 = vst [vmem:[%s6565_s26 + $0xb98] sm:$0xff] %v894_v51  ;;  %v896_v52 = vld [vmem:[%s6560_s25 + $0x2e80] sm:$0xff]  ;;  %v898_v53 = vld [vmem:[%s6560_s25 + $0x2e88] sm:$0xff] }
  0xcc   : > { %v900_v54 = vld [vmem:[%s6560_s25 + $0x2ec0] sm:$0xff]  ;;  %897 = vst [vmem:[%s6565_s26 + $0xba0] sm:$0xff] %v896_v52  ;;  %899 = vst [vmem:[%s6565_s26 + $0xba8] sm:$0xff] %v898_v53  ;;  %v902_v55 = vld [vmem:[%s6560_s25 + $0x2ec8] sm:$0xff] }
  0xcd   : > { %901 = vst [vmem:[%s6565_s26 + $0xbb0] sm:$0xff] %v900_v54  ;;  %v904_v56 = vld [vmem:[%s6560_s25 + $0x2f00] sm:$0xff]  ;;  %v906_v57 = vld [vmem:[%s6560_s25 + $0x2f08] sm:$0xff]  ;;  %903 = vst [vmem:[%s6565_s26 + $0xbb8] sm:$0xff] %v902_v55 }
  0xce   : > { %905 = vst [vmem:[%s6565_s26 + $0xbc0] sm:$0xff] %v904_v56  ;;  %907 = vst [vmem:[%s6565_s26 + $0xbc8] sm:$0xff] %v906_v57  ;;  %v908_v58 = vld [vmem:[%s6560_s25 + $0x2f40] sm:$0xff]  ;;  %v910_v59 = vld [vmem:[%s6560_s25 + $0x2f48] sm:$0xff] }
  0xcf   : > { %v912_v60 = vld [vmem:[%s6560_s25 + $0x2f80] sm:$0xff]  ;;  %909 = vst [vmem:[%s6565_s26 + $0xbd0] sm:$0xff] %v908_v58  ;;  %911 = vst [vmem:[%s6565_s26 + $0xbd8] sm:$0xff] %v910_v59  ;;  %v914_v61 = vld [vmem:[%s6560_s25 + $0x2f88] sm:$0xff] }
  0xd0   : > { %913 = vst [vmem:[%s6565_s26 + $0xbe0] sm:$0xff] %v912_v60  ;;  %v916_v62 = vld [vmem:[%s6560_s25 + $0x2fc0] sm:$0xff]  ;;  %v918_v63 = vld [vmem:[%s6560_s25 + $0x2fc8] sm:$0xff]  ;;  %915 = vst [vmem:[%s6565_s26 + $0xbe8] sm:$0xff] %v914_v61 }
  0xd1   : > { %917 = vst [vmem:[%s6565_s26 + $0xbf0] sm:$0xff] %v916_v62  ;;  %919 = vst [vmem:[%s6565_s26 + $0xbf8] sm:$0xff] %v918_v63  ;;  %v920_v0 = vld [vmem:[%s6560_s25 + $0x3000] sm:$0xff]  ;;  %v922_v1 = vld [vmem:[%s6560_s25 + $0x3008] sm:$0xff] }
  0xd2   : > { %v924_v2 = vld [vmem:[%s6560_s25 + $0x3040] sm:$0xff]  ;;  %921 = vst [vmem:[%s6565_s26 + $0xc00] sm:$0xff] %v920_v0  ;;  %923 = vst [vmem:[%s6565_s26 + $0xc08] sm:$0xff] %v922_v1  ;;  %v926_v3 = vld [vmem:[%s6560_s25 + $0x3048] sm:$0xff] }
  0xd3   : > { %925 = vst [vmem:[%s6565_s26 + $0xc10] sm:$0xff] %v924_v2  ;;  %v928_v4 = vld [vmem:[%s6560_s25 + $0x3080] sm:$0xff]  ;;  %v930_v5 = vld [vmem:[%s6560_s25 + $0x3088] sm:$0xff]  ;;  %927 = vst [vmem:[%s6565_s26 + $0xc18] sm:$0xff] %v926_v3 }
  0xd4   : > { %929 = vst [vmem:[%s6565_s26 + $0xc20] sm:$0xff] %v928_v4  ;;  %931 = vst [vmem:[%s6565_s26 + $0xc28] sm:$0xff] %v930_v5  ;;  %v932_v6 = vld [vmem:[%s6560_s25 + $0x30c0] sm:$0xff]  ;;  %v934_v7 = vld [vmem:[%s6560_s25 + $0x30c8] sm:$0xff] }
  0xd5   : > { %v936_v8 = vld [vmem:[%s6560_s25 + $0x3100] sm:$0xff]  ;;  %933 = vst [vmem:[%s6565_s26 + $0xc30] sm:$0xff] %v932_v6  ;;  %935 = vst [vmem:[%s6565_s26 + $0xc38] sm:$0xff] %v934_v7  ;;  %v938_v9 = vld [vmem:[%s6560_s25 + $0x3108] sm:$0xff] }
  0xd6   : > { %937 = vst [vmem:[%s6565_s26 + $0xc40] sm:$0xff] %v936_v8  ;;  %v940_v10 = vld [vmem:[%s6560_s25 + $0x3140] sm:$0xff]  ;;  %v942_v11 = vld [vmem:[%s6560_s25 + $0x3148] sm:$0xff]  ;;  %939 = vst [vmem:[%s6565_s26 + $0xc48] sm:$0xff] %v938_v9 }
  0xd7   : > { %941 = vst [vmem:[%s6565_s26 + $0xc50] sm:$0xff] %v940_v10  ;;  %943 = vst [vmem:[%s6565_s26 + $0xc58] sm:$0xff] %v942_v11  ;;  %v944_v12 = vld [vmem:[%s6560_s25 + $0x3180] sm:$0xff]  ;;  %v946_v13 = vld [vmem:[%s6560_s25 + $0x3188] sm:$0xff] }
  0xd8   : > { %v948_v14 = vld [vmem:[%s6560_s25 + $0x31c0] sm:$0xff]  ;;  %945 = vst [vmem:[%s6565_s26 + $0xc60] sm:$0xff] %v944_v12  ;;  %947 = vst [vmem:[%s6565_s26 + $0xc68] sm:$0xff] %v946_v13  ;;  %v950_v15 = vld [vmem:[%s6560_s25 + $0x31c8] sm:$0xff] }
  0xd9   : > { %949 = vst [vmem:[%s6565_s26 + $0xc70] sm:$0xff] %v948_v14  ;;  %v952_v16 = vld [vmem:[%s6560_s25 + $0x3200] sm:$0xff]  ;;  %v954_v17 = vld [vmem:[%s6560_s25 + $0x3208] sm:$0xff]  ;;  %951 = vst [vmem:[%s6565_s26 + $0xc78] sm:$0xff] %v950_v15 }
  0xda   : > { %953 = vst [vmem:[%s6565_s26 + $0xc80] sm:$0xff] %v952_v16  ;;  %955 = vst [vmem:[%s6565_s26 + $0xc88] sm:$0xff] %v954_v17  ;;  %v956_v18 = vld [vmem:[%s6560_s25 + $0x3240] sm:$0xff]  ;;  %v958_v19 = vld [vmem:[%s6560_s25 + $0x3248] sm:$0xff] }
  0xdb   : > { %v960_v20 = vld [vmem:[%s6560_s25 + $0x3280] sm:$0xff]  ;;  %957 = vst [vmem:[%s6565_s26 + $0xc90] sm:$0xff] %v956_v18  ;;  %959 = vst [vmem:[%s6565_s26 + $0xc98] sm:$0xff] %v958_v19  ;;  %v962_v21 = vld [vmem:[%s6560_s25 + $0x3288] sm:$0xff] }
  0xdc   : > { %961 = vst [vmem:[%s6565_s26 + $0xca0] sm:$0xff] %v960_v20  ;;  %v964_v22 = vld [vmem:[%s6560_s25 + $0x32c0] sm:$0xff]  ;;  %v966_v23 = vld [vmem:[%s6560_s25 + $0x32c8] sm:$0xff]  ;;  %963 = vst [vmem:[%s6565_s26 + $0xca8] sm:$0xff] %v962_v21 }
  0xdd   : > { %965 = vst [vmem:[%s6565_s26 + $0xcb0] sm:$0xff] %v964_v22  ;;  %967 = vst [vmem:[%s6565_s26 + $0xcb8] sm:$0xff] %v966_v23  ;;  %v968_v24 = vld [vmem:[%s6560_s25 + $0x3300] sm:$0xff]  ;;  %v970_v25 = vld [vmem:[%s6560_s25 + $0x3308] sm:$0xff] }
  0xde   : > { %v972_v26 = vld [vmem:[%s6560_s25 + $0x3340] sm:$0xff]  ;;  %969 = vst [vmem:[%s6565_s26 + $0xcc0] sm:$0xff] %v968_v24  ;;  %971 = vst [vmem:[%s6565_s26 + $0xcc8] sm:$0xff] %v970_v25  ;;  %v974_v27 = vld [vmem:[%s6560_s25 + $0x3348] sm:$0xff] }
  0xdf   : > { %973 = vst [vmem:[%s6565_s26 + $0xcd0] sm:$0xff] %v972_v26  ;;  %v976_v28 = vld [vmem:[%s6560_s25 + $0x3380] sm:$0xff]  ;;  %v978_v29 = vld [vmem:[%s6560_s25 + $0x3388] sm:$0xff]  ;;  %975 = vst [vmem:[%s6565_s26 + $0xcd8] sm:$0xff] %v974_v27 }
  0xe0   : > { %977 = vst [vmem:[%s6565_s26 + $0xce0] sm:$0xff] %v976_v28  ;;  %979 = vst [vmem:[%s6565_s26 + $0xce8] sm:$0xff] %v978_v29  ;;  %v980_v30 = vld [vmem:[%s6560_s25 + $0x33c0] sm:$0xff]  ;;  %v982_v31 = vld [vmem:[%s6560_s25 + $0x33c8] sm:$0xff] }
  0xe1   : > { %v984_v32 = vld [vmem:[%s6560_s25 + $0x3400] sm:$0xff]  ;;  %981 = vst [vmem:[%s6565_s26 + $0xcf0] sm:$0xff] %v980_v30  ;;  %983 = vst [vmem:[%s6565_s26 + $0xcf8] sm:$0xff] %v982_v31  ;;  %v986_v33 = vld [vmem:[%s6560_s25 + $0x3408] sm:$0xff] }
  0xe2   : > { %985 = vst [vmem:[%s6565_s26 + $0xd00] sm:$0xff] %v984_v32  ;;  %v988_v34 = vld [vmem:[%s6560_s25 + $0x3440] sm:$0xff]  ;;  %v990_v35 = vld [vmem:[%s6560_s25 + $0x3448] sm:$0xff]  ;;  %987 = vst [vmem:[%s6565_s26 + $0xd08] sm:$0xff] %v986_v33 }
  0xe3   : > { %989 = vst [vmem:[%s6565_s26 + $0xd10] sm:$0xff] %v988_v34  ;;  %991 = vst [vmem:[%s6565_s26 + $0xd18] sm:$0xff] %v990_v35  ;;  %v992_v36 = vld [vmem:[%s6560_s25 + $0x3480] sm:$0xff]  ;;  %v994_v37 = vld [vmem:[%s6560_s25 + $0x3488] sm:$0xff] }
  0xe4   : > { %v996_v38 = vld [vmem:[%s6560_s25 + $0x34c0] sm:$0xff]  ;;  %993 = vst [vmem:[%s6565_s26 + $0xd20] sm:$0xff] %v992_v36  ;;  %995 = vst [vmem:[%s6565_s26 + $0xd28] sm:$0xff] %v994_v37  ;;  %v998_v39 = vld [vmem:[%s6560_s25 + $0x34c8] sm:$0xff] }
  0xe5   : > { %997 = vst [vmem:[%s6565_s26 + $0xd30] sm:$0xff] %v996_v38  ;;  %v1000_v40 = vld [vmem:[%s6560_s25 + $0x3500] sm:$0xff]  ;;  %v1002_v41 = vld [vmem:[%s6560_s25 + $0x3508] sm:$0xff]  ;;  %999 = vst [vmem:[%s6565_s26 + $0xd38] sm:$0xff] %v998_v39 }
  0xe6   : > { %1001 = vst [vmem:[%s6565_s26 + $0xd40] sm:$0xff] %v1000_v40  ;;  %1003 = vst [vmem:[%s6565_s26 + $0xd48] sm:$0xff] %v1002_v41  ;;  %v1004_v42 = vld [vmem:[%s6560_s25 + $0x3540] sm:$0xff]  ;;  %v1006_v43 = vld [vmem:[%s6560_s25 + $0x3548] sm:$0xff] }
  0xe7   : > { %v1008_v44 = vld [vmem:[%s6560_s25 + $0x3580] sm:$0xff]  ;;  %1005 = vst [vmem:[%s6565_s26 + $0xd50] sm:$0xff] %v1004_v42  ;;  %1007 = vst [vmem:[%s6565_s26 + $0xd58] sm:$0xff] %v1006_v43  ;;  %v1010_v45 = vld [vmem:[%s6560_s25 + $0x3588] sm:$0xff] }
  0xe8   : > { %1009 = vst [vmem:[%s6565_s26 + $0xd60] sm:$0xff] %v1008_v44  ;;  %v1012_v46 = vld [vmem:[%s6560_s25 + $0x35c0] sm:$0xff]  ;;  %v1014_v47 = vld [vmem:[%s6560_s25 + $0x35c8] sm:$0xff]  ;;  %1011 = vst [vmem:[%s6565_s26 + $0xd68] sm:$0xff] %v1010_v45 }
  0xe9   : > { %1013 = vst [vmem:[%s6565_s26 + $0xd70] sm:$0xff] %v1012_v46  ;;  %1015 = vst [vmem:[%s6565_s26 + $0xd78] sm:$0xff] %v1014_v47  ;;  %v1016_v48 = vld [vmem:[%s6560_s25 + $0x3600] sm:$0xff]  ;;  %v1018_v49 = vld [vmem:[%s6560_s25 + $0x3608] sm:$0xff] }
  0xea   : > { %v1020_v50 = vld [vmem:[%s6560_s25 + $0x3640] sm:$0xff]  ;;  %1017 = vst [vmem:[%s6565_s26 + $0xd80] sm:$0xff] %v1016_v48  ;;  %1019 = vst [vmem:[%s6565_s26 + $0xd88] sm:$0xff] %v1018_v49  ;;  %v1022_v51 = vld [vmem:[%s6560_s25 + $0x3648] sm:$0xff] }
  0xeb   : > { %1021 = vst [vmem:[%s6565_s26 + $0xd90] sm:$0xff] %v1020_v50  ;;  %v1024_v52 = vld [vmem:[%s6560_s25 + $0x3680] sm:$0xff]  ;;  %v1026_v53 = vld [vmem:[%s6560_s25 + $0x3688] sm:$0xff]  ;;  %1023 = vst [vmem:[%s6565_s26 + $0xd98] sm:$0xff] %v1022_v51 }
  0xec   : > { %1025 = vst [vmem:[%s6565_s26 + $0xda0] sm:$0xff] %v1024_v52  ;;  %1027 = vst [vmem:[%s6565_s26 + $0xda8] sm:$0xff] %v1026_v53  ;;  %v1028_v54 = vld [vmem:[%s6560_s25 + $0x36c0] sm:$0xff]  ;;  %v1030_v55 = vld [vmem:[%s6560_s25 + $0x36c8] sm:$0xff] }
  0xed   : > { %v1032_v56 = vld [vmem:[%s6560_s25 + $0x3700] sm:$0xff]  ;;  %1029 = vst [vmem:[%s6565_s26 + $0xdb0] sm:$0xff] %v1028_v54  ;;  %1031 = vst [vmem:[%s6565_s26 + $0xdb8] sm:$0xff] %v1030_v55  ;;  %v1034_v57 = vld [vmem:[%s6560_s25 + $0x3708] sm:$0xff] }
  0xee   : > { %1033 = vst [vmem:[%s6565_s26 + $0xdc0] sm:$0xff] %v1032_v56  ;;  %v1036_v58 = vld [vmem:[%s6560_s25 + $0x3740] sm:$0xff]  ;;  %v1038_v59 = vld [vmem:[%s6560_s25 + $0x3748] sm:$0xff]  ;;  %1035 = vst [vmem:[%s6565_s26 + $0xdc8] sm:$0xff] %v1034_v57 }
  0xef   : > { %1037 = vst [vmem:[%s6565_s26 + $0xdd0] sm:$0xff] %v1036_v58  ;;  %1039 = vst [vmem:[%s6565_s26 + $0xdd8] sm:$0xff] %v1038_v59  ;;  %v1040_v60 = vld [vmem:[%s6560_s25 + $0x3780] sm:$0xff]  ;;  %v1042_v61 = vld [vmem:[%s6560_s25 + $0x3788] sm:$0xff] }
  0xf0   : > { %v1044_v62 = vld [vmem:[%s6560_s25 + $0x37c0] sm:$0xff]  ;;  %1041 = vst [vmem:[%s6565_s26 + $0xde0] sm:$0xff] %v1040_v60  ;;  %1043 = vst [vmem:[%s6565_s26 + $0xde8] sm:$0xff] %v1042_v61  ;;  %v1046_v63 = vld [vmem:[%s6560_s25 + $0x37c8] sm:$0xff] }
  0xf1   : > { %1045 = vst [vmem:[%s6565_s26 + $0xdf0] sm:$0xff] %v1044_v62  ;;  %v1048_v0 = vld [vmem:[%s6560_s25 + $0x3800] sm:$0xff]  ;;  %v1050_v1 = vld [vmem:[%s6560_s25 + $0x3808] sm:$0xff]  ;;  %1047 = vst [vmem:[%s6565_s26 + $0xdf8] sm:$0xff] %v1046_v63 }
  0xf2   : > { %1049 = vst [vmem:[%s6565_s26 + $0xe00] sm:$0xff] %v1048_v0  ;;  %1051 = vst [vmem:[%s6565_s26 + $0xe08] sm:$0xff] %v1050_v1  ;;  %v1052_v2 = vld [vmem:[%s6560_s25 + $0x3840] sm:$0xff]  ;;  %v1054_v3 = vld [vmem:[%s6560_s25 + $0x3848] sm:$0xff] }
  0xf3   : > { %v1056_v4 = vld [vmem:[%s6560_s25 + $0x3880] sm:$0xff]  ;;  %1053 = vst [vmem:[%s6565_s26 + $0xe10] sm:$0xff] %v1052_v2  ;;  %1055 = vst [vmem:[%s6565_s26 + $0xe18] sm:$0xff] %v1054_v3  ;;  %v1058_v5 = vld [vmem:[%s6560_s25 + $0x3888] sm:$0xff] }
  0xf4   : > { %1057 = vst [vmem:[%s6565_s26 + $0xe20] sm:$0xff] %v1056_v4  ;;  %v1060_v6 = vld [vmem:[%s6560_s25 + $0x38c0] sm:$0xff]  ;;  %v1062_v7 = vld [vmem:[%s6560_s25 + $0x38c8] sm:$0xff]  ;;  %1059 = vst [vmem:[%s6565_s26 + $0xe28] sm:$0xff] %v1058_v5 }
  0xf5   : > { %1061 = vst [vmem:[%s6565_s26 + $0xe30] sm:$0xff] %v1060_v6  ;;  %1063 = vst [vmem:[%s6565_s26 + $0xe38] sm:$0xff] %v1062_v7  ;;  %v1064_v8 = vld [vmem:[%s6560_s25 + $0x3900] sm:$0xff]  ;;  %v1066_v9 = vld [vmem:[%s6560_s25 + $0x3908] sm:$0xff] }
  0xf6   : > { %v1068_v10 = vld [vmem:[%s6560_s25 + $0x3940] sm:$0xff]  ;;  %1065 = vst [vmem:[%s6565_s26 + $0xe40] sm:$0xff] %v1064_v8  ;;  %1067 = vst [vmem:[%s6565_s26 + $0xe48] sm:$0xff] %v1066_v9  ;;  %v1070_v11 = vld [vmem:[%s6560_s25 + $0x3948] sm:$0xff] }
  0xf7   : > { %1069 = vst [vmem:[%s6565_s26 + $0xe50] sm:$0xff] %v1068_v10  ;;  %v1072_v12 = vld [vmem:[%s6560_s25 + $0x3980] sm:$0xff]  ;;  %v1074_v13 = vld [vmem:[%s6560_s25 + $0x3988] sm:$0xff]  ;;  %1071 = vst [vmem:[%s6565_s26 + $0xe58] sm:$0xff] %v1070_v11 }
  0xf8   : > { %1073 = vst [vmem:[%s6565_s26 + $0xe60] sm:$0xff] %v1072_v12  ;;  %1075 = vst [vmem:[%s6565_s26 + $0xe68] sm:$0xff] %v1074_v13  ;;  %v1076_v14 = vld [vmem:[%s6560_s25 + $0x39c0] sm:$0xff]  ;;  %v1078_v15 = vld [vmem:[%s6560_s25 + $0x39c8] sm:$0xff] }
  0xf9   : > { %v1080_v16 = vld [vmem:[%s6560_s25 + $0x3a00] sm:$0xff]  ;;  %1077 = vst [vmem:[%s6565_s26 + $0xe70] sm:$0xff] %v1076_v14  ;;  %1079 = vst [vmem:[%s6565_s26 + $0xe78] sm:$0xff] %v1078_v15  ;;  %v1082_v17 = vld [vmem:[%s6560_s25 + $0x3a08] sm:$0xff] }
  0xfa   : > { %1081 = vst [vmem:[%s6565_s26 + $0xe80] sm:$0xff] %v1080_v16  ;;  %v1084_v18 = vld [vmem:[%s6560_s25 + $0x3a40] sm:$0xff]  ;;  %v1086_v19 = vld [vmem:[%s6560_s25 + $0x3a48] sm:$0xff]  ;;  %1083 = vst [vmem:[%s6565_s26 + $0xe88] sm:$0xff] %v1082_v17 }
  0xfb   : > { %1085 = vst [vmem:[%s6565_s26 + $0xe90] sm:$0xff] %v1084_v18  ;;  %1087 = vst [vmem:[%s6565_s26 + $0xe98] sm:$0xff] %v1086_v19  ;;  %v1088_v20 = vld [vmem:[%s6560_s25 + $0x3a80] sm:$0xff]  ;;  %v1090_v21 = vld [vmem:[%s6560_s25 + $0x3a88] sm:$0xff] }
  0xfc   : > { %v1092_v22 = vld [vmem:[%s6560_s25 + $0x3ac0] sm:$0xff]  ;;  %1089 = vst [vmem:[%s6565_s26 + $0xea0] sm:$0xff] %v1088_v20  ;;  %1091 = vst [vmem:[%s6565_s26 + $0xea8] sm:$0xff] %v1090_v21  ;;  %v1094_v23 = vld [vmem:[%s6560_s25 + $0x3ac8] sm:$0xff] }
  0xfd   : > { %1093 = vst [vmem:[%s6565_s26 + $0xeb0] sm:$0xff] %v1092_v22  ;;  %v1096_v24 = vld [vmem:[%s6560_s25 + $0x3b00] sm:$0xff]  ;;  %v1098_v25 = vld [vmem:[%s6560_s25 + $0x3b08] sm:$0xff]  ;;  %1095 = vst [vmem:[%s6565_s26 + $0xeb8] sm:$0xff] %v1094_v23 }
  0xfe   : > { %1097 = vst [vmem:[%s6565_s26 + $0xec0] sm:$0xff] %v1096_v24  ;;  %1099 = vst [vmem:[%s6565_s26 + $0xec8] sm:$0xff] %v1098_v25  ;;  %v1100_v26 = vld [vmem:[%s6560_s25 + $0x3b40] sm:$0xff]  ;;  %v1102_v27 = vld [vmem:[%s6560_s25 + $0x3b48] sm:$0xff] }
  0xff   : > { %v1104_v28 = vld [vmem:[%s6560_s25 + $0x3b80] sm:$0xff]  ;;  %1101 = vst [vmem:[%s6565_s26 + $0xed0] sm:$0xff] %v1100_v26  ;;  %1103 = vst [vmem:[%s6565_s26 + $0xed8] sm:$0xff] %v1102_v27  ;;  %v1106_v29 = vld [vmem:[%s6560_s25 + $0x3b88] sm:$0xff] }
 0x100   : > { %1105 = vst [vmem:[%s6565_s26 + $0xee0] sm:$0xff] %v1104_v28  ;;  %v1108_v30 = vld [vmem:[%s6560_s25 + $0x3bc0] sm:$0xff]  ;;  %v1110_v31 = vld [vmem:[%s6560_s25 + $0x3bc8] sm:$0xff]  ;;  %1107 = vst [vmem:[%s6565_s26 + $0xee8] sm:$0xff] %v1106_v29 }
 0x101   : > { %1109 = vst [vmem:[%s6565_s26 + $0xef0] sm:$0xff] %v1108_v30  ;;  %1111 = vst [vmem:[%s6565_s26 + $0xef8] sm:$0xff] %v1110_v31  ;;  %v1112_v32 = vld [vmem:[%s6560_s25 + $0x3c00] sm:$0xff]  ;;  %v1114_v33 = vld [vmem:[%s6560_s25 + $0x3c08] sm:$0xff] }
 0x102   : > { %v1116_v34 = vld [vmem:[%s6560_s25 + $0x3c40] sm:$0xff]  ;;  %1113 = vst [vmem:[%s6565_s26 + $0xf00] sm:$0xff] %v1112_v32  ;;  %1115 = vst [vmem:[%s6565_s26 + $0xf08] sm:$0xff] %v1114_v33  ;;  %v1118_v35 = vld [vmem:[%s6560_s25 + $0x3c48] sm:$0xff] }
 0x103   : > { %1117 = vst [vmem:[%s6565_s26 + $0xf10] sm:$0xff] %v1116_v34  ;;  %v1120_v36 = vld [vmem:[%s6560_s25 + $0x3c80] sm:$0xff]  ;;  %v1122_v37 = vld [vmem:[%s6560_s25 + $0x3c88] sm:$0xff]  ;;  %1119 = vst [vmem:[%s6565_s26 + $0xf18] sm:$0xff] %v1118_v35 }
 0x104   : > { %1121 = vst [vmem:[%s6565_s26 + $0xf20] sm:$0xff] %v1120_v36  ;;  %1123 = vst [vmem:[%s6565_s26 + $0xf28] sm:$0xff] %v1122_v37  ;;  %v1124_v38 = vld [vmem:[%s6560_s25 + $0x3cc0] sm:$0xff]  ;;  %v1126_v39 = vld [vmem:[%s6560_s25 + $0x3cc8] sm:$0xff] }
 0x105   : > { %v1128_v40 = vld [vmem:[%s6560_s25 + $0x3d00] sm:$0xff]  ;;  %1125 = vst [vmem:[%s6565_s26 + $0xf30] sm:$0xff] %v1124_v38  ;;  %1127 = vst [vmem:[%s6565_s26 + $0xf38] sm:$0xff] %v1126_v39  ;;  %v1130_v41 = vld [vmem:[%s6560_s25 + $0x3d08] sm:$0xff] }
 0x106   : > { %1129 = vst [vmem:[%s6565_s26 + $0xf40] sm:$0xff] %v1128_v40  ;;  %v1132_v42 = vld [vmem:[%s6560_s25 + $0x3d40] sm:$0xff]  ;;  %v1134_v43 = vld [vmem:[%s6560_s25 + $0x3d48] sm:$0xff]  ;;  %1131 = vst [vmem:[%s6565_s26 + $0xf48] sm:$0xff] %v1130_v41 }
 0x107   : > { %1133 = vst [vmem:[%s6565_s26 + $0xf50] sm:$0xff] %v1132_v42  ;;  %1135 = vst [vmem:[%s6565_s26 + $0xf58] sm:$0xff] %v1134_v43  ;;  %v1136_v44 = vld [vmem:[%s6560_s25 + $0x3d80] sm:$0xff]  ;;  %v1138_v45 = vld [vmem:[%s6560_s25 + $0x3d88] sm:$0xff] }
 0x108   : > { %v1140_v46 = vld [vmem:[%s6560_s25 + $0x3dc0] sm:$0xff]  ;;  %1137 = vst [vmem:[%s6565_s26 + $0xf60] sm:$0xff] %v1136_v44  ;;  %1139 = vst [vmem:[%s6565_s26 + $0xf68] sm:$0xff] %v1138_v45  ;;  %v1142_v47 = vld [vmem:[%s6560_s25 + $0x3dc8] sm:$0xff] }
 0x109   : > { %1141 = vst [vmem:[%s6565_s26 + $0xf70] sm:$0xff] %v1140_v46  ;;  %v1144_v48 = vld [vmem:[%s6560_s25 + $0x3e00] sm:$0xff]  ;;  %v1146_v49 = vld [vmem:[%s6560_s25 + $0x3e08] sm:$0xff]  ;;  %1143 = vst [vmem:[%s6565_s26 + $0xf78] sm:$0xff] %v1142_v47 }
 0x10a   : > { %1145 = vst [vmem:[%s6565_s26 + $0xf80] sm:$0xff] %v1144_v48  ;;  %1147 = vst [vmem:[%s6565_s26 + $0xf88] sm:$0xff] %v1146_v49  ;;  %v1148_v50 = vld [vmem:[%s6560_s25 + $0x3e40] sm:$0xff]  ;;  %v1150_v51 = vld [vmem:[%s6560_s25 + $0x3e48] sm:$0xff] }
 0x10b   : > { %v1152_v52 = vld [vmem:[%s6560_s25 + $0x3e80] sm:$0xff]  ;;  %1149 = vst [vmem:[%s6565_s26 + $0xf90] sm:$0xff] %v1148_v50  ;;  %1151 = vst [vmem:[%s6565_s26 + $0xf98] sm:$0xff] %v1150_v51  ;;  %v1154_v53 = vld [vmem:[%s6560_s25 + $0x3e88] sm:$0xff] }
 0x10c   : > { %1153 = vst [vmem:[%s6565_s26 + $0xfa0] sm:$0xff] %v1152_v52  ;;  %v1156_v54 = vld [vmem:[%s6560_s25 + $0x3ec0] sm:$0xff]  ;;  %v1158_v55 = vld [vmem:[%s6560_s25 + $0x3ec8] sm:$0xff]  ;;  %1155 = vst [vmem:[%s6565_s26 + $0xfa8] sm:$0xff] %v1154_v53 }
 0x10d   : > { %1157 = vst [vmem:[%s6565_s26 + $0xfb0] sm:$0xff] %v1156_v54  ;;  %1159 = vst [vmem:[%s6565_s26 + $0xfb8] sm:$0xff] %v1158_v55  ;;  %v1160_v56 = vld [vmem:[%s6560_s25 + $0x3f00] sm:$0xff]  ;;  %v1162_v57 = vld [vmem:[%s6560_s25 + $0x3f08] sm:$0xff] }
 0x10e   : > { %v1164_v58 = vld [vmem:[%s6560_s25 + $0x3f40] sm:$0xff]  ;;  %1161 = vst [vmem:[%s6565_s26 + $0xfc0] sm:$0xff] %v1160_v56  ;;  %1163 = vst [vmem:[%s6565_s26 + $0xfc8] sm:$0xff] %v1162_v57  ;;  %v1166_v59 = vld [vmem:[%s6560_s25 + $0x3f48] sm:$0xff] }
 0x10f   : > { %1165 = vst [vmem:[%s6565_s26 + $0xfd0] sm:$0xff] %v1164_v58  ;;  %v1168_v60 = vld [vmem:[%s6560_s25 + $0x3f80] sm:$0xff]  ;;  %v1170_v61 = vld [vmem:[%s6560_s25 + $0x3f88] sm:$0xff]  ;;  %1167 = vst [vmem:[%s6565_s26 + $0xfd8] sm:$0xff] %v1166_v59 }
 0x110   : > { %1169 = vst [vmem:[%s6565_s26 + $0xfe0] sm:$0xff] %v1168_v60  ;;  %1171 = vst [vmem:[%s6565_s26 + $0xfe8] sm:$0xff] %v1170_v61  ;;  %v1172_v62 = vld [vmem:[%s6560_s25 + $0x3fc0] sm:$0xff]  ;;  %v1174_v63 = vld [vmem:[%s6560_s25 + $0x3fc8] sm:$0xff] }
 0x111   : > { %1173 = vst [vmem:[%s6565_s26 + $0xff0] sm:$0xff] %v1172_v62  ;;  %1175 = vst [vmem:[%s6565_s26 + $0xff8] sm:$0xff] %v1174_v63 }
 0x112 PF: > { %p5102_p5 = scmp.ge.s32.totalorder %s6504_s14, 1  ;;  %p1188_p6 = scmp.lt.s32.totalorder %s6504_s14, 5 }
 0x114   : > { %p1189_p7 = pnand %p5102_p5, %p1188_p6 }
 0x115   : > { %s1195_s27 = sand.u32 (!%p1189_p7), 1, %s6496_s12   ;;  %v1235_v0 = vld [vmem:[%s8175_s0 + $0x8] sm:$0xff] (!%p1189_p7)  ;;  %s5104_s18 = sshll.u32 (!%p1189_p7), %s5095_s15, 2 }
 0x116   : > { %1192 = sbr.rel (%p1189_p7) target bundleno = 1022 (0x3fe), region = 51  ;;  %s5103_s30 = sshll.u32 (!%p1189_p7), %s1195_s27, 12  ;;  %v1251_v1 = vpack.c.bf16 (!%p1189_p7), %v1235_v0, %v1235_v0  ;;  %v1234_v0 = vld [vmem:[%s8175_s0] sm:$0xff] (!%p1189_p7) }
 0x117   : > { %s7594_s4 = scalar_lea.vmem (!%p1189_p7), [#allocation2], %s5103_s30  ;;  %p1224_p8 = scmp.lt.s32.totalorder (!%p1189_p7), %s5104_s18, 15 }
 0x118   : > { %v5706_v2 = vld [vmem:[%s7594_s4 + $0x4] ss:$16 sps:$4 sm:$0xff] (!%p1189_p7)   ;;  %4392 = vmatprep.mubr.bf16.mxu0 (!%p1189_p7), %v1251_v1  ;;  %4720 = vmatprep.mubr.bf16.mxu1 (!%p1189_p7), %v1251_v1  ;;  %v5708_v3 = vld [vmem:[%s7594_s4 + $0xc] ss:$16 sps:$4 sm:$0xff] (!%p1189_p7)   ;;  %v5710_v4 = vld [vmem:[%s7594_s4] ss:$16 sps:$4 sm:$0xff] (!%p1189_p7)  }
 0x119   : > { %4360 = vmatprep.subr.bf16.mxu0 (!%p1189_p7), %v5706_v2  ;;  %v5711_v5 = vld [vmem:[%s7594_s4 + $0x8] ss:$16 sps:$4 sm:$0xff] (!%p1189_p7)   ;;  %4688 = vmatprep.subr.bf16.mxu1 (!%p1189_p7), %v5708_v3  ;;  %v5712_v6 = vld [vmem:[%s7594_s4 + $0x24] ss:$16 sps:$4 sm:$0xff] (!%p1189_p7)   ;;  %v5714_v7 = vld [vmem:[%s7594_s4 + $0x2c] ss:$16 sps:$4 sm:$0xff] (!%p1189_p7)  }
 0x11a   : > { %4361 = vmatpush1.bf16.msra.mxu0 (!%p1189_p7), %v5710_v4  ;;  %4689 = vmatpush1.bf16.msra.mxu1 (!%p1189_p7), %v5711_v5  ;;  %v5716_v8 = vld [vmem:[%s7594_s4 + $0x20] ss:$16 sps:$4 sm:$0xff] (!%p1189_p7)   ;;  %v5717_v9 = vld [vmem:[%s7594_s4 + $0x28] ss:$16 sps:$4 sm:$0xff] (!%p1189_p7)   ;;  %v5718_v10 = vld [vmem:[%s7594_s4 + $0x44] ss:$16 sps:$4 sm:$0xff] (!%p1189_p7)  }
 0x11b   : > { %4362 = vmatprep.subr.bf16.mxu0 (!%p1189_p7), %v5712_v6  ;;  %4690 = vmatprep.subr.bf16.mxu1 (!%p1189_p7), %v5714_v7  ;;  %v5720_v11 = vld [vmem:[%s7594_s4 + $0x4c] ss:$16 sps:$4 sm:$0xff] (!%p1189_p7)   ;;  %v5722_v12 = vld [vmem:[%s7594_s4 + $0x40] ss:$16 sps:$4 sm:$0xff] (!%p1189_p7)   ;;  %v5723_v13 = vld [vmem:[%s7594_s4 + $0x48] ss:$16 sps:$4 sm:$0xff] (!%p1189_p7)   ;;  %v1250_v7 = vpack.c.bf16 (!%p1189_p7), %v1234_v0, %v1234_v0 }
 0x11c   : > { %v5724_v14 = vld [vmem:[%s7594_s4 + $0x64] ss:$16 sps:$4 sm:$0xff] (!%p1189_p7)   ;;  %v5726_v15 = vld [vmem:[%s7594_s4 + $0x6c] ss:$16 sps:$4 sm:$0xff] (!%p1189_p7)   ;;  %v5728_v16 = vld [vmem:[%s7594_s4 + $0x60] ss:$16 sps:$4 sm:$0xff] (!%p1189_p7)  }
 0x11d   : > { %v5729_v17 = vld [vmem:[%s7594_s4 + $0x68] ss:$16 sps:$4 sm:$0xff]   ;;  %v5730_v18 = vld [vmem:[%s7594_s4 + $0x84] ss:$16 sps:$4 sm:$0xff]   ;;  %v5732_v19 = vld [vmem:[%s7594_s4 + $0x8c] ss:$16 sps:$4 sm:$0xff]  }
 0x11e   : > { %4363 = vmatpush1.bf16.msra.mxu0 %v5716_v8  ;;  %4691 = vmatpush1.bf16.msra.mxu1 %v5717_v9  ;;  %v5734_v20 = vld [vmem:[%s7594_s4 + $0x80] ss:$16 sps:$4 sm:$0xff]   ;;  %v5735_v21 = vld [vmem:[%s7594_s4 + $0x88] ss:$16 sps:$4 sm:$0xff]   ;;  %v5736_v22 = vld [vmem:[%s7594_s4 + $0xa4] ss:$16 sps:$4 sm:$0xff]  }
 0x11f   : > { %4364 = vmatprep.subr.bf16.mxu0 %v5718_v10  ;;  %4692 = vmatprep.subr.bf16.mxu1 %v5720_v11  ;;  %v5738_v23 = vld [vmem:[%s7594_s4 + $0xac] ss:$16 sps:$4 sm:$0xff]   ;;  %v5740_v24 = vld [vmem:[%s7594_s4 + $0xa0] ss:$16 sps:$4 sm:$0xff]   ;;  %v5741_v25 = vld [vmem:[%s7594_s4 + $0xa8] ss:$16 sps:$4 sm:$0xff]  }
 0x120   : > { %v5742_v26 = vld [vmem:[%s7594_s4 + $0xc4] ss:$16 sps:$4 sm:$0xff]   ;;  %v5744_v27 = vld [vmem:[%s7594_s4 + $0xcc] ss:$16 sps:$4 sm:$0xff]   ;;  %v5746_v28 = vld [vmem:[%s7594_s4 + $0xc0] ss:$16 sps:$4 sm:$0xff]  }
 0x121   : > { %v5747_v29 = vld [vmem:[%s7594_s4 + $0xc8] ss:$16 sps:$4 sm:$0xff]   ;;  %v5748_v30 = vld [vmem:[%s7594_s4 + $0xe4] ss:$16 sps:$4 sm:$0xff]   ;;  %v5750_v31 = vld [vmem:[%s7594_s4 + $0xec] ss:$16 sps:$4 sm:$0xff]  }
 0x122   : > { %4365 = vmatpush1.bf16.msra.mxu0 %v5722_v12  ;;  %4693 = vmatpush1.bf16.msra.mxu1 %v5723_v13  ;;  %v5752_v32 = vld [vmem:[%s7594_s4 + $0xe0] ss:$16 sps:$4 sm:$0xff]   ;;  %v5753_v33 = vld [vmem:[%s7594_s4 + $0xe8] ss:$16 sps:$4 sm:$0xff]   ;;  %v5754_v34 = vld [vmem:[%s7594_s4 + $0x104] ss:$16 sps:$4 sm:$0xff]  }
 0x123   : > { %4366 = vmatprep.subr.bf16.mxu0 %v5724_v14  ;;  %4694 = vmatprep.subr.bf16.mxu1 %v5726_v15  ;;  %v5756_v35 = vld [vmem:[%s7594_s4 + $0x10c] ss:$16 sps:$4 sm:$0xff]   ;;  %v5758_v36 = vld [vmem:[%s7594_s4 + $0x100] ss:$16 sps:$4 sm:$0xff]   ;;  %v5759_v37 = vld [vmem:[%s7594_s4 + $0x108] ss:$16 sps:$4 sm:$0xff]  }
 0x124   : > { %v5760_v38 = vld [vmem:[%s7594_s4 + $0x124] ss:$16 sps:$4 sm:$0xff]   ;;  %v5762_v39 = vld [vmem:[%s7594_s4 + $0x12c] ss:$16 sps:$4 sm:$0xff]   ;;  %v5764_v40 = vld [vmem:[%s7594_s4 + $0x120] ss:$16 sps:$4 sm:$0xff]  }
 0x125   : > { %v5765_v41 = vld [vmem:[%s7594_s4 + $0x128] ss:$16 sps:$4 sm:$0xff]   ;;  %v5766_v42 = vld [vmem:[%s7594_s4 + $0x144] ss:$16 sps:$4 sm:$0xff]   ;;  %v5768_v43 = vld [vmem:[%s7594_s4 + $0x14c] ss:$16 sps:$4 sm:$0xff]  }
 0x126   : > { %4367 = vmatpush1.bf16.msra.mxu0 %v5728_v16  ;;  %4695 = vmatpush1.bf16.msra.mxu1 %v5729_v17  ;;  %v5770_v44 = vld [vmem:[%s7594_s4 + $0x140] ss:$16 sps:$4 sm:$0xff]   ;;  %v5771_v45 = vld [vmem:[%s7594_s4 + $0x148] ss:$16 sps:$4 sm:$0xff]   ;;  %v5772_v46 = vld [vmem:[%s7594_s4 + $0x164] ss:$16 sps:$4 sm:$0xff]  }
 0x127   : > { %4368 = vmatprep.subr.bf16.mxu0 %v5730_v18  ;;  %4696 = vmatprep.subr.bf16.mxu1 %v5732_v19  ;;  %v5774_v47 = vld [vmem:[%s7594_s4 + $0x16c] ss:$16 sps:$4 sm:$0xff]   ;;  %v5776_v48 = vld [vmem:[%s7594_s4 + $0x160] ss:$16 sps:$4 sm:$0xff]   ;;  %v5777_v49 = vld [vmem:[%s7594_s4 + $0x168] ss:$16 sps:$4 sm:$0xff]  }
 0x128   : > { %v5778_v50 = vld [vmem:[%s7594_s4 + $0x184] ss:$16 sps:$4 sm:$0xff]   ;;  %v5780_v51 = vld [vmem:[%s7594_s4 + $0x18c] ss:$16 sps:$4 sm:$0xff]   ;;  %v5782_v52 = vld [vmem:[%s7594_s4 + $0x180] ss:$16 sps:$4 sm:$0xff]  }
 0x129   : > { %v5783_v53 = vld [vmem:[%s7594_s4 + $0x188] ss:$16 sps:$4 sm:$0xff]   ;;  %v5784_v54 = vld [vmem:[%s7594_s4 + $0x1a4] ss:$16 sps:$4 sm:$0xff]   ;;  %v5786_v55 = vld [vmem:[%s7594_s4 + $0x1ac] ss:$16 sps:$4 sm:$0xff]  }
 0x12a   : > { %4369 = vmatpush1.bf16.msra.mxu0 %v5734_v20  ;;  %4697 = vmatpush1.bf16.msra.mxu1 %v5735_v21  ;;  %v5788_v56 = vld [vmem:[%s7594_s4 + $0x1a0] ss:$16 sps:$4 sm:$0xff]   ;;  %v5789_v57 = vld [vmem:[%s7594_s4 + $0x1a8] ss:$16 sps:$4 sm:$0xff]   ;;  %v5790_v58 = vld [vmem:[%s7594_s4 + $0x1c4] ss:$16 sps:$4 sm:$0xff]  }
 0x12b   : > { %4370 = vmatprep.subr.bf16.mxu0 %v5736_v22  ;;  %4698 = vmatprep.subr.bf16.mxu1 %v5738_v23  ;;  %v5792_v59 = vld [vmem:[%s7594_s4 + $0x1cc] ss:$16 sps:$4 sm:$0xff]   ;;  %v5794_v60 = vld [vmem:[%s7594_s4 + $0x1c0] ss:$16 sps:$4 sm:$0xff]   ;;  %v5795_v61 = vld [vmem:[%s7594_s4 + $0x1c8] ss:$16 sps:$4 sm:$0xff]  }
 0x12c   : > { %v5796_v62 = vld [vmem:[%s7594_s4 + $0x1e4] ss:$16 sps:$4 sm:$0xff]   ;;  %v5798_v63 = vld [vmem:[%s7594_s4 + $0x1ec] ss:$16 sps:$4 sm:$0xff]   ;;  %v5800_v1 = vld [vmem:[%s7594_s4 + $0x1e0] ss:$16 sps:$4 sm:$0xff]  }
 0x12d   : > { %v5801_v2 = vld [vmem:[%s7594_s4 + $0x1e8] ss:$16 sps:$4 sm:$0xff]   ;;  %v5804_v3 = vld [vmem:[%s7594_s4 + $0x204] ss:$16 sps:$4 sm:$0xff]   ;;  %v5807_v4 = vld [vmem:[%s7594_s4 + $0x20c] ss:$16 sps:$4 sm:$0xff]  }
 0x12e   : > { %4371 = vmatpush1.bf16.msra.mxu0 %v5740_v24  ;;  %4699 = vmatpush1.bf16.msra.mxu1 %v5741_v25  ;;  %v5802_v5 = vld [vmem:[%s7594_s4 + $0x200] ss:$16 sps:$4 sm:$0xff]   ;;  %v5805_v6 = vld [vmem:[%s7594_s4 + $0x208] ss:$16 sps:$4 sm:$0xff]   ;;  %v5810_v8 = vld [vmem:[%s7594_s4 + $0x224] ss:$16 sps:$4 sm:$0xff]  }
 0x12f   : > { %4372 = vmatprep.subr.bf16.mxu0 %v5742_v26  ;;  %4700 = vmatprep.subr.bf16.mxu1 %v5744_v27  ;;  %v5813_v9 = vld [vmem:[%s7594_s4 + $0x22c] ss:$16 sps:$4 sm:$0xff]   ;;  %v5808_v10 = vld [vmem:[%s7594_s4 + $0x220] ss:$16 sps:$4 sm:$0xff]   ;;  %v5811_v11 = vld [vmem:[%s7594_s4 + $0x228] ss:$16 sps:$4 sm:$0xff]  }
 0x130   : > { %v5816_v12 = vld [vmem:[%s7594_s4 + $0x244] ss:$16 sps:$4 sm:$0xff]   ;;  %v5819_v13 = vld [vmem:[%s7594_s4 + $0x24c] ss:$16 sps:$4 sm:$0xff]   ;;  %v5814_v14 = vld [vmem:[%s7594_s4 + $0x240] ss:$16 sps:$4 sm:$0xff]  }
 0x131   : > { %v5817_v15 = vld [vmem:[%s7594_s4 + $0x248] ss:$16 sps:$4 sm:$0xff]   ;;  %v5822_v16 = vld [vmem:[%s7594_s4 + $0x264] ss:$16 sps:$4 sm:$0xff]   ;;  %v5825_v17 = vld [vmem:[%s7594_s4 + $0x26c] ss:$16 sps:$4 sm:$0xff]  }
 0x132   : > { %4373 = vmatpush1.bf16.msra.mxu0 %v5746_v28  ;;  %4701 = vmatpush1.bf16.msra.mxu1 %v5747_v29  ;;  %v5820_v18 = vld [vmem:[%s7594_s4 + $0x260] ss:$16 sps:$4 sm:$0xff]   ;;  %v5823_v19 = vld [vmem:[%s7594_s4 + $0x268] ss:$16 sps:$4 sm:$0xff]   ;;  %v5828_v20 = vld [vmem:[%s7594_s4 + $0x284] ss:$16 sps:$4 sm:$0xff]  }
 0x133   : > { %4374 = vmatprep.subr.bf16.mxu0 %v5748_v30  ;;  %4702 = vmatprep.subr.bf16.mxu1 %v5750_v31  ;;  %v5831_v21 = vld [vmem:[%s7594_s4 + $0x28c] ss:$16 sps:$4 sm:$0xff]   ;;  %v5826_v22 = vld [vmem:[%s7594_s4 + $0x280] ss:$16 sps:$4 sm:$0xff]   ;;  %v5829_v23 = vld [vmem:[%s7594_s4 + $0x288] ss:$16 sps:$4 sm:$0xff]  }
 0x134   : > { %v5834_v24 = vld [vmem:[%s7594_s4 + $0x2a4] ss:$16 sps:$4 sm:$0xff]   ;;  %v5837_v25 = vld [vmem:[%s7594_s4 + $0x2ac] ss:$16 sps:$4 sm:$0xff]   ;;  %v5832_v26 = vld [vmem:[%s7594_s4 + $0x2a0] ss:$16 sps:$4 sm:$0xff]  }
 0x135   : > { %v5835_v27 = vld [vmem:[%s7594_s4 + $0x2a8] ss:$16 sps:$4 sm:$0xff]   ;;  %v5840_v28 = vld [vmem:[%s7594_s4 + $0x2c4] ss:$16 sps:$4 sm:$0xff]   ;;  %v5843_v29 = vld [vmem:[%s7594_s4 + $0x2cc] ss:$16 sps:$4 sm:$0xff]  }
 0x136   : > { %4375 = vmatpush1.bf16.msra.mxu0 %v5752_v32  ;;  %4703 = vmatpush1.bf16.msra.mxu1 %v5753_v33  ;;  %v1237_v30 = vld [vmem:[%s8175_s0 + $0x18] sm:$0xff]  ;;  %v5838_v32 = vld [vmem:[%s7594_s4 + $0x2c0] ss:$16 sps:$4 sm:$0xff]   ;;  %s8183_s18 = smov (!%p1224_p8, %s5104_s18), 15 }
 0x137   : > { %4376 = vmatprep.subr.bf16.mxu0 %v5754_v34  ;;  %4704 = vmatprep.subr.bf16.mxu1 %v5756_v35  ;;  %v1253_v31 = vpack.c.bf16 %v1237_v30, %v1237_v30  ;;  %v5841_v33 = vld [vmem:[%s7594_s4 + $0x2c8] ss:$16 sps:$4 sm:$0xff]   ;;  %v5846_v34 = vld [vmem:[%s7594_s4 + $0x2e4] ss:$16 sps:$4 sm:$0xff]   ;;  %v5849_v35 = vld [vmem:[%s7594_s4 + $0x2ec] ss:$16 sps:$4 sm:$0xff]   ;;  %s1226_s21 = scalar_lea.vmem %s8177_s2, %s8183_s18 }
 0x138   : > { %v5886_v0 = vld [vmem:[%s7594_s4 + $0x3c0] ss:$16 sps:$4 sm:$0xff]   ;;  %v5930_v30 = vld [vmem:[%s7594_s4 + $0x4a4] ss:$16 sps:$4 sm:$0xff]   ;;  %s5106_s14 = sshll.u32 %s8183_s18, 3 }
 0x139   : > { %s1232_s23 = scalar_lea.vmem %s8178_s3, %s5106_s14 }
 0x13a   : > { %4377 = vmatpush1.bf16.msra.mxu0 %v5758_v36  ;;  %4705 = vmatpush1.bf16.msra.mxu1 %v5759_v37  ;;  %v5844_v36 = vld [vmem:[%s7594_s4 + $0x2e0] ss:$16 sps:$4 sm:$0xff]   ;;  %v5847_v37 = vld [vmem:[%s7594_s4 + $0x2e8] ss:$16 sps:$4 sm:$0xff]  }
 0x13b   : > { %4378 = vmatprep.subr.bf16.mxu0 %v5760_v38  ;;  %4706 = vmatprep.subr.bf16.mxu1 %v5762_v39  ;;  %v5852_v38 = vld [vmem:[%s7594_s4 + $0x304] ss:$16 sps:$4 sm:$0xff]   ;;  %v5855_v39 = vld [vmem:[%s7594_s4 + $0x30c] ss:$16 sps:$4 sm:$0xff]  }
 0x13e   : > { %4379 = vmatpush1.bf16.msra.mxu0 %v5764_v40  ;;  %4707 = vmatpush1.bf16.msra.mxu1 %v5765_v41  ;;  %v5850_v40 = vld [vmem:[%s7594_s4 + $0x300] ss:$16 sps:$4 sm:$0xff]   ;;  %v5853_v41 = vld [vmem:[%s7594_s4 + $0x308] ss:$16 sps:$4 sm:$0xff]  }
 0x13f   : > { %4380 = vmatprep.subr.bf16.mxu0 %v5766_v42  ;;  %4708 = vmatprep.subr.bf16.mxu1 %v5768_v43  ;;  %v5858_v42 = vld [vmem:[%s7594_s4 + $0x324] ss:$16 sps:$4 sm:$0xff]   ;;  %v5861_v43 = vld [vmem:[%s7594_s4 + $0x32c] ss:$16 sps:$4 sm:$0xff]  }
 0x142   : > { %4381 = vmatpush1.bf16.msra.mxu0 %v5770_v44  ;;  %4709 = vmatpush1.bf16.msra.mxu1 %v5771_v45  ;;  %v5856_v44 = vld [vmem:[%s7594_s4 + $0x320] ss:$16 sps:$4 sm:$0xff]   ;;  %v5859_v45 = vld [vmem:[%s7594_s4 + $0x328] ss:$16 sps:$4 sm:$0xff]  }
 0x143   : > { %4382 = vmatprep.subr.bf16.mxu0 %v5772_v46  ;;  %4710 = vmatprep.subr.bf16.mxu1 %v5774_v47  ;;  %v5864_v46 = vld [vmem:[%s7594_s4 + $0x344] ss:$16 sps:$4 sm:$0xff]   ;;  %v5867_v47 = vld [vmem:[%s7594_s4 + $0x34c] ss:$16 sps:$4 sm:$0xff]  }
 0x146   : > { %4383 = vmatpush1.bf16.msra.mxu0 %v5776_v48  ;;  %4711 = vmatpush1.bf16.msra.mxu1 %v5777_v49  ;;  %v5862_v48 = vld [vmem:[%s7594_s4 + $0x340] ss:$16 sps:$4 sm:$0xff]   ;;  %v5865_v49 = vld [vmem:[%s7594_s4 + $0x348] ss:$16 sps:$4 sm:$0xff]  }
 0x147   : > { %4384 = vmatprep.subr.bf16.mxu0 %v5778_v50  ;;  %4712 = vmatprep.subr.bf16.mxu1 %v5780_v51  ;;  %v5870_v50 = vld [vmem:[%s7594_s4 + $0x364] ss:$16 sps:$4 sm:$0xff]   ;;  %v5873_v51 = vld [vmem:[%s7594_s4 + $0x36c] ss:$16 sps:$4 sm:$0xff]  }
 0x14a   : > { %4385 = vmatpush1.bf16.msra.mxu0 %v5782_v52  ;;  %4713 = vmatpush1.bf16.msra.mxu1 %v5783_v53  ;;  %v5868_v52 = vld [vmem:[%s7594_s4 + $0x360] ss:$16 sps:$4 sm:$0xff]   ;;  %v5871_v53 = vld [vmem:[%s7594_s4 + $0x368] ss:$16 sps:$4 sm:$0xff]  }
 0x14b   : > { %4386 = vmatprep.subr.bf16.mxu0 %v5784_v54  ;;  %4714 = vmatprep.subr.bf16.mxu1 %v5786_v55  ;;  %v5876_v54 = vld [vmem:[%s7594_s4 + $0x384] ss:$16 sps:$4 sm:$0xff]   ;;  %v5879_v55 = vld [vmem:[%s7594_s4 + $0x38c] ss:$16 sps:$4 sm:$0xff]  }
 0x14e   : > { %4387 = vmatpush1.bf16.msra.mxu0 %v5788_v56  ;;  %4715 = vmatpush1.bf16.msra.mxu1 %v5789_v57  ;;  %v5874_v56 = vld [vmem:[%s7594_s4 + $0x380] ss:$16 sps:$4 sm:$0xff]   ;;  %v5877_v57 = vld [vmem:[%s7594_s4 + $0x388] ss:$16 sps:$4 sm:$0xff]  }
 0x14f   : > { %4388 = vmatprep.subr.bf16.mxu0 %v5790_v58  ;;  %4716 = vmatprep.subr.bf16.mxu1 %v5792_v59  ;;  %v5882_v58 = vld [vmem:[%s7594_s4 + $0x3a4] ss:$16 sps:$4 sm:$0xff]   ;;  %v5885_v59 = vld [vmem:[%s7594_s4 + $0x3ac] ss:$16 sps:$4 sm:$0xff]  }
 0x152   : > { %4389 = vmatpush1.bf16.msra.mxu0 %v5794_v60  ;;  %4717 = vmatpush1.bf16.msra.mxu1 %v5795_v61  ;;  %v5880_v60 = vld [vmem:[%s7594_s4 + $0x3a0] ss:$16 sps:$4 sm:$0xff]   ;;  %v5883_v61 = vld [vmem:[%s7594_s4 + $0x3a8] ss:$16 sps:$4 sm:$0xff]  }
 0x153   : > { %4390 = vmatprep.subr.bf16.mxu0 %v5796_v62  ;;  %4718 = vmatprep.subr.bf16.mxu1 %v5798_v63  ;;  %v5888_v62 = vld [vmem:[%s7594_s4 + $0x3c4] ss:$16 sps:$4 sm:$0xff]   ;;  %v5891_v63 = vld [vmem:[%s7594_s4 + $0x3cc] ss:$16 sps:$4 sm:$0xff]  }
 0x156   : > { %4391 = vmatpush1.bf16.msra.mxu0 %v5800_v1  ;;  %4719 = vmatpush1.bf16.msra.mxu1 %v5801_v2  ;;  %v5889_v1 = vld [vmem:[%s7594_s4 + $0x3c8] ss:$16 sps:$4 sm:$0xff]   ;;  %v5894_v2 = vld [vmem:[%s7594_s4 + $0x3e4] ss:$16 sps:$4 sm:$0xff]  }
 0x157   : > { %4401 = vmatprep.subr.bf16.mxu0 %v5804_v3  ;;  %4729 = vmatprep.subr.bf16.mxu1 %v5807_v4  ;;  %v5897_v3 = vld [vmem:[%s7594_s4 + $0x3ec] ss:$16 sps:$4 sm:$0xff]   ;;  %v5892_v4 = vld [vmem:[%s7594_s4 + $0x3e0] ss:$16 sps:$4 sm:$0xff]  }
 0x159   : > { %4393 = vmatmul.mubr.bf16.vlgmr.msra.gmra.mrb[0].mxu0 %v1250_v7  ;;  %4721 = vmatmul.mubr.bf16.vlgmr.msra.gmra.mrb[0].mxu1 %v1250_v7  ;;  %v5900_v7 = vld [vmem:[%s7594_s4 + $0x404] ss:$16 sps:$4 sm:$0xff]  }
 0x15a   : > { %4402 = vmatpush1.bf16.msra.mxu0 %v5802_v5  ;;  %4730 = vmatpush1.bf16.msra.mxu1 %v5805_v6  ;;  %v5895_v5 = vld [vmem:[%s7594_s4 + $0x3e8] ss:$16 sps:$4 sm:$0xff]   ;;  %v1236_v6 = vld [vmem:[%s8175_s0 + $0x10] sm:$0xff] }
 0x15b   : > { %4403 = vmatprep.subr.bf16.mxu0 %v5810_v8  ;;  %4731 = vmatprep.subr.bf16.mxu1 %v5813_v9  ;;  %v5903_v8 = vld [vmem:[%s7594_s4 + $0x40c] ss:$16 sps:$4 sm:$0xff]   ;;  %v5898_v9 = vld [vmem:[%s7594_s4 + $0x400] ss:$16 sps:$4 sm:$0xff]  }
 0x15c   : > { %4433 = vmatprep.mubr.bf16.mxu0 %v1253_v31  ;;  %4761 = vmatprep.mubr.bf16.mxu1 %v1253_v31  ;;  %v5933_v31 = vld [vmem:[%s7594_s4 + $0x4ac] ss:$16 sps:$4 sm:$0xff]  }
 0x15e   : > { %4404 = vmatpush1.bf16.msra.mxu0 %v5808_v10  ;;  %4732 = vmatpush1.bf16.msra.mxu1 %v5811_v11  ;;  %v1252_v10 = vpack.c.bf16 %v1236_v6, %v1236_v6  ;;  %v5901_v11 = vld [vmem:[%s7594_s4 + $0x408] ss:$16 sps:$4 sm:$0xff]   ;;  %v5990_v6 = vld [vmem:[%s7594_s4 + $0x5e4] ss:$16 sps:$4 sm:$0xff]  }
 0x15f   : > { %4405 = vmatprep.subr.bf16.mxu0 %v5816_v12  ;;  %4733 = vmatprep.subr.bf16.mxu1 %v5819_v13  ;;  %v5906_v12 = vld [vmem:[%s7594_s4 + $0x424] ss:$16 sps:$4 sm:$0xff]   ;;  %v1239_v13 = vld [vmem:[%s8175_s0 + $0x28] sm:$0xff] }
 0x162   : > { %4406 = vmatpush1.bf16.msra.mxu0 %v5814_v14  ;;  %4734 = vmatpush1.bf16.msra.mxu1 %v5817_v15  ;;  %v5909_v14 = vld [vmem:[%s7594_s4 + $0x42c] ss:$16 sps:$4 sm:$0xff]   ;;  %v1255_v15 = vpack.c.bf16 %v1239_v13, %v1239_v13 }
 0x163   : > { %4407 = vmatprep.subr.bf16.mxu0 %v5822_v16  ;;  %4735 = vmatprep.subr.bf16.mxu1 %v5825_v17  ;;  %v5904_v16 = vld [vmem:[%s7594_s4 + $0x420] ss:$16 sps:$4 sm:$0xff]   ;;  %v5907_v17 = vld [vmem:[%s7594_s4 + $0x428] ss:$16 sps:$4 sm:$0xff]  }
 0x166   : > { %4408 = vmatpush1.bf16.msra.mxu0 %v5820_v18  ;;  %4736 = vmatpush1.bf16.msra.mxu1 %v5823_v19  ;;  %v5912_v18 = vld [vmem:[%s7594_s4 + $0x444] ss:$16 sps:$4 sm:$0xff]   ;;  %v5915_v19 = vld [vmem:[%s7594_s4 + $0x44c] ss:$16 sps:$4 sm:$0xff]  }
 0x167   : > { %4409 = vmatprep.subr.bf16.mxu0 %v5828_v20  ;;  %4737 = vmatprep.subr.bf16.mxu1 %v5831_v21  ;;  %v5910_v20 = vld [vmem:[%s7594_s4 + $0x440] ss:$16 sps:$4 sm:$0xff]   ;;  %v5913_v21 = vld [vmem:[%s7594_s4 + $0x448] ss:$16 sps:$4 sm:$0xff]  }
 0x16a   : > { %4410 = vmatpush1.bf16.msra.mxu0 %v5826_v22  ;;  %4738 = vmatpush1.bf16.msra.mxu1 %v5829_v23  ;;  %v5918_v22 = vld [vmem:[%s7594_s4 + $0x464] ss:$16 sps:$4 sm:$0xff]   ;;  %v5921_v23 = vld [vmem:[%s7594_s4 + $0x46c] ss:$16 sps:$4 sm:$0xff]  }
 0x16b   : > { %4411 = vmatprep.subr.bf16.mxu0 %v5834_v24  ;;  %4739 = vmatprep.subr.bf16.mxu1 %v5837_v25  ;;  %v5916_v24 = vld [vmem:[%s7594_s4 + $0x460] ss:$16 sps:$4 sm:$0xff]   ;;  %v5919_v25 = vld [vmem:[%s7594_s4 + $0x468] ss:$16 sps:$4 sm:$0xff]  }
 0x16e   : > { %4412 = vmatpush1.bf16.msra.mxu0 %v5832_v26  ;;  %4740 = vmatpush1.bf16.msra.mxu1 %v5835_v27  ;;  %v5924_v26 = vld [vmem:[%s7594_s4 + $0x484] ss:$16 sps:$4 sm:$0xff]   ;;  %v5927_v27 = vld [vmem:[%s7594_s4 + $0x48c] ss:$16 sps:$4 sm:$0xff]  }
 0x16f   : > { %4413 = vmatprep.subr.bf16.mxu0 %v5840_v28  ;;  %4741 = vmatprep.subr.bf16.mxu1 %v5843_v29  ;;  %v5922_v28 = vld [vmem:[%s7594_s4 + $0x480] ss:$16 sps:$4 sm:$0xff]   ;;  %v5925_v29 = vld [vmem:[%s7594_s4 + $0x488] ss:$16 sps:$4 sm:$0xff]  }
 0x172   : > { %4414 = vmatpush1.bf16.msra.mxu0 %v5838_v32  ;;  %4742 = vmatpush1.bf16.msra.mxu1 %v5841_v33  ;;  %v5928_v32 = vld [vmem:[%s7594_s4 + $0x4a0] ss:$16 sps:$4 sm:$0xff]   ;;  %v5931_v33 = vld [vmem:[%s7594_s4 + $0x4a8] ss:$16 sps:$4 sm:$0xff]  }
 0x173   : > { %4415 = vmatprep.subr.bf16.mxu0 %v5846_v34  ;;  %4743 = vmatprep.subr.bf16.mxu1 %v5849_v35  ;;  %v5936_v34 = vld [vmem:[%s7594_s4 + $0x4c4] ss:$16 sps:$4 sm:$0xff]   ;;  %v5939_v35 = vld [vmem:[%s7594_s4 + $0x4cc] ss:$16 sps:$4 sm:$0xff]  }
 0x176   : > { %4416 = vmatpush1.bf16.msra.mxu0 %v5844_v36  ;;  %4744 = vmatpush1.bf16.msra.mxu1 %v5847_v37  ;;  %v5934_v36 = vld [vmem:[%s7594_s4 + $0x4c0] ss:$16 sps:$4 sm:$0xff]   ;;  %v5937_v37 = vld [vmem:[%s7594_s4 + $0x4c8] ss:$16 sps:$4 sm:$0xff]  }
 0x177   : > { %4417 = vmatprep.subr.bf16.mxu0 %v5852_v38  ;;  %4745 = vmatprep.subr.bf16.mxu1 %v5855_v39  ;;  %v5942_v38 = vld [vmem:[%s7594_s4 + $0x4e4] ss:$16 sps:$4 sm:$0xff]   ;;  %v5945_v39 = vld [vmem:[%s7594_s4 + $0x4ec] ss:$16 sps:$4 sm:$0xff]  }
 0x17a   : > { %4418 = vmatpush1.bf16.msra.mxu0 %v5850_v40  ;;  %4746 = vmatpush1.bf16.msra.mxu1 %v5853_v41  ;;  %v5940_v40 = vld [vmem:[%s7594_s4 + $0x4e0] ss:$16 sps:$4 sm:$0xff]   ;;  %v5943_v41 = vld [vmem:[%s7594_s4 + $0x4e8] ss:$16 sps:$4 sm:$0xff]  }
 0x17b   : > { %4419 = vmatprep.subr.bf16.mxu0 %v5858_v42  ;;  %4747 = vmatprep.subr.bf16.mxu1 %v5861_v43  ;;  %v5948_v42 = vld [vmem:[%s7594_s4 + $0x504] ss:$16 sps:$4 sm:$0xff]   ;;  %v5951_v43 = vld [vmem:[%s7594_s4 + $0x50c] ss:$16 sps:$4 sm:$0xff]  }
 0x17e   : > { %4420 = vmatpush1.bf16.msra.mxu0 %v5856_v44  ;;  %4748 = vmatpush1.bf16.msra.mxu1 %v5859_v45  ;;  %v5946_v44 = vld [vmem:[%s7594_s4 + $0x500] ss:$16 sps:$4 sm:$0xff]   ;;  %v5949_v45 = vld [vmem:[%s7594_s4 + $0x508] ss:$16 sps:$4 sm:$0xff]  }
 0x17f   : > { %4421 = vmatprep.subr.bf16.mxu0 %v5864_v46  ;;  %4749 = vmatprep.subr.bf16.mxu1 %v5867_v47  ;;  %v5954_v46 = vld [vmem:[%s7594_s4 + $0x524] ss:$16 sps:$4 sm:$0xff]   ;;  %v5957_v47 = vld [vmem:[%s7594_s4 + $0x52c] ss:$16 sps:$4 sm:$0xff]  }
 0x182   : > { %4422 = vmatpush1.bf16.msra.mxu0 %v5862_v48  ;;  %4750 = vmatpush1.bf16.msra.mxu1 %v5865_v49  ;;  %v5952_v48 = vld [vmem:[%s7594_s4 + $0x520] ss:$16 sps:$4 sm:$0xff]   ;;  %v5955_v49 = vld [vmem:[%s7594_s4 + $0x528] ss:$16 sps:$4 sm:$0xff]  }
 0x183   : > { %4423 = vmatprep.subr.bf16.mxu0 %v5870_v50  ;;  %4751 = vmatprep.subr.bf16.mxu1 %v5873_v51  ;;  %v5960_v50 = vld [vmem:[%s7594_s4 + $0x544] ss:$16 sps:$4 sm:$0xff]   ;;  %v5963_v51 = vld [vmem:[%s7594_s4 + $0x54c] ss:$16 sps:$4 sm:$0xff]  }
 0x186   : > { %4424 = vmatpush1.bf16.msra.mxu0 %v5868_v52  ;;  %4752 = vmatpush1.bf16.msra.mxu1 %v5871_v53  ;;  %v5958_v52 = vld [vmem:[%s7594_s4 + $0x540] ss:$16 sps:$4 sm:$0xff]   ;;  %v5961_v53 = vld [vmem:[%s7594_s4 + $0x548] ss:$16 sps:$4 sm:$0xff]  }
 0x187   : > { %4425 = vmatprep.subr.bf16.mxu0 %v5876_v54  ;;  %4753 = vmatprep.subr.bf16.mxu1 %v5879_v55  ;;  %v5966_v54 = vld [vmem:[%s7594_s4 + $0x564] ss:$16 sps:$4 sm:$0xff]   ;;  %v5969_v55 = vld [vmem:[%s7594_s4 + $0x56c] ss:$16 sps:$4 sm:$0xff]  }
 0x18a   : > { %4426 = vmatpush1.bf16.msra.mxu0 %v5874_v56  ;;  %4754 = vmatpush1.bf16.msra.mxu1 %v5877_v57  ;;  %v5964_v56 = vld [vmem:[%s7594_s4 + $0x560] ss:$16 sps:$4 sm:$0xff]   ;;  %v5967_v57 = vld [vmem:[%s7594_s4 + $0x568] ss:$16 sps:$4 sm:$0xff]  }
 0x18b   : > { %4427 = vmatprep.subr.bf16.mxu0 %v5882_v58  ;;  %4755 = vmatprep.subr.bf16.mxu1 %v5885_v59  ;;  %v5972_v58 = vld [vmem:[%s7594_s4 + $0x584] ss:$16 sps:$4 sm:$0xff]   ;;  %v5975_v59 = vld [vmem:[%s7594_s4 + $0x58c] ss:$16 sps:$4 sm:$0xff]  }
 0x18e   : > { %4428 = vmatpush1.bf16.msra.mxu0 %v5880_v60  ;;  %4756 = vmatpush1.bf16.msra.mxu1 %v5883_v61  ;;  %v5970_v60 = vld [vmem:[%s7594_s4 + $0x580] ss:$16 sps:$4 sm:$0xff]   ;;  %v5973_v61 = vld [vmem:[%s7594_s4 + $0x588] ss:$16 sps:$4 sm:$0xff]  }
 0x18f   : > { %4429 = vmatprep.subr.bf16.mxu0 %v5888_v62  ;;  %4757 = vmatprep.subr.bf16.mxu1 %v5891_v63  ;;  %v5978_v62 = vld [vmem:[%s7594_s4 + $0x5a4] ss:$16 sps:$4 sm:$0xff]   ;;  %v5981_v63 = vld [vmem:[%s7594_s4 + $0x5ac] ss:$16 sps:$4 sm:$0xff]  }
 0x192   : > { %4430 = vmatpush1.bf16.msra.mxu0 %v5886_v0  ;;  %4758 = vmatpush1.bf16.msra.mxu1 %v5889_v1  ;;  %v5976_v0 = vld [vmem:[%s7594_s4 + $0x5a0] ss:$16 sps:$4 sm:$0xff]   ;;  %v5979_v1 = vld [vmem:[%s7594_s4 + $0x5a8] ss:$16 sps:$4 sm:$0xff]  }
 0x193   : > { %4431 = vmatprep.subr.bf16.mxu0 %v5894_v2  ;;  %4759 = vmatprep.subr.bf16.mxu1 %v5897_v3  ;;  %v5984_v2 = vld [vmem:[%s7594_s4 + $0x5c4] ss:$16 sps:$4 sm:$0xff]   ;;  %v5987_v3 = vld [vmem:[%s7594_s4 + $0x5cc] ss:$16 sps:$4 sm:$0xff]  }
 0x196   : > { %4432 = vmatpush1.bf16.msra.mxu0 %v5892_v4  ;;  %4760 = vmatpush1.bf16.msra.mxu1 %v5895_v5  ;;  %v5982_v4 = vld [vmem:[%s7594_s4 + $0x5c0] ss:$16 sps:$4 sm:$0xff]   ;;  %v5985_v5 = vld [vmem:[%s7594_s4 + $0x5c8] ss:$16 sps:$4 sm:$0xff]  }
 0x197   : > { %4442 = vmatprep.subr.bf16.mxu0 %v5900_v7  ;;  %4770 = vmatprep.subr.bf16.mxu1 %v5903_v8  ;;  %v5993_v7 = vld [vmem:[%s7594_s4 + $0x5ec] ss:$16 sps:$4 sm:$0xff]   ;;  %v5988_v8 = vld [vmem:[%s7594_s4 + $0x5e0] ss:$16 sps:$4 sm:$0xff]  }
 0x199   : > { %4434 = vmatmul.mubr.bf16.vlgmr.msra.gmra.mrb[0].mxu0 %v1252_v10  ;;  %4762 = vmatmul.mubr.bf16.vlgmr.msra.gmra.mrb[0].mxu1 %v1252_v10  ;;  %v1238_v10 = vld [vmem:[%s8175_s0 + $0x20] sm:$0xff] }
 0x19a   : > { %4443 = vmatpush1.bf16.msra.mxu0 %v5898_v9  ;;  %4771 = vmatpush1.bf16.msra.mxu1 %v5901_v11  ;;  %v5991_v9 = vld [vmem:[%s7594_s4 + $0x5e8] ss:$16 sps:$4 sm:$0xff]   ;;  %v5996_v11 = vld [vmem:[%s7594_s4 + $0x604] ss:$16 sps:$4 sm:$0xff]   ;;  %v1254_v13 = vpack.c.bf16 %v1238_v10, %v1238_v10 }
 0x19b   : > { %4444 = vmatprep.subr.bf16.mxu0 %v5906_v12  ;;  %4772 = vmatprep.subr.bf16.mxu1 %v5909_v14  ;;  %v5999_v12 = vld [vmem:[%s7594_s4 + $0x60c] ss:$16 sps:$4 sm:$0xff]   ;;  %v6086_v10 = vld [vmem:[%s7594_s4 + $0x7e4] ss:$16 sps:$4 sm:$0xff]  }
 0x19c   : > { %4474 = vmatprep.mubr.bf16.mxu0 %v1255_v15  ;;  %4802 = vmatprep.mubr.bf16.mxu1 %v1255_v15  ;;  %v1241_v14 = vld [vmem:[%s8175_s0 + $0x38] sm:$0xff]  ;;  %v5994_v15 = vld [vmem:[%s7594_s4 + $0x600] ss:$16 sps:$4 sm:$0xff]  }
 0x19e   : > { %4445 = vmatpush1.bf16.msra.mxu0 %v5904_v16  ;;  %4773 = vmatpush1.bf16.msra.mxu1 %v5907_v17  ;;  %v5997_v16 = vld [vmem:[%s7594_s4 + $0x608] ss:$16 sps:$4 sm:$0xff]   ;;  %v6002_v17 = vld [vmem:[%s7594_s4 + $0x624] ss:$16 sps:$4 sm:$0xff]  }
 0x19f   : > { %4446 = vmatprep.subr.bf16.mxu0 %v5912_v18  ;;  %4774 = vmatprep.subr.bf16.mxu1 %v5915_v19  ;;  %v6005_v18 = vld [vmem:[%s7594_s4 + $0x62c] ss:$16 sps:$4 sm:$0xff]   ;;  %v1257_v19 = vpack.c.bf16 %v1241_v14, %v1241_v14  ;;  %v6092_v14 = vld [vmem:[%s7594_s4 + $0x804] ss:$16 sps:$4 sm:$0xff]  }
 0x1a2   : > { %4447 = vmatpush1.bf16.msra.mxu0 %v5910_v20  ;;  %4775 = vmatpush1.bf16.msra.mxu1 %v5913_v21  ;;  %v6000_v20 = vld [vmem:[%s7594_s4 + $0x620] ss:$16 sps:$4 sm:$0xff]   ;;  %v6003_v21 = vld [vmem:[%s7594_s4 + $0x628] ss:$16 sps:$4 sm:$0xff]  }
 0x1a3   : > { %4448 = vmatprep.subr.bf16.mxu0 %v5918_v22  ;;  %4776 = vmatprep.subr.bf16.mxu1 %v5921_v23  ;;  %v6008_v22 = vld [vmem:[%s7594_s4 + $0x644] ss:$16 sps:$4 sm:$0xff]   ;;  %v6011_v23 = vld [vmem:[%s7594_s4 + $0x64c] ss:$16 sps:$4 sm:$0xff]  }
 0x1a6   : > { %4449 = vmatpush1.bf16.msra.mxu0 %v5916_v24  ;;  %4777 = vmatpush1.bf16.msra.mxu1 %v5919_v25  ;;  %v6006_v24 = vld [vmem:[%s7594_s4 + $0x640] ss:$16 sps:$4 sm:$0xff]   ;;  %v6009_v25 = vld [vmem:[%s7594_s4 + $0x648] ss:$16 sps:$4 sm:$0xff]  }
 0x1a7   : > { %4450 = vmatprep.subr.bf16.mxu0 %v5924_v26  ;;  %4778 = vmatprep.subr.bf16.mxu1 %v5927_v27  ;;  %v6014_v26 = vld [vmem:[%s7594_s4 + $0x664] ss:$16 sps:$4 sm:$0xff]   ;;  %v6017_v27 = vld [vmem:[%s7594_s4 + $0x66c] ss:$16 sps:$4 sm:$0xff]  }
 0x1aa   : > { %4451 = vmatpush1.bf16.msra.mxu0 %v5922_v28  ;;  %4779 = vmatpush1.bf16.msra.mxu1 %v5925_v29  ;;  %v6012_v28 = vld [vmem:[%s7594_s4 + $0x660] ss:$16 sps:$4 sm:$0xff]   ;;  %v6015_v29 = vld [vmem:[%s7594_s4 + $0x668] ss:$16 sps:$4 sm:$0xff]  }
 0x1ab   : > { %4452 = vmatprep.subr.bf16.mxu0 %v5930_v30  ;;  %4780 = vmatprep.subr.bf16.mxu1 %v5933_v31  ;;  %v6020_v30 = vld [vmem:[%s7594_s4 + $0x684] ss:$16 sps:$4 sm:$0xff]   ;;  %v6023_v31 = vld [vmem:[%s7594_s4 + $0x68c] ss:$16 sps:$4 sm:$0xff]  }
 0x1ae   : > { %4453 = vmatpush1.bf16.msra.mxu0 %v5928_v32  ;;  %4781 = vmatpush1.bf16.msra.mxu1 %v5931_v33  ;;  %v6018_v32 = vld [vmem:[%s7594_s4 + $0x680] ss:$16 sps:$4 sm:$0xff]   ;;  %v6021_v33 = vld [vmem:[%s7594_s4 + $0x688] ss:$16 sps:$4 sm:$0xff]  }
 0x1af   : > { %4454 = vmatprep.subr.bf16.mxu0 %v5936_v34  ;;  %4782 = vmatprep.subr.bf16.mxu1 %v5939_v35  ;;  %v6026_v34 = vld [vmem:[%s7594_s4 + $0x6a4] ss:$16 sps:$4 sm:$0xff]   ;;  %v6029_v35 = vld [vmem:[%s7594_s4 + $0x6ac] ss:$16 sps:$4 sm:$0xff]  }
 0x1b2   : > { %4455 = vmatpush1.bf16.msra.mxu0 %v5934_v36  ;;  %4783 = vmatpush1.bf16.msra.mxu1 %v5937_v37  ;;  %v6024_v36 = vld [vmem:[%s7594_s4 + $0x6a0] ss:$16 sps:$4 sm:$0xff]   ;;  %v6027_v37 = vld [vmem:[%s7594_s4 + $0x6a8] ss:$16 sps:$4 sm:$0xff]  }
 0x1b3   : > { %4456 = vmatprep.subr.bf16.mxu0 %v5942_v38  ;;  %4784 = vmatprep.subr.bf16.mxu1 %v5945_v39  ;;  %v6032_v38 = vld [vmem:[%s7594_s4 + $0x6c4] ss:$16 sps:$4 sm:$0xff]   ;;  %v6035_v39 = vld [vmem:[%s7594_s4 + $0x6cc] ss:$16 sps:$4 sm:$0xff]  }
 0x1b6   : > { %4457 = vmatpush1.bf16.msra.mxu0 %v5940_v40  ;;  %4785 = vmatpush1.bf16.msra.mxu1 %v5943_v41  ;;  %v6030_v40 = vld [vmem:[%s7594_s4 + $0x6c0] ss:$16 sps:$4 sm:$0xff]   ;;  %v6033_v41 = vld [vmem:[%s7594_s4 + $0x6c8] ss:$16 sps:$4 sm:$0xff]  }
 0x1b7   : > { %4458 = vmatprep.subr.bf16.mxu0 %v5948_v42  ;;  %4786 = vmatprep.subr.bf16.mxu1 %v5951_v43  ;;  %v6038_v42 = vld [vmem:[%s7594_s4 + $0x6e4] ss:$16 sps:$4 sm:$0xff]   ;;  %v6041_v43 = vld [vmem:[%s7594_s4 + $0x6ec] ss:$16 sps:$4 sm:$0xff]  }
 0x1ba   : > { %4459 = vmatpush1.bf16.msra.mxu0 %v5946_v44  ;;  %4787 = vmatpush1.bf16.msra.mxu1 %v5949_v45  ;;  %v6036_v44 = vld [vmem:[%s7594_s4 + $0x6e0] ss:$16 sps:$4 sm:$0xff]   ;;  %v6039_v45 = vld [vmem:[%s7594_s4 + $0x6e8] ss:$16 sps:$4 sm:$0xff]  }
 0x1bb   : > { %4460 = vmatprep.subr.bf16.mxu0 %v5954_v46  ;;  %4788 = vmatprep.subr.bf16.mxu1 %v5957_v47  ;;  %v6044_v46 = vld [vmem:[%s7594_s4 + $0x704] ss:$16 sps:$4 sm:$0xff]   ;;  %v6047_v47 = vld [vmem:[%s7594_s4 + $0x70c] ss:$16 sps:$4 sm:$0xff]  }
 0x1be   : > { %4461 = vmatpush1.bf16.msra.mxu0 %v5952_v48  ;;  %4789 = vmatpush1.bf16.msra.mxu1 %v5955_v49  ;;  %v6042_v48 = vld [vmem:[%s7594_s4 + $0x700] ss:$16 sps:$4 sm:$0xff]   ;;  %v6045_v49 = vld [vmem:[%s7594_s4 + $0x708] ss:$16 sps:$4 sm:$0xff]  }
 0x1bf   : > { %4462 = vmatprep.subr.bf16.mxu0 %v5960_v50  ;;  %4790 = vmatprep.subr.bf16.mxu1 %v5963_v51  ;;  %v6050_v50 = vld [vmem:[%s7594_s4 + $0x724] ss:$16 sps:$4 sm:$0xff]   ;;  %v6053_v51 = vld [vmem:[%s7594_s4 + $0x72c] ss:$16 sps:$4 sm:$0xff]  }
 0x1c2   : > { %4463 = vmatpush1.bf16.msra.mxu0 %v5958_v52  ;;  %4791 = vmatpush1.bf16.msra.mxu1 %v5961_v53  ;;  %v6048_v52 = vld [vmem:[%s7594_s4 + $0x720] ss:$16 sps:$4 sm:$0xff]   ;;  %v6051_v53 = vld [vmem:[%s7594_s4 + $0x728] ss:$16 sps:$4 sm:$0xff]  }
 0x1c3   : > { %4464 = vmatprep.subr.bf16.mxu0 %v5966_v54  ;;  %4792 = vmatprep.subr.bf16.mxu1 %v5969_v55  ;;  %v6056_v54 = vld [vmem:[%s7594_s4 + $0x744] ss:$16 sps:$4 sm:$0xff]   ;;  %v6059_v55 = vld [vmem:[%s7594_s4 + $0x74c] ss:$16 sps:$4 sm:$0xff]  }
 0x1c6   : > { %4465 = vmatpush1.bf16.msra.mxu0 %v5964_v56  ;;  %4793 = vmatpush1.bf16.msra.mxu1 %v5967_v57  ;;  %v6054_v56 = vld [vmem:[%s7594_s4 + $0x740] ss:$16 sps:$4 sm:$0xff]   ;;  %v6057_v57 = vld [vmem:[%s7594_s4 + $0x748] ss:$16 sps:$4 sm:$0xff]  }
 0x1c7   : > { %4466 = vmatprep.subr.bf16.mxu0 %v5972_v58  ;;  %4794 = vmatprep.subr.bf16.mxu1 %v5975_v59  ;;  %v6062_v58 = vld [vmem:[%s7594_s4 + $0x764] ss:$16 sps:$4 sm:$0xff]   ;;  %v6065_v59 = vld [vmem:[%s7594_s4 + $0x76c] ss:$16 sps:$4 sm:$0xff]  }
 0x1ca   : > { %4467 = vmatpush1.bf16.msra.mxu0 %v5970_v60  ;;  %4795 = vmatpush1.bf16.msra.mxu1 %v5973_v61  ;;  %v6060_v60 = vld [vmem:[%s7594_s4 + $0x760] ss:$16 sps:$4 sm:$0xff]   ;;  %v6063_v61 = vld [vmem:[%s7594_s4 + $0x768] ss:$16 sps:$4 sm:$0xff]  }
 0x1cb   : > { %4468 = vmatprep.subr.bf16.mxu0 %v5978_v62  ;;  %4796 = vmatprep.subr.bf16.mxu1 %v5981_v63  ;;  %v6068_v62 = vld [vmem:[%s7594_s4 + $0x784] ss:$16 sps:$4 sm:$0xff]   ;;  %v6071_v63 = vld [vmem:[%s7594_s4 + $0x78c] ss:$16 sps:$4 sm:$0xff]  }
 0x1ce   : > { %4469 = vmatpush1.bf16.msra.mxu0 %v5976_v0  ;;  %4797 = vmatpush1.bf16.msra.mxu1 %v5979_v1  ;;  %v6066_v0 = vld [vmem:[%s7594_s4 + $0x780] ss:$16 sps:$4 sm:$0xff]   ;;  %v6069_v1 = vld [vmem:[%s7594_s4 + $0x788] ss:$16 sps:$4 sm:$0xff]  }
 0x1cf   : > { %4470 = vmatprep.subr.bf16.mxu0 %v5984_v2  ;;  %4798 = vmatprep.subr.bf16.mxu1 %v5987_v3  ;;  %v6074_v2 = vld [vmem:[%s7594_s4 + $0x7a4] ss:$16 sps:$4 sm:$0xff]   ;;  %v6077_v3 = vld [vmem:[%s7594_s4 + $0x7ac] ss:$16 sps:$4 sm:$0xff]  }
 0x1d2   : > { %4471 = vmatpush1.bf16.msra.mxu0 %v5982_v4  ;;  %4799 = vmatpush1.bf16.msra.mxu1 %v5985_v5  ;;  %v6072_v4 = vld [vmem:[%s7594_s4 + $0x7a0] ss:$16 sps:$4 sm:$0xff]   ;;  %v6075_v5 = vld [vmem:[%s7594_s4 + $0x7a8] ss:$16 sps:$4 sm:$0xff]  }
 0x1d3   : > { %4472 = vmatprep.subr.bf16.mxu0 %v5990_v6  ;;  %4800 = vmatprep.subr.bf16.mxu1 %v5993_v7  ;;  %v6080_v6 = vld [vmem:[%s7594_s4 + $0x7c4] ss:$16 sps:$4 sm:$0xff]   ;;  %v6083_v7 = vld [vmem:[%s7594_s4 + $0x7cc] ss:$16 sps:$4 sm:$0xff]  }
 0x1d6   : > { %4473 = vmatpush1.bf16.msra.mxu0 %v5988_v8  ;;  %4801 = vmatpush1.bf16.msra.mxu1 %v5991_v9  ;;  %v6078_v8 = vld [vmem:[%s7594_s4 + $0x7c0] ss:$16 sps:$4 sm:$0xff]   ;;  %v6081_v9 = vld [vmem:[%s7594_s4 + $0x7c8] ss:$16 sps:$4 sm:$0xff]  }
 0x1d7   : > { %4483 = vmatprep.subr.bf16.mxu0 %v5996_v11  ;;  %4811 = vmatprep.subr.bf16.mxu1 %v5999_v12  ;;  %v6089_v11 = vld [vmem:[%s7594_s4 + $0x7ec] ss:$16 sps:$4 sm:$0xff]   ;;  %v6084_v12 = vld [vmem:[%s7594_s4 + $0x7e0] ss:$16 sps:$4 sm:$0xff]  }
 0x1d9   : > { %4475 = vmatmul.mubr.bf16.vlgmr.msra.gmra.mrb[0].mxu0 %v1254_v13  ;;  %4803 = vmatmul.mubr.bf16.vlgmr.msra.gmra.mrb[0].mxu1 %v1254_v13  ;;  %v6087_v13 = vld [vmem:[%s7594_s4 + $0x7e8] ss:$16 sps:$4 sm:$0xff]  }
 0x1da   : > { %4484 = vmatpush1.bf16.msra.mxu0 %v5994_v15  ;;  %4812 = vmatpush1.bf16.msra.mxu1 %v5997_v16  ;;  %v1240_v15 = vld [vmem:[%s8175_s0 + $0x30] sm:$0xff]  ;;  %v6095_v16 = vld [vmem:[%s7594_s4 + $0x80c] ss:$16 sps:$4 sm:$0xff]  }
 0x1db   : > { %4485 = vmatprep.subr.bf16.mxu0 %v6002_v17  ;;  %4813 = vmatprep.subr.bf16.mxu1 %v6005_v18  ;;  %v6090_v17 = vld [vmem:[%s7594_s4 + $0x800] ss:$16 sps:$4 sm:$0xff]   ;;  %v6093_v18 = vld [vmem:[%s7594_s4 + $0x808] ss:$16 sps:$4 sm:$0xff]  }
 0x1dc   : > { %4515 = vmatprep.mubr.bf16.mxu0 %v1257_v19  ;;  %4843 = vmatprep.mubr.bf16.mxu1 %v1257_v19  ;;  %v1256_v19 = vpack.c.bf16 %v1240_v15, %v1240_v15  ;;  %v6185_v15 = vld [vmem:[%s7594_s4 + $0x9ec] ss:$16 sps:$4 sm:$0xff]  }
 0x1de   : > { %4486 = vmatpush1.bf16.msra.mxu0 %v6000_v20  ;;  %4814 = vmatpush1.bf16.msra.mxu1 %v6003_v21  ;;  %v1243_v20 = vld [vmem:[%s8175_s0 + $0x48] sm:$0xff]  ;;  %v6098_v21 = vld [vmem:[%s7594_s4 + $0x824] ss:$16 sps:$4 sm:$0xff]  }
 0x1df   : > { %4487 = vmatprep.subr.bf16.mxu0 %v6008_v22  ;;  %4815 = vmatprep.subr.bf16.mxu1 %v6011_v23  ;;  %v6101_v22 = vld [vmem:[%s7594_s4 + $0x82c] ss:$16 sps:$4 sm:$0xff]   ;;  %v1259_v23 = vpack.c.bf16 %v1243_v20, %v1243_v20 }
 0x1e0   : > { %v6191_v20 = vld [vmem:[%s7594_s4 + $0xa0c] ss:$16 sps:$4 sm:$0xff]  }
 0x1e2   : > { %4488 = vmatpush1.bf16.msra.mxu0 %v6006_v24  ;;  %4816 = vmatpush1.bf16.msra.mxu1 %v6009_v25  ;;  %v6096_v24 = vld [vmem:[%s7594_s4 + $0x820] ss:$16 sps:$4 sm:$0xff]   ;;  %v6099_v25 = vld [vmem:[%s7594_s4 + $0x828] ss:$16 sps:$4 sm:$0xff]  }
 0x1e3   : > { %4489 = vmatprep.subr.bf16.mxu0 %v6014_v26  ;;  %4817 = vmatprep.subr.bf16.mxu1 %v6017_v27  ;;  %v6104_v26 = vld [vmem:[%s7594_s4 + $0x844] ss:$16 sps:$4 sm:$0xff]   ;;  %v6107_v27 = vld [vmem:[%s7594_s4 + $0x84c] ss:$16 sps:$4 sm:$0xff]  }
 0x1e6   : > { %4490 = vmatpush1.bf16.msra.mxu0 %v6012_v28  ;;  %4818 = vmatpush1.bf16.msra.mxu1 %v6015_v29  ;;  %v6102_v28 = vld [vmem:[%s7594_s4 + $0x840] ss:$16 sps:$4 sm:$0xff]   ;;  %v6105_v29 = vld [vmem:[%s7594_s4 + $0x848] ss:$16 sps:$4 sm:$0xff]  }
 0x1e7   : > { %4491 = vmatprep.subr.bf16.mxu0 %v6020_v30  ;;  %4819 = vmatprep.subr.bf16.mxu1 %v6023_v31  ;;  %v6110_v30 = vld [vmem:[%s7594_s4 + $0x864] ss:$16 sps:$4 sm:$0xff]   ;;  %v6113_v31 = vld [vmem:[%s7594_s4 + $0x86c] ss:$16 sps:$4 sm:$0xff]  }
 0x1ea   : > { %4492 = vmatpush1.bf16.msra.mxu0 %v6018_v32  ;;  %4820 = vmatpush1.bf16.msra.mxu1 %v6021_v33  ;;  %v6108_v32 = vld [vmem:[%s7594_s4 + $0x860] ss:$16 sps:$4 sm:$0xff]   ;;  %v6111_v33 = vld [vmem:[%s7594_s4 + $0x868] ss:$16 sps:$4 sm:$0xff]  }
 0x1eb   : > { %4493 = vmatprep.subr.bf16.mxu0 %v6026_v34  ;;  %4821 = vmatprep.subr.bf16.mxu1 %v6029_v35  ;;  %v6116_v34 = vld [vmem:[%s7594_s4 + $0x884] ss:$16 sps:$4 sm:$0xff]   ;;  %v6119_v35 = vld [vmem:[%s7594_s4 + $0x88c] ss:$16 sps:$4 sm:$0xff]  }
 0x1ee   : > { %4494 = vmatpush1.bf16.msra.mxu0 %v6024_v36  ;;  %4822 = vmatpush1.bf16.msra.mxu1 %v6027_v37  ;;  %v6114_v36 = vld [vmem:[%s7594_s4 + $0x880] ss:$16 sps:$4 sm:$0xff]   ;;  %v6117_v37 = vld [vmem:[%s7594_s4 + $0x888] ss:$16 sps:$4 sm:$0xff]  }
 0x1ef   : > { %4495 = vmatprep.subr.bf16.mxu0 %v6032_v38  ;;  %4823 = vmatprep.subr.bf16.mxu1 %v6035_v39  ;;  %v6122_v38 = vld [vmem:[%s7594_s4 + $0x8a4] ss:$16 sps:$4 sm:$0xff]   ;;  %v6125_v39 = vld [vmem:[%s7594_s4 + $0x8ac] ss:$16 sps:$4 sm:$0xff]  }
 0x1f2   : > { %4496 = vmatpush1.bf16.msra.mxu0 %v6030_v40  ;;  %4824 = vmatpush1.bf16.msra.mxu1 %v6033_v41  ;;  %v6120_v40 = vld [vmem:[%s7594_s4 + $0x8a0] ss:$16 sps:$4 sm:$0xff]   ;;  %v6123_v41 = vld [vmem:[%s7594_s4 + $0x8a8] ss:$16 sps:$4 sm:$0xff]  }
 0x1f3   : > { %4497 = vmatprep.subr.bf16.mxu0 %v6038_v42  ;;  %4825 = vmatprep.subr.bf16.mxu1 %v6041_v43  ;;  %v6128_v42 = vld [vmem:[%s7594_s4 + $0x8c4] ss:$16 sps:$4 sm:$0xff]   ;;  %v6131_v43 = vld [vmem:[%s7594_s4 + $0x8cc] ss:$16 sps:$4 sm:$0xff]  }
 0x1f6   : > { %4498 = vmatpush1.bf16.msra.mxu0 %v6036_v44  ;;  %4826 = vmatpush1.bf16.msra.mxu1 %v6039_v45  ;;  %v6126_v44 = vld [vmem:[%s7594_s4 + $0x8c0] ss:$16 sps:$4 sm:$0xff]   ;;  %v6129_v45 = vld [vmem:[%s7594_s4 + $0x8c8] ss:$16 sps:$4 sm:$0xff]  }
 0x1f7   : > { %4499 = vmatprep.subr.bf16.mxu0 %v6044_v46  ;;  %4827 = vmatprep.subr.bf16.mxu1 %v6047_v47  ;;  %v6134_v46 = vld [vmem:[%s7594_s4 + $0x8e4] ss:$16 sps:$4 sm:$0xff]   ;;  %v6137_v47 = vld [vmem:[%s7594_s4 + $0x8ec] ss:$16 sps:$4 sm:$0xff]  }
 0x1fa   : > { %4500 = vmatpush1.bf16.msra.mxu0 %v6042_v48  ;;  %4828 = vmatpush1.bf16.msra.mxu1 %v6045_v49  ;;  %v6132_v48 = vld [vmem:[%s7594_s4 + $0x8e0] ss:$16 sps:$4 sm:$0xff]   ;;  %v6135_v49 = vld [vmem:[%s7594_s4 + $0x8e8] ss:$16 sps:$4 sm:$0xff]  }
 0x1fb   : > { %4501 = vmatprep.subr.bf16.mxu0 %v6050_v50  ;;  %4829 = vmatprep.subr.bf16.mxu1 %v6053_v51  ;;  %v6140_v50 = vld [vmem:[%s7594_s4 + $0x904] ss:$16 sps:$4 sm:$0xff]   ;;  %v6143_v51 = vld [vmem:[%s7594_s4 + $0x90c] ss:$16 sps:$4 sm:$0xff]  }
 0x1fe   : > { %4502 = vmatpush1.bf16.msra.mxu0 %v6048_v52  ;;  %4830 = vmatpush1.bf16.msra.mxu1 %v6051_v53  ;;  %v6138_v52 = vld [vmem:[%s7594_s4 + $0x900] ss:$16 sps:$4 sm:$0xff]   ;;  %v6141_v53 = vld [vmem:[%s7594_s4 + $0x908] ss:$16 sps:$4 sm:$0xff]  }
 0x1ff   : > { %4503 = vmatprep.subr.bf16.mxu0 %v6056_v54  ;;  %4831 = vmatprep.subr.bf16.mxu1 %v6059_v55  ;;  %v6146_v54 = vld [vmem:[%s7594_s4 + $0x924] ss:$16 sps:$4 sm:$0xff]   ;;  %v6149_v55 = vld [vmem:[%s7594_s4 + $0x92c] ss:$16 sps:$4 sm:$0xff]  }
 0x202   : > { %4504 = vmatpush1.bf16.msra.mxu0 %v6054_v56  ;;  %4832 = vmatpush1.bf16.msra.mxu1 %v6057_v57  ;;  %v6144_v56 = vld [vmem:[%s7594_s4 + $0x920] ss:$16 sps:$4 sm:$0xff]   ;;  %v6147_v57 = vld [vmem:[%s7594_s4 + $0x928] ss:$16 sps:$4 sm:$0xff]  }
 0x203   : > { %4505 = vmatprep.subr.bf16.mxu0 %v6062_v58  ;;  %4833 = vmatprep.subr.bf16.mxu1 %v6065_v59  ;;  %v6152_v58 = vld [vmem:[%s7594_s4 + $0x944] ss:$16 sps:$4 sm:$0xff]   ;;  %v6155_v59 = vld [vmem:[%s7594_s4 + $0x94c] ss:$16 sps:$4 sm:$0xff]  }
 0x206   : > { %4506 = vmatpush1.bf16.msra.mxu0 %v6060_v60  ;;  %4834 = vmatpush1.bf16.msra.mxu1 %v6063_v61  ;;  %v6150_v60 = vld [vmem:[%s7594_s4 + $0x940] ss:$16 sps:$4 sm:$0xff]   ;;  %v6153_v61 = vld [vmem:[%s7594_s4 + $0x948] ss:$16 sps:$4 sm:$0xff]  }
 0x207   : > { %4507 = vmatprep.subr.bf16.mxu0 %v6068_v62  ;;  %4835 = vmatprep.subr.bf16.mxu1 %v6071_v63  ;;  %v6158_v62 = vld [vmem:[%s7594_s4 + $0x964] ss:$16 sps:$4 sm:$0xff]   ;;  %v6161_v63 = vld [vmem:[%s7594_s4 + $0x96c] ss:$16 sps:$4 sm:$0xff]  }
 0x20a   : > { %4508 = vmatpush1.bf16.msra.mxu0 %v6066_v0  ;;  %4836 = vmatpush1.bf16.msra.mxu1 %v6069_v1  ;;  %v6156_v0 = vld [vmem:[%s7594_s4 + $0x960] ss:$16 sps:$4 sm:$0xff]   ;;  %v6159_v1 = vld [vmem:[%s7594_s4 + $0x968] ss:$16 sps:$4 sm:$0xff]  }
 0x20b   : > { %4509 = vmatprep.subr.bf16.mxu0 %v6074_v2  ;;  %4837 = vmatprep.subr.bf16.mxu1 %v6077_v3  ;;  %v6164_v2 = vld [vmem:[%s7594_s4 + $0x984] ss:$16 sps:$4 sm:$0xff]   ;;  %v6167_v3 = vld [vmem:[%s7594_s4 + $0x98c] ss:$16 sps:$4 sm:$0xff]  }
 0x20e   : > { %4510 = vmatpush1.bf16.msra.mxu0 %v6072_v4  ;;  %4838 = vmatpush1.bf16.msra.mxu1 %v6075_v5  ;;  %v6162_v4 = vld [vmem:[%s7594_s4 + $0x980] ss:$16 sps:$4 sm:$0xff]   ;;  %v6165_v5 = vld [vmem:[%s7594_s4 + $0x988] ss:$16 sps:$4 sm:$0xff]  }
 0x20f   : > { %4511 = vmatprep.subr.bf16.mxu0 %v6080_v6  ;;  %4839 = vmatprep.subr.bf16.mxu1 %v6083_v7  ;;  %v6170_v6 = vld [vmem:[%s7594_s4 + $0x9a4] ss:$16 sps:$4 sm:$0xff]   ;;  %v6173_v7 = vld [vmem:[%s7594_s4 + $0x9ac] ss:$16 sps:$4 sm:$0xff]  }
 0x212   : > { %4512 = vmatpush1.bf16.msra.mxu0 %v6078_v8  ;;  %4840 = vmatpush1.bf16.msra.mxu1 %v6081_v9  ;;  %v6168_v8 = vld [vmem:[%s7594_s4 + $0x9a0] ss:$16 sps:$4 sm:$0xff]   ;;  %v6171_v9 = vld [vmem:[%s7594_s4 + $0x9a8] ss:$16 sps:$4 sm:$0xff]  }
 0x213   : > { %4513 = vmatprep.subr.bf16.mxu0 %v6086_v10  ;;  %4841 = vmatprep.subr.bf16.mxu1 %v6089_v11  ;;  %v6176_v10 = vld [vmem:[%s7594_s4 + $0x9c4] ss:$16 sps:$4 sm:$0xff]   ;;  %v6179_v11 = vld [vmem:[%s7594_s4 + $0x9cc] ss:$16 sps:$4 sm:$0xff]  }
 0x216   : > { %4514 = vmatpush1.bf16.msra.mxu0 %v6084_v12  ;;  %4842 = vmatpush1.bf16.msra.mxu1 %v6087_v13  ;;  %v6174_v12 = vld [vmem:[%s7594_s4 + $0x9c0] ss:$16 sps:$4 sm:$0xff]   ;;  %v6177_v13 = vld [vmem:[%s7594_s4 + $0x9c8] ss:$16 sps:$4 sm:$0xff]  }
 0x217   : > { %4524 = vmatprep.subr.bf16.mxu0 %v6092_v14  ;;  %4852 = vmatprep.subr.bf16.mxu1 %v6095_v16  ;;  %v6182_v14 = vld [vmem:[%s7594_s4 + $0x9e4] ss:$16 sps:$4 sm:$0xff]   ;;  %v6180_v16 = vld [vmem:[%s7594_s4 + $0x9e0] ss:$16 sps:$4 sm:$0xff]  }
 0x219   : > { %4516 = vmatmul.mubr.bf16.vlgmr.msra.gmra.mrb[0].mxu0 %v1256_v19  ;;  %4844 = vmatmul.mubr.bf16.vlgmr.msra.gmra.mrb[0].mxu1 %v1256_v19  ;;  %v1242_v19 = vld [vmem:[%s8175_s0 + $0x40] sm:$0xff] }
 0x21a   : > { %4525 = vmatpush1.bf16.msra.mxu0 %v6090_v17  ;;  %4853 = vmatpush1.bf16.msra.mxu1 %v6093_v18  ;;  %v6183_v17 = vld [vmem:[%s7594_s4 + $0x9e8] ss:$16 sps:$4 sm:$0xff]   ;;  %v6188_v18 = vld [vmem:[%s7594_s4 + $0xa04] ss:$16 sps:$4 sm:$0xff]  }
 0x21b   : > { %4526 = vmatprep.subr.bf16.mxu0 %v6098_v21  ;;  %4854 = vmatprep.subr.bf16.mxu1 %v6101_v22  ;;  %v1245_v21 = vld [vmem:[%s8175_s0 + $0x58] sm:$0xff]  ;;  %v1258_v22 = vpack.c.bf16 %v1242_v19, %v1242_v19 }
 0x21c   : > { %4556 = vmatprep.mubr.bf16.mxu0 %v1259_v23  ;;  %4884 = vmatprep.mubr.bf16.mxu1 %v1259_v23  ;;  %v6186_v23 = vld [vmem:[%s7594_s4 + $0xa00] ss:$16 sps:$4 sm:$0xff]   ;;  %v6281_v19 = vld [vmem:[%s7594_s4 + $0xbec] ss:$16 sps:$4 sm:$0xff]  }
 0x21e   : > { %4527 = vmatpush1.bf16.msra.mxu0 %v6096_v24  ;;  %4855 = vmatpush1.bf16.msra.mxu1 %v6099_v25  ;;  %v6189_v24 = vld [vmem:[%s7594_s4 + $0xa08] ss:$16 sps:$4 sm:$0xff]   ;;  %v6194_v25 = vld [vmem:[%s7594_s4 + $0xa24] ss:$16 sps:$4 sm:$0xff]  }
 0x21f   : > { %4528 = vmatprep.subr.bf16.mxu0 %v6104_v26  ;;  %4856 = vmatprep.subr.bf16.mxu1 %v6107_v27  ;;  %v6197_v26 = vld [vmem:[%s7594_s4 + $0xa2c] ss:$16 sps:$4 sm:$0xff]   ;;  %v1261_v27 = vpack.c.bf16 %v1245_v21, %v1245_v21  ;;  %v6279_v21 = vld [vmem:[%s7594_s4 + $0xbe8] ss:$16 sps:$4 sm:$0xff]  }
 0x222   : > { %4529 = vmatpush1.bf16.msra.mxu0 %v6102_v28  ;;  %4857 = vmatpush1.bf16.msra.mxu1 %v6105_v29  ;;  %v6192_v28 = vld [vmem:[%s7594_s4 + $0xa20] ss:$16 sps:$4 sm:$0xff]   ;;  %v6195_v29 = vld [vmem:[%s7594_s4 + $0xa28] ss:$16 sps:$4 sm:$0xff]  }
 0x223   : > { %4530 = vmatprep.subr.bf16.mxu0 %v6110_v30  ;;  %4858 = vmatprep.subr.bf16.mxu1 %v6113_v31  ;;  %v6200_v30 = vld [vmem:[%s7594_s4 + $0xa44] ss:$16 sps:$4 sm:$0xff]   ;;  %v6203_v31 = vld [vmem:[%s7594_s4 + $0xa4c] ss:$16 sps:$4 sm:$0xff]  }
 0x226   : > { %4531 = vmatpush1.bf16.msra.mxu0 %v6108_v32  ;;  %4859 = vmatpush1.bf16.msra.mxu1 %v6111_v33  ;;  %v6198_v32 = vld [vmem:[%s7594_s4 + $0xa40] ss:$16 sps:$4 sm:$0xff]   ;;  %v6201_v33 = vld [vmem:[%s7594_s4 + $0xa48] ss:$16 sps:$4 sm:$0xff]  }
 0x227   : > { %4532 = vmatprep.subr.bf16.mxu0 %v6116_v34  ;;  %4860 = vmatprep.subr.bf16.mxu1 %v6119_v35  ;;  %v6206_v34 = vld [vmem:[%s7594_s4 + $0xa64] ss:$16 sps:$4 sm:$0xff]   ;;  %v6209_v35 = vld [vmem:[%s7594_s4 + $0xa6c] ss:$16 sps:$4 sm:$0xff]  }
 0x22a   : > { %4533 = vmatpush1.bf16.msra.mxu0 %v6114_v36  ;;  %4861 = vmatpush1.bf16.msra.mxu1 %v6117_v37  ;;  %v6204_v36 = vld [vmem:[%s7594_s4 + $0xa60] ss:$16 sps:$4 sm:$0xff]   ;;  %v6207_v37 = vld [vmem:[%s7594_s4 + $0xa68] ss:$16 sps:$4 sm:$0xff]  }
 0x22b   : > { %4534 = vmatprep.subr.bf16.mxu0 %v6122_v38  ;;  %4862 = vmatprep.subr.bf16.mxu1 %v6125_v39  ;;  %v6212_v38 = vld [vmem:[%s7594_s4 + $0xa84] ss:$16 sps:$4 sm:$0xff]   ;;  %v6215_v39 = vld [vmem:[%s7594_s4 + $0xa8c] ss:$16 sps:$4 sm:$0xff]  }
 0x22e   : > { %4535 = vmatpush1.bf16.msra.mxu0 %v6120_v40  ;;  %4863 = vmatpush1.bf16.msra.mxu1 %v6123_v41  ;;  %v6210_v40 = vld [vmem:[%s7594_s4 + $0xa80] ss:$16 sps:$4 sm:$0xff]   ;;  %v6213_v41 = vld [vmem:[%s7594_s4 + $0xa88] ss:$16 sps:$4 sm:$0xff]  }
 0x22f   : > { %4536 = vmatprep.subr.bf16.mxu0 %v6128_v42  ;;  %4864 = vmatprep.subr.bf16.mxu1 %v6131_v43  ;;  %v6218_v42 = vld [vmem:[%s7594_s4 + $0xaa4] ss:$16 sps:$4 sm:$0xff]   ;;  %v6221_v43 = vld [vmem:[%s7594_s4 + $0xaac] ss:$16 sps:$4 sm:$0xff]  }
 0x232   : > { %4537 = vmatpush1.bf16.msra.mxu0 %v6126_v44  ;;  %4865 = vmatpush1.bf16.msra.mxu1 %v6129_v45  ;;  %v6216_v44 = vld [vmem:[%s7594_s4 + $0xaa0] ss:$16 sps:$4 sm:$0xff]   ;;  %v6219_v45 = vld [vmem:[%s7594_s4 + $0xaa8] ss:$16 sps:$4 sm:$0xff]  }
 0x233   : > { %4538 = vmatprep.subr.bf16.mxu0 %v6134_v46  ;;  %4866 = vmatprep.subr.bf16.mxu1 %v6137_v47  ;;  %v6224_v46 = vld [vmem:[%s7594_s4 + $0xac4] ss:$16 sps:$4 sm:$0xff]   ;;  %v6227_v47 = vld [vmem:[%s7594_s4 + $0xacc] ss:$16 sps:$4 sm:$0xff]  }
 0x236   : > { %4539 = vmatpush1.bf16.msra.mxu0 %v6132_v48  ;;  %4867 = vmatpush1.bf16.msra.mxu1 %v6135_v49  ;;  %v6222_v48 = vld [vmem:[%s7594_s4 + $0xac0] ss:$16 sps:$4 sm:$0xff]   ;;  %v6225_v49 = vld [vmem:[%s7594_s4 + $0xac8] ss:$16 sps:$4 sm:$0xff]  }
 0x237   : > { %4540 = vmatprep.subr.bf16.mxu0 %v6140_v50  ;;  %4868 = vmatprep.subr.bf16.mxu1 %v6143_v51  ;;  %v6230_v50 = vld [vmem:[%s7594_s4 + $0xae4] ss:$16 sps:$4 sm:$0xff]   ;;  %v6233_v51 = vld [vmem:[%s7594_s4 + $0xaec] ss:$16 sps:$4 sm:$0xff]  }
 0x23a   : > { %4541 = vmatpush1.bf16.msra.mxu0 %v6138_v52  ;;  %4869 = vmatpush1.bf16.msra.mxu1 %v6141_v53  ;;  %v6228_v52 = vld [vmem:[%s7594_s4 + $0xae0] ss:$16 sps:$4 sm:$0xff]   ;;  %v6231_v53 = vld [vmem:[%s7594_s4 + $0xae8] ss:$16 sps:$4 sm:$0xff]  }
 0x23b   : > { %4542 = vmatprep.subr.bf16.mxu0 %v6146_v54  ;;  %4870 = vmatprep.subr.bf16.mxu1 %v6149_v55  ;;  %v6236_v54 = vld [vmem:[%s7594_s4 + $0xb04] ss:$16 sps:$4 sm:$0xff]   ;;  %v6239_v55 = vld [vmem:[%s7594_s4 + $0xb0c] ss:$16 sps:$4 sm:$0xff]  }
 0x23e   : > { %4543 = vmatpush1.bf16.msra.mxu0 %v6144_v56  ;;  %4871 = vmatpush1.bf16.msra.mxu1 %v6147_v57  ;;  %v6234_v56 = vld [vmem:[%s7594_s4 + $0xb00] ss:$16 sps:$4 sm:$0xff]   ;;  %v6237_v57 = vld [vmem:[%s7594_s4 + $0xb08] ss:$16 sps:$4 sm:$0xff]  }
 0x23f   : > { %4544 = vmatprep.subr.bf16.mxu0 %v6152_v58  ;;  %4872 = vmatprep.subr.bf16.mxu1 %v6155_v59  ;;  %v6242_v58 = vld [vmem:[%s7594_s4 + $0xb24] ss:$16 sps:$4 sm:$0xff]   ;;  %v6245_v59 = vld [vmem:[%s7594_s4 + $0xb2c] ss:$16 sps:$4 sm:$0xff]  }
 0x242   : > { %4545 = vmatpush1.bf16.msra.mxu0 %v6150_v60  ;;  %4873 = vmatpush1.bf16.msra.mxu1 %v6153_v61  ;;  %v6240_v60 = vld [vmem:[%s7594_s4 + $0xb20] ss:$16 sps:$4 sm:$0xff]   ;;  %v6243_v61 = vld [vmem:[%s7594_s4 + $0xb28] ss:$16 sps:$4 sm:$0xff]  }
 0x243   : > { %4546 = vmatprep.subr.bf16.mxu0 %v6158_v62  ;;  %4874 = vmatprep.subr.bf16.mxu1 %v6161_v63  ;;  %v6248_v62 = vld [vmem:[%s7594_s4 + $0xb44] ss:$16 sps:$4 sm:$0xff]   ;;  %v6251_v63 = vld [vmem:[%s7594_s4 + $0xb4c] ss:$16 sps:$4 sm:$0xff]  }
 0x246   : > { %4547 = vmatpush1.bf16.msra.mxu0 %v6156_v0  ;;  %4875 = vmatpush1.bf16.msra.mxu1 %v6159_v1  ;;  %v6246_v0 = vld [vmem:[%s7594_s4 + $0xb40] ss:$16 sps:$4 sm:$0xff]   ;;  %v6249_v1 = vld [vmem:[%s7594_s4 + $0xb48] ss:$16 sps:$4 sm:$0xff]  }
 0x247   : > { %4548 = vmatprep.subr.bf16.mxu0 %v6164_v2  ;;  %4876 = vmatprep.subr.bf16.mxu1 %v6167_v3  ;;  %v6254_v2 = vld [vmem:[%s7594_s4 + $0xb64] ss:$16 sps:$4 sm:$0xff]   ;;  %v6257_v3 = vld [vmem:[%s7594_s4 + $0xb6c] ss:$16 sps:$4 sm:$0xff]  }
 0x24a   : > { %4549 = vmatpush1.bf16.msra.mxu0 %v6162_v4  ;;  %4877 = vmatpush1.bf16.msra.mxu1 %v6165_v5  ;;  %v6252_v4 = vld [vmem:[%s7594_s4 + $0xb60] ss:$16 sps:$4 sm:$0xff]   ;;  %v6255_v5 = vld [vmem:[%s7594_s4 + $0xb68] ss:$16 sps:$4 sm:$0xff]  }
 0x24b   : > { %4550 = vmatprep.subr.bf16.mxu0 %v6170_v6  ;;  %4878 = vmatprep.subr.bf16.mxu1 %v6173_v7  ;;  %v6260_v6 = vld [vmem:[%s7594_s4 + $0xb84] ss:$16 sps:$4 sm:$0xff]   ;;  %v6263_v7 = vld [vmem:[%s7594_s4 + $0xb8c] ss:$16 sps:$4 sm:$0xff]  }
 0x24e   : > { %4551 = vmatpush1.bf16.msra.mxu0 %v6168_v8  ;;  %4879 = vmatpush1.bf16.msra.mxu1 %v6171_v9  ;;  %v6258_v8 = vld [vmem:[%s7594_s4 + $0xb80] ss:$16 sps:$4 sm:$0xff]   ;;  %v6261_v9 = vld [vmem:[%s7594_s4 + $0xb88] ss:$16 sps:$4 sm:$0xff]  }
 0x24f   : > { %4552 = vmatprep.subr.bf16.mxu0 %v6176_v10  ;;  %4880 = vmatprep.subr.bf16.mxu1 %v6179_v11  ;;  %v6266_v10 = vld [vmem:[%s7594_s4 + $0xba4] ss:$16 sps:$4 sm:$0xff]   ;;  %v6269_v11 = vld [vmem:[%s7594_s4 + $0xbac] ss:$16 sps:$4 sm:$0xff]  }
 0x252   : > { %4553 = vmatpush1.bf16.msra.mxu0 %v6174_v12  ;;  %4881 = vmatpush1.bf16.msra.mxu1 %v6177_v13  ;;  %v6264_v12 = vld [vmem:[%s7594_s4 + $0xba0] ss:$16 sps:$4 sm:$0xff]   ;;  %v6267_v13 = vld [vmem:[%s7594_s4 + $0xba8] ss:$16 sps:$4 sm:$0xff]  }
 0x253   : > { %4554 = vmatprep.subr.bf16.mxu0 %v6182_v14  ;;  %4882 = vmatprep.subr.bf16.mxu1 %v6185_v15  ;;  %v6272_v14 = vld [vmem:[%s7594_s4 + $0xbc4] ss:$16 sps:$4 sm:$0xff]   ;;  %v6275_v15 = vld [vmem:[%s7594_s4 + $0xbcc] ss:$16 sps:$4 sm:$0xff]  }
 0x256   : > { %4555 = vmatpush1.bf16.msra.mxu0 %v6180_v16  ;;  %4883 = vmatpush1.bf16.msra.mxu1 %v6183_v17  ;;  %v6270_v16 = vld [vmem:[%s7594_s4 + $0xbc0] ss:$16 sps:$4 sm:$0xff]   ;;  %v6273_v17 = vld [vmem:[%s7594_s4 + $0xbc8] ss:$16 sps:$4 sm:$0xff]  }
 0x257   : > { %4565 = vmatprep.subr.bf16.mxu0 %v6188_v18  ;;  %4893 = vmatprep.subr.bf16.mxu1 %v6191_v20  ;;  %v6278_v18 = vld [vmem:[%s7594_s4 + $0xbe4] ss:$16 sps:$4 sm:$0xff]   ;;  %v6276_v20 = vld [vmem:[%s7594_s4 + $0xbe0] ss:$16 sps:$4 sm:$0xff]  }
 0x259   : > { %4557 = vmatmul.mubr.bf16.vlgmr.msra.gmra.mrb[0].mxu0 %v1258_v22  ;;  %4885 = vmatmul.mubr.bf16.vlgmr.msra.gmra.mrb[0].mxu1 %v1258_v22  ;;  %v1244_v22 = vld [vmem:[%s8175_s0 + $0x50] sm:$0xff] }
 0x25a   : > { %4566 = vmatpush1.bf16.msra.mxu0 %v6186_v23  ;;  %4894 = vmatpush1.bf16.msra.mxu1 %v6189_v24  ;;  %v6284_v23 = vld [vmem:[%s7594_s4 + $0xc04] ss:$16 sps:$4 sm:$0xff]   ;;  %v6287_v24 = vld [vmem:[%s7594_s4 + $0xc0c] ss:$16 sps:$4 sm:$0xff]  }
 0x25b   : > { %4567 = vmatprep.subr.bf16.mxu0 %v6194_v25  ;;  %4895 = vmatprep.subr.bf16.mxu1 %v6197_v26  ;;  %v1260_v25 = vpack.c.bf16 %v1244_v22, %v1244_v22  ;;  %v1247_v26 = vld [vmem:[%s8175_s0 + $0x68] sm:$0xff]  ;;  %v6374_v22 = vld [vmem:[%s7594_s4 + $0xde4] ss:$16 sps:$4 sm:$0xff]  }
 0x25c   : > { %4597 = vmatprep.mubr.bf16.mxu0 %v1261_v27  ;;  %4925 = vmatprep.mubr.bf16.mxu1 %v1261_v27  ;;  %v6282_v27 = vld [vmem:[%s7594_s4 + $0xc00] ss:$16 sps:$4 sm:$0xff]  }
 0x25e   : > { %4568 = vmatpush1.bf16.msra.mxu0 %v6192_v28  ;;  %4896 = vmatpush1.bf16.msra.mxu1 %v6195_v29  ;;  %v6285_v28 = vld [vmem:[%s7594_s4 + $0xc08] ss:$16 sps:$4 sm:$0xff]   ;;  %v6290_v29 = vld [vmem:[%s7594_s4 + $0xc24] ss:$16 sps:$4 sm:$0xff]  }
 0x25f   : > { %4569 = vmatprep.subr.bf16.mxu0 %v6200_v30  ;;  %4897 = vmatprep.subr.bf16.mxu1 %v6203_v31  ;;  %v6293_v30 = vld [vmem:[%s7594_s4 + $0xc2c] ss:$16 sps:$4 sm:$0xff]   ;;  %v1263_v31 = vpack.c.bf16 %v1247_v26, %v1247_v26  ;;  %v1246_v26 = vld [vmem:[%s8175_s0 + $0x60] sm:$0xff] }
 0x262   : > { %4570 = vmatpush1.bf16.msra.mxu0 %v6198_v32  ;;  %4898 = vmatpush1.bf16.msra.mxu1 %v6201_v33  ;;  %v6288_v32 = vld [vmem:[%s7594_s4 + $0xc20] ss:$16 sps:$4 sm:$0xff]   ;;  %v6291_v33 = vld [vmem:[%s7594_s4 + $0xc28] ss:$16 sps:$4 sm:$0xff]  }
 0x263   : > { %4571 = vmatprep.subr.bf16.mxu0 %v6206_v34  ;;  %4899 = vmatprep.subr.bf16.mxu1 %v6209_v35  ;;  %v6296_v34 = vld [vmem:[%s7594_s4 + $0xc44] ss:$16 sps:$4 sm:$0xff]   ;;  %v6299_v35 = vld [vmem:[%s7594_s4 + $0xc4c] ss:$16 sps:$4 sm:$0xff]  }
 0x266   : > { %4572 = vmatpush1.bf16.msra.mxu0 %v6204_v36  ;;  %4900 = vmatpush1.bf16.msra.mxu1 %v6207_v37  ;;  %v6294_v36 = vld [vmem:[%s7594_s4 + $0xc40] ss:$16 sps:$4 sm:$0xff]   ;;  %v6297_v37 = vld [vmem:[%s7594_s4 + $0xc48] ss:$16 sps:$4 sm:$0xff]  }
 0x267   : > { %4573 = vmatprep.subr.bf16.mxu0 %v6212_v38  ;;  %4901 = vmatprep.subr.bf16.mxu1 %v6215_v39  ;;  %v6302_v38 = vld [vmem:[%s7594_s4 + $0xc64] ss:$16 sps:$4 sm:$0xff]   ;;  %v6305_v39 = vld [vmem:[%s7594_s4 + $0xc6c] ss:$16 sps:$4 sm:$0xff]  }
 0x26a   : > { %4574 = vmatpush1.bf16.msra.mxu0 %v6210_v40  ;;  %4902 = vmatpush1.bf16.msra.mxu1 %v6213_v41  ;;  %v6300_v40 = vld [vmem:[%s7594_s4 + $0xc60] ss:$16 sps:$4 sm:$0xff]   ;;  %v6303_v41 = vld [vmem:[%s7594_s4 + $0xc68] ss:$16 sps:$4 sm:$0xff]  }
 0x26b   : > { %4575 = vmatprep.subr.bf16.mxu0 %v6218_v42  ;;  %4903 = vmatprep.subr.bf16.mxu1 %v6221_v43  ;;  %v6308_v42 = vld [vmem:[%s7594_s4 + $0xc84] ss:$16 sps:$4 sm:$0xff]   ;;  %v6311_v43 = vld [vmem:[%s7594_s4 + $0xc8c] ss:$16 sps:$4 sm:$0xff]  }
 0x26e   : > { %4576 = vmatpush1.bf16.msra.mxu0 %v6216_v44  ;;  %4904 = vmatpush1.bf16.msra.mxu1 %v6219_v45  ;;  %v6306_v44 = vld [vmem:[%s7594_s4 + $0xc80] ss:$16 sps:$4 sm:$0xff]   ;;  %v6309_v45 = vld [vmem:[%s7594_s4 + $0xc88] ss:$16 sps:$4 sm:$0xff]  }
 0x26f   : > { %4577 = vmatprep.subr.bf16.mxu0 %v6224_v46  ;;  %4905 = vmatprep.subr.bf16.mxu1 %v6227_v47  ;;  %v6314_v46 = vld [vmem:[%s7594_s4 + $0xca4] ss:$16 sps:$4 sm:$0xff]   ;;  %v6317_v47 = vld [vmem:[%s7594_s4 + $0xcac] ss:$16 sps:$4 sm:$0xff]  }
 0x272   : > { %4578 = vmatpush1.bf16.msra.mxu0 %v6222_v48  ;;  %4906 = vmatpush1.bf16.msra.mxu1 %v6225_v49  ;;  %v6312_v48 = vld [vmem:[%s7594_s4 + $0xca0] ss:$16 sps:$4 sm:$0xff]   ;;  %v6315_v49 = vld [vmem:[%s7594_s4 + $0xca8] ss:$16 sps:$4 sm:$0xff]  }
 0x273   : > { %4579 = vmatprep.subr.bf16.mxu0 %v6230_v50  ;;  %4907 = vmatprep.subr.bf16.mxu1 %v6233_v51  ;;  %v6320_v50 = vld [vmem:[%s7594_s4 + $0xcc4] ss:$16 sps:$4 sm:$0xff]   ;;  %v6323_v51 = vld [vmem:[%s7594_s4 + $0xccc] ss:$16 sps:$4 sm:$0xff]  }
 0x276   : > { %4580 = vmatpush1.bf16.msra.mxu0 %v6228_v52  ;;  %4908 = vmatpush1.bf16.msra.mxu1 %v6231_v53  ;;  %v6318_v52 = vld [vmem:[%s7594_s4 + $0xcc0] ss:$16 sps:$4 sm:$0xff]   ;;  %v6321_v53 = vld [vmem:[%s7594_s4 + $0xcc8] ss:$16 sps:$4 sm:$0xff]  }
 0x277   : > { %4581 = vmatprep.subr.bf16.mxu0 %v6236_v54  ;;  %4909 = vmatprep.subr.bf16.mxu1 %v6239_v55  ;;  %v6326_v54 = vld [vmem:[%s7594_s4 + $0xce4] ss:$16 sps:$4 sm:$0xff]   ;;  %v6329_v55 = vld [vmem:[%s7594_s4 + $0xcec] ss:$16 sps:$4 sm:$0xff]  }
 0x27a   : > { %4582 = vmatpush1.bf16.msra.mxu0 %v6234_v56  ;;  %4910 = vmatpush1.bf16.msra.mxu1 %v6237_v57  ;;  %v6324_v56 = vld [vmem:[%s7594_s4 + $0xce0] ss:$16 sps:$4 sm:$0xff]   ;;  %v6327_v57 = vld [vmem:[%s7594_s4 + $0xce8] ss:$16 sps:$4 sm:$0xff]  }
 0x27b   : > { %4583 = vmatprep.subr.bf16.mxu0 %v6242_v58  ;;  %4911 = vmatprep.subr.bf16.mxu1 %v6245_v59  ;;  %v6332_v58 = vld [vmem:[%s7594_s4 + $0xd04] ss:$16 sps:$4 sm:$0xff]   ;;  %v6335_v59 = vld [vmem:[%s7594_s4 + $0xd0c] ss:$16 sps:$4 sm:$0xff]  }
 0x27e   : > { %4584 = vmatpush1.bf16.msra.mxu0 %v6240_v60  ;;  %4912 = vmatpush1.bf16.msra.mxu1 %v6243_v61  ;;  %v6330_v60 = vld [vmem:[%s7594_s4 + $0xd00] ss:$16 sps:$4 sm:$0xff]   ;;  %v6333_v61 = vld [vmem:[%s7594_s4 + $0xd08] ss:$16 sps:$4 sm:$0xff]  }
 0x27f   : > { %4585 = vmatprep.subr.bf16.mxu0 %v6248_v62  ;;  %4913 = vmatprep.subr.bf16.mxu1 %v6251_v63  ;;  %v6338_v62 = vld [vmem:[%s7594_s4 + $0xd24] ss:$16 sps:$4 sm:$0xff]   ;;  %v6341_v63 = vld [vmem:[%s7594_s4 + $0xd2c] ss:$16 sps:$4 sm:$0xff]  }
 0x282   : > { %4586 = vmatpush1.bf16.msra.mxu0 %v6246_v0  ;;  %4914 = vmatpush1.bf16.msra.mxu1 %v6249_v1  ;;  %v6336_v0 = vld [vmem:[%s7594_s4 + $0xd20] ss:$16 sps:$4 sm:$0xff]   ;;  %v6339_v1 = vld [vmem:[%s7594_s4 + $0xd28] ss:$16 sps:$4 sm:$0xff]  }
 0x283   : > { %4587 = vmatprep.subr.bf16.mxu0 %v6254_v2  ;;  %4915 = vmatprep.subr.bf16.mxu1 %v6257_v3  ;;  %v6344_v2 = vld [vmem:[%s7594_s4 + $0xd44] ss:$16 sps:$4 sm:$0xff]   ;;  %v6347_v3 = vld [vmem:[%s7594_s4 + $0xd4c] ss:$16 sps:$4 sm:$0xff]  }
 0x286   : > { %4588 = vmatpush1.bf16.msra.mxu0 %v6252_v4  ;;  %4916 = vmatpush1.bf16.msra.mxu1 %v6255_v5  ;;  %v6342_v4 = vld [vmem:[%s7594_s4 + $0xd40] ss:$16 sps:$4 sm:$0xff]   ;;  %v6345_v5 = vld [vmem:[%s7594_s4 + $0xd48] ss:$16 sps:$4 sm:$0xff]  }
 0x287   : > { %4589 = vmatprep.subr.bf16.mxu0 %v6260_v6  ;;  %4917 = vmatprep.subr.bf16.mxu1 %v6263_v7  ;;  %v6350_v6 = vld [vmem:[%s7594_s4 + $0xd64] ss:$16 sps:$4 sm:$0xff]   ;;  %v6353_v7 = vld [vmem:[%s7594_s4 + $0xd6c] ss:$16 sps:$4 sm:$0xff]  }
 0x28a   : > { %4590 = vmatpush1.bf16.msra.mxu0 %v6258_v8  ;;  %4918 = vmatpush1.bf16.msra.mxu1 %v6261_v9  ;;  %v6348_v8 = vld [vmem:[%s7594_s4 + $0xd60] ss:$16 sps:$4 sm:$0xff]   ;;  %v6351_v9 = vld [vmem:[%s7594_s4 + $0xd68] ss:$16 sps:$4 sm:$0xff]  }
 0x28b   : > { %4591 = vmatprep.subr.bf16.mxu0 %v6266_v10  ;;  %4919 = vmatprep.subr.bf16.mxu1 %v6269_v11  ;;  %v6356_v10 = vld [vmem:[%s7594_s4 + $0xd84] ss:$16 sps:$4 sm:$0xff]   ;;  %v6359_v11 = vld [vmem:[%s7594_s4 + $0xd8c] ss:$16 sps:$4 sm:$0xff]  }
 0x28e   : > { %4592 = vmatpush1.bf16.msra.mxu0 %v6264_v12  ;;  %4920 = vmatpush1.bf16.msra.mxu1 %v6267_v13  ;;  %v6354_v12 = vld [vmem:[%s7594_s4 + $0xd80] ss:$16 sps:$4 sm:$0xff]   ;;  %v6357_v13 = vld [vmem:[%s7594_s4 + $0xd88] ss:$16 sps:$4 sm:$0xff]  }
 0x28f   : > { %4593 = vmatprep.subr.bf16.mxu0 %v6272_v14  ;;  %4921 = vmatprep.subr.bf16.mxu1 %v6275_v15  ;;  %v6362_v14 = vld [vmem:[%s7594_s4 + $0xda4] ss:$16 sps:$4 sm:$0xff]   ;;  %v6365_v15 = vld [vmem:[%s7594_s4 + $0xdac] ss:$16 sps:$4 sm:$0xff]  }
 0x292   : > { %4594 = vmatpush1.bf16.msra.mxu0 %v6270_v16  ;;  %4922 = vmatpush1.bf16.msra.mxu1 %v6273_v17  ;;  %v6360_v16 = vld [vmem:[%s7594_s4 + $0xda0] ss:$16 sps:$4 sm:$0xff]   ;;  %v6363_v17 = vld [vmem:[%s7594_s4 + $0xda8] ss:$16 sps:$4 sm:$0xff]  }
 0x293   : > { %4595 = vmatprep.subr.bf16.mxu0 %v6278_v18  ;;  %4923 = vmatprep.subr.bf16.mxu1 %v6281_v19  ;;  %v6368_v18 = vld [vmem:[%s7594_s4 + $0xdc4] ss:$16 sps:$4 sm:$0xff]   ;;  %v6371_v19 = vld [vmem:[%s7594_s4 + $0xdcc] ss:$16 sps:$4 sm:$0xff]  }
 0x296   : > { %4596 = vmatpush1.bf16.msra.mxu0 %v6276_v20  ;;  %4924 = vmatpush1.bf16.msra.mxu1 %v6279_v21  ;;  %v6366_v20 = vld [vmem:[%s7594_s4 + $0xdc0] ss:$16 sps:$4 sm:$0xff]   ;;  %v6369_v21 = vld [vmem:[%s7594_s4 + $0xdc8] ss:$16 sps:$4 sm:$0xff]  }
 0x297   : > { %4606 = vmatprep.subr.bf16.mxu0 %v6284_v23  ;;  %4934 = vmatprep.subr.bf16.mxu1 %v6287_v24  ;;  %v6377_v23 = vld [vmem:[%s7594_s4 + $0xdec] ss:$16 sps:$4 sm:$0xff]   ;;  %v6372_v24 = vld [vmem:[%s7594_s4 + $0xde0] ss:$16 sps:$4 sm:$0xff]  }
 0x299   : > { %4598 = vmatmul.mubr.bf16.vlgmr.msra.gmra.mrb[0].mxu0 %v1260_v25  ;;  %4926 = vmatmul.mubr.bf16.vlgmr.msra.gmra.mrb[0].mxu1 %v1260_v25  ;;  %v6375_v25 = vld [vmem:[%s7594_s4 + $0xde8] ss:$16 sps:$4 sm:$0xff]  }
 0x29a   : > { %4607 = vmatpush1.bf16.msra.mxu0 %v6282_v27  ;;  %4935 = vmatpush1.bf16.msra.mxu1 %v6285_v28  ;;  %v6380_v27 = vld [vmem:[%s7594_s4 + $0xe04] ss:$16 sps:$4 sm:$0xff]   ;;  %v6383_v28 = vld [vmem:[%s7594_s4 + $0xe0c] ss:$16 sps:$4 sm:$0xff]  }
 0x29b   : > { %4608 = vmatprep.subr.bf16.mxu0 %v6290_v29  ;;  %4936 = vmatprep.subr.bf16.mxu1 %v6293_v30  ;;  %v1262_v29 = vpack.c.bf16 %v1246_v26, %v1246_v26  ;;  %v1249_v30 = vld [vmem:[%s8175_s0 + $0x78] sm:$0xff]  ;;  %v6470_v26 = vld [vmem:[%s7594_s4 + $0xfe4] ss:$16 sps:$4 sm:$0xff]  }
 0x29c   : > { %4638 = vmatprep.mubr.bf16.mxu0 %v1263_v31  ;;  %4966 = vmatprep.mubr.bf16.mxu1 %v1263_v31  ;;  %v6378_v31 = vld [vmem:[%s7594_s4 + $0xe00] ss:$16 sps:$4 sm:$0xff]  }
 0x29e   : > { %4609 = vmatpush1.bf16.msra.mxu0 %v6288_v32  ;;  %4937 = vmatpush1.bf16.msra.mxu1 %v6291_v33  ;;  %v6381_v32 = vld [vmem:[%s7594_s4 + $0xe08] ss:$16 sps:$4 sm:$0xff]   ;;  %v6386_v33 = vld [vmem:[%s7594_s4 + $0xe24] ss:$16 sps:$4 sm:$0xff]  }
 0x29f   : > { %4610 = vmatprep.subr.bf16.mxu0 %v6296_v34  ;;  %4938 = vmatprep.subr.bf16.mxu1 %v6299_v35  ;;  %v6389_v34 = vld [vmem:[%s7594_s4 + $0xe2c] ss:$16 sps:$4 sm:$0xff]   ;;  %v1265_v35 = vpack.c.bf16 %v1249_v30, %v1249_v30  ;;  %v1248_v30 = vld [vmem:[%s8175_s0 + $0x70] sm:$0xff] }
 0x2a2   : > { %4611 = vmatpush1.bf16.msra.mxu0 %v6294_v36  ;;  %4939 = vmatpush1.bf16.msra.mxu1 %v6297_v37  ;;  %v6384_v36 = vld [vmem:[%s7594_s4 + $0xe20] ss:$16 sps:$4 sm:$0xff]   ;;  %v6387_v37 = vld [vmem:[%s7594_s4 + $0xe28] ss:$16 sps:$4 sm:$0xff]  }
 0x2a3   : > { %4612 = vmatprep.subr.bf16.mxu0 %v6302_v38  ;;  %4940 = vmatprep.subr.bf16.mxu1 %v6305_v39  ;;  %v6392_v38 = vld [vmem:[%s7594_s4 + $0xe44] ss:$16 sps:$4 sm:$0xff]   ;;  %v6395_v39 = vld [vmem:[%s7594_s4 + $0xe4c] ss:$16 sps:$4 sm:$0xff]  }
 0x2a6   : > { %4613 = vmatpush1.bf16.msra.mxu0 %v6300_v40  ;;  %4941 = vmatpush1.bf16.msra.mxu1 %v6303_v41  ;;  %v6390_v40 = vld [vmem:[%s7594_s4 + $0xe40] ss:$16 sps:$4 sm:$0xff]   ;;  %v6393_v41 = vld [vmem:[%s7594_s4 + $0xe48] ss:$16 sps:$4 sm:$0xff]  }
 0x2a7   : > { %4614 = vmatprep.subr.bf16.mxu0 %v6308_v42  ;;  %4942 = vmatprep.subr.bf16.mxu1 %v6311_v43  ;;  %v6398_v42 = vld [vmem:[%s7594_s4 + $0xe64] ss:$16 sps:$4 sm:$0xff]   ;;  %v6401_v43 = vld [vmem:[%s7594_s4 + $0xe6c] ss:$16 sps:$4 sm:$0xff]  }
 0x2aa   : > { %4615 = vmatpush1.bf16.msra.mxu0 %v6306_v44  ;;  %4943 = vmatpush1.bf16.msra.mxu1 %v6309_v45  ;;  %v6396_v44 = vld [vmem:[%s7594_s4 + $0xe60] ss:$16 sps:$4 sm:$0xff]   ;;  %v6399_v45 = vld [vmem:[%s7594_s4 + $0xe68] ss:$16 sps:$4 sm:$0xff]  }
 0x2ab   : > { %4616 = vmatprep.subr.bf16.mxu0 %v6314_v46  ;;  %4944 = vmatprep.subr.bf16.mxu1 %v6317_v47  ;;  %v6404_v46 = vld [vmem:[%s7594_s4 + $0xe84] ss:$16 sps:$4 sm:$0xff]   ;;  %v6407_v47 = vld [vmem:[%s7594_s4 + $0xe8c] ss:$16 sps:$4 sm:$0xff]  }
 0x2ae   : > { %4617 = vmatpush1.bf16.msra.mxu0 %v6312_v48  ;;  %4945 = vmatpush1.bf16.msra.mxu1 %v6315_v49  ;;  %v6402_v48 = vld [vmem:[%s7594_s4 + $0xe80] ss:$16 sps:$4 sm:$0xff]   ;;  %v6405_v49 = vld [vmem:[%s7594_s4 + $0xe88] ss:$16 sps:$4 sm:$0xff]  }
 0x2af   : > { %4618 = vmatprep.subr.bf16.mxu0 %v6320_v50  ;;  %4946 = vmatprep.subr.bf16.mxu1 %v6323_v51  ;;  %v6410_v50 = vld [vmem:[%s7594_s4 + $0xea4] ss:$16 sps:$4 sm:$0xff]   ;;  %v6413_v51 = vld [vmem:[%s7594_s4 + $0xeac] ss:$16 sps:$4 sm:$0xff]  }
 0x2b2   : > { %4619 = vmatpush1.bf16.msra.mxu0 %v6318_v52  ;;  %4947 = vmatpush1.bf16.msra.mxu1 %v6321_v53  ;;  %v6408_v52 = vld [vmem:[%s7594_s4 + $0xea0] ss:$16 sps:$4 sm:$0xff]   ;;  %v6411_v53 = vld [vmem:[%s7594_s4 + $0xea8] ss:$16 sps:$4 sm:$0xff]  }
 0x2b3   : > { %4620 = vmatprep.subr.bf16.mxu0 %v6326_v54  ;;  %4948 = vmatprep.subr.bf16.mxu1 %v6329_v55  ;;  %v6416_v54 = vld [vmem:[%s7594_s4 + $0xec4] ss:$16 sps:$4 sm:$0xff]   ;;  %v6419_v55 = vld [vmem:[%s7594_s4 + $0xecc] ss:$16 sps:$4 sm:$0xff]  }
 0x2b6   : > { %4621 = vmatpush1.bf16.msra.mxu0 %v6324_v56  ;;  %4949 = vmatpush1.bf16.msra.mxu1 %v6327_v57  ;;  %v6414_v56 = vld [vmem:[%s7594_s4 + $0xec0] ss:$16 sps:$4 sm:$0xff]   ;;  %v6417_v57 = vld [vmem:[%s7594_s4 + $0xec8] ss:$16 sps:$4 sm:$0xff]  }
 0x2b7   : > { %4622 = vmatprep.subr.bf16.mxu0 %v6332_v58  ;;  %4950 = vmatprep.subr.bf16.mxu1 %v6335_v59  ;;  %v6422_v58 = vld [vmem:[%s7594_s4 + $0xee4] ss:$16 sps:$4 sm:$0xff]   ;;  %v6425_v59 = vld [vmem:[%s7594_s4 + $0xeec] ss:$16 sps:$4 sm:$0xff]  }
 0x2ba   : > { %4623 = vmatpush1.bf16.msra.mxu0 %v6330_v60  ;;  %4951 = vmatpush1.bf16.msra.mxu1 %v6333_v61  ;;  %v6420_v60 = vld [vmem:[%s7594_s4 + $0xee0] ss:$16 sps:$4 sm:$0xff]   ;;  %v6423_v61 = vld [vmem:[%s7594_s4 + $0xee8] ss:$16 sps:$4 sm:$0xff]  }
 0x2bb   : > { %4624 = vmatprep.subr.bf16.mxu0 %v6338_v62  ;;  %4952 = vmatprep.subr.bf16.mxu1 %v6341_v63  ;;  %v6428_v62 = vld [vmem:[%s7594_s4 + $0xf04] ss:$16 sps:$4 sm:$0xff]   ;;  %v6431_v63 = vld [vmem:[%s7594_s4 + $0xf0c] ss:$16 sps:$4 sm:$0xff]  }
 0x2be   : > { %4625 = vmatpush1.bf16.msra.mxu0 %v6336_v0  ;;  %4953 = vmatpush1.bf16.msra.mxu1 %v6339_v1  ;;  %v6426_v0 = vld [vmem:[%s7594_s4 + $0xf00] ss:$16 sps:$4 sm:$0xff]   ;;  %v6429_v1 = vld [vmem:[%s7594_s4 + $0xf08] ss:$16 sps:$4 sm:$0xff]  }
 0x2bf   : > { %4626 = vmatprep.subr.bf16.mxu0 %v6344_v2  ;;  %4954 = vmatprep.subr.bf16.mxu1 %v6347_v3  ;;  %v6434_v2 = vld [vmem:[%s7594_s4 + $0xf24] ss:$16 sps:$4 sm:$0xff]   ;;  %v6437_v3 = vld [vmem:[%s7594_s4 + $0xf2c] ss:$16 sps:$4 sm:$0xff]  }
 0x2c2   : > { %4627 = vmatpush1.bf16.msra.mxu0 %v6342_v4  ;;  %4955 = vmatpush1.bf16.msra.mxu1 %v6345_v5  ;;  %v6432_v4 = vld [vmem:[%s7594_s4 + $0xf20] ss:$16 sps:$4 sm:$0xff]   ;;  %v6435_v5 = vld [vmem:[%s7594_s4 + $0xf28] ss:$16 sps:$4 sm:$0xff]  }
 0x2c3   : > { %4628 = vmatprep.subr.bf16.mxu0 %v6350_v6  ;;  %4956 = vmatprep.subr.bf16.mxu1 %v6353_v7  ;;  %v6440_v6 = vld [vmem:[%s7594_s4 + $0xf44] ss:$16 sps:$4 sm:$0xff]   ;;  %v6443_v7 = vld [vmem:[%s7594_s4 + $0xf4c] ss:$16 sps:$4 sm:$0xff]  }
 0x2c6   : > { %4629 = vmatpush1.bf16.msra.mxu0 %v6348_v8  ;;  %4957 = vmatpush1.bf16.msra.mxu1 %v6351_v9  ;;  %v6438_v8 = vld [vmem:[%s7594_s4 + $0xf40] ss:$16 sps:$4 sm:$0xff]   ;;  %v6441_v9 = vld [vmem:[%s7594_s4 + $0xf48] ss:$16 sps:$4 sm:$0xff]  }
 0x2c7   : > { %4630 = vmatprep.subr.bf16.mxu0 %v6356_v10  ;;  %4958 = vmatprep.subr.bf16.mxu1 %v6359_v11  ;;  %v6446_v10 = vld [vmem:[%s7594_s4 + $0xf64] ss:$16 sps:$4 sm:$0xff]   ;;  %v6449_v11 = vld [vmem:[%s7594_s4 + $0xf6c] ss:$16 sps:$4 sm:$0xff]  }
 0x2ca   : > { %4631 = vmatpush1.bf16.msra.mxu0 %v6354_v12  ;;  %4959 = vmatpush1.bf16.msra.mxu1 %v6357_v13  ;;  %v6444_v12 = vld [vmem:[%s7594_s4 + $0xf60] ss:$16 sps:$4 sm:$0xff]   ;;  %v6447_v13 = vld [vmem:[%s7594_s4 + $0xf68] ss:$16 sps:$4 sm:$0xff]  }
 0x2cb   : > { %4632 = vmatprep.subr.bf16.mxu0 %v6362_v14  ;;  %4960 = vmatprep.subr.bf16.mxu1 %v6365_v15  ;;  %v6452_v14 = vld [vmem:[%s7594_s4 + $0xf84] ss:$16 sps:$4 sm:$0xff]   ;;  %v6455_v15 = vld [vmem:[%s7594_s4 + $0xf8c] ss:$16 sps:$4 sm:$0xff]  }
 0x2ce   : > { %4633 = vmatpush1.bf16.msra.mxu0 %v6360_v16  ;;  %4961 = vmatpush1.bf16.msra.mxu1 %v6363_v17  ;;  %v6450_v16 = vld [vmem:[%s7594_s4 + $0xf80] ss:$16 sps:$4 sm:$0xff]   ;;  %v6453_v17 = vld [vmem:[%s7594_s4 + $0xf88] ss:$16 sps:$4 sm:$0xff]  }
 0x2cf   : > { %4634 = vmatprep.subr.bf16.mxu0 %v6368_v18  ;;  %4962 = vmatprep.subr.bf16.mxu1 %v6371_v19  ;;  %v6458_v18 = vld [vmem:[%s7594_s4 + $0xfa4] ss:$16 sps:$4 sm:$0xff]   ;;  %v6461_v19 = vld [vmem:[%s7594_s4 + $0xfac] ss:$16 sps:$4 sm:$0xff]  }
 0x2d2   : > { %4635 = vmatpush1.bf16.msra.mxu0 %v6366_v20  ;;  %4963 = vmatpush1.bf16.msra.mxu1 %v6369_v21  ;;  %v6456_v20 = vld [vmem:[%s7594_s4 + $0xfa0] ss:$16 sps:$4 sm:$0xff]   ;;  %v6459_v21 = vld [vmem:[%s7594_s4 + $0xfa8] ss:$16 sps:$4 sm:$0xff]  }
 0x2d3   : > { %4636 = vmatprep.subr.bf16.mxu0 %v6374_v22  ;;  %4964 = vmatprep.subr.bf16.mxu1 %v6377_v23  ;;  %v6464_v22 = vld [vmem:[%s7594_s4 + $0xfc4] ss:$16 sps:$4 sm:$0xff]   ;;  %v6467_v23 = vld [vmem:[%s7594_s4 + $0xfcc] ss:$16 sps:$4 sm:$0xff]  }
 0x2d6   : > { %4637 = vmatpush1.bf16.msra.mxu0 %v6372_v24  ;;  %4965 = vmatpush1.bf16.msra.mxu1 %v6375_v25  ;;  %v6462_v24 = vld [vmem:[%s7594_s4 + $0xfc0] ss:$16 sps:$4 sm:$0xff]   ;;  %v6465_v25 = vld [vmem:[%s7594_s4 + $0xfc8] ss:$16 sps:$4 sm:$0xff]  }
 0x2d7   : > { %4647 = vmatprep.subr.bf16.mxu0 %v6380_v27  ;;  %4975 = vmatprep.subr.bf16.mxu1 %v6383_v28  ;;  %v6473_v27 = vld [vmem:[%s7594_s4 + $0xfec] ss:$16 sps:$4 sm:$0xff]   ;;  %v6468_v28 = vld [vmem:[%s7594_s4 + $0xfe0] ss:$16 sps:$4 sm:$0xff]  }
 0x2d9   : > { %4639 = vmatmul.mubr.bf16.vlgmr.msra.gmra.mrb[0].mxu0 %v1262_v29  ;;  %4967 = vmatmul.mubr.bf16.vlgmr.msra.gmra.mrb[0].mxu1 %v1262_v29  ;;  %v6471_v29 = vld [vmem:[%s7594_s4 + $0xfe8] ss:$16 sps:$4 sm:$0xff]  }
 0x2da   : > { %4648 = vmatpush1.bf16.msra.mxu0 %v6378_v31  ;;  %4976 = vmatpush1.bf16.msra.mxu1 %v6381_v32  ;;  %v1264_v31 = vpack.c.bf16 %v1248_v30, %v1248_v30  ;;  %v1780_v32 = vlaneseq }
 0x2db   : > { %4649 = vmatprep.subr.bf16.mxu0 %v6386_v33  ;;  %4977 = vmatprep.subr.bf16.mxu1 %v6389_v34 }
 0x2dc   : > { %4679 = vmatprep.mubr.bf16.mxu0 %v1265_v35  ;;  %5007 = vmatprep.mubr.bf16.mxu1 %v1265_v35  ;;  %v1781_v33 = vshrl.u32 %v1780_v32, 7 }
 0x2de   : > { %4650 = vmatpush1.bf16.msra.mxu0 %v6384_v36  ;;  %4978 = vmatpush1.bf16.msra.mxu1 %v6387_v37  ;;  %v1782_v34 = vsub.s32 0, %v1781_v33  ;;  %v1790_v35 = vsub.s32 2, %v1781_v33  ;;  %v1778_v36 = vld [vmem:[%s1226_s21] sm:$0xf]  ;;  %v1786_v37 = vsub.s32 1, %v1781_v33 }
 0x2df   : > { %4651 = vmatprep.subr.bf16.mxu0 %v6392_v38  ;;  %4979 = vmatprep.subr.bf16.mxu1 %v6395_v39  ;;  %v1794_v38 = vsub.s32 3, %v1781_v33 }
 0x2e0   : > { %v1783_v39 = vrot.slane %v1778_v36, %v1782_v34 }
 0x2e2   : > { %4652 = vmatpush1.bf16.msra.mxu0 %v6390_v40  ;;  %4980 = vmatpush1.bf16.msra.mxu1 %v6393_v41  ;;  %v1791_v40 = vrot.slane %v1778_v36, %v1790_v35  ;;  %v1787_v41 = vrot.slane %v1778_v36, %v1786_v37 }
 0x2e3   : > { %4653 = vmatprep.subr.bf16.mxu0 %v6398_v42  ;;  %4981 = vmatprep.subr.bf16.mxu1 %v6401_v43  ;;  %v1795_v42 = vrot.slane %v1778_v36, %v1794_v38 }
 0x2e6   : > { %4654 = vmatpush1.bf16.msra.mxu0 %v6396_v44  ;;  %4982 = vmatpush1.bf16.msra.mxu1 %v6399_v45 }
 0x2e7   : > { %4655 = vmatprep.subr.bf16.mxu0 %v6404_v46  ;;  %4983 = vmatprep.subr.bf16.mxu1 %v6407_v47 }
 0x2ea   : > { %4656 = vmatpush1.bf16.msra.mxu0 %v6402_v48  ;;  %4984 = vmatpush1.bf16.msra.mxu1 %v6405_v49 }
 0x2eb   : > { %4657 = vmatprep.subr.bf16.mxu0 %v6410_v50  ;;  %4985 = vmatprep.subr.bf16.mxu1 %v6413_v51 }
 0x2ee   : > { %4658 = vmatpush1.bf16.msra.mxu0 %v6408_v52  ;;  %4986 = vmatpush1.bf16.msra.mxu1 %v6411_v53 }
 0x2ef   : > { %4659 = vmatprep.subr.bf16.mxu0 %v6416_v54  ;;  %4987 = vmatprep.subr.bf16.mxu1 %v6419_v55 }
 0x2f2   : > { %4660 = vmatpush1.bf16.msra.mxu0 %v6414_v56  ;;  %4988 = vmatpush1.bf16.msra.mxu1 %v6417_v57 }
 0x2f3   : > { %4661 = vmatprep.subr.bf16.mxu0 %v6422_v58  ;;  %4989 = vmatprep.subr.bf16.mxu1 %v6425_v59 }
 0x2f6   : > { %4662 = vmatpush1.bf16.msra.mxu0 %v6420_v60  ;;  %4990 = vmatpush1.bf16.msra.mxu1 %v6423_v61 }
 0x2f7   : > { %4663 = vmatprep.subr.bf16.mxu0 %v6428_v62  ;;  %4991 = vmatprep.subr.bf16.mxu1 %v6431_v63 }
 0x2fa   : > { %4664 = vmatpush1.bf16.msra.mxu0 %v6426_v0  ;;  %4992 = vmatpush1.bf16.msra.mxu1 %v6429_v1 }
 0x2fb   : > { %4665 = vmatprep.subr.bf16.mxu0 %v6434_v2  ;;  %4993 = vmatprep.subr.bf16.mxu1 %v6437_v3 }
 0x2fe   : > { %4666 = vmatpush1.bf16.msra.mxu0 %v6432_v4  ;;  %4994 = vmatpush1.bf16.msra.mxu1 %v6435_v5 }
 0x2ff   : > { %4667 = vmatprep.subr.bf16.mxu0 %v6440_v6  ;;  %4995 = vmatprep.subr.bf16.mxu1 %v6443_v7 }
 0x302   : > { %4668 = vmatpush1.bf16.msra.mxu0 %v6438_v8  ;;  %4996 = vmatpush1.bf16.msra.mxu1 %v6441_v9 }
 0x303   : > { %4669 = vmatprep.subr.bf16.mxu0 %v6446_v10  ;;  %4997 = vmatprep.subr.bf16.mxu1 %v6449_v11 }
 0x306   : > { %4670 = vmatpush1.bf16.msra.mxu0 %v6444_v12  ;;  %4998 = vmatpush1.bf16.msra.mxu1 %v6447_v13 }
 0x307   : > { %4671 = vmatprep.subr.bf16.mxu0 %v6452_v14  ;;  %4999 = vmatprep.subr.bf16.mxu1 %v6455_v15 }
 0x30a   : > { %4672 = vmatpush1.bf16.msra.mxu0 %v6450_v16  ;;  %5000 = vmatpush1.bf16.msra.mxu1 %v6453_v17 }
 0x30b   : > { %4673 = vmatprep.subr.bf16.mxu0 %v6458_v18  ;;  %5001 = vmatprep.subr.bf16.mxu1 %v6461_v19 }
 0x30e   : > { %4674 = vmatpush1.bf16.msra.mxu0 %v6456_v20  ;;  %5002 = vmatpush1.bf16.msra.mxu1 %v6459_v21 }
 0x30f   : > { %4675 = vmatprep.subr.bf16.mxu0 %v6464_v22  ;;  %5003 = vmatprep.subr.bf16.mxu1 %v6467_v23 }
 0x312   : > { %4676 = vmatpush1.bf16.msra.mxu0 %v6462_v24  ;;  %5004 = vmatpush1.bf16.msra.mxu1 %v6465_v25 }
 0x313   : > { %4677 = vmatprep.subr.bf16.mxu0 %v6470_v26  ;;  %5005 = vmatprep.subr.bf16.mxu1 %v6473_v27 }
 0x316   : > { %4678 = vmatpush1.bf16.msra.mxu0 %v6468_v28  ;;  %5006 = vmatpush1.bf16.msra.mxu1 %v6471_v29 }
 0x319   : > { %4680 = vmatmul.mubr.bf16.vlgmr.msra.gmra.mrb[0].mxu0 %v1264_v31  ;;  %5008 = vmatmul.mubr.bf16.vlgmr.msra.gmra.mrb[0].mxu1 %v1264_v31 }
 0x3ec   : > { %v4681_v43 = vpop.f32.mrb[0].mxu0  ;;  %v5009_v44 = vpop.f32.mrb[0].mxu1 }
 0x3ed   : > { %v5622_v45 = vadd.f32 %v4681_v43, %v1783_v39  ;;  %v5624_v46 = vadd.f32 %v5009_v44, %v1791_v40  ;;  %v4683_v47 = vpop.f32.mrb[1].mxu0  ;;  %v5011_v48 = vpop.f32.mrb[1].mxu1 }
 0x3ee   : > { %v5623_v49 = vadd.f32 %v4683_v47, %v1787_v41  ;;  %v5625_v50 = vadd.f32 %v5011_v48, %v1795_v42  ;;  %v4685_v51 = vpop.f32.mrb[2].mxu0  ;;  %v5013_v52 = vpop.f32.mrb[2].mxu1 }
 0x3ef   : > { %6474 = vtanh.f32 %v5622_v45  ;;  %v4686_v53 = vpop.f32.mrb[3].mxu0  ;;  %v5014_v54 = vpop.f32.mrb[3].mxu1 }
 0x3f0   : > { %6476 = vtanh.f32 %v5624_v46 }
 0x3f1   : > { %6478 = vtanh.f32 %v5623_v49 }
 0x3f2   : > { %6480 = vtanh.f32 %v5625_v50 }
 0x3f9   : > { %v6475_v55 = vpop.eup %6474 }
 0x3fa   : > { %v6477_v56 = vpop.eup %6476  ;;  %5020 = vst [vmem:[%s1232_s23] sm:$0xff] %v6475_v55 }
 0x3fb   : > { %v6479_v57 = vpop.eup %6478  ;;  %5022 = vst [vmem:[%s1232_s23 + $0x10] sm:$0xff] %v6477_v56 }
 0x3fc   : > { %v6481_v58 = vpop.eup %6480  ;;  %5021 = vst [vmem:[%s1232_s23 + $0x8] sm:$0xff] %v6479_v57 }
 0x3fd   : > { %5023 = vst [vmem:[%s1232_s23 + $0x18] sm:$0xff] %v6481_v58 }
 0x3fe PF: > { %p10_p9 = scmp.ge.s32.totalorder %s6543_s16, 6   ;;  %s8179_s12 = smov %s6500_s13 }
 0x3ff   : > { %s8180_s13 = smov %s6552_s19  ;;  %s8181_s14 = smov %s6543_s16 }
 0x400   :  { %12 = sbr.rel (!%p10_p9) target bundleno = 2 (0x2), region = 93 }

// kernel: deblur_mlp_forward.6
= control target key start
LH: loop header
LB: loop body
LE: loop exit
PB: predicated region body
PF: predicated region fallthrough
CT: control target
= control target key end

     0   :  { %8 = vsyncpa [#allocation3], 0  ;;  %s6362_s0 = inlined_call_operand.vmem [shape: f32[8,2048], index: 0, kind: input, shape index: {}]   ;;  %s6363_s1 = inlined_call_operand.hbm [shape: bf16[2048,2048], index: 1, kind: input, shape index: {}]   ;;  %s6364_s2 = inlined_call_operand.hbm [shape: f32[1,2048], index: 2, kind: input, shape index: {}]   ;;  %s6365_s3 = inlined_call_operand.vmem [shape: f32[8,2048], index: 3, kind: output, shape index: {}]  }
   0x1   :  { %10 = vsyncpa [#allocation3 + $0x1], 0 }
   0x2   :  { %11 = vsyncpa [#allocation5], 0 }
   0x3   :  { %13 = vsyncpa [#allocation5 + $0x1], 0  ;;  %s5651_s12 = smov 0   ;;  %s5653_s13 = smov 0  }
   0x4   :  { %s5655_s14 = smov 0   ;;  %s5657_s15 = smov 0  }
   0x5 LB: > { %s4112_s16 = sadd.s32 4294967295, %s5624_s15   ;;  %s5671_s17 = sadd.s32 1, %s5624_s15   ;;  %s5624_s15 = sphi %s5657_s15, %s6375_s15   ;;  %s5620_s14 = sphi %s5655_s14, %s6374_s14   ;;  %s5616_s13 = sphi %s5653_s13, %s6373_s13   ;;  %s5612_s12 = sphi %s5651_s12, %s6372_s12  }
   0x6   : > { %s44_s18 = ssub.s32 %s5624_s15, %s5671_s17  ;;  %s47_s19 = sadd.s32 1, %s5620_s14 }
   0x7   : > { %p45_p0 = scmp.eq.s32.totalorder %s44_s18, 0  ;;  %p54_p1 = scmp.ne.s32.totalorder %s5620_s14, %s5616_s13 }
   0x8   : > { %p55_p2 = scmp.eq.s32.totalorder %s5624_s15, 0  ;;  %p60_p3 = scmp.ne.s32.totalorder %s5616_s13, %s5612_s12 }
   0x9   : > { %s5681_s20 = scalar_select %p45_p0, %s5620_s14, %s47_s19  }
   0xa   : > { %p56_p4 = por %p55_p2, %p54_p1  ;;  %p61_p5 = scmp.eq.s32.totalorder %s4112_s16, 0 }
   0xb   : > { %p4714_p6 = scmp.lt.s32.totalorder %s5624_s15, 4  ;;  %s5691_s22 = sand.u32 1, %s5620_s14  }
   0xc   : > { %p5686_p7 = por %p61_p5, %p60_p3  ;;  %s4116_s23 = sshll.u32 %s5691_s22, 12 }
   0xd   : > { %s4641_s24 = sshll.u32 %s5624_s15, 8  ;;  %s143_s28 = scalar_lea.vmem [#allocation2], %s4116_s23 }
   0xe   : > { %s6367_s21 = scalar_select %p5686_p7, 1, 0 }
   0xf   : > { %s5698_s27 = scalar_lea.hbm %s6363_s1, %s4641_s24  ;;  %s150_s29 = sshll.u32 %s143_s28, 4  ;;  %s5700_s29 = int_to_ptr.vmem [resolvable:$true] %s150_s29 }
  0x10   : > { %p5702_p8 = pnand %p4714_p6, %p56_p4  ;;  %s140_s4 = scalar_lea.sflag [#allocation3], %s5691_s22 }
  0x11   : > { %s5526_s5 = scalar_lea.hbm %s5698_s27, 65536  ;;  %s5531_s8 = scalar_lea.hbm %s6363_s1, 262144 }
  0x12   : > { %p5527_p9 = scmp.ne.s32.totalorder %s5698_s27, %s5526_s5  ;;  %p5528_p10 = pneg %p5702_p8 }
  0x13   : > { %p5532_p13 = scmp.lt.u32.totalorder %s5698_s27, %s6363_s1  ;;  %p5533_p0 = scmp.lt.u32.totalorder %s5531_s8, %s5526_s5 }
  0x14   : > { %p5529_p11 = pnand %p5528_p10, %p5527_p9  ;;  %p5535_p2 = scmp.lt.u32.totalorder %s5526_s5, %s5698_s27 }
  0x15   : > { %p5534_p1 = por %p5533_p0, %p5532_p13 }
  0x16   : > { %p5530_p12 = pneg %p5529_p11 }
  0x17   : > { %p5536_p3 = por %p5535_p2, %p5534_p1 }
  0x19   : > { %p5537_p4 = pnand %p5536_p3, %p5530_p12 }
  0x1b   : > { %5540 = shalt.err (!%p5537_p4)
}
  0x1c   : > { %s5541_s11 = scalar_lea.vmem %s5700_s29, 65536  ;;  %s5626_s12 = smov [#allocation2]  }
  0x1d   : > { %p5542_p5 = scmp.ne.s32.totalorder %s5700_s29, %s5541_s11  ;;  %s5546_s18 = sshll.u32 %s5626_s12, 4  ;;  %s5547_s18 = int_to_ptr.vmem [resolvable:$false] %s5546_s18 }
  0x1e   : > { %s5548_s19 = scalar_lea.vmem %s5547_s18, 131072  ;;  %p5549_p11 = scmp.lt.s32.totalorder %s5700_s29, %s5547_s18 }
  0x1f   : > { %p5544_p6 = pnand %p5542_p5, %p5528_p10  ;;  %p5550_p13 = scmp.lt.s32.totalorder %s5548_s19, %s5541_s11 }
  0x21   : > { %p5545_p9 = pneg %p5544_p6  ;;  %p5551_p0 = por %p5550_p13, %p5549_p11 }
  0x23   : > { %p5552_p1 = pnand %p5551_p0, %p5545_p9 }
  0x25   : > { %5555 = shalt.err (!%p5552_p1)
}
  0x26   : > { %s5627_s23 = smov 1024   ;;  %s5628_s24 = smov 256  }
  0x27   : > { %s5629_s25 = smov 16   ;;  %p4122_p12 = scmp.ge.s32.totalorder %s5624_s15, 1 }
  0x28   : > { %4710 = dma.hbm_to_vmem [thread:$0]  (!%p5702_p8), %s5698_s27, 65536, %s5700_s29, %s140_s4, %s5627_s23, %s5628_s24, %s5629_s25  }
  0x29   : > { %p177_p2 = scmp.lt.s32.totalorder %s5624_s15, 5  ;;  %s4119_s26 = sshll.u32 %s5691_s22, 2 }
  0x2a   : > { %s4642_s5 = sshll.u32 %s5624_s15, 6  ;;  %s164_s6 = scalar_lea.vmem [#allocation4], %s4119_s26 }
  0x2b   : > { %p5737_p3 = pnand %p4122_p12, %p177_p2  ;;  %s172_s7 = sshll.u32 %s164_s6, 4  ;;  %s173_s7 = int_to_ptr.vmem [resolvable:$true] %s172_s7 }
  0x2c   : > { %s5745_s10 = scalar_lea.hbm %s6364_s2, %s4642_s5  ;;  %s161_s27 = scalar_lea.sflag [#allocation5], %s5691_s22 }
  0x2d   : > { %s6369_s28 = scalar_select %p5737_p3, 1, 0 }
  0x2e   : > { %s5556_s29 = scalar_lea.hbm %s5745_s10, 64  ;;  %s5561_s12 = scalar_lea.hbm %s6364_s2, 256 }
  0x2f   : > { %p5557_p4 = scmp.ne.s32.totalorder %s5745_s10, %s5556_s29  ;;  %p5562_p9 = scmp.lt.u32.totalorder %s5745_s10, %s6364_s2 }
  0x30   : > { %p5563_p11 = scmp.lt.u32.totalorder %s5561_s12, %s5556_s29  ;;  %p5565_p0 = scmp.lt.u32.totalorder %s5556_s29, %s5745_s10 }
  0x31   : > { %p5559_p5 = pnand %p5557_p4, %p5528_p10 }
  0x32   : > { %p5564_p13 = por %p5563_p11, %p5562_p9 }
  0x33   : > { %p5560_p6 = pneg %p5559_p5 }
  0x34   : > { %p5566_p1 = por %p5565_p0, %p5564_p13 }
  0x36   : > { %p5567_p12 = pnand %p5566_p1, %p5560_p6 }
  0x38   : > { %5570 = shalt.err (!%p5567_p12)
}
  0x39   : > { %s5571_s22 = scalar_lea.vmem %s173_s7, 64  ;;  %s5630_s23 = smov [#allocation4]  }
  0x3a   : > { %p5572_p2 = scmp.ne.s32.totalorder %s173_s7, %s5571_s22  ;;  %s5576_s24 = sshll.u32 %s5630_s23, 4  ;;  %s5577_s24 = int_to_ptr.vmem [resolvable:$false] %s5576_s24 }
  0x3b   : > { %s5578_s25 = scalar_lea.vmem %s5577_s24, 128  ;;  %p5579_p7 = scmp.lt.s32.totalorder %s173_s7, %s5577_s24 }
  0x3c   : > { %p5574_p4 = pnand %p5572_p2, %p5528_p10  ;;  %p5580_p3 = scmp.lt.s32.totalorder %s5578_s25, %s5571_s22 }
  0x3e   : > { %p5575_p5 = pneg %p5574_p4  ;;  %p5581_p9 = por %p5580_p3, %p5579_p7 }
  0x40   : > { %p5582_p11 = pnand %p5581_p9, %p5575_p5 }
  0x42   : > { %5585 = shalt.err (!%p5582_p11)
}
  0x43   : > { %4713 = dma.hbm_to_vmem [thread:$0]  (!%p5702_p8), %s5745_s10, 64, %s173_s7, %s161_s27  }
  0x44   : > { %p6370_p6 = scmp.ne.s32.totalorder %s6369_s28, 0 }
  0x45   : > { %s183_s26 = sand.u32 (!%p6370_p6), 1, %s5616_s13   ;;  %p6371_p10 = scmp.ne.s32.totalorder (!%p6370_p6), %s6367_s21, 0 }
  0x46   : > { %181 = sbr.rel (%p6370_p6) target bundleno = 823 (0x337), region = 32  ;;  %s4123_s5 = sshll.u32 (!%p6370_p6), %s183_s26, 12 }
  0x47   : > { %s184_s6 = scalar_lea.sflag (!%p6370_p6), [#allocation3], %s183_s26  ;;  %s5770_s8 = scalar_lea.vmem (!%p6370_p6), [#allocation2], %s4123_s5 }
  0x4d   : > { %5603 = dma.done.wait (%p6371_p10), %s184_s6, 65536  }
  0x4e   : > { %5605 = vsyncadd (%p6371_p10), %s184_s6, 4294901760  ;;  %s4124_s9 = sshll.u32 %s183_s26, 2  ;;  %s193_s30 = scalar_lea.sflag [#allocation5], %s183_s26 }
  0x4f   : > { %s5776_s29 = scalar_lea.vmem [#allocation4], %s4124_s9 }
  0x50   : > { %5607 = dma.done.wait (%p6371_p10), %s193_s30, 64  }
  0x51   : > { %5609 = vsyncadd (%p6371_p10), %s193_s30, 4294967232  ;;  %v4750_v0 = vld [vmem:[%s5770_s8 + $0x4] ss:$16 sps:$4 sm:$0xff]   ;;  %v4752_v1 = vld [vmem:[%s5770_s8 + $0xc] ss:$16 sps:$4 sm:$0xff]  }
  0x52   : > { %3358 = vmatprep.subr.bf16.mxu0 %v4750_v0  ;;  %v4754_v2 = vld [vmem:[%s5770_s8] ss:$16 sps:$4 sm:$0xff]   ;;  %v4755_v3 = vld [vmem:[%s5770_s8 + $0x8] ss:$16 sps:$4 sm:$0xff]   ;;  %3686 = vmatprep.subr.bf16.mxu1 %v4752_v1  ;;  %v4756_v4 = vld [vmem:[%s5770_s8 + $0x24] ss:$16 sps:$4 sm:$0xff]  }
  0x53   : > { %3359 = vmatpush1.bf16.msra.mxu0 %v4754_v2  ;;  %3687 = vmatpush1.bf16.msra.mxu1 %v4755_v3  ;;  %v4758_v5 = vld [vmem:[%s5770_s8 + $0x2c] ss:$16 sps:$4 sm:$0xff]   ;;  %v4760_v6 = vld [vmem:[%s5770_s8 + $0x20] ss:$16 sps:$4 sm:$0xff]   ;;  %v4761_v7 = vld [vmem:[%s5770_s8 + $0x28] ss:$16 sps:$4 sm:$0xff]  }
  0x54   : > { %3360 = vmatprep.subr.bf16.mxu0 %v4756_v4  ;;  %3688 = vmatprep.subr.bf16.mxu1 %v4758_v5  ;;  %v4762_v8 = vld [vmem:[%s5770_s8 + $0x44] ss:$16 sps:$4 sm:$0xff]   ;;  %v4764_v9 = vld [vmem:[%s5770_s8 + $0x4c] ss:$16 sps:$4 sm:$0xff]   ;;  %v4766_v10 = vld [vmem:[%s5770_s8 + $0x40] ss:$16 sps:$4 sm:$0xff]  }
  0x55   : > { %v4767_v11 = vld [vmem:[%s5770_s8 + $0x48] ss:$16 sps:$4 sm:$0xff]   ;;  %v4768_v12 = vld [vmem:[%s5770_s8 + $0x64] ss:$16 sps:$4 sm:$0xff]   ;;  %v4770_v13 = vld [vmem:[%s5770_s8 + $0x6c] ss:$16 sps:$4 sm:$0xff]  }
  0x56   : > { %v4772_v14 = vld [vmem:[%s5770_s8 + $0x60] ss:$16 sps:$4 sm:$0xff]   ;;  %v4773_v15 = vld [vmem:[%s5770_s8 + $0x68] ss:$16 sps:$4 sm:$0xff]   ;;  %v4774_v16 = vld [vmem:[%s5770_s8 + $0x84] ss:$16 sps:$4 sm:$0xff]  }
  0x57   : > { %3361 = vmatpush1.bf16.msra.mxu0 %v4760_v6  ;;  %3689 = vmatpush1.bf16.msra.mxu1 %v4761_v7  ;;  %v4776_v17 = vld [vmem:[%s5770_s8 + $0x8c] ss:$16 sps:$4 sm:$0xff]   ;;  %v4778_v18 = vld [vmem:[%s5770_s8 + $0x80] ss:$16 sps:$4 sm:$0xff]   ;;  %v4779_v19 = vld [vmem:[%s5770_s8 + $0x88] ss:$16 sps:$4 sm:$0xff]  }
  0x58   : > { %3362 = vmatprep.subr.bf16.mxu0 %v4762_v8  ;;  %3690 = vmatprep.subr.bf16.mxu1 %v4764_v9  ;;  %v4780_v20 = vld [vmem:[%s5770_s8 + $0xa4] ss:$16 sps:$4 sm:$0xff]   ;;  %v4782_v21 = vld [vmem:[%s5770_s8 + $0xac] ss:$16 sps:$4 sm:$0xff]   ;;  %v4784_v22 = vld [vmem:[%s5770_s8 + $0xa0] ss:$16 sps:$4 sm:$0xff]  }
  0x59   : > { %v4785_v23 = vld [vmem:[%s5770_s8 + $0xa8] ss:$16 sps:$4 sm:$0xff]   ;;  %v4786_v24 = vld [vmem:[%s5770_s8 + $0xc4] ss:$16 sps:$4 sm:$0xff]   ;;  %v4788_v25 = vld [vmem:[%s5770_s8 + $0xcc] ss:$16 sps:$4 sm:$0xff]  }
  0x5a   : > { %v4790_v26 = vld [vmem:[%s5770_s8 + $0xc0] ss:$16 sps:$4 sm:$0xff]   ;;  %v4791_v27 = vld [vmem:[%s5770_s8 + $0xc8] ss:$16 sps:$4 sm:$0xff]   ;;  %v4792_v28 = vld [vmem:[%s5770_s8 + $0xe4] ss:$16 sps:$4 sm:$0xff]  }
  0x5b   : > { %3363 = vmatpush1.bf16.msra.mxu0 %v4766_v10  ;;  %3691 = vmatpush1.bf16.msra.mxu1 %v4767_v11  ;;  %v4794_v29 = vld [vmem:[%s5770_s8 + $0xec] ss:$16 sps:$4 sm:$0xff]   ;;  %v4796_v30 = vld [vmem:[%s5770_s8 + $0xe0] ss:$16 sps:$4 sm:$0xff]   ;;  %v4797_v31 = vld [vmem:[%s5770_s8 + $0xe8] ss:$16 sps:$4 sm:$0xff]  }
  0x5c   : > { %3364 = vmatprep.subr.bf16.mxu0 %v4768_v12  ;;  %3692 = vmatprep.subr.bf16.mxu1 %v4770_v13  ;;  %v4798_v32 = vld [vmem:[%s5770_s8 + $0x104] ss:$16 sps:$4 sm:$0xff]   ;;  %v4800_v33 = vld [vmem:[%s5770_s8 + $0x10c] ss:$16 sps:$4 sm:$0xff]   ;;  %v4802_v34 = vld [vmem:[%s5770_s8 + $0x100] ss:$16 sps:$4 sm:$0xff]  }
  0x5d   : > { %v4803_v35 = vld [vmem:[%s5770_s8 + $0x108] ss:$16 sps:$4 sm:$0xff]   ;;  %v4804_v36 = vld [vmem:[%s5770_s8 + $0x124] ss:$16 sps:$4 sm:$0xff]   ;;  %v4806_v37 = vld [vmem:[%s5770_s8 + $0x12c] ss:$16 sps:$4 sm:$0xff]  }
  0x5e   : > { %v4808_v38 = vld [vmem:[%s5770_s8 + $0x120] ss:$16 sps:$4 sm:$0xff]   ;;  %v4809_v39 = vld [vmem:[%s5770_s8 + $0x128] ss:$16 sps:$4 sm:$0xff]   ;;  %v4810_v40 = vld [vmem:[%s5770_s8 + $0x144] ss:$16 sps:$4 sm:$0xff]  }
  0x5f   : > { %3365 = vmatpush1.bf16.msra.mxu0 %v4772_v14  ;;  %3693 = vmatpush1.bf16.msra.mxu1 %v4773_v15  ;;  %v4812_v41 = vld [vmem:[%s5770_s8 + $0x14c] ss:$16 sps:$4 sm:$0xff]   ;;  %v4814_v42 = vld [vmem:[%s5770_s8 + $0x140] ss:$16 sps:$4 sm:$0xff]   ;;  %v4815_v43 = vld [vmem:[%s5770_s8 + $0x148] ss:$16 sps:$4 sm:$0xff]  }
  0x60   : > { %3366 = vmatprep.subr.bf16.mxu0 %v4774_v16  ;;  %3694 = vmatprep.subr.bf16.mxu1 %v4776_v17  ;;  %v4816_v44 = vld [vmem:[%s5770_s8 + $0x164] ss:$16 sps:$4 sm:$0xff]   ;;  %v4818_v45 = vld [vmem:[%s5770_s8 + $0x16c] ss:$16 sps:$4 sm:$0xff]   ;;  %v4820_v47 = vld [vmem:[%s5770_s8 + $0x160] ss:$16 sps:$4 sm:$0xff]  }
  0x61   : > { %v233_v46 = vld [vmem:[%s6362_s0 + $0x8] sm:$0xff]  ;;  %v4822_v50 = vld [vmem:[%s5770_s8 + $0x184] ss:$16 sps:$4 sm:$0xff]   ;;  %v4826_v52 = vld [vmem:[%s5770_s8 + $0x180] ss:$16 sps:$4 sm:$0xff]  }
  0x62   : > { %v249_v48 = vpack.c.bf16 %v233_v46, %v233_v46  ;;  %v4821_v49 = vld [vmem:[%s5770_s8 + $0x168] ss:$16 sps:$4 sm:$0xff]   ;;  %v4824_v51 = vld [vmem:[%s5770_s8 + $0x18c] ss:$16 sps:$4 sm:$0xff]   ;;  %v4828_v54 = vld [vmem:[%s5770_s8 + $0x1a4] ss:$16 sps:$4 sm:$0xff]  }
  0x63   : > { %3367 = vmatpush1.bf16.msra.mxu0 %v4778_v18  ;;  %3695 = vmatpush1.bf16.msra.mxu1 %v4779_v19  ;;  %v4827_v53 = vld [vmem:[%s5770_s8 + $0x188] ss:$16 sps:$4 sm:$0xff]   ;;  %v4830_v55 = vld [vmem:[%s5770_s8 + $0x1ac] ss:$16 sps:$4 sm:$0xff]   ;;  %v4832_v56 = vld [vmem:[%s5770_s8 + $0x1a0] ss:$16 sps:$4 sm:$0xff]  }
  0x64   : > { %3368 = vmatprep.subr.bf16.mxu0 %v4780_v20  ;;  %3696 = vmatprep.subr.bf16.mxu1 %v4782_v21  ;;  %v4833_v57 = vld [vmem:[%s5770_s8 + $0x1a8] ss:$16 sps:$4 sm:$0xff]   ;;  %v4834_v58 = vld [vmem:[%s5770_s8 + $0x1c4] ss:$16 sps:$4 sm:$0xff]   ;;  %v4836_v59 = vld [vmem:[%s5770_s8 + $0x1cc] ss:$16 sps:$4 sm:$0xff]  }
  0x65   : > { %3390 = vmatprep.mubr.bf16.mxu0 %v249_v48  ;;  %3718 = vmatprep.mubr.bf16.mxu1 %v249_v48  ;;  %v4838_v60 = vld [vmem:[%s5770_s8 + $0x1c0] ss:$16 sps:$4 sm:$0xff]   ;;  %v4839_v61 = vld [vmem:[%s5770_s8 + $0x1c8] ss:$16 sps:$4 sm:$0xff]   ;;  %v4840_v62 = vld [vmem:[%s5770_s8 + $0x1e4] ss:$16 sps:$4 sm:$0xff]  }
  0x66   : > { %v4842_v63 = vld [vmem:[%s5770_s8 + $0x1ec] ss:$16 sps:$4 sm:$0xff]   ;;  %v4844_v0 = vld [vmem:[%s5770_s8 + $0x1e0] ss:$16 sps:$4 sm:$0xff]   ;;  %v4845_v1 = vld [vmem:[%s5770_s8 + $0x1e8] ss:$16 sps:$4 sm:$0xff]  }
  0x67   : > { %3369 = vmatpush1.bf16.msra.mxu0 %v4784_v22  ;;  %3697 = vmatpush1.bf16.msra.mxu1 %v4785_v23  ;;  %v232_v2 = vld [vmem:[%s6362_s0] sm:$0xff]  ;;  %v4851_v4 = vld [vmem:[%s5770_s8 + $0x20c] ss:$16 sps:$4 sm:$0xff]   ;;  %v4849_v7 = vld [vmem:[%s5770_s8 + $0x208] ss:$16 sps:$4 sm:$0xff]  }
  0x68   : > { %3370 = vmatprep.subr.bf16.mxu0 %v4786_v24  ;;  %3698 = vmatprep.subr.bf16.mxu1 %v4788_v25  ;;  %v4848_v3 = vld [vmem:[%s5770_s8 + $0x204] ss:$16 sps:$4 sm:$0xff]   ;;  %v248_v5 = vpack.c.bf16 %v232_v2, %v232_v2  ;;  %v4846_v6 = vld [vmem:[%s5770_s8 + $0x200] ss:$16 sps:$4 sm:$0xff]   ;;  %v4857_v9 = vld [vmem:[%s5770_s8 + $0x22c] ss:$16 sps:$4 sm:$0xff]  }
  0x69   : > { %v4854_v8 = vld [vmem:[%s5770_s8 + $0x224] ss:$16 sps:$4 sm:$0xff]   ;;  %v4852_v10 = vld [vmem:[%s5770_s8 + $0x220] ss:$16 sps:$4 sm:$0xff]   ;;  %v4855_v11 = vld [vmem:[%s5770_s8 + $0x228] ss:$16 sps:$4 sm:$0xff]  }
  0x6a   : > { %v4860_v12 = vld [vmem:[%s5770_s8 + $0x244] ss:$16 sps:$4 sm:$0xff]   ;;  %v4863_v13 = vld [vmem:[%s5770_s8 + $0x24c] ss:$16 sps:$4 sm:$0xff]   ;;  %v4858_v14 = vld [vmem:[%s5770_s8 + $0x240] ss:$16 sps:$4 sm:$0xff]  }
  0x6b   : > { %3371 = vmatpush1.bf16.msra.mxu0 %v4790_v26  ;;  %3699 = vmatpush1.bf16.msra.mxu1 %v4791_v27  ;;  %v4861_v15 = vld [vmem:[%s5770_s8 + $0x248] ss:$16 sps:$4 sm:$0xff]   ;;  %v4866_v16 = vld [vmem:[%s5770_s8 + $0x264] ss:$16 sps:$4 sm:$0xff]   ;;  %v4869_v17 = vld [vmem:[%s5770_s8 + $0x26c] ss:$16 sps:$4 sm:$0xff]  }
  0x6c   : > { %3372 = vmatprep.subr.bf16.mxu0 %v4792_v28  ;;  %3700 = vmatprep.subr.bf16.mxu1 %v4794_v29  ;;  %v4864_v18 = vld [vmem:[%s5770_s8 + $0x260] ss:$16 sps:$4 sm:$0xff]   ;;  %v4867_v19 = vld [vmem:[%s5770_s8 + $0x268] ss:$16 sps:$4 sm:$0xff]   ;;  %v4872_v20 = vld [vmem:[%s5770_s8 + $0x284] ss:$16 sps:$4 sm:$0xff]  }
  0x6d   : > { %v4875_v21 = vld [vmem:[%s5770_s8 + $0x28c] ss:$16 sps:$4 sm:$0xff]   ;;  %v4870_v22 = vld [vmem:[%s5770_s8 + $0x280] ss:$16 sps:$4 sm:$0xff]   ;;  %v4873_v23 = vld [vmem:[%s5770_s8 + $0x288] ss:$16 sps:$4 sm:$0xff]  }
  0x6e   : > { %v4878_v24 = vld [vmem:[%s5770_s8 + $0x2a4] ss:$16 sps:$4 sm:$0xff]   ;;  %v4881_v25 = vld [vmem:[%s5770_s8 + $0x2ac] ss:$16 sps:$4 sm:$0xff]   ;;  %v4876_v26 = vld [vmem:[%s5770_s8 + $0x2a0] ss:$16 sps:$4 sm:$0xff]  }
  0x6f   : > { %3373 = vmatpush1.bf16.msra.mxu0 %v4796_v30  ;;  %3701 = vmatpush1.bf16.msra.mxu1 %v4797_v31  ;;  %v4879_v27 = vld [vmem:[%s5770_s8 + $0x2a8] ss:$16 sps:$4 sm:$0xff]   ;;  %v4884_v28 = vld [vmem:[%s5770_s8 + $0x2c4] ss:$16 sps:$4 sm:$0xff]   ;;  %v4887_v29 = vld [vmem:[%s5770_s8 + $0x2cc] ss:$16 sps:$4 sm:$0xff]  }
  0x70   : > { %3374 = vmatprep.subr.bf16.mxu0 %v4798_v32  ;;  %3702 = vmatprep.subr.bf16.mxu1 %v4800_v33  ;;  %v235_v30 = vld [vmem:[%s6362_s0 + $0x18] sm:$0xff]  ;;  %v4882_v31 = vld [vmem:[%s5770_s8 + $0x2c0] ss:$16 sps:$4 sm:$0xff]   ;;  %v4908_v46 = vld [vmem:[%s5770_s8 + $0x344] ss:$16 sps:$4 sm:$0xff]  }
  0x71   : > { %v251_v32 = vpack.c.bf16 %v235_v30, %v235_v30  ;;  %v4885_v33 = vld [vmem:[%s5770_s8 + $0x2c8] ss:$16 sps:$4 sm:$0xff]   ;;  %v4906_v48 = vld [vmem:[%s5770_s8 + $0x340] ss:$16 sps:$4 sm:$0xff]   ;;  %v4938_v2 = vld [vmem:[%s5770_s8 + $0x3e4] ss:$16 sps:$4 sm:$0xff]  }
  0x72   : > { %v4974_v30 = vld [vmem:[%s5770_s8 + $0x4a4] ss:$16 sps:$4 sm:$0xff]  }
  0x73   : > { %3375 = vmatpush1.bf16.msra.mxu0 %v4802_v34  ;;  %3703 = vmatpush1.bf16.msra.mxu1 %v4803_v35  ;;  %v4890_v34 = vld [vmem:[%s5770_s8 + $0x2e4] ss:$16 sps:$4 sm:$0xff]   ;;  %v4893_v35 = vld [vmem:[%s5770_s8 + $0x2ec] ss:$16 sps:$4 sm:$0xff]  }
  0x74   : > { %3376 = vmatprep.subr.bf16.mxu0 %v4804_v36  ;;  %3704 = vmatprep.subr.bf16.mxu1 %v4806_v37  ;;  %v4888_v36 = vld [vmem:[%s5770_s8 + $0x2e0] ss:$16 sps:$4 sm:$0xff]   ;;  %v4891_v37 = vld [vmem:[%s5770_s8 + $0x2e8] ss:$16 sps:$4 sm:$0xff]  }
  0x77   : > { %3377 = vmatpush1.bf16.msra.mxu0 %v4808_v38  ;;  %3705 = vmatpush1.bf16.msra.mxu1 %v4809_v39  ;;  %v4896_v38 = vld [vmem:[%s5770_s8 + $0x304] ss:$16 sps:$4 sm:$0xff]   ;;  %v4899_v39 = vld [vmem:[%s5770_s8 + $0x30c] ss:$16 sps:$4 sm:$0xff]  }
  0x78   : > { %3378 = vmatprep.subr.bf16.mxu0 %v4810_v40  ;;  %3706 = vmatprep.subr.bf16.mxu1 %v4812_v41  ;;  %v4894_v40 = vld [vmem:[%s5770_s8 + $0x300] ss:$16 sps:$4 sm:$0xff]   ;;  %v4897_v41 = vld [vmem:[%s5770_s8 + $0x308] ss:$16 sps:$4 sm:$0xff]  }
  0x7b   : > { %3379 = vmatpush1.bf16.msra.mxu0 %v4814_v42  ;;  %3707 = vmatpush1.bf16.msra.mxu1 %v4815_v43  ;;  %v4902_v42 = vld [vmem:[%s5770_s8 + $0x324] ss:$16 sps:$4 sm:$0xff]   ;;  %v4905_v43 = vld [vmem:[%s5770_s8 + $0x32c] ss:$16 sps:$4 sm:$0xff]  }
  0x7c   : > { %3380 = vmatprep.subr.bf16.mxu0 %v4816_v44  ;;  %3708 = vmatprep.subr.bf16.mxu1 %v4818_v45  ;;  %v4900_v44 = vld [vmem:[%s5770_s8 + $0x320] ss:$16 sps:$4 sm:$0xff]   ;;  %v4903_v45 = vld [vmem:[%s5770_s8 + $0x328] ss:$16 sps:$4 sm:$0xff]  }
  0x7f   : > { %3381 = vmatpush1.bf16.msra.mxu0 %v4820_v47  ;;  %3709 = vmatpush1.bf16.msra.mxu1 %v4821_v49  ;;  %v4911_v47 = vld [vmem:[%s5770_s8 + $0x34c] ss:$16 sps:$4 sm:$0xff]   ;;  %v4909_v49 = vld [vmem:[%s5770_s8 + $0x348] ss:$16 sps:$4 sm:$0xff]  }
  0x80   : > { %3382 = vmatprep.subr.bf16.mxu0 %v4822_v50  ;;  %3710 = vmatprep.subr.bf16.mxu1 %v4824_v51  ;;  %v4914_v50 = vld [vmem:[%s5770_s8 + $0x364] ss:$16 sps:$4 sm:$0xff]   ;;  %v4917_v51 = vld [vmem:[%s5770_s8 + $0x36c] ss:$16 sps:$4 sm:$0xff]  }
  0x83   : > { %3383 = vmatpush1.bf16.msra.mxu0 %v4826_v52  ;;  %3711 = vmatpush1.bf16.msra.mxu1 %v4827_v53  ;;  %v4912_v52 = vld [vmem:[%s5770_s8 + $0x360] ss:$16 sps:$4 sm:$0xff]   ;;  %v4915_v53 = vld [vmem:[%s5770_s8 + $0x368] ss:$16 sps:$4 sm:$0xff]  }
  0x84   : > { %3384 = vmatprep.subr.bf16.mxu0 %v4828_v54  ;;  %3712 = vmatprep.subr.bf16.mxu1 %v4830_v55  ;;  %v4920_v54 = vld [vmem:[%s5770_s8 + $0x384] ss:$16 sps:$4 sm:$0xff]   ;;  %v4923_v55 = vld [vmem:[%s5770_s8 + $0x38c] ss:$16 sps:$4 sm:$0xff]  }
  0x87   : > { %3385 = vmatpush1.bf16.msra.mxu0 %v4832_v56  ;;  %3713 = vmatpush1.bf16.msra.mxu1 %v4833_v57  ;;  %v4918_v56 = vld [vmem:[%s5770_s8 + $0x380] ss:$16 sps:$4 sm:$0xff]   ;;  %v4921_v57 = vld [vmem:[%s5770_s8 + $0x388] ss:$16 sps:$4 sm:$0xff]  }
  0x88   : > { %3386 = vmatprep.subr.bf16.mxu0 %v4834_v58  ;;  %3714 = vmatprep.subr.bf16.mxu1 %v4836_v59  ;;  %v4926_v58 = vld [vmem:[%s5770_s8 + $0x3a4] ss:$16 sps:$4 sm:$0xff]   ;;  %v4929_v59 = vld [vmem:[%s5770_s8 + $0x3ac] ss:$16 sps:$4 sm:$0xff]  }
  0x8b   : > { %3387 = vmatpush1.bf16.msra.mxu0 %v4838_v60  ;;  %3715 = vmatpush1.bf16.msra.mxu1 %v4839_v61  ;;  %v4924_v60 = vld [vmem:[%s5770_s8 + $0x3a0] ss:$16 sps:$4 sm:$0xff]   ;;  %v4927_v61 = vld [vmem:[%s5770_s8 + $0x3a8] ss:$16 sps:$4 sm:$0xff]  }
  0x8c   : > { %3388 = vmatprep.subr.bf16.mxu0 %v4840_v62  ;;  %3716 = vmatprep.subr.bf16.mxu1 %v4842_v63  ;;  %v4932_v62 = vld [vmem:[%s5770_s8 + $0x3c4] ss:$16 sps:$4 sm:$0xff]   ;;  %v4935_v63 = vld [vmem:[%s5770_s8 + $0x3cc] ss:$16 sps:$4 sm:$0xff]  }
  0x8f   : > { %3389 = vmatpush1.bf16.msra.mxu0 %v4844_v0  ;;  %3717 = vmatpush1.bf16.msra.mxu1 %v4845_v1  ;;  %v4930_v0 = vld [vmem:[%s5770_s8 + $0x3c0] ss:$16 sps:$4 sm:$0xff]   ;;  %v4933_v1 = vld [vmem:[%s5770_s8 + $0x3c8] ss:$16 sps:$4 sm:$0xff]  }
  0x90   : > { %3399 = vmatprep.subr.bf16.mxu0 %v4848_v3  ;;  %3727 = vmatprep.subr.bf16.mxu1 %v4851_v4  ;;  %v4941_v3 = vld [vmem:[%s5770_s8 + $0x3ec] ss:$16 sps:$4 sm:$0xff]   ;;  %v4936_v4 = vld [vmem:[%s5770_s8 + $0x3e0] ss:$16 sps:$4 sm:$0xff]  }
  0x92   : > { %3391 = vmatmul.mubr.bf16.vlgmr.msra.gmra.mrb[0].mxu0 %v248_v5  ;;  %3719 = vmatmul.mubr.bf16.vlgmr.msra.gmra.mrb[0].mxu1 %v248_v5  ;;  %v4939_v5 = vld [vmem:[%s5770_s8 + $0x3e8] ss:$16 sps:$4 sm:$0xff]  }
  0x93   : > { %3400 = vmatpush1.bf16.msra.mxu0 %v4846_v6  ;;  %3728 = vmatpush1.bf16.msra.mxu1 %v4849_v7  ;;  %v4944_v6 = vld [vmem:[%s5770_s8 + $0x404] ss:$16 sps:$4 sm:$0xff]  }
  0x94   : > { %3401 = vmatprep.subr.bf16.mxu0 %v4854_v8  ;;  %3729 = vmatprep.subr.bf16.mxu1 %v4857_v9  ;;  %v234_v7 = vld [vmem:[%s6362_s0 + $0x10] sm:$0xff]  ;;  %v4947_v8 = vld [vmem:[%s5770_s8 + $0x40c] ss:$16 sps:$4 sm:$0xff]  }
  0x95   : > { %3431 = vmatprep.mubr.bf16.mxu0 %v251_v32  ;;  %3759 = vmatprep.mubr.bf16.mxu1 %v251_v32  ;;  %v4942_v9 = vld [vmem:[%s5770_s8 + $0x400] ss:$16 sps:$4 sm:$0xff]  }
  0x96   : > { %v4972_v32 = vld [vmem:[%s5770_s8 + $0x4a0] ss:$16 sps:$4 sm:$0xff]  }
  0x97   : > { %3402 = vmatpush1.bf16.msra.mxu0 %v4852_v10  ;;  %3730 = vmatpush1.bf16.msra.mxu1 %v4855_v11  ;;  %v4945_v10 = vld [vmem:[%s5770_s8 + $0x408] ss:$16 sps:$4 sm:$0xff]   ;;  %v250_v11 = vpack.c.bf16 %v234_v7, %v234_v7  ;;  %v5037_v7 = vld [vmem:[%s5770_s8 + $0x5ec] ss:$16 sps:$4 sm:$0xff]  }
  0x98   : > { %3403 = vmatprep.subr.bf16.mxu0 %v4860_v12  ;;  %3731 = vmatprep.subr.bf16.mxu1 %v4863_v13  ;;  %v4950_v12 = vld [vmem:[%s5770_s8 + $0x424] ss:$16 sps:$4 sm:$0xff]   ;;  %v4953_v13 = vld [vmem:[%s5770_s8 + $0x42c] ss:$16 sps:$4 sm:$0xff]  }
  0x9b   : > { %3404 = vmatpush1.bf16.msra.mxu0 %v4858_v14  ;;  %3732 = vmatpush1.bf16.msra.mxu1 %v4861_v15  ;;  %v237_v14 = vld [vmem:[%s6362_s0 + $0x28] sm:$0xff] }
  0x9c   : > { %3405 = vmatprep.subr.bf16.mxu0 %v4866_v16  ;;  %3733 = vmatprep.subr.bf16.mxu1 %v4869_v17  ;;  %v253_v15 = vpack.c.bf16 %v237_v14, %v237_v14  ;;  %v4948_v16 = vld [vmem:[%s5770_s8 + $0x420] ss:$16 sps:$4 sm:$0xff]   ;;  %v4951_v17 = vld [vmem:[%s5770_s8 + $0x428] ss:$16 sps:$4 sm:$0xff]  }
  0x9d   : > { %v5041_v14 = vld [vmem:[%s5770_s8 + $0x608] ss:$16 sps:$4 sm:$0xff]  }
  0x9f   : > { %3406 = vmatpush1.bf16.msra.mxu0 %v4864_v18  ;;  %3734 = vmatpush1.bf16.msra.mxu1 %v4867_v19  ;;  %v4956_v18 = vld [vmem:[%s5770_s8 + $0x444] ss:$16 sps:$4 sm:$0xff]   ;;  %v4959_v19 = vld [vmem:[%s5770_s8 + $0x44c] ss:$16 sps:$4 sm:$0xff]  }
  0xa0   : > { %3407 = vmatprep.subr.bf16.mxu0 %v4872_v20  ;;  %3735 = vmatprep.subr.bf16.mxu1 %v4875_v21  ;;  %v4954_v20 = vld [vmem:[%s5770_s8 + $0x440] ss:$16 sps:$4 sm:$0xff]   ;;  %v4957_v21 = vld [vmem:[%s5770_s8 + $0x448] ss:$16 sps:$4 sm:$0xff]  }
  0xa3   : > { %3408 = vmatpush1.bf16.msra.mxu0 %v4870_v22  ;;  %3736 = vmatpush1.bf16.msra.mxu1 %v4873_v23  ;;  %v4962_v22 = vld [vmem:[%s5770_s8 + $0x464] ss:$16 sps:$4 sm:$0xff]   ;;  %v4965_v23 = vld [vmem:[%s5770_s8 + $0x46c] ss:$16 sps:$4 sm:$0xff]  }
  0xa4   : > { %3409 = vmatprep.subr.bf16.mxu0 %v4878_v24  ;;  %3737 = vmatprep.subr.bf16.mxu1 %v4881_v25  ;;  %v4960_v24 = vld [vmem:[%s5770_s8 + $0x460] ss:$16 sps:$4 sm:$0xff]   ;;  %v4963_v25 = vld [vmem:[%s5770_s8 + $0x468] ss:$16 sps:$4 sm:$0xff]  }
  0xa7   : > { %3410 = vmatpush1.bf16.msra.mxu0 %v4876_v26  ;;  %3738 = vmatpush1.bf16.msra.mxu1 %v4879_v27  ;;  %v4968_v26 = vld [vmem:[%s5770_s8 + $0x484] ss:$16 sps:$4 sm:$0xff]   ;;  %v4971_v27 = vld [vmem:[%s5770_s8 + $0x48c] ss:$16 sps:$4 sm:$0xff]  }
  0xa8   : > { %3411 = vmatprep.subr.bf16.mxu0 %v4884_v28  ;;  %3739 = vmatprep.subr.bf16.mxu1 %v4887_v29  ;;  %v4966_v28 = vld [vmem:[%s5770_s8 + $0x480] ss:$16 sps:$4 sm:$0xff]   ;;  %v4969_v29 = vld [vmem:[%s5770_s8 + $0x488] ss:$16 sps:$4 sm:$0xff]  }
  0xab   : > { %3412 = vmatpush1.bf16.msra.mxu0 %v4882_v31  ;;  %3740 = vmatpush1.bf16.msra.mxu1 %v4885_v33  ;;  %v4977_v31 = vld [vmem:[%s5770_s8 + $0x4ac] ss:$16 sps:$4 sm:$0xff]   ;;  %v4975_v33 = vld [vmem:[%s5770_s8 + $0x4a8] ss:$16 sps:$4 sm:$0xff]  }
  0xac   : > { %3413 = vmatprep.subr.bf16.mxu0 %v4890_v34  ;;  %3741 = vmatprep.subr.bf16.mxu1 %v4893_v35  ;;  %v4980_v34 = vld [vmem:[%s5770_s8 + $0x4c4] ss:$16 sps:$4 sm:$0xff]   ;;  %v4983_v35 = vld [vmem:[%s5770_s8 + $0x4cc] ss:$16 sps:$4 sm:$0xff]  }
  0xaf   : > { %3414 = vmatpush1.bf16.msra.mxu0 %v4888_v36  ;;  %3742 = vmatpush1.bf16.msra.mxu1 %v4891_v37  ;;  %v4978_v36 = vld [vmem:[%s5770_s8 + $0x4c0] ss:$16 sps:$4 sm:$0xff]   ;;  %v4981_v37 = vld [vmem:[%s5770_s8 + $0x4c8] ss:$16 sps:$4 sm:$0xff]  }
  0xb0   : > { %3415 = vmatprep.subr.bf16.mxu0 %v4896_v38  ;;  %3743 = vmatprep.subr.bf16.mxu1 %v4899_v39  ;;  %v4986_v38 = vld [vmem:[%s5770_s8 + $0x4e4] ss:$16 sps:$4 sm:$0xff]   ;;  %v4989_v39 = vld [vmem:[%s5770_s8 + $0x4ec] ss:$16 sps:$4 sm:$0xff]  }
  0xb3   : > { %3416 = vmatpush1.bf16.msra.mxu0 %v4894_v40  ;;  %3744 = vmatpush1.bf16.msra.mxu1 %v4897_v41  ;;  %v4984_v40 = vld [vmem:[%s5770_s8 + $0x4e0] ss:$16 sps:$4 sm:$0xff]   ;;  %v4987_v41 = vld [vmem:[%s5770_s8 + $0x4e8] ss:$16 sps:$4 sm:$0xff]  }
  0xb4   : > { %3417 = vmatprep.subr.bf16.mxu0 %v4902_v42  ;;  %3745 = vmatprep.subr.bf16.mxu1 %v4905_v43  ;;  %v4992_v42 = vld [vmem:[%s5770_s8 + $0x504] ss:$16 sps:$4 sm:$0xff]   ;;  %v4995_v43 = vld [vmem:[%s5770_s8 + $0x50c] ss:$16 sps:$4 sm:$0xff]  }
  0xb7   : > { %3418 = vmatpush1.bf16.msra.mxu0 %v4900_v44  ;;  %3746 = vmatpush1.bf16.msra.mxu1 %v4903_v45  ;;  %v4990_v44 = vld [vmem:[%s5770_s8 + $0x500] ss:$16 sps:$4 sm:$0xff]   ;;  %v4993_v45 = vld [vmem:[%s5770_s8 + $0x508] ss:$16 sps:$4 sm:$0xff]  }
  0xb8   : > { %3419 = vmatprep.subr.bf16.mxu0 %v4908_v46  ;;  %3747 = vmatprep.subr.bf16.mxu1 %v4911_v47  ;;  %v4998_v46 = vld [vmem:[%s5770_s8 + $0x524] ss:$16 sps:$4 sm:$0xff]   ;;  %v5001_v47 = vld [vmem:[%s5770_s8 + $0x52c] ss:$16 sps:$4 sm:$0xff]  }
  0xbb   : > { %3420 = vmatpush1.bf16.msra.mxu0 %v4906_v48  ;;  %3748 = vmatpush1.bf16.msra.mxu1 %v4909_v49  ;;  %v4996_v48 = vld [vmem:[%s5770_s8 + $0x520] ss:$16 sps:$4 sm:$0xff]   ;;  %v4999_v49 = vld [vmem:[%s5770_s8 + $0x528] ss:$16 sps:$4 sm:$0xff]  }
  0xbc   : > { %3421 = vmatprep.subr.bf16.mxu0 %v4914_v50  ;;  %3749 = vmatprep.subr.bf16.mxu1 %v4917_v51  ;;  %v5004_v50 = vld [vmem:[%s5770_s8 + $0x544] ss:$16 sps:$4 sm:$0xff]   ;;  %v5007_v51 = vld [vmem:[%s5770_s8 + $0x54c] ss:$16 sps:$4 sm:$0xff]  }
  0xbf   : > { %3422 = vmatpush1.bf16.msra.mxu0 %v4912_v52  ;;  %3750 = vmatpush1.bf16.msra.mxu1 %v4915_v53  ;;  %v5002_v52 = vld [vmem:[%s5770_s8 + $0x540] ss:$16 sps:$4 sm:$0xff]   ;;  %v5005_v53 = vld [vmem:[%s5770_s8 + $0x548] ss:$16 sps:$4 sm:$0xff]  }
  0xc0   : > { %3423 = vmatprep.subr.bf16.mxu0 %v4920_v54  ;;  %3751 = vmatprep.subr.bf16.mxu1 %v4923_v55  ;;  %v5010_v54 = vld [vmem:[%s5770_s8 + $0x564] ss:$16 sps:$4 sm:$0xff]   ;;  %v5013_v55 = vld [vmem:[%s5770_s8 + $0x56c] ss:$16 sps:$4 sm:$0xff]  }
  0xc3   : > { %3424 = vmatpush1.bf16.msra.mxu0 %v4918_v56  ;;  %3752 = vmatpush1.bf16.msra.mxu1 %v4921_v57  ;;  %v5008_v56 = vld [vmem:[%s5770_s8 + $0x560] ss:$16 sps:$4 sm:$0xff]   ;;  %v5011_v57 = vld [vmem:[%s5770_s8 + $0x568] ss:$16 sps:$4 sm:$0xff]  }
  0xc4   : > { %3425 = vmatprep.subr.bf16.mxu0 %v4926_v58  ;;  %3753 = vmatprep.subr.bf16.mxu1 %v4929_v59  ;;  %v5016_v58 = vld [vmem:[%s5770_s8 + $0x584] ss:$16 sps:$4 sm:$0xff]   ;;  %v5019_v59 = vld [vmem:[%s5770_s8 + $0x58c] ss:$16 sps:$4 sm:$0xff]  }
  0xc7   : > { %3426 = vmatpush1.bf16.msra.mxu0 %v4924_v60  ;;  %3754 = vmatpush1.bf16.msra.mxu1 %v4927_v61  ;;  %v5014_v60 = vld [vmem:[%s5770_s8 + $0x580] ss:$16 sps:$4 sm:$0xff]   ;;  %v5017_v61 = vld [vmem:[%s5770_s8 + $0x588] ss:$16 sps:$4 sm:$0xff]  }
  0xc8   : > { %3427 = vmatprep.subr.bf16.mxu0 %v4932_v62  ;;  %3755 = vmatprep.subr.bf16.mxu1 %v4935_v63  ;;  %v5022_v62 = vld [vmem:[%s5770_s8 + $0x5a4] ss:$16 sps:$4 sm:$0xff]   ;;  %v5025_v63 = vld [vmem:[%s5770_s8 + $0x5ac] ss:$16 sps:$4 sm:$0xff]  }
  0xcb   : > { %3428 = vmatpush1.bf16.msra.mxu0 %v4930_v0  ;;  %3756 = vmatpush1.bf16.msra.mxu1 %v4933_v1  ;;  %v5020_v0 = vld [vmem:[%s5770_s8 + $0x5a0] ss:$16 sps:$4 sm:$0xff]   ;;  %v5023_v1 = vld [vmem:[%s5770_s8 + $0x5a8] ss:$16 sps:$4 sm:$0xff]  }
  0xcc   : > { %3429 = vmatprep.subr.bf16.mxu0 %v4938_v2  ;;  %3757 = vmatprep.subr.bf16.mxu1 %v4941_v3  ;;  %v5028_v2 = vld [vmem:[%s5770_s8 + $0x5c4] ss:$16 sps:$4 sm:$0xff]   ;;  %v5031_v3 = vld [vmem:[%s5770_s8 + $0x5cc] ss:$16 sps:$4 sm:$0xff]  }
  0xcf   : > { %3430 = vmatpush1.bf16.msra.mxu0 %v4936_v4  ;;  %3758 = vmatpush1.bf16.msra.mxu1 %v4939_v5  ;;  %v5026_v4 = vld [vmem:[%s5770_s8 + $0x5c0] ss:$16 sps:$4 sm:$0xff]   ;;  %v5029_v5 = vld [vmem:[%s5770_s8 + $0x5c8] ss:$16 sps:$4 sm:$0xff]  }
  0xd0   : > { %3440 = vmatprep.subr.bf16.mxu0 %v4944_v6  ;;  %3768 = vmatprep.subr.bf16.mxu1 %v4947_v8  ;;  %v5034_v6 = vld [vmem:[%s5770_s8 + $0x5e4] ss:$16 sps:$4 sm:$0xff]   ;;  %v5032_v8 = vld [vmem:[%s5770_s8 + $0x5e0] ss:$16 sps:$4 sm:$0xff]  }
  0xd2   : > { %3432 = vmatmul.mubr.bf16.vlgmr.msra.gmra.mrb[0].mxu0 %v250_v11  ;;  %3760 = vmatmul.mubr.bf16.vlgmr.msra.gmra.mrb[0].mxu1 %v250_v11  ;;  %v236_v11 = vld [vmem:[%s6362_s0 + $0x20] sm:$0xff] }
  0xd3   : > { %3441 = vmatpush1.bf16.msra.mxu0 %v4942_v9  ;;  %3769 = vmatpush1.bf16.msra.mxu1 %v4945_v10  ;;  %v5035_v9 = vld [vmem:[%s5770_s8 + $0x5e8] ss:$16 sps:$4 sm:$0xff]   ;;  %v5040_v10 = vld [vmem:[%s5770_s8 + $0x604] ss:$16 sps:$4 sm:$0xff]  }
  0xd4   : > { %3442 = vmatprep.subr.bf16.mxu0 %v4950_v12  ;;  %3770 = vmatprep.subr.bf16.mxu1 %v4953_v13  ;;  %v5043_v12 = vld [vmem:[%s5770_s8 + $0x60c] ss:$16 sps:$4 sm:$0xff]   ;;  %v5038_v13 = vld [vmem:[%s5770_s8 + $0x600] ss:$16 sps:$4 sm:$0xff]  }
  0xd5   : > { %3472 = vmatprep.mubr.bf16.mxu0 %v253_v15  ;;  %3800 = vmatprep.mubr.bf16.mxu1 %v253_v15  ;;  %v252_v15 = vpack.c.bf16 %v236_v11, %v236_v11  ;;  %v5133_v11 = vld [vmem:[%s5770_s8 + $0x7ec] ss:$16 sps:$4 sm:$0xff]  }
  0xd7   : > { %3443 = vmatpush1.bf16.msra.mxu0 %v4948_v16  ;;  %3771 = vmatpush1.bf16.msra.mxu1 %v4951_v17  ;;  %v239_v16 = vld [vmem:[%s6362_s0 + $0x38] sm:$0xff]  ;;  %v5046_v17 = vld [vmem:[%s5770_s8 + $0x624] ss:$16 sps:$4 sm:$0xff]  }
  0xd8   : > { %3444 = vmatprep.subr.bf16.mxu0 %v4956_v18  ;;  %3772 = vmatprep.subr.bf16.mxu1 %v4959_v19  ;;  %v5049_v18 = vld [vmem:[%s5770_s8 + $0x62c] ss:$16 sps:$4 sm:$0xff]   ;;  %v255_v19 = vpack.c.bf16 %v239_v16, %v239_v16 }
  0xd9   : > { %v5139_v16 = vld [vmem:[%s5770_s8 + $0x80c] ss:$16 sps:$4 sm:$0xff]  }
  0xdb   : > { %3445 = vmatpush1.bf16.msra.mxu0 %v4954_v20  ;;  %3773 = vmatpush1.bf16.msra.mxu1 %v4957_v21  ;;  %v5044_v20 = vld [vmem:[%s5770_s8 + $0x620] ss:$16 sps:$4 sm:$0xff]   ;;  %v5047_v21 = vld [vmem:[%s5770_s8 + $0x628] ss:$16 sps:$4 sm:$0xff]  }
  0xdc   : > { %3446 = vmatprep.subr.bf16.mxu0 %v4962_v22  ;;  %3774 = vmatprep.subr.bf16.mxu1 %v4965_v23  ;;  %v5052_v22 = vld [vmem:[%s5770_s8 + $0x644] ss:$16 sps:$4 sm:$0xff]   ;;  %v5055_v23 = vld [vmem:[%s5770_s8 + $0x64c] ss:$16 sps:$4 sm:$0xff]  }
  0xdf   : > { %3447 = vmatpush1.bf16.msra.mxu0 %v4960_v24  ;;  %3775 = vmatpush1.bf16.msra.mxu1 %v4963_v25  ;;  %v5050_v24 = vld [vmem:[%s5770_s8 + $0x640] ss:$16 sps:$4 sm:$0xff]   ;;  %v5053_v25 = vld [vmem:[%s5770_s8 + $0x648] ss:$16 sps:$4 sm:$0xff]  }
  0xe0   : > { %3448 = vmatprep.subr.bf16.mxu0 %v4968_v26  ;;  %3776 = vmatprep.subr.bf16.mxu1 %v4971_v27  ;;  %v5058_v26 = vld [vmem:[%s5770_s8 + $0x664] ss:$16 sps:$4 sm:$0xff]   ;;  %v5061_v27 = vld [vmem:[%s5770_s8 + $0x66c] ss:$16 sps:$4 sm:$0xff]  }
  0xe3   : > { %3449 = vmatpush1.bf16.msra.mxu0 %v4966_v28  ;;  %3777 = vmatpush1.bf16.msra.mxu1 %v4969_v29  ;;  %v5056_v28 = vld [vmem:[%s5770_s8 + $0x660] ss:$16 sps:$4 sm:$0xff]   ;;  %v5059_v29 = vld [vmem:[%s5770_s8 + $0x668] ss:$16 sps:$4 sm:$0xff]  }
  0xe4   : > { %3450 = vmatprep.subr.bf16.mxu0 %v4974_v30  ;;  %3778 = vmatprep.subr.bf16.mxu1 %v4977_v31  ;;  %v5064_v30 = vld [vmem:[%s5770_s8 + $0x684] ss:$16 sps:$4 sm:$0xff]   ;;  %v5067_v31 = vld [vmem:[%s5770_s8 + $0x68c] ss:$16 sps:$4 sm:$0xff]  }
  0xe7   : > { %3451 = vmatpush1.bf16.msra.mxu0 %v4972_v32  ;;  %3779 = vmatpush1.bf16.msra.mxu1 %v4975_v33  ;;  %v5062_v32 = vld [vmem:[%s5770_s8 + $0x680] ss:$16 sps:$4 sm:$0xff]   ;;  %v5065_v33 = vld [vmem:[%s5770_s8 + $0x688] ss:$16 sps:$4 sm:$0xff]  }
  0xe8   : > { %3452 = vmatprep.subr.bf16.mxu0 %v4980_v34  ;;  %3780 = vmatprep.subr.bf16.mxu1 %v4983_v35  ;;  %v5070_v34 = vld [vmem:[%s5770_s8 + $0x6a4] ss:$16 sps:$4 sm:$0xff]   ;;  %v5073_v35 = vld [vmem:[%s5770_s8 + $0x6ac] ss:$16 sps:$4 sm:$0xff]  }
  0xeb   : > { %3453 = vmatpush1.bf16.msra.mxu0 %v4978_v36  ;;  %3781 = vmatpush1.bf16.msra.mxu1 %v4981_v37  ;;  %v5068_v36 = vld [vmem:[%s5770_s8 + $0x6a0] ss:$16 sps:$4 sm:$0xff]   ;;  %v5071_v37 = vld [vmem:[%s5770_s8 + $0x6a8] ss:$16 sps:$4 sm:$0xff]  }
  0xec   : > { %3454 = vmatprep.subr.bf16.mxu0 %v4986_v38  ;;  %3782 = vmatprep.subr.bf16.mxu1 %v4989_v39  ;;  %v5076_v38 = vld [vmem:[%s5770_s8 + $0x6c4] ss:$16 sps:$4 sm:$0xff]   ;;  %v5079_v39 = vld [vmem:[%s5770_s8 + $0x6cc] ss:$16 sps:$4 sm:$0xff]  }
  0xef   : > { %3455 = vmatpush1.bf16.msra.mxu0 %v4984_v40  ;;  %3783 = vmatpush1.bf16.msra.mxu1 %v4987_v41  ;;  %v5074_v40 = vld [vmem:[%s5770_s8 + $0x6c0] ss:$16 sps:$4 sm:$0xff]   ;;  %v5077_v41 = vld [vmem:[%s5770_s8 + $0x6c8] ss:$16 sps:$4 sm:$0xff]  }
  0xf0   : > { %3456 = vmatprep.subr.bf16.mxu0 %v4992_v42  ;;  %3784 = vmatprep.subr.bf16.mxu1 %v4995_v43  ;;  %v5082_v42 = vld [vmem:[%s5770_s8 + $0x6e4] ss:$16 sps:$4 sm:$0xff]   ;;  %v5085_v43 = vld [vmem:[%s5770_s8 + $0x6ec] ss:$16 sps:$4 sm:$0xff]  }
  0xf3   : > { %3457 = vmatpush1.bf16.msra.mxu0 %v4990_v44  ;;  %3785 = vmatpush1.bf16.msra.mxu1 %v4993_v45  ;;  %v5080_v44 = vld [vmem:[%s5770_s8 + $0x6e0] ss:$16 sps:$4 sm:$0xff]   ;;  %v5083_v45 = vld [vmem:[%s5770_s8 + $0x6e8] ss:$16 sps:$4 sm:$0xff]  }
  0xf4   : > { %3458 = vmatprep.subr.bf16.mxu0 %v4998_v46  ;;  %3786 = vmatprep.subr.bf16.mxu1 %v5001_v47  ;;  %v5088_v46 = vld [vmem:[%s5770_s8 + $0x704] ss:$16 sps:$4 sm:$0xff]   ;;  %v5091_v47 = vld [vmem:[%s5770_s8 + $0x70c] ss:$16 sps:$4 sm:$0xff]  }
  0xf7   : > { %3459 = vmatpush1.bf16.msra.mxu0 %v4996_v48  ;;  %3787 = vmatpush1.bf16.msra.mxu1 %v4999_v49  ;;  %v5086_v48 = vld [vmem:[%s5770_s8 + $0x700] ss:$16 sps:$4 sm:$0xff]   ;;  %v5089_v49 = vld [vmem:[%s5770_s8 + $0x708] ss:$16 sps:$4 sm:$0xff]  }
  0xf8   : > { %3460 = vmatprep.subr.bf16.mxu0 %v5004_v50  ;;  %3788 = vmatprep.subr.bf16.mxu1 %v5007_v51  ;;  %v5094_v50 = vld [vmem:[%s5770_s8 + $0x724] ss:$16 sps:$4 sm:$0xff]   ;;  %v5097_v51 = vld [vmem:[%s5770_s8 + $0x72c] ss:$16 sps:$4 sm:$0xff]  }
  0xfb   : > { %3461 = vmatpush1.bf16.msra.mxu0 %v5002_v52  ;;  %3789 = vmatpush1.bf16.msra.mxu1 %v5005_v53  ;;  %v5092_v52 = vld [vmem:[%s5770_s8 + $0x720] ss:$16 sps:$4 sm:$0xff]   ;;  %v5095_v53 = vld [vmem:[%s5770_s8 + $0x728] ss:$16 sps:$4 sm:$0xff]  }
  0xfc   : > { %3462 = vmatprep.subr.bf16.mxu0 %v5010_v54  ;;  %3790 = vmatprep.subr.bf16.mxu1 %v5013_v55  ;;  %v5100_v54 = vld [vmem:[%s5770_s8 + $0x744] ss:$16 sps:$4 sm:$0xff]   ;;  %v5103_v55 = vld [vmem:[%s5770_s8 + $0x74c] ss:$16 sps:$4 sm:$0xff]  }
  0xff   : > { %3463 = vmatpush1.bf16.msra.mxu0 %v5008_v56  ;;  %3791 = vmatpush1.bf16.msra.mxu1 %v5011_v57  ;;  %v5098_v56 = vld [vmem:[%s5770_s8 + $0x740] ss:$16 sps:$4 sm:$0xff]   ;;  %v5101_v57 = vld [vmem:[%s5770_s8 + $0x748] ss:$16 sps:$4 sm:$0xff]  }
 0x100   : > { %3464 = vmatprep.subr.bf16.mxu0 %v5016_v58  ;;  %3792 = vmatprep.subr.bf16.mxu1 %v5019_v59  ;;  %v5106_v58 = vld [vmem:[%s5770_s8 + $0x764] ss:$16 sps:$4 sm:$0xff]   ;;  %v5109_v59 = vld [vmem:[%s5770_s8 + $0x76c] ss:$16 sps:$4 sm:$0xff]  }
 0x103   : > { %3465 = vmatpush1.bf16.msra.mxu0 %v5014_v60  ;;  %3793 = vmatpush1.bf16.msra.mxu1 %v5017_v61  ;;  %v5104_v60 = vld [vmem:[%s5770_s8 + $0x760] ss:$16 sps:$4 sm:$0xff]   ;;  %v5107_v61 = vld [vmem:[%s5770_s8 + $0x768] ss:$16 sps:$4 sm:$0xff]  }
 0x104   : > { %3466 = vmatprep.subr.bf16.mxu0 %v5022_v62  ;;  %3794 = vmatprep.subr.bf16.mxu1 %v5025_v63  ;;  %v5112_v62 = vld [vmem:[%s5770_s8 + $0x784] ss:$16 sps:$4 sm:$0xff]   ;;  %v5115_v63 = vld [vmem:[%s5770_s8 + $0x78c] ss:$16 sps:$4 sm:$0xff]  }
 0x107   : > { %3467 = vmatpush1.bf16.msra.mxu0 %v5020_v0  ;;  %3795 = vmatpush1.bf16.msra.mxu1 %v5023_v1  ;;  %v5110_v0 = vld [vmem:[%s5770_s8 + $0x780] ss:$16 sps:$4 sm:$0xff]   ;;  %v5113_v1 = vld [vmem:[%s5770_s8 + $0x788] ss:$16 sps:$4 sm:$0xff]  }
 0x108   : > { %3468 = vmatprep.subr.bf16.mxu0 %v5028_v2  ;;  %3796 = vmatprep.subr.bf16.mxu1 %v5031_v3  ;;  %v5118_v2 = vld [vmem:[%s5770_s8 + $0x7a4] ss:$16 sps:$4 sm:$0xff]   ;;  %v5121_v3 = vld [vmem:[%s5770_s8 + $0x7ac] ss:$16 sps:$4 sm:$0xff]  }
 0x10b   : > { %3469 = vmatpush1.bf16.msra.mxu0 %v5026_v4  ;;  %3797 = vmatpush1.bf16.msra.mxu1 %v5029_v5  ;;  %v5116_v4 = vld [vmem:[%s5770_s8 + $0x7a0] ss:$16 sps:$4 sm:$0xff]   ;;  %v5119_v5 = vld [vmem:[%s5770_s8 + $0x7a8] ss:$16 sps:$4 sm:$0xff]  }
 0x10c   : > { %3470 = vmatprep.subr.bf16.mxu0 %v5034_v6  ;;  %3798 = vmatprep.subr.bf16.mxu1 %v5037_v7  ;;  %v5124_v6 = vld [vmem:[%s5770_s8 + $0x7c4] ss:$16 sps:$4 sm:$0xff]   ;;  %v5127_v7 = vld [vmem:[%s5770_s8 + $0x7cc] ss:$16 sps:$4 sm:$0xff]  }
 0x10f   : > { %3471 = vmatpush1.bf16.msra.mxu0 %v5032_v8  ;;  %3799 = vmatpush1.bf16.msra.mxu1 %v5035_v9  ;;  %v5122_v8 = vld [vmem:[%s5770_s8 + $0x7c0] ss:$16 sps:$4 sm:$0xff]   ;;  %v5125_v9 = vld [vmem:[%s5770_s8 + $0x7c8] ss:$16 sps:$4 sm:$0xff]  }
 0x110   : > { %3481 = vmatprep.subr.bf16.mxu0 %v5040_v10  ;;  %3809 = vmatprep.subr.bf16.mxu1 %v5043_v12  ;;  %v5130_v10 = vld [vmem:[%s5770_s8 + $0x7e4] ss:$16 sps:$4 sm:$0xff]   ;;  %v5128_v12 = vld [vmem:[%s5770_s8 + $0x7e0] ss:$16 sps:$4 sm:$0xff]  }
 0x112   : > { %3473 = vmatmul.mubr.bf16.vlgmr.msra.gmra.mrb[0].mxu0 %v252_v15  ;;  %3801 = vmatmul.mubr.bf16.vlgmr.msra.gmra.mrb[0].mxu1 %v252_v15  ;;  %v5136_v15 = vld [vmem:[%s5770_s8 + $0x804] ss:$16 sps:$4 sm:$0xff]  }
 0x113   : > { %3482 = vmatpush1.bf16.msra.mxu0 %v5038_v13  ;;  %3810 = vmatpush1.bf16.msra.mxu1 %v5041_v14  ;;  %v5131_v13 = vld [vmem:[%s5770_s8 + $0x7e8] ss:$16 sps:$4 sm:$0xff]   ;;  %v238_v14 = vld [vmem:[%s6362_s0 + $0x30] sm:$0xff] }
 0x114   : > { %3483 = vmatprep.subr.bf16.mxu0 %v5046_v17  ;;  %3811 = vmatprep.subr.bf16.mxu1 %v5049_v18  ;;  %v254_v17 = vpack.c.bf16 %v238_v14, %v238_v14  ;;  %v241_v18 = vld [vmem:[%s6362_s0 + $0x48] sm:$0xff]  ;;  %v5226_v14 = vld [vmem:[%s5770_s8 + $0x9e4] ss:$16 sps:$4 sm:$0xff]  }
 0x115   : > { %3513 = vmatprep.mubr.bf16.mxu0 %v255_v19  ;;  %3841 = vmatprep.mubr.bf16.mxu1 %v255_v19  ;;  %v5134_v19 = vld [vmem:[%s5770_s8 + $0x800] ss:$16 sps:$4 sm:$0xff]  }
 0x117   : > { %3484 = vmatpush1.bf16.msra.mxu0 %v5044_v20  ;;  %3812 = vmatpush1.bf16.msra.mxu1 %v5047_v21  ;;  %v5137_v20 = vld [vmem:[%s5770_s8 + $0x808] ss:$16 sps:$4 sm:$0xff]   ;;  %v5142_v21 = vld [vmem:[%s5770_s8 + $0x824] ss:$16 sps:$4 sm:$0xff]  }
 0x118   : > { %3485 = vmatprep.subr.bf16.mxu0 %v5052_v22  ;;  %3813 = vmatprep.subr.bf16.mxu1 %v5055_v23  ;;  %v5145_v22 = vld [vmem:[%s5770_s8 + $0x82c] ss:$16 sps:$4 sm:$0xff]   ;;  %v257_v23 = vpack.c.bf16 %v241_v18, %v241_v18  ;;  %v5232_v18 = vld [vmem:[%s5770_s8 + $0xa04] ss:$16 sps:$4 sm:$0xff]  }
 0x11b   : > { %3486 = vmatpush1.bf16.msra.mxu0 %v5050_v24  ;;  %3814 = vmatpush1.bf16.msra.mxu1 %v5053_v25  ;;  %v5140_v24 = vld [vmem:[%s5770_s8 + $0x820] ss:$16 sps:$4 sm:$0xff]   ;;  %v5143_v25 = vld [vmem:[%s5770_s8 + $0x828] ss:$16 sps:$4 sm:$0xff]  }
 0x11c   : > { %3487 = vmatprep.subr.bf16.mxu0 %v5058_v26  ;;  %3815 = vmatprep.subr.bf16.mxu1 %v5061_v27  ;;  %v5148_v26 = vld [vmem:[%s5770_s8 + $0x844] ss:$16 sps:$4 sm:$0xff]   ;;  %v5151_v27 = vld [vmem:[%s5770_s8 + $0x84c] ss:$16 sps:$4 sm:$0xff]  }
 0x11f   : > { %3488 = vmatpush1.bf16.msra.mxu0 %v5056_v28  ;;  %3816 = vmatpush1.bf16.msra.mxu1 %v5059_v29  ;;  %v5146_v28 = vld [vmem:[%s5770_s8 + $0x840] ss:$16 sps:$4 sm:$0xff]   ;;  %v5149_v29 = vld [vmem:[%s5770_s8 + $0x848] ss:$16 sps:$4 sm:$0xff]  }
 0x120   : > { %3489 = vmatprep.subr.bf16.mxu0 %v5064_v30  ;;  %3817 = vmatprep.subr.bf16.mxu1 %v5067_v31  ;;  %v5154_v30 = vld [vmem:[%s5770_s8 + $0x864] ss:$16 sps:$4 sm:$0xff]   ;;  %v5157_v31 = vld [vmem:[%s5770_s8 + $0x86c] ss:$16 sps:$4 sm:$0xff]  }
 0x123   : > { %3490 = vmatpush1.bf16.msra.mxu0 %v5062_v32  ;;  %3818 = vmatpush1.bf16.msra.mxu1 %v5065_v33  ;;  %v5152_v32 = vld [vmem:[%s5770_s8 + $0x860] ss:$16 sps:$4 sm:$0xff]   ;;  %v5155_v33 = vld [vmem:[%s5770_s8 + $0x868] ss:$16 sps:$4 sm:$0xff]  }
 0x124   : > { %3491 = vmatprep.subr.bf16.mxu0 %v5070_v34  ;;  %3819 = vmatprep.subr.bf16.mxu1 %v5073_v35  ;;  %v5160_v34 = vld [vmem:[%s5770_s8 + $0x884] ss:$16 sps:$4 sm:$0xff]   ;;  %v5163_v35 = vld [vmem:[%s5770_s8 + $0x88c] ss:$16 sps:$4 sm:$0xff]  }
 0x127   : > { %3492 = vmatpush1.bf16.msra.mxu0 %v5068_v36  ;;  %3820 = vmatpush1.bf16.msra.mxu1 %v5071_v37  ;;  %v5158_v36 = vld [vmem:[%s5770_s8 + $0x880] ss:$16 sps:$4 sm:$0xff]   ;;  %v5161_v37 = vld [vmem:[%s5770_s8 + $0x888] ss:$16 sps:$4 sm:$0xff]  }
 0x128   : > { %3493 = vmatprep.subr.bf16.mxu0 %v5076_v38  ;;  %3821 = vmatprep.subr.bf16.mxu1 %v5079_v39  ;;  %v5166_v38 = vld [vmem:[%s5770_s8 + $0x8a4] ss:$16 sps:$4 sm:$0xff]   ;;  %v5169_v39 = vld [vmem:[%s5770_s8 + $0x8ac] ss:$16 sps:$4 sm:$0xff]  }
 0x12b   : > { %3494 = vmatpush1.bf16.msra.mxu0 %v5074_v40  ;;  %3822 = vmatpush1.bf16.msra.mxu1 %v5077_v41  ;;  %v5164_v40 = vld [vmem:[%s5770_s8 + $0x8a0] ss:$16 sps:$4 sm:$0xff]   ;;  %v5167_v41 = vld [vmem:[%s5770_s8 + $0x8a8] ss:$16 sps:$4 sm:$0xff]  }
 0x12c   : > { %3495 = vmatprep.subr.bf16.mxu0 %v5082_v42  ;;  %3823 = vmatprep.subr.bf16.mxu1 %v5085_v43  ;;  %v5172_v42 = vld [vmem:[%s5770_s8 + $0x8c4] ss:$16 sps:$4 sm:$0xff]   ;;  %v5175_v43 = vld [vmem:[%s5770_s8 + $0x8cc] ss:$16 sps:$4 sm:$0xff]  }
 0x12f   : > { %3496 = vmatpush1.bf16.msra.mxu0 %v5080_v44  ;;  %3824 = vmatpush1.bf16.msra.mxu1 %v5083_v45  ;;  %v5170_v44 = vld [vmem:[%s5770_s8 + $0x8c0] ss:$16 sps:$4 sm:$0xff]   ;;  %v5173_v45 = vld [vmem:[%s5770_s8 + $0x8c8] ss:$16 sps:$4 sm:$0xff]  }
 0x130   : > { %3497 = vmatprep.subr.bf16.mxu0 %v5088_v46  ;;  %3825 = vmatprep.subr.bf16.mxu1 %v5091_v47  ;;  %v5178_v46 = vld [vmem:[%s5770_s8 + $0x8e4] ss:$16 sps:$4 sm:$0xff]   ;;  %v5181_v47 = vld [vmem:[%s5770_s8 + $0x8ec] ss:$16 sps:$4 sm:$0xff]  }
 0x133   : > { %3498 = vmatpush1.bf16.msra.mxu0 %v5086_v48  ;;  %3826 = vmatpush1.bf16.msra.mxu1 %v5089_v49  ;;  %v5176_v48 = vld [vmem:[%s5770_s8 + $0x8e0] ss:$16 sps:$4 sm:$0xff]   ;;  %v5179_v49 = vld [vmem:[%s5770_s8 + $0x8e8] ss:$16 sps:$4 sm:$0xff]  }
 0x134   : > { %3499 = vmatprep.subr.bf16.mxu0 %v5094_v50  ;;  %3827 = vmatprep.subr.bf16.mxu1 %v5097_v51  ;;  %v5184_v50 = vld [vmem:[%s5770_s8 + $0x904] ss:$16 sps:$4 sm:$0xff]   ;;  %v5187_v51 = vld [vmem:[%s5770_s8 + $0x90c] ss:$16 sps:$4 sm:$0xff]  }
 0x137   : > { %3500 = vmatpush1.bf16.msra.mxu0 %v5092_v52  ;;  %3828 = vmatpush1.bf16.msra.mxu1 %v5095_v53  ;;  %v5182_v52 = vld [vmem:[%s5770_s8 + $0x900] ss:$16 sps:$4 sm:$0xff]   ;;  %v5185_v53 = vld [vmem:[%s5770_s8 + $0x908] ss:$16 sps:$4 sm:$0xff]  }
 0x138   : > { %3501 = vmatprep.subr.bf16.mxu0 %v5100_v54  ;;  %3829 = vmatprep.subr.bf16.mxu1 %v5103_v55  ;;  %v5190_v54 = vld [vmem:[%s5770_s8 + $0x924] ss:$16 sps:$4 sm:$0xff]   ;;  %v5193_v55 = vld [vmem:[%s5770_s8 + $0x92c] ss:$16 sps:$4 sm:$0xff]  }
 0x13b   : > { %3502 = vmatpush1.bf16.msra.mxu0 %v5098_v56  ;;  %3830 = vmatpush1.bf16.msra.mxu1 %v5101_v57  ;;  %v5188_v56 = vld [vmem:[%s5770_s8 + $0x920] ss:$16 sps:$4 sm:$0xff]   ;;  %v5191_v57 = vld [vmem:[%s5770_s8 + $0x928] ss:$16 sps:$4 sm:$0xff]  }
 0x13c   : > { %3503 = vmatprep.subr.bf16.mxu0 %v5106_v58  ;;  %3831 = vmatprep.subr.bf16.mxu1 %v5109_v59  ;;  %v5196_v58 = vld [vmem:[%s5770_s8 + $0x944] ss:$16 sps:$4 sm:$0xff]   ;;  %v5199_v59 = vld [vmem:[%s5770_s8 + $0x94c] ss:$16 sps:$4 sm:$0xff]  }
 0x13f   : > { %3504 = vmatpush1.bf16.msra.mxu0 %v5104_v60  ;;  %3832 = vmatpush1.bf16.msra.mxu1 %v5107_v61  ;;  %v5194_v60 = vld [vmem:[%s5770_s8 + $0x940] ss:$16 sps:$4 sm:$0xff]   ;;  %v5197_v61 = vld [vmem:[%s5770_s8 + $0x948] ss:$16 sps:$4 sm:$0xff]  }
 0x140   : > { %3505 = vmatprep.subr.bf16.mxu0 %v5112_v62  ;;  %3833 = vmatprep.subr.bf16.mxu1 %v5115_v63  ;;  %v5202_v62 = vld [vmem:[%s5770_s8 + $0x964] ss:$16 sps:$4 sm:$0xff]   ;;  %v5205_v63 = vld [vmem:[%s5770_s8 + $0x96c] ss:$16 sps:$4 sm:$0xff]  }
 0x143   : > { %3506 = vmatpush1.bf16.msra.mxu0 %v5110_v0  ;;  %3834 = vmatpush1.bf16.msra.mxu1 %v5113_v1  ;;  %v5200_v0 = vld [vmem:[%s5770_s8 + $0x960] ss:$16 sps:$4 sm:$0xff]   ;;  %v5203_v1 = vld [vmem:[%s5770_s8 + $0x968] ss:$16 sps:$4 sm:$0xff]  }
 0x144   : > { %3507 = vmatprep.subr.bf16.mxu0 %v5118_v2  ;;  %3835 = vmatprep.subr.bf16.mxu1 %v5121_v3  ;;  %v5208_v2 = vld [vmem:[%s5770_s8 + $0x984] ss:$16 sps:$4 sm:$0xff]   ;;  %v5211_v3 = vld [vmem:[%s5770_s8 + $0x98c] ss:$16 sps:$4 sm:$0xff]  }
 0x147   : > { %3508 = vmatpush1.bf16.msra.mxu0 %v5116_v4  ;;  %3836 = vmatpush1.bf16.msra.mxu1 %v5119_v5  ;;  %v5206_v4 = vld [vmem:[%s5770_s8 + $0x980] ss:$16 sps:$4 sm:$0xff]   ;;  %v5209_v5 = vld [vmem:[%s5770_s8 + $0x988] ss:$16 sps:$4 sm:$0xff]  }
 0x148   : > { %3509 = vmatprep.subr.bf16.mxu0 %v5124_v6  ;;  %3837 = vmatprep.subr.bf16.mxu1 %v5127_v7  ;;  %v5214_v6 = vld [vmem:[%s5770_s8 + $0x9a4] ss:$16 sps:$4 sm:$0xff]   ;;  %v5217_v7 = vld [vmem:[%s5770_s8 + $0x9ac] ss:$16 sps:$4 sm:$0xff]  }
 0x14b   : > { %3510 = vmatpush1.bf16.msra.mxu0 %v5122_v8  ;;  %3838 = vmatpush1.bf16.msra.mxu1 %v5125_v9  ;;  %v5212_v8 = vld [vmem:[%s5770_s8 + $0x9a0] ss:$16 sps:$4 sm:$0xff]   ;;  %v5215_v9 = vld [vmem:[%s5770_s8 + $0x9a8] ss:$16 sps:$4 sm:$0xff]  }
 0x14c   : > { %3511 = vmatprep.subr.bf16.mxu0 %v5130_v10  ;;  %3839 = vmatprep.subr.bf16.mxu1 %v5133_v11  ;;  %v5220_v10 = vld [vmem:[%s5770_s8 + $0x9c4] ss:$16 sps:$4 sm:$0xff]   ;;  %v5223_v11 = vld [vmem:[%s5770_s8 + $0x9cc] ss:$16 sps:$4 sm:$0xff]  }
 0x14f   : > { %3512 = vmatpush1.bf16.msra.mxu0 %v5128_v12  ;;  %3840 = vmatpush1.bf16.msra.mxu1 %v5131_v13  ;;  %v5218_v12 = vld [vmem:[%s5770_s8 + $0x9c0] ss:$16 sps:$4 sm:$0xff]   ;;  %v5221_v13 = vld [vmem:[%s5770_s8 + $0x9c8] ss:$16 sps:$4 sm:$0xff]  }
 0x150   : > { %3522 = vmatprep.subr.bf16.mxu0 %v5136_v15  ;;  %3850 = vmatprep.subr.bf16.mxu1 %v5139_v16  ;;  %v5229_v15 = vld [vmem:[%s5770_s8 + $0x9ec] ss:$16 sps:$4 sm:$0xff]   ;;  %v5224_v16 = vld [vmem:[%s5770_s8 + $0x9e0] ss:$16 sps:$4 sm:$0xff]  }
 0x152   : > { %3514 = vmatmul.mubr.bf16.vlgmr.msra.gmra.mrb[0].mxu0 %v254_v17  ;;  %3842 = vmatmul.mubr.bf16.vlgmr.msra.gmra.mrb[0].mxu1 %v254_v17  ;;  %v5227_v17 = vld [vmem:[%s5770_s8 + $0x9e8] ss:$16 sps:$4 sm:$0xff]  }
 0x153   : > { %3523 = vmatpush1.bf16.msra.mxu0 %v5134_v19  ;;  %3851 = vmatpush1.bf16.msra.mxu1 %v5137_v20  ;;  %v240_v19 = vld [vmem:[%s6362_s0 + $0x40] sm:$0xff]  ;;  %v5235_v20 = vld [vmem:[%s5770_s8 + $0xa0c] ss:$16 sps:$4 sm:$0xff]  }
 0x154   : > { %3524 = vmatprep.subr.bf16.mxu0 %v5142_v21  ;;  %3852 = vmatprep.subr.bf16.mxu1 %v5145_v22  ;;  %v243_v21 = vld [vmem:[%s6362_s0 + $0x58] sm:$0xff]  ;;  %v256_v22 = vpack.c.bf16 %v240_v19, %v240_v19 }
 0x155   : > { %3554 = vmatprep.mubr.bf16.mxu0 %v257_v23  ;;  %3882 = vmatprep.mubr.bf16.mxu1 %v257_v23  ;;  %v5230_v23 = vld [vmem:[%s5770_s8 + $0xa00] ss:$16 sps:$4 sm:$0xff]   ;;  %v5325_v19 = vld [vmem:[%s5770_s8 + $0xbec] ss:$16 sps:$4 sm:$0xff]  }
 0x157   : > { %3525 = vmatpush1.bf16.msra.mxu0 %v5140_v24  ;;  %3853 = vmatpush1.bf16.msra.mxu1 %v5143_v25  ;;  %v5233_v24 = vld [vmem:[%s5770_s8 + $0xa08] ss:$16 sps:$4 sm:$0xff]   ;;  %v5238_v25 = vld [vmem:[%s5770_s8 + $0xa24] ss:$16 sps:$4 sm:$0xff]  }
 0x158   : > { %3526 = vmatprep.subr.bf16.mxu0 %v5148_v26  ;;  %3854 = vmatprep.subr.bf16.mxu1 %v5151_v27  ;;  %v5241_v26 = vld [vmem:[%s5770_s8 + $0xa2c] ss:$16 sps:$4 sm:$0xff]   ;;  %v259_v27 = vpack.c.bf16 %v243_v21, %v243_v21  ;;  %v5323_v21 = vld [vmem:[%s5770_s8 + $0xbe8] ss:$16 sps:$4 sm:$0xff]  }
 0x15b   : > { %3527 = vmatpush1.bf16.msra.mxu0 %v5146_v28  ;;  %3855 = vmatpush1.bf16.msra.mxu1 %v5149_v29  ;;  %v5236_v28 = vld [vmem:[%s5770_s8 + $0xa20] ss:$16 sps:$4 sm:$0xff]   ;;  %v5239_v29 = vld [vmem:[%s5770_s8 + $0xa28] ss:$16 sps:$4 sm:$0xff]  }
 0x15c   : > { %3528 = vmatprep.subr.bf16.mxu0 %v5154_v30  ;;  %3856 = vmatprep.subr.bf16.mxu1 %v5157_v31  ;;  %v5244_v30 = vld [vmem:[%s5770_s8 + $0xa44] ss:$16 sps:$4 sm:$0xff]   ;;  %v5247_v31 = vld [vmem:[%s5770_s8 + $0xa4c] ss:$16 sps:$4 sm:$0xff]  }
 0x15f   : > { %3529 = vmatpush1.bf16.msra.mxu0 %v5152_v32  ;;  %3857 = vmatpush1.bf16.msra.mxu1 %v5155_v33  ;;  %v5242_v32 = vld [vmem:[%s5770_s8 + $0xa40] ss:$16 sps:$4 sm:$0xff]   ;;  %v5245_v33 = vld [vmem:[%s5770_s8 + $0xa48] ss:$16 sps:$4 sm:$0xff]  }
 0x160   : > { %3530 = vmatprep.subr.bf16.mxu0 %v5160_v34  ;;  %3858 = vmatprep.subr.bf16.mxu1 %v5163_v35  ;;  %v5250_v34 = vld [vmem:[%s5770_s8 + $0xa64] ss:$16 sps:$4 sm:$0xff]   ;;  %v5253_v35 = vld [vmem:[%s5770_s8 + $0xa6c] ss:$16 sps:$4 sm:$0xff]  }
 0x163   : > { %3531 = vmatpush1.bf16.msra.mxu0 %v5158_v36  ;;  %3859 = vmatpush1.bf16.msra.mxu1 %v5161_v37  ;;  %v5248_v36 = vld [vmem:[%s5770_s8 + $0xa60] ss:$16 sps:$4 sm:$0xff]   ;;  %v5251_v37 = vld [vmem:[%s5770_s8 + $0xa68] ss:$16 sps:$4 sm:$0xff]  }
 0x164   : > { %3532 = vmatprep.subr.bf16.mxu0 %v5166_v38  ;;  %3860 = vmatprep.subr.bf16.mxu1 %v5169_v39  ;;  %v5256_v38 = vld [vmem:[%s5770_s8 + $0xa84] ss:$16 sps:$4 sm:$0xff]   ;;  %v5259_v39 = vld [vmem:[%s5770_s8 + $0xa8c] ss:$16 sps:$4 sm:$0xff]  }
 0x167   : > { %3533 = vmatpush1.bf16.msra.mxu0 %v5164_v40  ;;  %3861 = vmatpush1.bf16.msra.mxu1 %v5167_v41  ;;  %v5254_v40 = vld [vmem:[%s5770_s8 + $0xa80] ss:$16 sps:$4 sm:$0xff]   ;;  %v5257_v41 = vld [vmem:[%s5770_s8 + $0xa88] ss:$16 sps:$4 sm:$0xff]  }
 0x168   : > { %3534 = vmatprep.subr.bf16.mxu0 %v5172_v42  ;;  %3862 = vmatprep.subr.bf16.mxu1 %v5175_v43  ;;  %v5262_v42 = vld [vmem:[%s5770_s8 + $0xaa4] ss:$16 sps:$4 sm:$0xff]   ;;  %v5265_v43 = vld [vmem:[%s5770_s8 + $0xaac] ss:$16 sps:$4 sm:$0xff]  }
 0x16b   : > { %3535 = vmatpush1.bf16.msra.mxu0 %v5170_v44  ;;  %3863 = vmatpush1.bf16.msra.mxu1 %v5173_v45  ;;  %v5260_v44 = vld [vmem:[%s5770_s8 + $0xaa0] ss:$16 sps:$4 sm:$0xff]   ;;  %v5263_v45 = vld [vmem:[%s5770_s8 + $0xaa8] ss:$16 sps:$4 sm:$0xff]  }
 0x16c   : > { %3536 = vmatprep.subr.bf16.mxu0 %v5178_v46  ;;  %3864 = vmatprep.subr.bf16.mxu1 %v5181_v47  ;;  %v5268_v46 = vld [vmem:[%s5770_s8 + $0xac4] ss:$16 sps:$4 sm:$0xff]   ;;  %v5271_v47 = vld [vmem:[%s5770_s8 + $0xacc] ss:$16 sps:$4 sm:$0xff]  }
 0x16f   : > { %3537 = vmatpush1.bf16.msra.mxu0 %v5176_v48  ;;  %3865 = vmatpush1.bf16.msra.mxu1 %v5179_v49  ;;  %v5266_v48 = vld [vmem:[%s5770_s8 + $0xac0] ss:$16 sps:$4 sm:$0xff]   ;;  %v5269_v49 = vld [vmem:[%s5770_s8 + $0xac8] ss:$16 sps:$4 sm:$0xff]  }
 0x170   : > { %3538 = vmatprep.subr.bf16.mxu0 %v5184_v50  ;;  %3866 = vmatprep.subr.bf16.mxu1 %v5187_v51  ;;  %v5274_v50 = vld [vmem:[%s5770_s8 + $0xae4] ss:$16 sps:$4 sm:$0xff]   ;;  %v5277_v51 = vld [vmem:[%s5770_s8 + $0xaec] ss:$16 sps:$4 sm:$0xff]  }
 0x173   : > { %3539 = vmatpush1.bf16.msra.mxu0 %v5182_v52  ;;  %3867 = vmatpush1.bf16.msra.mxu1 %v5185_v53  ;;  %v5272_v52 = vld [vmem:[%s5770_s8 + $0xae0] ss:$16 sps:$4 sm:$0xff]   ;;  %v5275_v53 = vld [vmem:[%s5770_s8 + $0xae8] ss:$16 sps:$4 sm:$0xff]  }
 0x174   : > { %3540 = vmatprep.subr.bf16.mxu0 %v5190_v54  ;;  %3868 = vmatprep.subr.bf16.mxu1 %v5193_v55  ;;  %v5280_v54 = vld [vmem:[%s5770_s8 + $0xb04] ss:$16 sps:$4 sm:$0xff]   ;;  %v5283_v55 = vld [vmem:[%s5770_s8 + $0xb0c] ss:$16 sps:$4 sm:$0xff]  }
 0x177   : > { %3541 = vmatpush1.bf16.msra.mxu0 %v5188_v56  ;;  %3869 = vmatpush1.bf16.msra.mxu1 %v5191_v57  ;;  %v5278_v56 = vld [vmem:[%s5770_s8 + $0xb00] ss:$16 sps:$4 sm:$0xff]   ;;  %v5281_v57 = vld [vmem:[%s5770_s8 + $0xb08] ss:$16 sps:$4 sm:$0xff]  }
 0x178   : > { %3542 = vmatprep.subr.bf16.mxu0 %v5196_v58  ;;  %3870 = vmatprep.subr.bf16.mxu1 %v5199_v59  ;;  %v5286_v58 = vld [vmem:[%s5770_s8 + $0xb24] ss:$16 sps:$4 sm:$0xff]   ;;  %v5289_v59 = vld [vmem:[%s5770_s8 + $0xb2c] ss:$16 sps:$4 sm:$0xff]  }
 0x17b   : > { %3543 = vmatpush1.bf16.msra.mxu0 %v5194_v60  ;;  %3871 = vmatpush1.bf16.msra.mxu1 %v5197_v61  ;;  %v5284_v60 = vld [vmem:[%s5770_s8 + $0xb20] ss:$16 sps:$4 sm:$0xff]   ;;  %v5287_v61 = vld [vmem:[%s5770_s8 + $0xb28] ss:$16 sps:$4 sm:$0xff]  }
 0x17c   : > { %3544 = vmatprep.subr.bf16.mxu0 %v5202_v62  ;;  %3872 = vmatprep.subr.bf16.mxu1 %v5205_v63  ;;  %v5292_v62 = vld [vmem:[%s5770_s8 + $0xb44] ss:$16 sps:$4 sm:$0xff]   ;;  %v5295_v63 = vld [vmem:[%s5770_s8 + $0xb4c] ss:$16 sps:$4 sm:$0xff]  }
 0x17f   : > { %3545 = vmatpush1.bf16.msra.mxu0 %v5200_v0  ;;  %3873 = vmatpush1.bf16.msra.mxu1 %v5203_v1  ;;  %v5290_v0 = vld [vmem:[%s5770_s8 + $0xb40] ss:$16 sps:$4 sm:$0xff]   ;;  %v5293_v1 = vld [vmem:[%s5770_s8 + $0xb48] ss:$16 sps:$4 sm:$0xff]  }
 0x180   : > { %3546 = vmatprep.subr.bf16.mxu0 %v5208_v2  ;;  %3874 = vmatprep.subr.bf16.mxu1 %v5211_v3  ;;  %v5298_v2 = vld [vmem:[%s5770_s8 + $0xb64] ss:$16 sps:$4 sm:$0xff]   ;;  %v5301_v3 = vld [vmem:[%s5770_s8 + $0xb6c] ss:$16 sps:$4 sm:$0xff]  }
 0x183   : > { %3547 = vmatpush1.bf16.msra.mxu0 %v5206_v4  ;;  %3875 = vmatpush1.bf16.msra.mxu1 %v5209_v5  ;;  %v5296_v4 = vld [vmem:[%s5770_s8 + $0xb60] ss:$16 sps:$4 sm:$0xff]   ;;  %v5299_v5 = vld [vmem:[%s5770_s8 + $0xb68] ss:$16 sps:$4 sm:$0xff]  }
 0x184   : > { %3548 = vmatprep.subr.bf16.mxu0 %v5214_v6  ;;  %3876 = vmatprep.subr.bf16.mxu1 %v5217_v7  ;;  %v5304_v6 = vld [vmem:[%s5770_s8 + $0xb84] ss:$16 sps:$4 sm:$0xff]   ;;  %v5307_v7 = vld [vmem:[%s5770_s8 + $0xb8c] ss:$16 sps:$4 sm:$0xff]  }
 0x187   : > { %3549 = vmatpush1.bf16.msra.mxu0 %v5212_v8  ;;  %3877 = vmatpush1.bf16.msra.mxu1 %v5215_v9  ;;  %v5302_v8 = vld [vmem:[%s5770_s8 + $0xb80] ss:$16 sps:$4 sm:$0xff]   ;;  %v5305_v9 = vld [vmem:[%s5770_s8 + $0xb88] ss:$16 sps:$4 sm:$0xff]  }
 0x188   : > { %3550 = vmatprep.subr.bf16.mxu0 %v5220_v10  ;;  %3878 = vmatprep.subr.bf16.mxu1 %v5223_v11  ;;  %v5310_v10 = vld [vmem:[%s5770_s8 + $0xba4] ss:$16 sps:$4 sm:$0xff]   ;;  %v5313_v11 = vld [vmem:[%s5770_s8 + $0xbac] ss:$16 sps:$4 sm:$0xff]  }
 0x18b   : > { %3551 = vmatpush1.bf16.msra.mxu0 %v5218_v12  ;;  %3879 = vmatpush1.bf16.msra.mxu1 %v5221_v13  ;;  %v5308_v12 = vld [vmem:[%s5770_s8 + $0xba0] ss:$16 sps:$4 sm:$0xff]   ;;  %v5311_v13 = vld [vmem:[%s5770_s8 + $0xba8] ss:$16 sps:$4 sm:$0xff]  }
 0x18c   : > { %3552 = vmatprep.subr.bf16.mxu0 %v5226_v14  ;;  %3880 = vmatprep.subr.bf16.mxu1 %v5229_v15  ;;  %v5316_v14 = vld [vmem:[%s5770_s8 + $0xbc4] ss:$16 sps:$4 sm:$0xff]   ;;  %v5319_v15 = vld [vmem:[%s5770_s8 + $0xbcc] ss:$16 sps:$4 sm:$0xff]  }
 0x18f   : > { %3553 = vmatpush1.bf16.msra.mxu0 %v5224_v16  ;;  %3881 = vmatpush1.bf16.msra.mxu1 %v5227_v17  ;;  %v5314_v16 = vld [vmem:[%s5770_s8 + $0xbc0] ss:$16 sps:$4 sm:$0xff]   ;;  %v5317_v17 = vld [vmem:[%s5770_s8 + $0xbc8] ss:$16 sps:$4 sm:$0xff]  }
 0x190   : > { %3563 = vmatprep.subr.bf16.mxu0 %v5232_v18  ;;  %3891 = vmatprep.subr.bf16.mxu1 %v5235_v20  ;;  %v5322_v18 = vld [vmem:[%s5770_s8 + $0xbe4] ss:$16 sps:$4 sm:$0xff]   ;;  %v5320_v20 = vld [vmem:[%s5770_s8 + $0xbe0] ss:$16 sps:$4 sm:$0xff]  }
 0x192   : > { %3555 = vmatmul.mubr.bf16.vlgmr.msra.gmra.mrb[0].mxu0 %v256_v22  ;;  %3883 = vmatmul.mubr.bf16.vlgmr.msra.gmra.mrb[0].mxu1 %v256_v22  ;;  %v242_v22 = vld [vmem:[%s6362_s0 + $0x50] sm:$0xff] }
 0x193   : > { %3564 = vmatpush1.bf16.msra.mxu0 %v5230_v23  ;;  %3892 = vmatpush1.bf16.msra.mxu1 %v5233_v24  ;;  %v5328_v23 = vld [vmem:[%s5770_s8 + $0xc04] ss:$16 sps:$4 sm:$0xff]   ;;  %v5331_v24 = vld [vmem:[%s5770_s8 + $0xc0c] ss:$16 sps:$4 sm:$0xff]  }
 0x194   : > { %3565 = vmatprep.subr.bf16.mxu0 %v5238_v25  ;;  %3893 = vmatprep.subr.bf16.mxu1 %v5241_v26  ;;  %v258_v25 = vpack.c.bf16 %v242_v22, %v242_v22  ;;  %v245_v26 = vld [vmem:[%s6362_s0 + $0x68] sm:$0xff]  ;;  %v5418_v22 = vld [vmem:[%s5770_s8 + $0xde4] ss:$16 sps:$4 sm:$0xff]  }
 0x195   : > { %3595 = vmatprep.mubr.bf16.mxu0 %v259_v27  ;;  %3923 = vmatprep.mubr.bf16.mxu1 %v259_v27  ;;  %v5326_v27 = vld [vmem:[%s5770_s8 + $0xc00] ss:$16 sps:$4 sm:$0xff]  }
 0x197   : > { %3566 = vmatpush1.bf16.msra.mxu0 %v5236_v28  ;;  %3894 = vmatpush1.bf16.msra.mxu1 %v5239_v29  ;;  %v5329_v28 = vld [vmem:[%s5770_s8 + $0xc08] ss:$16 sps:$4 sm:$0xff]   ;;  %v5334_v29 = vld [vmem:[%s5770_s8 + $0xc24] ss:$16 sps:$4 sm:$0xff]  }
 0x198   : > { %3567 = vmatprep.subr.bf16.mxu0 %v5244_v30  ;;  %3895 = vmatprep.subr.bf16.mxu1 %v5247_v31  ;;  %v5337_v30 = vld [vmem:[%s5770_s8 + $0xc2c] ss:$16 sps:$4 sm:$0xff]   ;;  %v261_v31 = vpack.c.bf16 %v245_v26, %v245_v26  ;;  %v244_v26 = vld [vmem:[%s6362_s0 + $0x60] sm:$0xff] }
 0x19b   : > { %3568 = vmatpush1.bf16.msra.mxu0 %v5242_v32  ;;  %3896 = vmatpush1.bf16.msra.mxu1 %v5245_v33  ;;  %v5332_v32 = vld [vmem:[%s5770_s8 + $0xc20] ss:$16 sps:$4 sm:$0xff]   ;;  %v5335_v33 = vld [vmem:[%s5770_s8 + $0xc28] ss:$16 sps:$4 sm:$0xff]  }
 0x19c   : > { %3569 = vmatprep.subr.bf16.mxu0 %v5250_v34  ;;  %3897 = vmatprep.subr.bf16.mxu1 %v5253_v35  ;;  %v5340_v34 = vld [vmem:[%s5770_s8 + $0xc44] ss:$16 sps:$4 sm:$0xff]   ;;  %v5343_v35 = vld [vmem:[%s5770_s8 + $0xc4c] ss:$16 sps:$4 sm:$0xff]  }
 0x19f   : > { %3570 = vmatpush1.bf16.msra.mxu0 %v5248_v36  ;;  %3898 = vmatpush1.bf16.msra.mxu1 %v5251_v37  ;;  %v5338_v36 = vld [vmem:[%s5770_s8 + $0xc40] ss:$16 sps:$4 sm:$0xff]   ;;  %v5341_v37 = vld [vmem:[%s5770_s8 + $0xc48] ss:$16 sps:$4 sm:$0xff]  }
 0x1a0   : > { %3571 = vmatprep.subr.bf16.mxu0 %v5256_v38  ;;  %3899 = vmatprep.subr.bf16.mxu1 %v5259_v39  ;;  %v5346_v38 = vld [vmem:[%s5770_s8 + $0xc64] ss:$16 sps:$4 sm:$0xff]   ;;  %v5349_v39 = vld [vmem:[%s5770_s8 + $0xc6c] ss:$16 sps:$4 sm:$0xff]  }
 0x1a3   : > { %3572 = vmatpush1.bf16.msra.mxu0 %v5254_v40  ;;  %3900 = vmatpush1.bf16.msra.mxu1 %v5257_v41  ;;  %v5344_v40 = vld [vmem:[%s5770_s8 + $0xc60] ss:$16 sps:$4 sm:$0xff]   ;;  %v5347_v41 = vld [vmem:[%s5770_s8 + $0xc68] ss:$16 sps:$4 sm:$0xff]  }
 0x1a4   : > { %3573 = vmatprep.subr.bf16.mxu0 %v5262_v42  ;;  %3901 = vmatprep.subr.bf16.mxu1 %v5265_v43  ;;  %v5352_v42 = vld [vmem:[%s5770_s8 + $0xc84] ss:$16 sps:$4 sm:$0xff]   ;;  %v5355_v43 = vld [vmem:[%s5770_s8 + $0xc8c] ss:$16 sps:$4 sm:$0xff]  }
 0x1a7   : > { %3574 = vmatpush1.bf16.msra.mxu0 %v5260_v44  ;;  %3902 = vmatpush1.bf16.msra.mxu1 %v5263_v45  ;;  %v5350_v44 = vld [vmem:[%s5770_s8 + $0xc80] ss:$16 sps:$4 sm:$0xff]   ;;  %v5353_v45 = vld [vmem:[%s5770_s8 + $0xc88] ss:$16 sps:$4 sm:$0xff]  }
 0x1a8   : > { %3575 = vmatprep.subr.bf16.mxu0 %v5268_v46  ;;  %3903 = vmatprep.subr.bf16.mxu1 %v5271_v47  ;;  %v5358_v46 = vld [vmem:[%s5770_s8 + $0xca4] ss:$16 sps:$4 sm:$0xff]   ;;  %v5361_v47 = vld [vmem:[%s5770_s8 + $0xcac] ss:$16 sps:$4 sm:$0xff]  }
 0x1ab   : > { %3576 = vmatpush1.bf16.msra.mxu0 %v5266_v48  ;;  %3904 = vmatpush1.bf16.msra.mxu1 %v5269_v49  ;;  %v5356_v48 = vld [vmem:[%s5770_s8 + $0xca0] ss:$16 sps:$4 sm:$0xff]   ;;  %v5359_v49 = vld [vmem:[%s5770_s8 + $0xca8] ss:$16 sps:$4 sm:$0xff]  }
 0x1ac   : > { %3577 = vmatprep.subr.bf16.mxu0 %v5274_v50  ;;  %3905 = vmatprep.subr.bf16.mxu1 %v5277_v51  ;;  %v5364_v50 = vld [vmem:[%s5770_s8 + $0xcc4] ss:$16 sps:$4 sm:$0xff]   ;;  %v5367_v51 = vld [vmem:[%s5770_s8 + $0xccc] ss:$16 sps:$4 sm:$0xff]  }
 0x1af   : > { %3578 = vmatpush1.bf16.msra.mxu0 %v5272_v52  ;;  %3906 = vmatpush1.bf16.msra.mxu1 %v5275_v53  ;;  %v5362_v52 = vld [vmem:[%s5770_s8 + $0xcc0] ss:$16 sps:$4 sm:$0xff]   ;;  %v5365_v53 = vld [vmem:[%s5770_s8 + $0xcc8] ss:$16 sps:$4 sm:$0xff]  }
 0x1b0   : > { %3579 = vmatprep.subr.bf16.mxu0 %v5280_v54  ;;  %3907 = vmatprep.subr.bf16.mxu1 %v5283_v55  ;;  %v5370_v54 = vld [vmem:[%s5770_s8 + $0xce4] ss:$16 sps:$4 sm:$0xff]   ;;  %v5373_v55 = vld [vmem:[%s5770_s8 + $0xcec] ss:$16 sps:$4 sm:$0xff]  }
 0x1b3   : > { %3580 = vmatpush1.bf16.msra.mxu0 %v5278_v56  ;;  %3908 = vmatpush1.bf16.msra.mxu1 %v5281_v57  ;;  %v5368_v56 = vld [vmem:[%s5770_s8 + $0xce0] ss:$16 sps:$4 sm:$0xff]   ;;  %v5371_v57 = vld [vmem:[%s5770_s8 + $0xce8] ss:$16 sps:$4 sm:$0xff]  }
 0x1b4   : > { %3581 = vmatprep.subr.bf16.mxu0 %v5286_v58  ;;  %3909 = vmatprep.subr.bf16.mxu1 %v5289_v59  ;;  %v5376_v58 = vld [vmem:[%s5770_s8 + $0xd04] ss:$16 sps:$4 sm:$0xff]   ;;  %v5379_v59 = vld [vmem:[%s5770_s8 + $0xd0c] ss:$16 sps:$4 sm:$0xff]  }
 0x1b7   : > { %3582 = vmatpush1.bf16.msra.mxu0 %v5284_v60  ;;  %3910 = vmatpush1.bf16.msra.mxu1 %v5287_v61  ;;  %v5374_v60 = vld [vmem:[%s5770_s8 + $0xd00] ss:$16 sps:$4 sm:$0xff]   ;;  %v5377_v61 = vld [vmem:[%s5770_s8 + $0xd08] ss:$16 sps:$4 sm:$0xff]  }
 0x1b8   : > { %3583 = vmatprep.subr.bf16.mxu0 %v5292_v62  ;;  %3911 = vmatprep.subr.bf16.mxu1 %v5295_v63  ;;  %v5382_v62 = vld [vmem:[%s5770_s8 + $0xd24] ss:$16 sps:$4 sm:$0xff]   ;;  %v5385_v63 = vld [vmem:[%s5770_s8 + $0xd2c] ss:$16 sps:$4 sm:$0xff]  }
 0x1bb   : > { %3584 = vmatpush1.bf16.msra.mxu0 %v5290_v0  ;;  %3912 = vmatpush1.bf16.msra.mxu1 %v5293_v1  ;;  %v5380_v0 = vld [vmem:[%s5770_s8 + $0xd20] ss:$16 sps:$4 sm:$0xff]   ;;  %v5383_v1 = vld [vmem:[%s5770_s8 + $0xd28] ss:$16 sps:$4 sm:$0xff]  }
 0x1bc   : > { %3585 = vmatprep.subr.bf16.mxu0 %v5298_v2  ;;  %3913 = vmatprep.subr.bf16.mxu1 %v5301_v3  ;;  %v5388_v2 = vld [vmem:[%s5770_s8 + $0xd44] ss:$16 sps:$4 sm:$0xff]   ;;  %v5391_v3 = vld [vmem:[%s5770_s8 + $0xd4c] ss:$16 sps:$4 sm:$0xff]  }
 0x1bf   : > { %3586 = vmatpush1.bf16.msra.mxu0 %v5296_v4  ;;  %3914 = vmatpush1.bf16.msra.mxu1 %v5299_v5  ;;  %v5386_v4 = vld [vmem:[%s5770_s8 + $0xd40] ss:$16 sps:$4 sm:$0xff]   ;;  %v5389_v5 = vld [vmem:[%s5770_s8 + $0xd48] ss:$16 sps:$4 sm:$0xff]  }
 0x1c0   : > { %3587 = vmatprep.subr.bf16.mxu0 %v5304_v6  ;;  %3915 = vmatprep.subr.bf16.mxu1 %v5307_v7  ;;  %v5394_v6 = vld [vmem:[%s5770_s8 + $0xd64] ss:$16 sps:$4 sm:$0xff]   ;;  %v5397_v7 = vld [vmem:[%s5770_s8 + $0xd6c] ss:$16 sps:$4 sm:$0xff]  }
 0x1c3   : > { %3588 = vmatpush1.bf16.msra.mxu0 %v5302_v8  ;;  %3916 = vmatpush1.bf16.msra.mxu1 %v5305_v9  ;;  %v5392_v8 = vld [vmem:[%s5770_s8 + $0xd60] ss:$16 sps:$4 sm:$0xff]   ;;  %v5395_v9 = vld [vmem:[%s5770_s8 + $0xd68] ss:$16 sps:$4 sm:$0xff]  }
 0x1c4   : > { %3589 = vmatprep.subr.bf16.mxu0 %v5310_v10  ;;  %3917 = vmatprep.subr.bf16.mxu1 %v5313_v11  ;;  %v5400_v10 = vld [vmem:[%s5770_s8 + $0xd84] ss:$16 sps:$4 sm:$0xff]   ;;  %v5403_v11 = vld [vmem:[%s5770_s8 + $0xd8c] ss:$16 sps:$4 sm:$0xff]  }
 0x1c7   : > { %3590 = vmatpush1.bf16.msra.mxu0 %v5308_v12  ;;  %3918 = vmatpush1.bf16.msra.mxu1 %v5311_v13  ;;  %v5398_v12 = vld [vmem:[%s5770_s8 + $0xd80] ss:$16 sps:$4 sm:$0xff]   ;;  %v5401_v13 = vld [vmem:[%s5770_s8 + $0xd88] ss:$16 sps:$4 sm:$0xff]  }
 0x1c8   : > { %3591 = vmatprep.subr.bf16.mxu0 %v5316_v14  ;;  %3919 = vmatprep.subr.bf16.mxu1 %v5319_v15  ;;  %v5406_v14 = vld [vmem:[%s5770_s8 + $0xda4] ss:$16 sps:$4 sm:$0xff]   ;;  %v5409_v15 = vld [vmem:[%s5770_s8 + $0xdac] ss:$16 sps:$4 sm:$0xff]  }
 0x1cb   : > { %3592 = vmatpush1.bf16.msra.mxu0 %v5314_v16  ;;  %3920 = vmatpush1.bf16.msra.mxu1 %v5317_v17  ;;  %v5404_v16 = vld [vmem:[%s5770_s8 + $0xda0] ss:$16 sps:$4 sm:$0xff]   ;;  %v5407_v17 = vld [vmem:[%s5770_s8 + $0xda8] ss:$16 sps:$4 sm:$0xff]  }
 0x1cc   : > { %3593 = vmatprep.subr.bf16.mxu0 %v5322_v18  ;;  %3921 = vmatprep.subr.bf16.mxu1 %v5325_v19  ;;  %v5412_v18 = vld [vmem:[%s5770_s8 + $0xdc4] ss:$16 sps:$4 sm:$0xff]   ;;  %v5415_v19 = vld [vmem:[%s5770_s8 + $0xdcc] ss:$16 sps:$4 sm:$0xff]  }
 0x1cf   : > { %3594 = vmatpush1.bf16.msra.mxu0 %v5320_v20  ;;  %3922 = vmatpush1.bf16.msra.mxu1 %v5323_v21  ;;  %v5410_v20 = vld [vmem:[%s5770_s8 + $0xdc0] ss:$16 sps:$4 sm:$0xff]   ;;  %v5413_v21 = vld [vmem:[%s5770_s8 + $0xdc8] ss:$16 sps:$4 sm:$0xff]  }
 0x1d0   : > { %3604 = vmatprep.subr.bf16.mxu0 %v5328_v23  ;;  %3932 = vmatprep.subr.bf16.mxu1 %v5331_v24  ;;  %v5421_v23 = vld [vmem:[%s5770_s8 + $0xdec] ss:$16 sps:$4 sm:$0xff]   ;;  %v5416_v24 = vld [vmem:[%s5770_s8 + $0xde0] ss:$16 sps:$4 sm:$0xff]  }
 0x1d2   : > { %3596 = vmatmul.mubr.bf16.vlgmr.msra.gmra.mrb[0].mxu0 %v258_v25  ;;  %3924 = vmatmul.mubr.bf16.vlgmr.msra.gmra.mrb[0].mxu1 %v258_v25  ;;  %v5419_v25 = vld [vmem:[%s5770_s8 + $0xde8] ss:$16 sps:$4 sm:$0xff]  }
 0x1d3   : > { %3605 = vmatpush1.bf16.msra.mxu0 %v5326_v27  ;;  %3933 = vmatpush1.bf16.msra.mxu1 %v5329_v28  ;;  %v5424_v27 = vld [vmem:[%s5770_s8 + $0xe04] ss:$16 sps:$4 sm:$0xff]   ;;  %v5427_v28 = vld [vmem:[%s5770_s8 + $0xe0c] ss:$16 sps:$4 sm:$0xff]  }
 0x1d4   : > { %3606 = vmatprep.subr.bf16.mxu0 %v5334_v29  ;;  %3934 = vmatprep.subr.bf16.mxu1 %v5337_v30  ;;  %v260_v29 = vpack.c.bf16 %v244_v26, %v244_v26  ;;  %v247_v30 = vld [vmem:[%s6362_s0 + $0x78] sm:$0xff]  ;;  %v5514_v26 = vld [vmem:[%s5770_s8 + $0xfe4] ss:$16 sps:$4 sm:$0xff]  }
 0x1d5   : > { %3636 = vmatprep.mubr.bf16.mxu0 %v261_v31  ;;  %3964 = vmatprep.mubr.bf16.mxu1 %v261_v31  ;;  %v5422_v31 = vld [vmem:[%s5770_s8 + $0xe00] ss:$16 sps:$4 sm:$0xff]  }
 0x1d7   : > { %3607 = vmatpush1.bf16.msra.mxu0 %v5332_v32  ;;  %3935 = vmatpush1.bf16.msra.mxu1 %v5335_v33  ;;  %v5425_v32 = vld [vmem:[%s5770_s8 + $0xe08] ss:$16 sps:$4 sm:$0xff]   ;;  %v5430_v33 = vld [vmem:[%s5770_s8 + $0xe24] ss:$16 sps:$4 sm:$0xff]  }
 0x1d8   : > { %3608 = vmatprep.subr.bf16.mxu0 %v5340_v34  ;;  %3936 = vmatprep.subr.bf16.mxu1 %v5343_v35  ;;  %v5433_v34 = vld [vmem:[%s5770_s8 + $0xe2c] ss:$16 sps:$4 sm:$0xff]   ;;  %v263_v35 = vpack.c.bf16 %v247_v30, %v247_v30  ;;  %v246_v30 = vld [vmem:[%s6362_s0 + $0x70] sm:$0xff] }
 0x1db   : > { %3609 = vmatpush1.bf16.msra.mxu0 %v5338_v36  ;;  %3937 = vmatpush1.bf16.msra.mxu1 %v5341_v37  ;;  %v5428_v36 = vld [vmem:[%s5770_s8 + $0xe20] ss:$16 sps:$4 sm:$0xff]   ;;  %v5431_v37 = vld [vmem:[%s5770_s8 + $0xe28] ss:$16 sps:$4 sm:$0xff]  }
 0x1dc   : > { %3610 = vmatprep.subr.bf16.mxu0 %v5346_v38  ;;  %3938 = vmatprep.subr.bf16.mxu1 %v5349_v39  ;;  %v5436_v38 = vld [vmem:[%s5770_s8 + $0xe44] ss:$16 sps:$4 sm:$0xff]   ;;  %v5439_v39 = vld [vmem:[%s5770_s8 + $0xe4c] ss:$16 sps:$4 sm:$0xff]  }
 0x1df   : > { %3611 = vmatpush1.bf16.msra.mxu0 %v5344_v40  ;;  %3939 = vmatpush1.bf16.msra.mxu1 %v5347_v41  ;;  %v5434_v40 = vld [vmem:[%s5770_s8 + $0xe40] ss:$16 sps:$4 sm:$0xff]   ;;  %v5437_v41 = vld [vmem:[%s5770_s8 + $0xe48] ss:$16 sps:$4 sm:$0xff]  }
 0x1e0   : > { %3612 = vmatprep.subr.bf16.mxu0 %v5352_v42  ;;  %3940 = vmatprep.subr.bf16.mxu1 %v5355_v43  ;;  %v5442_v42 = vld [vmem:[%s5770_s8 + $0xe64] ss:$16 sps:$4 sm:$0xff]   ;;  %v5445_v43 = vld [vmem:[%s5770_s8 + $0xe6c] ss:$16 sps:$4 sm:$0xff]  }
 0x1e3   : > { %3613 = vmatpush1.bf16.msra.mxu0 %v5350_v44  ;;  %3941 = vmatpush1.bf16.msra.mxu1 %v5353_v45  ;;  %v5440_v44 = vld [vmem:[%s5770_s8 + $0xe60] ss:$16 sps:$4 sm:$0xff]   ;;  %v5443_v45 = vld [vmem:[%s5770_s8 + $0xe68] ss:$16 sps:$4 sm:$0xff]  }
 0x1e4   : > { %3614 = vmatprep.subr.bf16.mxu0 %v5358_v46  ;;  %3942 = vmatprep.subr.bf16.mxu1 %v5361_v47  ;;  %v5448_v46 = vld [vmem:[%s5770_s8 + $0xe84] ss:$16 sps:$4 sm:$0xff]   ;;  %v5451_v47 = vld [vmem:[%s5770_s8 + $0xe8c] ss:$16 sps:$4 sm:$0xff]  }
 0x1e7   : > { %3615 = vmatpush1.bf16.msra.mxu0 %v5356_v48  ;;  %3943 = vmatpush1.bf16.msra.mxu1 %v5359_v49  ;;  %v5446_v48 = vld [vmem:[%s5770_s8 + $0xe80] ss:$16 sps:$4 sm:$0xff]   ;;  %v5449_v49 = vld [vmem:[%s5770_s8 + $0xe88] ss:$16 sps:$4 sm:$0xff]  }
 0x1e8   : > { %3616 = vmatprep.subr.bf16.mxu0 %v5364_v50  ;;  %3944 = vmatprep.subr.bf16.mxu1 %v5367_v51  ;;  %v5454_v50 = vld [vmem:[%s5770_s8 + $0xea4] ss:$16 sps:$4 sm:$0xff]   ;;  %v5457_v51 = vld [vmem:[%s5770_s8 + $0xeac] ss:$16 sps:$4 sm:$0xff]  }
 0x1eb   : > { %3617 = vmatpush1.bf16.msra.mxu0 %v5362_v52  ;;  %3945 = vmatpush1.bf16.msra.mxu1 %v5365_v53  ;;  %v5452_v52 = vld [vmem:[%s5770_s8 + $0xea0] ss:$16 sps:$4 sm:$0xff]   ;;  %v5455_v53 = vld [vmem:[%s5770_s8 + $0xea8] ss:$16 sps:$4 sm:$0xff]  }
 0x1ec   : > { %3618 = vmatprep.subr.bf16.mxu0 %v5370_v54  ;;  %3946 = vmatprep.subr.bf16.mxu1 %v5373_v55  ;;  %v5460_v54 = vld [vmem:[%s5770_s8 + $0xec4] ss:$16 sps:$4 sm:$0xff]   ;;  %v5463_v55 = vld [vmem:[%s5770_s8 + $0xecc] ss:$16 sps:$4 sm:$0xff]  }
 0x1ef   : > { %3619 = vmatpush1.bf16.msra.mxu0 %v5368_v56  ;;  %3947 = vmatpush1.bf16.msra.mxu1 %v5371_v57  ;;  %v5458_v56 = vld [vmem:[%s5770_s8 + $0xec0] ss:$16 sps:$4 sm:$0xff]   ;;  %v5461_v57 = vld [vmem:[%s5770_s8 + $0xec8] ss:$16 sps:$4 sm:$0xff]  }
 0x1f0   : > { %3620 = vmatprep.subr.bf16.mxu0 %v5376_v58  ;;  %3948 = vmatprep.subr.bf16.mxu1 %v5379_v59  ;;  %v5466_v58 = vld [vmem:[%s5770_s8 + $0xee4] ss:$16 sps:$4 sm:$0xff]   ;;  %v5469_v59 = vld [vmem:[%s5770_s8 + $0xeec] ss:$16 sps:$4 sm:$0xff]  }
 0x1f3   : > { %3621 = vmatpush1.bf16.msra.mxu0 %v5374_v60  ;;  %3949 = vmatpush1.bf16.msra.mxu1 %v5377_v61  ;;  %v5464_v60 = vld [vmem:[%s5770_s8 + $0xee0] ss:$16 sps:$4 sm:$0xff]   ;;  %v5467_v61 = vld [vmem:[%s5770_s8 + $0xee8] ss:$16 sps:$4 sm:$0xff]  }
 0x1f4   : > { %3622 = vmatprep.subr.bf16.mxu0 %v5382_v62  ;;  %3950 = vmatprep.subr.bf16.mxu1 %v5385_v63  ;;  %v5472_v62 = vld [vmem:[%s5770_s8 + $0xf04] ss:$16 sps:$4 sm:$0xff]   ;;  %v5475_v63 = vld [vmem:[%s5770_s8 + $0xf0c] ss:$16 sps:$4 sm:$0xff]  }
 0x1f7   : > { %3623 = vmatpush1.bf16.msra.mxu0 %v5380_v0  ;;  %3951 = vmatpush1.bf16.msra.mxu1 %v5383_v1  ;;  %v5470_v0 = vld [vmem:[%s5770_s8 + $0xf00] ss:$16 sps:$4 sm:$0xff]   ;;  %v5473_v1 = vld [vmem:[%s5770_s8 + $0xf08] ss:$16 sps:$4 sm:$0xff]  }
 0x1f8   : > { %3624 = vmatprep.subr.bf16.mxu0 %v5388_v2  ;;  %3952 = vmatprep.subr.bf16.mxu1 %v5391_v3  ;;  %v5478_v2 = vld [vmem:[%s5770_s8 + $0xf24] ss:$16 sps:$4 sm:$0xff]   ;;  %v5481_v3 = vld [vmem:[%s5770_s8 + $0xf2c] ss:$16 sps:$4 sm:$0xff]  }
 0x1fb   : > { %3625 = vmatpush1.bf16.msra.mxu0 %v5386_v4  ;;  %3953 = vmatpush1.bf16.msra.mxu1 %v5389_v5  ;;  %v5476_v4 = vld [vmem:[%s5770_s8 + $0xf20] ss:$16 sps:$4 sm:$0xff]   ;;  %v5479_v5 = vld [vmem:[%s5770_s8 + $0xf28] ss:$16 sps:$4 sm:$0xff]  }
 0x1fc   : > { %3626 = vmatprep.subr.bf16.mxu0 %v5394_v6  ;;  %3954 = vmatprep.subr.bf16.mxu1 %v5397_v7  ;;  %v5484_v6 = vld [vmem:[%s5770_s8 + $0xf44] ss:$16 sps:$4 sm:$0xff]   ;;  %v5487_v7 = vld [vmem:[%s5770_s8 + $0xf4c] ss:$16 sps:$4 sm:$0xff]  }
 0x1ff   : > { %3627 = vmatpush1.bf16.msra.mxu0 %v5392_v8  ;;  %3955 = vmatpush1.bf16.msra.mxu1 %v5395_v9  ;;  %v5482_v8 = vld [vmem:[%s5770_s8 + $0xf40] ss:$16 sps:$4 sm:$0xff]   ;;  %v5485_v9 = vld [vmem:[%s5770_s8 + $0xf48] ss:$16 sps:$4 sm:$0xff]  }
 0x200   : > { %3628 = vmatprep.subr.bf16.mxu0 %v5400_v10  ;;  %3956 = vmatprep.subr.bf16.mxu1 %v5403_v11  ;;  %v5490_v10 = vld [vmem:[%s5770_s8 + $0xf64] ss:$16 sps:$4 sm:$0xff]   ;;  %v5493_v11 = vld [vmem:[%s5770_s8 + $0xf6c] ss:$16 sps:$4 sm:$0xff]  }
 0x203   : > { %3629 = vmatpush1.bf16.msra.mxu0 %v5398_v12  ;;  %3957 = vmatpush1.bf16.msra.mxu1 %v5401_v13  ;;  %v5488_v12 = vld [vmem:[%s5770_s8 + $0xf60] ss:$16 sps:$4 sm:$0xff]   ;;  %v5491_v13 = vld [vmem:[%s5770_s8 + $0xf68] ss:$16 sps:$4 sm:$0xff]  }
 0x204   : > { %3630 = vmatprep.subr.bf16.mxu0 %v5406_v14  ;;  %3958 = vmatprep.subr.bf16.mxu1 %v5409_v15  ;;  %v5496_v14 = vld [vmem:[%s5770_s8 + $0xf84] ss:$16 sps:$4 sm:$0xff]   ;;  %v5499_v15 = vld [vmem:[%s5770_s8 + $0xf8c] ss:$16 sps:$4 sm:$0xff]  }
 0x207   : > { %3631 = vmatpush1.bf16.msra.mxu0 %v5404_v16  ;;  %3959 = vmatpush1.bf16.msra.mxu1 %v5407_v17  ;;  %v5494_v16 = vld [vmem:[%s5770_s8 + $0xf80] ss:$16 sps:$4 sm:$0xff]   ;;  %v5497_v17 = vld [vmem:[%s5770_s8 + $0xf88] ss:$16 sps:$4 sm:$0xff]  }
 0x208   : > { %3632 = vmatprep.subr.bf16.mxu0 %v5412_v18  ;;  %3960 = vmatprep.subr.bf16.mxu1 %v5415_v19  ;;  %v5502_v18 = vld [vmem:[%s5770_s8 + $0xfa4] ss:$16 sps:$4 sm:$0xff]   ;;  %v5505_v19 = vld [vmem:[%s5770_s8 + $0xfac] ss:$16 sps:$4 sm:$0xff]  }
 0x20b   : > { %3633 = vmatpush1.bf16.msra.mxu0 %v5410_v20  ;;  %3961 = vmatpush1.bf16.msra.mxu1 %v5413_v21  ;;  %v5500_v20 = vld [vmem:[%s5770_s8 + $0xfa0] ss:$16 sps:$4 sm:$0xff]   ;;  %v5503_v21 = vld [vmem:[%s5770_s8 + $0xfa8] ss:$16 sps:$4 sm:$0xff]  }
 0x20c   : > { %3634 = vmatprep.subr.bf16.mxu0 %v5418_v22  ;;  %3962 = vmatprep.subr.bf16.mxu1 %v5421_v23  ;;  %v5508_v22 = vld [vmem:[%s5770_s8 + $0xfc4] ss:$16 sps:$4 sm:$0xff]   ;;  %v5511_v23 = vld [vmem:[%s5770_s8 + $0xfcc] ss:$16 sps:$4 sm:$0xff]  }
 0x20f   : > { %3635 = vmatpush1.bf16.msra.mxu0 %v5416_v24  ;;  %3963 = vmatpush1.bf16.msra.mxu1 %v5419_v25  ;;  %v5506_v24 = vld [vmem:[%s5770_s8 + $0xfc0] ss:$16 sps:$4 sm:$0xff]   ;;  %v5509_v25 = vld [vmem:[%s5770_s8 + $0xfc8] ss:$16 sps:$4 sm:$0xff]  }
 0x210   : > { %3645 = vmatprep.subr.bf16.mxu0 %v5424_v27  ;;  %3973 = vmatprep.subr.bf16.mxu1 %v5427_v28  ;;  %v5517_v27 = vld [vmem:[%s5770_s8 + $0xfec] ss:$16 sps:$4 sm:$0xff]   ;;  %v5512_v28 = vld [vmem:[%s5770_s8 + $0xfe0] ss:$16 sps:$4 sm:$0xff]  }
 0x212   : > { %3637 = vmatmul.mubr.bf16.vlgmr.msra.gmra.mrb[0].mxu0 %v260_v29  ;;  %3965 = vmatmul.mubr.bf16.vlgmr.msra.gmra.mrb[0].mxu1 %v260_v29  ;;  %v5515_v29 = vld [vmem:[%s5770_s8 + $0xfe8] ss:$16 sps:$4 sm:$0xff]   ;;  %s4125_s8 = sshll.u32 %s4112_s16, 2 }
 0x213   : > { %3646 = vmatpush1.bf16.msra.mxu0 %v5422_v31  ;;  %3974 = vmatpush1.bf16.msra.mxu1 %v5425_v32  ;;  %v262_v31 = vpack.c.bf16 %v246_v30, %v246_v30  ;;  %v778_v32 = vlaneseq  ;;  %p227_p7 = scmp.lt.s32.totalorder %s4125_s8, 15 }
 0x214   : > { %3647 = vmatprep.subr.bf16.mxu0 %v5430_v33  ;;  %3975 = vmatprep.subr.bf16.mxu1 %v5433_v34 }
 0x215   : > { %3677 = vmatprep.mubr.bf16.mxu0 %v263_v35  ;;  %4005 = vmatprep.mubr.bf16.mxu1 %v263_v35  ;;  %v779_v33 = vshrl.u32 %v778_v32, 7  ;;  %s6377_s8 = smov (!%p227_p7, %s4125_s8), 15 }
 0x216   : > { %s4126_s15 = sshll.u32 %s6377_s8, 3 }
 0x217   : > { %3648 = vmatpush1.bf16.msra.mxu0 %v5428_v36  ;;  %3976 = vmatpush1.bf16.msra.mxu1 %v5431_v37  ;;  %v780_v34 = vsub.s32 0, %v779_v33  ;;  %v788_v35 = vsub.s32 2, %v779_v33  ;;  %v776_v36 = vld [vmem:[%s5776_s29] sm:$0xf]  ;;  %v784_v37 = vsub.s32 1, %v779_v33  ;;  %s230_s25 = scalar_lea.vmem %s6365_s3, %s4126_s15 }
 0x218   : > { %3649 = vmatprep.subr.bf16.mxu0 %v5436_v38  ;;  %3977 = vmatprep.subr.bf16.mxu1 %v5439_v39  ;;  %v792_v38 = vsub.s32 3, %v779_v33 }
 0x219   : > { %v781_v39 = vrot.slane %v776_v36, %v780_v34 }
 0x21b   : > { %3650 = vmatpush1.bf16.msra.mxu0 %v5434_v40  ;;  %3978 = vmatpush1.bf16.msra.mxu1 %v5437_v41  ;;  %v789_v40 = vrot.slane %v776_v36, %v788_v35  ;;  %v785_v41 = vrot.slane %v776_v36, %v784_v37 }
 0x21c   : > { %3651 = vmatprep.subr.bf16.mxu0 %v5442_v42  ;;  %3979 = vmatprep.subr.bf16.mxu1 %v5445_v43  ;;  %v793_v42 = vrot.slane %v776_v36, %v792_v38 }
 0x21f   : > { %3652 = vmatpush1.bf16.msra.mxu0 %v5440_v44  ;;  %3980 = vmatpush1.bf16.msra.mxu1 %v5443_v45 }
 0x220   : > { %3653 = vmatprep.subr.bf16.mxu0 %v5448_v46  ;;  %3981 = vmatprep.subr.bf16.mxu1 %v5451_v47 }
 0x223   : > { %3654 = vmatpush1.bf16.msra.mxu0 %v5446_v48  ;;  %3982 = vmatpush1.bf16.msra.mxu1 %v5449_v49 }
 0x224   : > { %3655 = vmatprep.subr.bf16.mxu0 %v5454_v50  ;;  %3983 = vmatprep.subr.bf16.mxu1 %v5457_v51 }
 0x227   : > { %3656 = vmatpush1.bf16.msra.mxu0 %v5452_v52  ;;  %3984 = vmatpush1.bf16.msra.mxu1 %v5455_v53 }
 0x228   : > { %3657 = vmatprep.subr.bf16.mxu0 %v5460_v54  ;;  %3985 = vmatprep.subr.bf16.mxu1 %v5463_v55 }
 0x22b   : > { %3658 = vmatpush1.bf16.msra.mxu0 %v5458_v56  ;;  %3986 = vmatpush1.bf16.msra.mxu1 %v5461_v57 }
 0x22c   : > { %3659 = vmatprep.subr.bf16.mxu0 %v5466_v58  ;;  %3987 = vmatprep.subr.bf16.mxu1 %v5469_v59 }
 0x22f   : > { %3660 = vmatpush1.bf16.msra.mxu0 %v5464_v60  ;;  %3988 = vmatpush1.bf16.msra.mxu1 %v5467_v61 }
 0x230   : > { %3661 = vmatprep.subr.bf16.mxu0 %v5472_v62  ;;  %3989 = vmatprep.subr.bf16.mxu1 %v5475_v63 }
 0x233   : > { %3662 = vmatpush1.bf16.msra.mxu0 %v5470_v0  ;;  %3990 = vmatpush1.bf16.msra.mxu1 %v5473_v1 }
 0x234   : > { %3663 = vmatprep.subr.bf16.mxu0 %v5478_v2  ;;  %3991 = vmatprep.subr.bf16.mxu1 %v5481_v3 }
 0x237   : > { %3664 = vmatpush1.bf16.msra.mxu0 %v5476_v4  ;;  %3992 = vmatpush1.bf16.msra.mxu1 %v5479_v5 }
 0x238   : > { %3665 = vmatprep.subr.bf16.mxu0 %v5484_v6  ;;  %3993 = vmatprep.subr.bf16.mxu1 %v5487_v7 }
 0x23b   : > { %3666 = vmatpush1.bf16.msra.mxu0 %v5482_v8  ;;  %3994 = vmatpush1.bf16.msra.mxu1 %v5485_v9 }
 0x23c   : > { %3667 = vmatprep.subr.bf16.mxu0 %v5490_v10  ;;  %3995 = vmatprep.subr.bf16.mxu1 %v5493_v11 }
 0x23f   : > { %3668 = vmatpush1.bf16.msra.mxu0 %v5488_v12  ;;  %3996 = vmatpush1.bf16.msra.mxu1 %v5491_v13 }
 0x240   : > { %3669 = vmatprep.subr.bf16.mxu0 %v5496_v14  ;;  %3997 = vmatprep.subr.bf16.mxu1 %v5499_v15 }
 0x243   : > { %3670 = vmatpush1.bf16.msra.mxu0 %v5494_v16  ;;  %3998 = vmatpush1.bf16.msra.mxu1 %v5497_v17 }
 0x244   : > { %3671 = vmatprep.subr.bf16.mxu0 %v5502_v18  ;;  %3999 = vmatprep.subr.bf16.mxu1 %v5505_v19 }
 0x247   : > { %3672 = vmatpush1.bf16.msra.mxu0 %v5500_v20  ;;  %4000 = vmatpush1.bf16.msra.mxu1 %v5503_v21 }
 0x248   : > { %3673 = vmatprep.subr.bf16.mxu0 %v5508_v22  ;;  %4001 = vmatprep.subr.bf16.mxu1 %v5511_v23 }
 0x24b   : > { %3674 = vmatpush1.bf16.msra.mxu0 %v5506_v24  ;;  %4002 = vmatpush1.bf16.msra.mxu1 %v5509_v25 }
 0x24c   : > { %3675 = vmatprep.subr.bf16.mxu0 %v5514_v26  ;;  %4003 = vmatprep.subr.bf16.mxu1 %v5517_v27 }
 0x24f   : > { %3676 = vmatpush1.bf16.msra.mxu0 %v5512_v28  ;;  %4004 = vmatpush1.bf16.msra.mxu1 %v5515_v29 }
 0x252   : > { %3678 = vmatmul.mubr.bf16.vlgmr.msra.gmra.mrb[0].mxu0 %v262_v31  ;;  %4006 = vmatmul.mubr.bf16.vlgmr.msra.gmra.mrb[0].mxu1 %v262_v31 }
 0x325   : > { %v3679_v43 = vpop.f32.mrb[0].mxu0  ;;  %v4007_v44 = vpop.f32.mrb[0].mxu1 }
 0x326   : > { %v4643_v45 = vadd.f32 %v3679_v43, %v781_v39  ;;  %v4645_v46 = vadd.f32 %v4007_v44, %v789_v40  ;;  %v3681_v47 = vpop.f32.mrb[1].mxu0  ;;  %v4009_v48 = vpop.f32.mrb[1].mxu1 }
 0x327   : > { %v4644_v49 = vadd.f32 %v3681_v47, %v785_v41  ;;  %v4646_v50 = vadd.f32 %v4009_v48, %v793_v42  ;;  %v3683_v51 = vpop.f32.mrb[2].mxu0  ;;  %v4011_v52 = vpop.f32.mrb[2].mxu1 }
 0x328   : > { %5518 = vtanh.f32 %v4643_v45  ;;  %v3684_v53 = vpop.f32.mrb[3].mxu0  ;;  %v4012_v54 = vpop.f32.mrb[3].mxu1 }
 0x329   : > { %5520 = vtanh.f32 %v4645_v46 }
 0x32a   : > { %5522 = vtanh.f32 %v4644_v49 }
 0x32b   : > { %5524 = vtanh.f32 %v4646_v50 }
 0x332   : > { %v5519_v55 = vpop.eup %5518 }
 0x333   : > { %v5521_v56 = vpop.eup %5520  ;;  %4018 = vst [vmem:[%s230_s25] sm:$0xff] %v5519_v55 }
 0x334   : > { %v5523_v57 = vpop.eup %5522  ;;  %4020 = vst [vmem:[%s230_s25 + $0x10] sm:$0xff] %v5521_v56 }
 0x335   : > { %v5525_v58 = vpop.eup %5524  ;;  %4019 = vst [vmem:[%s230_s25 + $0x8] sm:$0xff] %v5523_v57 }
 0x336   : > { %4021 = vst [vmem:[%s230_s25 + $0x18] sm:$0xff] %v5525_v58 }
 0x337 PF: > { %p16_p8 = scmp.ge.s32.totalorder %s5671_s17, 6   ;;  %s6372_s12 = smov %s5616_s13 }
 0x338   : > { %s6373_s13 = smov %s5620_s14  ;;  %s6374_s14 = smov %s5681_s20 }
 0x339   : > { %s6375_s15 = smov %s5671_s17  ;;  %18 = sbr.rel (!%p16_p8) target bundleno = 5 (0x5), region = 85 }
 0x340   :  { %4044 = vsyncpa [#allocation3], 1 }
 0x341   :  { %4046 = vsyncpa [#allocation3 + $0x1], 1 }
 0x342   :  { %4047 = vsyncpa [#allocation5], 1 }
 0x343   :  { %4049 = vsyncpa [#allocation5 + $0x1], 1 }

</bundles_post_ra>
